<compile_context>
chip_gen: v7x
topology: tpu7x:2x2x1
jax: 0.10.0
libtpu: 0.0.40
codegen_flags: <defaults>
</compile_context>

<pallas_src>
import jax
import jax.numpy as jnp
from jax.experimental import pallas as pl
from jax.experimental.pallas import tpu as pltpu

KSIZE = 7
PAD = KSIZE // 2          # 3
NUM_ACC = 4               # partial accumulators (one per VALU slot)


def _round_up(x, m):
    return (x + m - 1) // m * m


def _pick_block_n(n, slot):
    """Largest divisor of n with packed width <= 512 lanes and >= 2 grid steps."""
    best = 1
    for bn in range(1, n + 1):
        if n % bn or bn * slot > 512:
            continue
        if n >= 2 and n // bn < 2:      # keep the grid splittable on v7x (2 TCs)
            continue
        best = max(best, bn)
    return best


def _make_kernel(block_n, c_in, h, w, wacc, wpad):
    slot = w + 2 * PAD                   # per-image lane slot (data + halo)
    n_taps = 2 * KSIZE * KSIZE

    def kernel(w_ref, x_ref, o_ref, padw_ref):
        # w_ref    : SMEM (98,)                      flattened conv weights [c][kh][kw]
        # x_ref    : VMEM (block_n, C, H, W)         input batch tile (NCHW)
        # o_ref    : VMEM (1, H, Wacc)               lane-packed sigmoid(conv) slab
        # padw_ref : VMEM (2, H+2*PAD, Wpad)         zero-padded, lane-packed features

        # Hoist the 98 scalar weight reads: once per grid step, not per image.
        wv = [w_ref[k] for k in range(n_taps)]

        # Clear the scratch each step (gutters / halos must be zero; safe under
        # "parallel" semantics because every step re-initializes its own state).
        padw_ref[...] = jnp.zeros((2, h + 2 * PAD, wpad), jnp.float32)

        # Per image: channel mean / max one plane at a time, then drop the two
        # feature planes into that image's lane slot (interior rows only).
        # Static loop: the expensive 98-MAC pass below no longer scales with
        # block_n, so the unrolled per-image code here stays small.
        for b in range(block_n):
            p = x_ref[b, 0].astype(jnp.float32)
            acc_sum = p
            acc_max = p
            for ch in range(1, c_in):
                p = x_ref[b, ch].astype(jnp.float32)
                acc_sum = acc_sum + p
                acc_max = jnp.maximum(acc_max, p)
            base = b * slot + PAD
            padw_ref[0, PAD:PAD + h, base:base + w] = acc_sum * (1.0 / c_in)
            padw_ref[1, PAD:PAD + h, base:base + w] = acc_max

        # 7x7 conv over the packed planes: 98 full-width shifted MACs feeding
        # four round-robin partial accumulators.  Tap (kh, kw) contributes
        # w[c,kh,kw] * padw[c, i+kh, lane+kw]  ->  out at (i, lane).
        accs = [jnp.zeros((h, wacc), jnp.float32) for _ in range(NUM_ACC)]
        i = 0
        for ch in range(2):
            for kh in range(KSIZE):
                for kw in range(KSIZE):
                    tap = padw_ref[ch, kh:kh + h, kw:kw + wacc]
                    k = ch * KSIZE * KSIZE + kh * KSIZE + kw
                    accs[i % NUM_ACC] = accs[i % NUM_ACC] + wv[k] * tap
                    i += 1
        conv = (accs[0] + accs[1]) + (accs[2] + accs[3])

        # Single lane-dense (Wacc % 128 == 0) store per grid step.
        o_ref[0] = jax.nn.sigmoid(conv).astype(o_ref.dtype)

    return kernel


def spatial_attention(x, w, *, block_n=None):
    """x: (N, C, H, W), w: (1, 2, 7, 7) -> sigmoid(conv2d(cat(mean_c, max_c)))."""
    n, c, h, width = x.shape
    assert w.shape == (1, 2, KSIZE, KSIZE), w.shape

    slot = width + 2 * PAD
    if block_n is None:
        block_n = _pick_block_n(n, slot)
    assert n % block_n == 0, (n, block_n)
    nb = n // block_n

    wacc = _round_up(block_n * slot, 128)   # lane-dense accumulator / output width
    wpad = wacc + 128                        # + room for the kw in 0..6 tap shifts

    w_flat = w.reshape(-1).astype(jnp.float32)
    kernel = _make_kernel(block_n, c, h, width, wacc, wpad)

    # VMEM budget: double-buffered in/out blocks + scratch, 2x slack,
    # capped at 48 MiB so it also leaves headroom on v7x's 64 MiB VMEM.
    itemsize = jnp.dtype(x.dtype).itemsize
    need = (2 * block_n * c * h * width * itemsize        # x block, double buffered
            + 2 * h * wacc * itemsize                      # out slab, double buffered
            + 2 * (h + 2 * PAD) * wpad * 4)                # packed feature scratch
    vmem_limit = int(min(48 * 2**20, max(16 * 2**20, 2 * need)))

    out_packed = pl.pallas_call(
        kernel,
        out_shape=jax.ShapeDtypeStruct((nb, h, wacc), x.dtype),
        grid=(nb,),
        in_specs=[
            # whole weight vector in SMEM (scalar reads, hoisted in the kernel)
            pl.BlockSpec(memory_space=pltpu.MemorySpace.SMEM),
            pl.BlockSpec((block_n, c, h, width), lambda i: (i, 0, 0, 0)),
        ],
        out_specs=pl.BlockSpec((1, h, wacc), lambda i: (i, 0, 0)),
        scratch_shapes=[
            pltpu.VMEM((2, h + 2 * PAD, wpad), jnp.float32),
        ],
        compiler_params=pltpu.CompilerParams(
            dimension_semantics=("parallel",),   # v7x: shard batch grid over 2 TCs
            vmem_limit_bytes=vmem_limit,
        ),
    )(w_flat, x)

    # Un-pack the lane-packed slab back to NCHW (cheap, lane-dense reads).
    y = out_packed[:, :, :block_n * slot]
    y = y.reshape(nb, h, block_n, slot)[:, :, :, :width]
    y = jnp.transpose(y, (0, 2, 1, 3)).reshape(n, 1, h, width)
    return y.astype(x.dtype)


def _reference(x, w):
    avg = jnp.mean(x, axis=1, keepdims=True)
    mx = jnp.max(x, axis=1, keepdims=True)
    feat = jnp.concatenate([avg, mx], axis=1)
    y = jax.lax.conv_general_dilated(
        feat, w, window_strides=(1, 1), padding=[(PAD, PAD), (PAD, PAD)],
        dimension_numbers=("NCHW", "OIHW", "NCHW"),
        precision=jax.lax.Precision.HIGHEST)
    return jax.nn.sigmoid(y)


if __name__ == "__main__":
    key = jax.random.PRNGKey(0)
    kx, kw = jax.random.split(key)

    # Primary check at the spec shape.
    N, C, H, W = 2, 4, 16, 16
    x = jax.random.normal(kx, (N, C, H, W), dtype=jnp.float32)
    w = jax.random.normal(kw, (1, 2, KSIZE, KSIZE), dtype=jnp.float32) * 0.1

    out = jax.block_until_ready(spatial_attention(x, w))
    ref = jax.block_until_ready(_reference(x, w))
    assert out.shape == (N, 1, H, W), out.shape
    err = float(jnp.max(jnp.abs(out - ref)))
    assert jnp.allclose(out, ref, atol=2e-5, rtol=1e-5), err

    # Secondary check: exercises multi-image lane packing (block_n > 1).
    x2 = jax.random.normal(jax.random.PRNGKey(1), (8, C, H, W), dtype=jnp.float32)
    out2 = jax.block_until_ready(spatial_attention(x2, w))
    ref2 = jax.block_until_ready(_reference(x2, w))
    err2 = float(jnp.max(jnp.abs(out2 - ref2)))
    assert jnp.allclose(out2, ref2, atol=2e-5, rtol=1e-5), err2

    print("KERNEL_OK")
</pallas_src>

<mosaic_0001>
module attributes {stable_mosaic.version = 11 : i64} {
  func.func @kernel(%arg0: i32, %arg1: memref<98xf32, #tpu.memory_space<smem>>, %arg2: memref<1x4x16x16xf32, #tpu.memory_space<vmem>>, %arg3: memref<1x16x128xf32, #tpu.memory_space<vmem>>, %arg4: memref<2x22x256xf32, #tpu.memory_space<vmem>>) attributes {dimension_semantics = [#tpu.dimension_semantics<parallel>], iteration_bounds = array<i64: 2>, scalar_prefetch = 0 : i64, scratch_operands = 1 : i64, tpu.core_type = #tpu.core_type<tc>, window_params = [{transform_indices = @transform_0, window_bounds = array<i64: 98>}, {transform_indices = @transform_1, window_bounds = array<i64: 1, 4, 16, 16>}, {transform_indices = @transform_2, window_bounds = array<i64: 1, 16, 128>}]} {
    %c0 = arith.constant 0 : index
    %0 = memref.load %arg1[%c0] : memref<98xf32, #tpu.memory_space<smem>>
    %c1 = arith.constant 1 : index
    %1 = memref.load %arg1[%c1] : memref<98xf32, #tpu.memory_space<smem>>
    %c2 = arith.constant 2 : index
    %2 = memref.load %arg1[%c2] : memref<98xf32, #tpu.memory_space<smem>>
    %c3 = arith.constant 3 : index
    %3 = memref.load %arg1[%c3] : memref<98xf32, #tpu.memory_space<smem>>
    %c4 = arith.constant 4 : index
    %4 = memref.load %arg1[%c4] : memref<98xf32, #tpu.memory_space<smem>>
    %c5 = arith.constant 5 : index
    %5 = memref.load %arg1[%c5] : memref<98xf32, #tpu.memory_space<smem>>
    %c6 = arith.constant 6 : index
    %6 = memref.load %arg1[%c6] : memref<98xf32, #tpu.memory_space<smem>>
    %c7 = arith.constant 7 : index
    %7 = memref.load %arg1[%c7] : memref<98xf32, #tpu.memory_space<smem>>
    %c8 = arith.constant 8 : index
    %8 = memref.load %arg1[%c8] : memref<98xf32, #tpu.memory_space<smem>>
    %c9 = arith.constant 9 : index
    %9 = memref.load %arg1[%c9] : memref<98xf32, #tpu.memory_space<smem>>
    %c10 = arith.constant 10 : index
    %10 = memref.load %arg1[%c10] : memref<98xf32, #tpu.memory_space<smem>>
    %c11 = arith.constant 11 : index
    %11 = memref.load %arg1[%c11] : memref<98xf32, #tpu.memory_space<smem>>
    %c12 = arith.constant 12 : index
    %12 = memref.load %arg1[%c12] : memref<98xf32, #tpu.memory_space<smem>>
    %c13 = arith.constant 13 : index
    %13 = memref.load %arg1[%c13] : memref<98xf32, #tpu.memory_space<smem>>
    %c14 = arith.constant 14 : index
    %14 = memref.load %arg1[%c14] : memref<98xf32, #tpu.memory_space<smem>>
    %c15 = arith.constant 15 : index
    %15 = memref.load %arg1[%c15] : memref<98xf32, #tpu.memory_space<smem>>
    %c16 = arith.constant 16 : index
    %16 = memref.load %arg1[%c16] : memref<98xf32, #tpu.memory_space<smem>>
    %c17 = arith.constant 17 : index
    %17 = memref.load %arg1[%c17] : memref<98xf32, #tpu.memory_space<smem>>
    %c18 = arith.constant 18 : index
    %18 = memref.load %arg1[%c18] : memref<98xf32, #tpu.memory_space<smem>>
    %c19 = arith.constant 19 : index
    %19 = memref.load %arg1[%c19] : memref<98xf32, #tpu.memory_space<smem>>
    %c20 = arith.constant 20 : index
    %20 = memref.load %arg1[%c20] : memref<98xf32, #tpu.memory_space<smem>>
    %c21 = arith.constant 21 : index
    %21 = memref.load %arg1[%c21] : memref<98xf32, #tpu.memory_space<smem>>
    %c22 = arith.constant 22 : index
    %22 = memref.load %arg1[%c22] : memref<98xf32, #tpu.memory_space<smem>>
    %c23 = arith.constant 23 : index
    %23 = memref.load %arg1[%c23] : memref<98xf32, #tpu.memory_space<smem>>
    %c24 = arith.constant 24 : index
    %24 = memref.load %arg1[%c24] : memref<98xf32, #tpu.memory_space<smem>>
    %c25 = arith.constant 25 : index
    %25 = memref.load %arg1[%c25] : memref<98xf32, #tpu.memory_space<smem>>
    %c26 = arith.constant 26 : index
    %26 = memref.load %arg1[%c26] : memref<98xf32, #tpu.memory_space<smem>>
    %c27 = arith.constant 27 : index
    %27 = memref.load %arg1[%c27] : memref<98xf32, #tpu.memory_space<smem>>
    %c28 = arith.constant 28 : index
    %28 = memref.load %arg1[%c28] : memref<98xf32, #tpu.memory_space<smem>>
    %c29 = arith.constant 29 : index
    %29 = memref.load %arg1[%c29] : memref<98xf32, #tpu.memory_space<smem>>
    %c30 = arith.constant 30 : index
    %30 = memref.load %arg1[%c30] : memref<98xf32, #tpu.memory_space<smem>>
    %c31 = arith.constant 31 : index
    %31 = memref.load %arg1[%c31] : memref<98xf32, #tpu.memory_space<smem>>
    %c32 = arith.constant 32 : index
    %32 = memref.load %arg1[%c32] : memref<98xf32, #tpu.memory_space<smem>>
    %c33 = arith.constant 33 : index
    %33 = memref.load %arg1[%c33] : memref<98xf32, #tpu.memory_space<smem>>
    %c34 = arith.constant 34 : index
    %34 = memref.load %arg1[%c34] : memref<98xf32, #tpu.memory_space<smem>>
    %c35 = arith.constant 35 : index
    %35 = memref.load %arg1[%c35] : memref<98xf32, #tpu.memory_space<smem>>
    %c36 = arith.constant 36 : index
    %36 = memref.load %arg1[%c36] : memref<98xf32, #tpu.memory_space<smem>>
    %c37 = arith.constant 37 : index
    %37 = memref.load %arg1[%c37] : memref<98xf32, #tpu.memory_space<smem>>
    %c38 = arith.constant 38 : index
    %38 = memref.load %arg1[%c38] : memref<98xf32, #tpu.memory_space<smem>>
    %c39 = arith.constant 39 : index
    %39 = memref.load %arg1[%c39] : memref<98xf32, #tpu.memory_space<smem>>
    %c40 = arith.constant 40 : index
    %40 = memref.load %arg1[%c40] : memref<98xf32, #tpu.memory_space<smem>>
    %c41 = arith.constant 41 : index
    %41 = memref.load %arg1[%c41] : memref<98xf32, #tpu.memory_space<smem>>
    %c42 = arith.constant 42 : index
    %42 = memref.load %arg1[%c42] : memref<98xf32, #tpu.memory_space<smem>>
    %c43 = arith.constant 43 : index
    %43 = memref.load %arg1[%c43] : memref<98xf32, #tpu.memory_space<smem>>
    %c44 = arith.constant 44 : index
    %44 = memref.load %arg1[%c44] : memref<98xf32, #tpu.memory_space<smem>>
    %c45 = arith.constant 45 : index
    %45 = memref.load %arg1[%c45] : memref<98xf32, #tpu.memory_space<smem>>
    %c46 = arith.constant 46 : index
    %46 = memref.load %arg1[%c46] : memref<98xf32, #tpu.memory_space<smem>>
    %c47 = arith.constant 47 : index
    %47 = memref.load %arg1[%c47] : memref<98xf32, #tpu.memory_space<smem>>
    %c48 = arith.constant 48 : index
    %48 = memref.load %arg1[%c48] : memref<98xf32, #tpu.memory_space<smem>>
    %c49 = arith.constant 49 : index
    %49 = memref.load %arg1[%c49] : memref<98xf32, #tpu.memory_space<smem>>
    %c50 = arith.constant 50 : index
    %50 = memref.load %arg1[%c50] : memref<98xf32, #tpu.memory_space<smem>>
    %c51 = arith.constant 51 : index
    %51 = memref.load %arg1[%c51] : memref<98xf32, #tpu.memory_space<smem>>
    %c52 = arith.constant 52 : index
    %52 = memref.load %arg1[%c52] : memref<98xf32, #tpu.memory_space<smem>>
    %c53 = arith.constant 53 : index
    %53 = memref.load %arg1[%c53] : memref<98xf32, #tpu.memory_space<smem>>
    %c54 = arith.constant 54 : index
    %54 = memref.load %arg1[%c54] : memref<98xf32, #tpu.memory_space<smem>>
    %c55 = arith.constant 55 : index
    %55 = memref.load %arg1[%c55] : memref<98xf32, #tpu.memory_space<smem>>
    %c56 = arith.constant 56 : index
    %56 = memref.load %arg1[%c56] : memref<98xf32, #tpu.memory_space<smem>>
    %c57 = arith.constant 57 : index
    %57 = memref.load %arg1[%c57] : memref<98xf32, #tpu.memory_space<smem>>
    %c58 = arith.constant 58 : index
    %58 = memref.load %arg1[%c58] : memref<98xf32, #tpu.memory_space<smem>>
    %c59 = arith.constant 59 : index
    %59 = memref.load %arg1[%c59] : memref<98xf32, #tpu.memory_space<smem>>
    %c60 = arith.constant 60 : index
    %60 = memref.load %arg1[%c60] : memref<98xf32, #tpu.memory_space<smem>>
    %c61 = arith.constant 61 : index
    %61 = memref.load %arg1[%c61] : memref<98xf32, #tpu.memory_space<smem>>
    %c62 = arith.constant 62 : index
    %62 = memref.load %arg1[%c62] : memref<98xf32, #tpu.memory_space<smem>>
    %c63 = arith.constant 63 : index
    %63 = memref.load %arg1[%c63] : memref<98xf32, #tpu.memory_space<smem>>
    %c64 = arith.constant 64 : index
    %64 = memref.load %arg1[%c64] : memref<98xf32, #tpu.memory_space<smem>>
    %c65 = arith.constant 65 : index
    %65 = memref.load %arg1[%c65] : memref<98xf32, #tpu.memory_space<smem>>
    %c66 = arith.constant 66 : index
    %66 = memref.load %arg1[%c66] : memref<98xf32, #tpu.memory_space<smem>>
    %c67 = arith.constant 67 : index
    %67 = memref.load %arg1[%c67] : memref<98xf32, #tpu.memory_space<smem>>
    %c68 = arith.constant 68 : index
    %68 = memref.load %arg1[%c68] : memref<98xf32, #tpu.memory_space<smem>>
    %c69 = arith.constant 69 : index
    %69 = memref.load %arg1[%c69] : memref<98xf32, #tpu.memory_space<smem>>
    %c70 = arith.constant 70 : index
    %70 = memref.load %arg1[%c70] : memref<98xf32, #tpu.memory_space<smem>>
    %c71 = arith.constant 71 : index
    %71 = memref.load %arg1[%c71] : memref<98xf32, #tpu.memory_space<smem>>
    %c72 = arith.constant 72 : index
    %72 = memref.load %arg1[%c72] : memref<98xf32, #tpu.memory_space<smem>>
    %c73 = arith.constant 73 : index
    %73 = memref.load %arg1[%c73] : memref<98xf32, #tpu.memory_space<smem>>
    %c74 = arith.constant 74 : index
    %74 = memref.load %arg1[%c74] : memref<98xf32, #tpu.memory_space<smem>>
    %c75 = arith.constant 75 : index
    %75 = memref.load %arg1[%c75] : memref<98xf32, #tpu.memory_space<smem>>
    %c76 = arith.constant 76 : index
    %76 = memref.load %arg1[%c76] : memref<98xf32, #tpu.memory_space<smem>>
    %c77 = arith.constant 77 : index
    %77 = memref.load %arg1[%c77] : memref<98xf32, #tpu.memory_space<smem>>
    %c78 = arith.constant 78 : index
    %78 = memref.load %arg1[%c78] : memref<98xf32, #tpu.memory_space<smem>>
    %c79 = arith.constant 79 : index
    %79 = memref.load %arg1[%c79] : memref<98xf32, #tpu.memory_space<smem>>
    %c80 = arith.constant 80 : index
    %80 = memref.load %arg1[%c80] : memref<98xf32, #tpu.memory_space<smem>>
    %c81 = arith.constant 81 : index
    %81 = memref.load %arg1[%c81] : memref<98xf32, #tpu.memory_space<smem>>
    %c82 = arith.constant 82 : index
    %82 = memref.load %arg1[%c82] : memref<98xf32, #tpu.memory_space<smem>>
    %c83 = arith.constant 83 : index
    %83 = memref.load %arg1[%c83] : memref<98xf32, #tpu.memory_space<smem>>
    %c84 = arith.constant 84 : index
    %84 = memref.load %arg1[%c84] : memref<98xf32, #tpu.memory_space<smem>>
    %c85 = arith.constant 85 : index
    %85 = memref.load %arg1[%c85] : memref<98xf32, #tpu.memory_space<smem>>
    %c86 = arith.constant 86 : index
    %86 = memref.load %arg1[%c86] : memref<98xf32, #tpu.memory_space<smem>>
    %c87 = arith.constant 87 : index
    %87 = memref.load %arg1[%c87] : memref<98xf32, #tpu.memory_space<smem>>
    %c88 = arith.constant 88 : index
    %88 = memref.load %arg1[%c88] : memref<98xf32, #tpu.memory_space<smem>>
    %c89 = arith.constant 89 : index
    %89 = memref.load %arg1[%c89] : memref<98xf32, #tpu.memory_space<smem>>
    %c90 = arith.constant 90 : index
    %90 = memref.load %arg1[%c90] : memref<98xf32, #tpu.memory_space<smem>>
    %c91 = arith.constant 91 : index
    %91 = memref.load %arg1[%c91] : memref<98xf32, #tpu.memory_space<smem>>
    %c92 = arith.constant 92 : index
    %92 = memref.load %arg1[%c92] : memref<98xf32, #tpu.memory_space<smem>>
    %c93 = arith.constant 93 : index
    %93 = memref.load %arg1[%c93] : memref<98xf32, #tpu.memory_space<smem>>
    %c94 = arith.constant 94 : index
    %94 = memref.load %arg1[%c94] : memref<98xf32, #tpu.memory_space<smem>>
    %c95 = arith.constant 95 : index
    %95 = memref.load %arg1[%c95] : memref<98xf32, #tpu.memory_space<smem>>
    %c96 = arith.constant 96 : index
    %96 = memref.load %arg1[%c96] : memref<98xf32, #tpu.memory_space<smem>>
    %c97 = arith.constant 97 : index
    %97 = memref.load %arg1[%c97] : memref<98xf32, #tpu.memory_space<smem>>
    %cst = arith.constant 0.000000e+00 : f32
    %98 = vector.broadcast %cst : f32 to vector<2x22x256xf32>
    %c0_0 = arith.constant 0 : index
    %c0_1 = arith.constant 0 : index
    %c0_2 = arith.constant 0 : index
    %99 = vector.load %arg4[%c0_0, %c0_1, %c0_2] : memref<2x22x256xf32, #tpu.memory_space<vmem>>, vector<2x22x256xf32>
    tpu.vector_store %arg4[%c0_0, %c0_1, %c0_2], %98 {strides = array<i32>} : memref<2x22x256xf32, #tpu.memory_space<vmem>>, vector<2x22x256xf32>,
    %c0_3 = arith.constant 0 : index
    %c0_4 = arith.constant 0 : index
    %c0_5 = arith.constant 0 : index
    %c0_6 = arith.constant 0 : index
    %100 = vector.load %arg2[%c0_3, %c0_4, %c0_5, %c0_6] : memref<1x4x16x16xf32, #tpu.memory_space<vmem>>, vector<1x1x16x16xf32>
    %101 = vector.shape_cast %100 : vector<1x1x16x16xf32> to vector<16x16xf32>
    %c0_7 = arith.constant 0 : index
    %c1_8 = arith.constant 1 : index
    %c0_9 = arith.constant 0 : index
    %c0_10 = arith.constant 0 : index
    %102 = vector.load %arg2[%c0_7, %c1_8, %c0_9, %c0_10] : memref<1x4x16x16xf32, #tpu.memory_space<vmem>>, vector<1x1x16x16xf32>
    %103 = vector.shape_cast %102 : vector<1x1x16x16xf32> to vector<16x16xf32>
    %104 = arith.addf %101, %103 : vector<16x16xf32>
    %105 = arith.maximumf %101, %103 : vector<16x16xf32>
    %c0_11 = arith.constant 0 : index
    %c2_12 = arith.constant 2 : index
    %c0_13 = arith.constant 0 : index
    %c0_14 = arith.constant 0 : index
    %106 = vector.load %arg2[%c0_11, %c2_12, %c0_13, %c0_14] : memref<1x4x16x16xf32, #tpu.memory_space<vmem>>, vector<1x1x16x16xf32>
    %107 = vector.shape_cast %106 : vector<1x1x16x16xf32> to vector<16x16xf32>
    %108 = arith.addf %104, %107 : vector<16x16xf32>
    %109 = arith.maximumf %105, %107 : vector<16x16xf32>
    %c0_15 = arith.constant 0 : index
    %c3_16 = arith.constant 3 : index
    %c0_17 = arith.constant 0 : index
    %c0_18 = arith.constant 0 : index
    %110 = vector.load %arg2[%c0_15, %c3_16, %c0_17, %c0_18] : memref<1x4x16x16xf32, #tpu.memory_space<vmem>>, vector<1x1x16x16xf32>
    %111 = vector.shape_cast %110 : vector<1x1x16x16xf32> to vector<16x16xf32>
    %112 = arith.addf %108, %111 : vector<16x16xf32>
    %113 = arith.maximumf %109, %111 : vector<16x16xf32>
    %cst_19 = arith.constant 2.500000e-01 : f32
    %114 = vector.broadcast %cst_19 : f32 to vector<16x16xf32>
    %115 = arith.mulf %112, %114 : vector<16x16xf32>
    %c0_20 = arith.constant 0 : index
    %c3_21 = arith.constant 3 : index
    %c3_22 = arith.constant 3 : index
    %116 = vector.load %arg4[%c0_20, %c3_21, %c3_22] : memref<2x22x256xf32, #tpu.memory_space<vmem>>, vector<1x16x16xf32>
    %117 = vector.shape_cast %116 : vector<1x16x16xf32> to vector<16x16xf32>
    %118 = vector.shape_cast %115 : vector<16x16xf32> to vector<1x16x16xf32>
    tpu.vector_store %arg4[%c0_20, %c3_21, %c3_22], %118 {strides = array<i32>} : memref<2x22x256xf32, #tpu.memory_space<vmem>>, vector<1x16x16xf32>,
    %c1_23 = arith.constant 1 : index
    %c3_24 = arith.constant 3 : index
    %c3_25 = arith.constant 3 : index
    %119 = vector.load %arg4[%c1_23, %c3_24, %c3_25] : memref<2x22x256xf32, #tpu.memory_space<vmem>>, vector<1x16x16xf32>
    %120 = vector.shape_cast %119 : vector<1x16x16xf32> to vector<16x16xf32>
    %121 = vector.shape_cast %113 : vector<16x16xf32> to vector<1x16x16xf32>
    tpu.vector_store %arg4[%c1_23, %c3_24, %c3_25], %121 {strides = array<i32>} : memref<2x22x256xf32, #tpu.memory_space<vmem>>, vector<1x16x16xf32>,
    %cst_26 = arith.constant 0.000000e+00 : f32
    %122 = vector.broadcast %cst_26 : f32 to vector<16x128xf32>
    %cst_27 = arith.constant 0.000000e+00 : f32
    %123 = vector.broadcast %cst_27 : f32 to vector<16x128xf32>
    %cst_28 = arith.constant 0.000000e+00 : f32
    %124 = vector.broadcast %cst_28 : f32 to vector<16x128xf32>
    %cst_29 = arith.constant 0.000000e+00 : f32
    %125 = vector.broadcast %cst_29 : f32 to vector<16x128xf32>
    %c0_30 = arith.constant 0 : index
    %c0_31 = arith.constant 0 : index
    %c0_32 = arith.constant 0 : index
    %126 = vector.load %arg4[%c0_30, %c0_31, %c0_32] : memref<2x22x256xf32, #tpu.memory_space<vmem>>, vector<1x16x128xf32>
    %127 = vector.shape_cast %126 : vector<1x16x128xf32> to vector<16x128xf32>
    %128 = vector.broadcast %0 : f32 to vector<16x128xf32>
    %129 = arith.mulf %128, %127 : vector<16x128xf32>
    %130 = arith.addf %122, %129 : vector<16x128xf32>
    %c0_33 = arith.constant 0 : index
    %c0_34 = arith.constant 0 : index
    %c1_35 = arith.constant 1 : index
    %131 = vector.load %arg4[%c0_33, %c0_34, %c1_35] : memref<2x22x256xf32, #tpu.memory_space<vmem>>, vector<1x16x128xf32>
    %132 = vector.shape_cast %131 : vector<1x16x128xf32> to vector<16x128xf32>
    %133 = vector.broadcast %1 : f32 to vector<16x128xf32>
    %134 = arith.mulf %133, %132 : vector<16x128xf32>
    %135 = arith.addf %123, %134 : vector<16x128xf32>
    %c0_36 = arith.constant 0 : index
    %c0_37 = arith.constant 0 : index
    %c2_38 = arith.constant 2 : index
    %136 = vector.load %arg4[%c0_36, %c0_37, %c2_38] : memref<2x22x256xf32, #tpu.memory_space<vmem>>, vector<1x16x128xf32>
    %137 = vector.shape_cast %136 : vector<1x16x128xf32> to vector<16x128xf32>
    %138 = vector.broadcast %2 : f32 to vector<16x128xf32>
    %139 = arith.mulf %138, %137 : vector<16x128xf32>
    %140 = arith.addf %124, %139 : vector<16x128xf32>
    %c0_39 = arith.constant 0 : index
    %c0_40 = arith.constant 0 : index
    %c3_41 = arith.constant 3 : index
    %141 = vector.load %arg4[%c0_39, %c0_40, %c3_41] : memref<2x22x256xf32, #tpu.memory_space<vmem>>, vector<1x16x128xf32>
    %142 = vector.shape_cast %141 : vector<1x16x128xf32> to vector<16x128xf32>
    %143 = vector.broadcast %3 : f32 to vector<16x128xf32>
    %144 = arith.mulf %143, %142 : vector<16x128xf32>
    %145 = arith.addf %125, %144 : vector<16x128xf32>
    %c0_42 = arith.constant 0 : index
    %c0_43 = arith.constant 0 : index
    %c4_44 = arith.constant 4 : index
    %146 = vector.load %arg4[%c0_42, %c0_43, %c4_44] : memref<2x22x256xf32, #tpu.memory_space<vmem>>, vector<1x16x128xf32>
    %147 = vector.shape_cast %146 : vector<1x16x128xf32> to vector<16x128xf32>
    %148 = vector.broadcast %4 : f32 to vector<16x128xf32>
    %149 = arith.mulf %148, %147 : vector<16x128xf32>
    %150 = arith.addf %130, %149 : vector<16x128xf32>
    %c0_45 = arith.constant 0 : index
    %c0_46 = arith.constant 0 : index
    %c5_47 = arith.constant 5 : index
    %151 = vector.load %arg4[%c0_45, %c0_46, %c5_47] : memref<2x22x256xf32, #tpu.memory_space<vmem>>, vector<1x16x128xf32>
    %152 = vector.shape_cast %151 : vector<1x16x128xf32> to vector<16x128xf32>
    %153 = vector.broadcast %5 : f32 to vector<16x128xf32>
    %154 = arith.mulf %153, %152 : vector<16x128xf32>
    %155 = arith.addf %135, %154 : vector<16x128xf32>
    %c0_48 = arith.constant 0 : index
    %c0_49 = arith.constant 0 : index
    %c6_50 = arith.constant 6 : index
    %156 = vector.load %arg4[%c0_48, %c0_49, %c6_50] : memref<2x22x256xf32, #tpu.memory_space<vmem>>, vector<1x16x128xf32>
    %157 = vector.shape_cast %156 : vector<1x16x128xf32> to vector<16x128xf32>
    %158 = vector.broadcast %6 : f32 to vector<16x128xf32>
    %159 = arith.mulf %158, %157 : vector<16x128xf32>
    %160 = arith.addf %140, %159 : vector<16x128xf32>
    %c0_51 = arith.constant 0 : index
    %c1_52 = arith.constant 1 : index
    %c0_53 = arith.constant 0 : index
    %161 = vector.load %arg4[%c0_51, %c1_52, %c0_53] : memref<2x22x256xf32, #tpu.memory_space<vmem>>, vector<1x16x128xf32>
    %162 = vector.shape_cast %161 : vector<1x16x128xf32> to vector<16x128xf32>
    %163 = vector.broadcast %7 : f32 to vector<16x128xf32>
    %164 = arith.mulf %163, %162 : vector<16x128xf32>
    %165 = arith.addf %145, %164 : vector<16x128xf32>
    %c0_54 = arith.constant 0 : index
    %c1_55 = arith.constant 1 : index
    %c1_56 = arith.constant 1 : index
    %166 = vector.load %arg4[%c0_54, %c1_55, %c1_56] : memref<2x22x256xf32, #tpu.memory_space<vmem>>, vector<1x16x128xf32>
    %167 = vector.shape_cast %166 : vector<1x16x128xf32> to vector<16x128xf32>
    %168 = vector.broadcast %8 : f32 to vector<16x128xf32>
    %169 = arith.mulf %168, %167 : vector<16x128xf32>
    %170 = arith.addf %150, %169 : vector<16x128xf32>
    %c0_57 = arith.constant 0 : index
    %c1_58 = arith.constant 1 : index
    %c2_59 = arith.constant 2 : index
    %171 = vector.load %arg4[%c0_57, %c1_58, %c2_59] : memref<2x22x256xf32, #tpu.memory_space<vmem>>, vector<1x16x128xf32>
    %172 = vector.shape_cast %171 : vector<1x16x128xf32> to vector<16x128xf32>
    %173 = vector.broadcast %9 : f32 to vector<16x128xf32>
    %174 = arith.mulf %173, %172 : vector<16x128xf32>
    %175 = arith.addf %155, %174 : vector<16x128xf32>
    %c0_60 = arith.constant 0 : index
    %c1_61 = arith.constant 1 : index
    %c3_62 = arith.constant 3 : index
    %176 = vector.load %arg4[%c0_60, %c1_61, %c3_62] : memref<2x22x256xf32, #tpu.memory_space<vmem>>, vector<1x16x128xf32>
    %177 = vector.shape_cast %176 : vector<1x16x128xf32> to vector<16x128xf32>
    %178 = vector.broadcast %10 : f32 to vector<16x128xf32>
    %179 = arith.mulf %178, %177 : vector<16x128xf32>
    %180 = arith.addf %160, %179 : vector<16x128xf32>
    %c0_63 = arith.constant 0 : index
    %c1_64 = arith.constant 1 : index
    %c4_65 = arith.constant 4 : index
    %181 = vector.load %arg4[%c0_63, %c1_64, %c4_65] : memref<2x22x256xf32, #tpu.memory_space<vmem>>, vector<1x16x128xf32>
    %182 = vector.shape_cast %181 : vector<1x16x128xf32> to vector<16x128xf32>
    %183 = vector.broadcast %11 : f32 to vector<16x128xf32>
    %184 = arith.mulf %183, %182 : vector<16x128xf32>
    %185 = arith.addf %165, %184 : vector<16x128xf32>
    %c0_66 = arith.constant 0 : index
    %c1_67 = arith.constant 1 : index
    %c5_68 = arith.constant 5 : index
    %186 = vector.load %arg4[%c0_66, %c1_67, %c5_68] : memref<2x22x256xf32, #tpu.memory_space<vmem>>, vector<1x16x128xf32>
    %187 = vector.shape_cast %186 : vector<1x16x128xf32> to vector<16x128xf32>
    %188 = vector.broadcast %12 : f32 to vector<16x128xf32>
    %189 = arith.mulf %188, %187 : vector<16x128xf32>
    %190 = arith.addf %170, %189 : vector<16x128xf32>
    %c0_69 = arith.constant 0 : index
    %c1_70 = arith.constant 1 : index
    %c6_71 = arith.constant 6 : index
    %191 = vector.load %arg4[%c0_69, %c1_70, %c6_71] : memref<2x22x256xf32, #tpu.memory_space<vmem>>, vector<1x16x128xf32>
    %192 = vector.shape_cast %191 : vector<1x16x128xf32> to vector<16x128xf32>
    %193 = vector.broadcast %13 : f32 to vector<16x128xf32>
    %194 = arith.mulf %193, %192 : vector<16x128xf32>
    %195 = arith.addf %175, %194 : vector<16x128xf32>
    %c0_72 = arith.constant 0 : index
    %c2_73 = arith.constant 2 : index
    %c0_74 = arith.constant 0 : index
    %196 = vector.load %arg4[%c0_72, %c2_73, %c0_74] : memref<2x22x256xf32, #tpu.memory_space<vmem>>, vector<1x16x128xf32>
    %197 = vector.shape_cast %196 : vector<1x16x128xf32> to vector<16x128xf32>
    %198 = vector.broadcast %14 : f32 to vector<16x128xf32>
    %199 = arith.mulf %198, %197 : vector<16x128xf32>
    %200 = arith.addf %180, %199 : vector<16x128xf32>
    %c0_75 = arith.constant 0 : index
    %c2_76 = arith.constant 2 : index
    %c1_77 = arith.constant 1 : index
    %201 = vector.load %arg4[%c0_75, %c2_76, %c1_77] : memref<2x22x256xf32, #tpu.memory_space<vmem>>, vector<1x16x128xf32>
    %202 = vector.shape_cast %201 : vector<1x16x128xf32> to vector<16x128xf32>
    %203 = vector.broadcast %15 : f32 to vector<16x128xf32>
    %204 = arith.mulf %203, %202 : vector<16x128xf32>
    %205 = arith.addf %185, %204 : vector<16x128xf32>
    %c0_78 = arith.constant 0 : index
    %c2_79 = arith.constant 2 : index
    %c2_80 = arith.constant 2 : index
    %206 = vector.load %arg4[%c0_78, %c2_79, %c2_80] : memref<2x22x256xf32, #tpu.memory_space<vmem>>, vector<1x16x128xf32>
    %207 = vector.shape_cast %206 : vector<1x16x128xf32> to vector<16x128xf32>
    %208 = vector.broadcast %16 : f32 to vector<16x128xf32>
    %209 = arith.mulf %208, %207 : vector<16x128xf32>
    %210 = arith.addf %190, %209 : vector<16x128xf32>
    %c0_81 = arith.constant 0 : index
    %c2_82 = arith.constant 2 : index
    %c3_83 = arith.constant 3 : index
    %211 = vector.load %arg4[%c0_81, %c2_82, %c3_83] : memref<2x22x256xf32, #tpu.memory_space<vmem>>, vector<1x16x128xf32>
    %212 = vector.shape_cast %211 : vector<1x16x128xf32> to vector<16x128xf32>
    %213 = vector.broadcast %17 : f32 to vector<16x128xf32>
    %214 = arith.mulf %213, %212 : vector<16x128xf32>
    %215 = arith.addf %195, %214 : vector<16x128xf32>
    %c0_84 = arith.constant 0 : index
    %c2_85 = arith.constant 2 : index
    %c4_86 = arith.constant 4 : index
    %216 = vector.load %arg4[%c0_84, %c2_85, %c4_86] : memref<2x22x256xf32, #tpu.memory_space<vmem>>, vector<1x16x128xf32>
    %217 = vector.shape_cast %216 : vector<1x16x128xf32> to vector<16x128xf32>
    %218 = vector.broadcast %18 : f32 to vector<16x128xf32>
    %219 = arith.mulf %218, %217 : vector<16x128xf32>
    %220 = arith.addf %200, %219 : vector<16x128xf32>
    %c0_87 = arith.constant 0 : index
    %c2_88 = arith.constant 2 : index
    %c5_89 = arith.constant 5 : index
    %221 = vector.load %arg4[%c0_87, %c2_88, %c5_89] : memref<2x22x256xf32, #tpu.memory_space<vmem>>, vector<1x16x128xf32>
    %222 = vector.shape_cast %221 : vector<1x16x128xf32> to vector<16x128xf32>
    %223 = vector.broadcast %19 : f32 to vector<16x128xf32>
    %224 = arith.mulf %223, %222 : vector<16x128xf32>
    %225 = arith.addf %205, %224 : vector<16x128xf32>
    %c0_90 = arith.constant 0 : index
    %c2_91 = arith.constant 2 : index
    %c6_92 = arith.constant 6 : index
    %226 = vector.load %arg4[%c0_90, %c2_91, %c6_92] : memref<2x22x256xf32, #tpu.memory_space<vmem>>, vector<1x16x128xf32>
    %227 = vector.shape_cast %226 : vector<1x16x128xf32> to vector<16x128xf32>
    %228 = vector.broadcast %20 : f32 to vector<16x128xf32>
    %229 = arith.mulf %228, %227 : vector<16x128xf32>
    %230 = arith.addf %210, %229 : vector<16x128xf32>
    %c0_93 = arith.constant 0 : index
    %c3_94 = arith.constant 3 : index
    %c0_95 = arith.constant 0 : index
    %231 = vector.load %arg4[%c0_93, %c3_94, %c0_95] : memref<2x22x256xf32, #tpu.memory_space<vmem>>, vector<1x16x128xf32>
    %232 = vector.shape_cast %231 : vector<1x16x128xf32> to vector<16x128xf32>
    %233 = vector.broadcast %21 : f32 to vector<16x128xf32>
    %234 = arith.mulf %233, %232 : vector<16x128xf32>
    %235 = arith.addf %215, %234 : vector<16x128xf32>
    %c0_96 = arith.constant 0 : index
    %c3_97 = arith.constant 3 : index
    %c1_98 = arith.constant 1 : index
    %236 = vector.load %arg4[%c0_96, %c3_97, %c1_98] : memref<2x22x256xf32, #tpu.memory_space<vmem>>, vector<1x16x128xf32>
    %237 = vector.shape_cast %236 : vector<1x16x128xf32> to vector<16x128xf32>
    %238 = vector.broadcast %22 : f32 to vector<16x128xf32>
    %239 = arith.mulf %238, %237 : vector<16x128xf32>
    %240 = arith.addf %220, %239 : vector<16x128xf32>
    %c0_99 = arith.constant 0 : index
    %c3_100 = arith.constant 3 : index
    %c2_101 = arith.constant 2 : index
    %241 = vector.load %arg4[%c0_99, %c3_100, %c2_101] : memref<2x22x256xf32, #tpu.memory_space<vmem>>, vector<1x16x128xf32>
    %242 = vector.shape_cast %241 : vector<1x16x128xf32> to vector<16x128xf32>
    %243 = vector.broadcast %23 : f32 to vector<16x128xf32>
    %244 = arith.mulf %243, %242 : vector<16x128xf32>
    %245 = arith.addf %225, %244 : vector<16x128xf32>
    %c0_102 = arith.constant 0 : index
    %c3_103 = arith.constant 3 : index
    %c3_104 = arith.constant 3 : index
    %246 = vector.load %arg4[%c0_102, %c3_103, %c3_104] : memref<2x22x256xf32, #tpu.memory_space<vmem>>, vector<1x16x128xf32>
    %247 = vector.shape_cast %246 : vector<1x16x128xf32> to vector<16x128xf32>
    %248 = vector.broadcast %24 : f32 to vector<16x128xf32>
    %249 = arith.mulf %248, %247 : vector<16x128xf32>
    %250 = arith.addf %230, %249 : vector<16x128xf32>
    %c0_105 = arith.constant 0 : index
    %c3_106 = arith.constant 3 : index
    %c4_107 = arith.constant 4 : index
    %251 = vector.load %arg4[%c0_105, %c3_106, %c4_107] : memref<2x22x256xf32, #tpu.memory_space<vmem>>, vector<1x16x128xf32>
    %252 = vector.shape_cast %251 : vector<1x16x128xf32> to vector<16x128xf32>
    %253 = vector.broadcast %25 : f32 to vector<16x128xf32>
    %254 = arith.mulf %253, %252 : vector<16x128xf32>
    %255 = arith.addf %235, %254 : vector<16x128xf32>
    %c0_108 = arith.constant 0 : index
    %c3_109 = arith.constant 3 : index
    %c5_110 = arith.constant 5 : index
    %256 = vector.load %arg4[%c0_108, %c3_109, %c5_110] : memref<2x22x256xf32, #tpu.memory_space<vmem>>, vector<1x16x128xf32>
    %257 = vector.shape_cast %256 : vector<1x16x128xf32> to vector<16x128xf32>
    %258 = vector.broadcast %26 : f32 to vector<16x128xf32>
    %259 = arith.mulf %258, %257 : vector<16x128xf32>
    %260 = arith.addf %240, %259 : vector<16x128xf32>
    %c0_111 = arith.constant 0 : index
    %c3_112 = arith.constant 3 : index
    %c6_113 = arith.constant 6 : index
    %261 = vector.load %arg4[%c0_111, %c3_112, %c6_113] : memref<2x22x256xf32, #tpu.memory_space<vmem>>, vector<1x16x128xf32>
    %262 = vector.shape_cast %261 : vector<1x16x128xf32> to vector<16x128xf32>
    %263 = vector.broadcast %27 : f32 to vector<16x128xf32>
    %264 = arith.mulf %263, %262 : vector<16x128xf32>
    %265 = arith.addf %245, %264 : vector<16x128xf32>
    %c0_114 = arith.constant 0 : index
    %c4_115 = arith.constant 4 : index
    %c0_116 = arith.constant 0 : index
    %266 = vector.load %arg4[%c0_114, %c4_115, %c0_116] : memref<2x22x256xf32, #tpu.memory_space<vmem>>, vector<1x16x128xf32>
    %267 = vector.shape_cast %266 : vector<1x16x128xf32> to vector<16x128xf32>
    %268 = vector.broadcast %28 : f32 to vector<16x128xf32>
    %269 = arith.mulf %268, %267 : vector<16x128xf32>
    %270 = arith.addf %250, %269 : vector<16x128xf32>
    %c0_117 = arith.constant 0 : index
    %c4_118 = arith.constant 4 : index
    %c1_119 = arith.constant 1 : index
    %271 = vector.load %arg4[%c0_117, %c4_118, %c1_119] : memref<2x22x256xf32, #tpu.memory_space<vmem>>, vector<1x16x128xf32>
    %272 = vector.shape_cast %271 : vector<1x16x128xf32> to vector<16x128xf32>
    %273 = vector.broadcast %29 : f32 to vector<16x128xf32>
    %274 = arith.mulf %273, %272 : vector<16x128xf32>
    %275 = arith.addf %255, %274 : vector<16x128xf32>
    %c0_120 = arith.constant 0 : index
    %c4_121 = arith.constant 4 : index
    %c2_122 = arith.constant 2 : index
    %276 = vector.load %arg4[%c0_120, %c4_121, %c2_122] : memref<2x22x256xf32, #tpu.memory_space<vmem>>, vector<1x16x128xf32>
    %277 = vector.shape_cast %276 : vector<1x16x128xf32> to vector<16x128xf32>
    %278 = vector.broadcast %30 : f32 to vector<16x128xf32>
    %279 = arith.mulf %278, %277 : vector<16x128xf32>
    %280 = arith.addf %260, %279 : vector<16x128xf32>
    %c0_123 = arith.constant 0 : index
    %c4_124 = arith.constant 4 : index
    %c3_125 = arith.constant 3 : index
    %281 = vector.load %arg4[%c0_123, %c4_124, %c3_125] : memref<2x22x256xf32, #tpu.memory_space<vmem>>, vector<1x16x128xf32>
    %282 = vector.shape_cast %281 : vector<1x16x128xf32> to vector<16x128xf32>
    %283 = vector.broadcast %31 : f32 to vector<16x128xf32>
    %284 = arith.mulf %283, %282 : vector<16x128xf32>
    %285 = arith.addf %265, %284 : vector<16x128xf32>
    %c0_126 = arith.constant 0 : index
    %c4_127 = arith.constant 4 : index
    %c4_128 = arith.constant 4 : index
    %286 = vector.load %arg4[%c0_126, %c4_127, %c4_128] : memref<2x22x256xf32, #tpu.memory_space<vmem>>, vector<1x16x128xf32>
    %287 = vector.shape_cast %286 : vector<1x16x128xf32> to vector<16x128xf32>
    %288 = vector.broadcast %32 : f32 to vector<16x128xf32>
    %289 = arith.mulf %288, %287 : vector<16x128xf32>
    %290 = arith.addf %270, %289 : vector<16x128xf32>
    %c0_129 = arith.constant 0 : index
    %c4_130 = arith.constant 4 : index
    %c5_131 = arith.constant 5 : index
    %291 = vector.load %arg4[%c0_129, %c4_130, %c5_131] : memref<2x22x256xf32, #tpu.memory_space<vmem>>, vector<1x16x128xf32>
    %292 = vector.shape_cast %291 : vector<1x16x128xf32> to vector<16x128xf32>
    %293 = vector.broadcast %33 : f32 to vector<16x128xf32>
    %294 = arith.mulf %293, %292 : vector<16x128xf32>
    %295 = arith.addf %275, %294 : vector<16x128xf32>
    %c0_132 = arith.constant 0 : index
    %c4_133 = arith.constant 4 : index
    %c6_134 = arith.constant 6 : index
    %296 = vector.load %arg4[%c0_132, %c4_133, %c6_134] : memref<2x22x256xf32, #tpu.memory_space<vmem>>, vector<1x16x128xf32>
    %297 = vector.shape_cast %296 : vector<1x16x128xf32> to vector<16x128xf32>
    %298 = vector.broadcast %34 : f32 to vector<16x128xf32>
    %299 = arith.mulf %298, %297 : vector<16x128xf32>
    %300 = arith.addf %280, %299 : vector<16x128xf32>
    %c0_135 = arith.constant 0 : index
    %c5_136 = arith.constant 5 : index
    %c0_137 = arith.constant 0 : index
    %301 = vector.load %arg4[%c0_135, %c5_136, %c0_137] : memref<2x22x256xf32, #tpu.memory_space<vmem>>, vector<1x16x128xf32>
    %302 = vector.shape_cast %301 : vector<1x16x128xf32> to vector<16x128xf32>
    %303 = vector.broadcast %35 : f32 to vector<16x128xf32>
    %304 = arith.mulf %303, %302 : vector<16x128xf32>
    %305 = arith.addf %285, %304 : vector<16x128xf32>
    %c0_138 = arith.constant 0 : index
    %c5_139 = arith.constant 5 : index
    %c1_140 = arith.constant 1 : index
    %306 = vector.load %arg4[%c0_138, %c5_139, %c1_140] : memref<2x22x256xf32, #tpu.memory_space<vmem>>, vector<1x16x128xf32>
    %307 = vector.shape_cast %306 : vector<1x16x128xf32> to vector<16x128xf32>
    %308 = vector.broadcast %36 : f32 to vector<16x128xf32>
    %309 = arith.mulf %308, %307 : vector<16x128xf32>
    %310 = arith.addf %290, %309 : vector<16x128xf32>
    %c0_141 = arith.constant 0 : index
    %c5_142 = arith.constant 5 : index
    %c2_143 = arith.constant 2 : index
    %311 = vector.load %arg4[%c0_141, %c5_142, %c2_143] : memref<2x22x256xf32, #tpu.memory_space<vmem>>, vector<1x16x128xf32>
    %312 = vector.shape_cast %311 : vector<1x16x128xf32> to vector<16x128xf32>
    %313 = vector.broadcast %37 : f32 to vector<16x128xf32>
    %314 = arith.mulf %313, %312 : vector<16x128xf32>
    %315 = arith.addf %295, %314 : vector<16x128xf32>
    %c0_144 = arith.constant 0 : index
    %c5_145 = arith.constant 5 : index
    %c3_146 = arith.constant 3 : index
    %316 = vector.load %arg4[%c0_144, %c5_145, %c3_146] : memref<2x22x256xf32, #tpu.memory_space<vmem>>, vector<1x16x128xf32>
    %317 = vector.shape_cast %316 : vector<1x16x128xf32> to vector<16x128xf32>
    %318 = vector.broadcast %38 : f32 to vector<16x128xf32>
    %319 = arith.mulf %318, %317 : vector<16x128xf32>
    %320 = arith.addf %300, %319 : vector<16x128xf32>
    %c0_147 = arith.constant 0 : index
    %c5_148 = arith.constant 5 : index
    %c4_149 = arith.constant 4 : index
    %321 = vector.load %arg4[%c0_147, %c5_148, %c4_149] : memref<2x22x256xf32, #tpu.memory_space<vmem>>, vector<1x16x128xf32>
    %322 = vector.shape_cast %321 : vector<1x16x128xf32> to vector<16x128xf32>
    %323 = vector.broadcast %39 : f32 to vector<16x128xf32>
    %324 = arith.mulf %323, %322 : vector<16x128xf32>
    %325 = arith.addf %305, %324 : vector<16x128xf32>
    %c0_150 = arith.constant 0 : index
    %c5_151 = arith.constant 5 : index
    %c5_152 = arith.constant 5 : index
    %326 = vector.load %arg4[%c0_150, %c5_151, %c5_152] : memref<2x22x256xf32, #tpu.memory_space<vmem>>, vector<1x16x128xf32>
    %327 = vector.shape_cast %326 : vector<1x16x128xf32> to vector<16x128xf32>
    %328 = vector.broadcast %40 : f32 to vector<16x128xf32>
    %329 = arith.mulf %328, %327 : vector<16x128xf32>
    %330 = arith.addf %310, %329 : vector<16x128xf32>
    %c0_153 = arith.constant 0 : index
    %c5_154 = arith.constant 5 : index
    %c6_155 = arith.constant 6 : index
    %331 = vector.load %arg4[%c0_153, %c5_154, %c6_155] : memref<2x22x256xf32, #tpu.memory_space<vmem>>, vector<1x16x128xf32>
    %332 = vector.shape_cast %331 : vector<1x16x128xf32> to vector<16x128xf32>
    %333 = vector.broadcast %41 : f32 to vector<16x128xf32>
    %334 = arith.mulf %333, %332 : vector<16x128xf32>
    %335 = arith.addf %315, %334 : vector<16x128xf32>
    %c0_156 = arith.constant 0 : index
    %c6_157 = arith.constant 6 : index
    %c0_158 = arith.constant 0 : index
    %336 = vector.load %arg4[%c0_156, %c6_157, %c0_158] : memref<2x22x256xf32, #tpu.memory_space<vmem>>, vector<1x16x128xf32>
    %337 = vector.shape_cast %336 : vector<1x16x128xf32> to vector<16x128xf32>
    %338 = vector.broadcast %42 : f32 to vector<16x128xf32>
    %339 = arith.mulf %338, %337 : vector<16x128xf32>
    %340 = arith.addf %320, %339 : vector<16x128xf32>
    %c0_159 = arith.constant 0 : index
    %c6_160 = arith.constant 6 : index
    %c1_161 = arith.constant 1 : index
    %341 = vector.load %arg4[%c0_159, %c6_160, %c1_161] : memref<2x22x256xf32, #tpu.memory_space<vmem>>, vector<1x16x128xf32>
    %342 = vector.shape_cast %341 : vector<1x16x128xf32> to vector<16x128xf32>
    %343 = vector.broadcast %43 : f32 to vector<16x128xf32>
    %344 = arith.mulf %343, %342 : vector<16x128xf32>
    %345 = arith.addf %325, %344 : vector<16x128xf32>
    %c0_162 = arith.constant 0 : index
    %c6_163 = arith.constant 6 : index
    %c2_164 = arith.constant 2 : index
    %346 = vector.load %arg4[%c0_162, %c6_163, %c2_164] : memref<2x22x256xf32, #tpu.memory_space<vmem>>, vector<1x16x128xf32>
    %347 = vector.shape_cast %346 : vector<1x16x128xf32> to vector<16x128xf32>
    %348 = vector.broadcast %44 : f32 to vector<16x128xf32>
    %349 = arith.mulf %348, %347 : vector<16x128xf32>
    %350 = arith.addf %330, %349 : vector<16x128xf32>
    %c0_165 = arith.constant 0 : index
    %c6_166 = arith.constant 6 : index
    %c3_167 = arith.constant 3 : index
    %351 = vector.load %arg4[%c0_165, %c6_166, %c3_167] : memref<2x22x256xf32, #tpu.memory_space<vmem>>, vector<1x16x128xf32>
    %352 = vector.shape_cast %351 : vector<1x16x128xf32> to vector<16x128xf32>
    %353 = vector.broadcast %45 : f32 to vector<16x128xf32>
    %354 = arith.mulf %353, %352 : vector<16x128xf32>
    %355 = arith.addf %335, %354 : vector<16x128xf32>
    %c0_168 = arith.constant 0 : index
    %c6_169 = arith.constant 6 : index
    %c4_170 = arith.constant 4 : index
    %356 = vector.load %arg4[%c0_168, %c6_169, %c4_170] : memref<2x22x256xf32, #tpu.memory_space<vmem>>, vector<1x16x128xf32>
    %357 = vector.shape_cast %356 : vector<1x16x128xf32> to vector<16x128xf32>
    %358 = vector.broadcast %46 : f32 to vector<16x128xf32>
    %359 = arith.mulf %358, %357 : vector<16x128xf32>
    %360 = arith.addf %340, %359 : vector<16x128xf32>
    %c0_171 = arith.constant 0 : index
    %c6_172 = arith.constant 6 : index
    %c5_173 = arith.constant 5 : index
    %361 = vector.load %arg4[%c0_171, %c6_172, %c5_173] : memref<2x22x256xf32, #tpu.memory_space<vmem>>, vector<1x16x128xf32>
    %362 = vector.shape_cast %361 : vector<1x16x128xf32> to vector<16x128xf32>
    %363 = vector.broadcast %47 : f32 to vector<16x128xf32>
    %364 = arith.mulf %363, %362 : vector<16x128xf32>
    %365 = arith.addf %345, %364 : vector<16x128xf32>
    %c0_174 = arith.constant 0 : index
    %c6_175 = arith.constant 6 : index
    %c6_176 = arith.constant 6 : index
    %366 = vector.load %arg4[%c0_174, %c6_175, %c6_176] : memref<2x22x256xf32, #tpu.memory_space<vmem>>, vector<1x16x128xf32>
    %367 = vector.shape_cast %366 : vector<1x16x128xf32> to vector<16x128xf32>
    %368 = vector.broadcast %48 : f32 to vector<16x128xf32>
    %369 = arith.mulf %368, %367 : vector<16x128xf32>
    %370 = arith.addf %350, %369 : vector<16x128xf32>
    %c1_177 = arith.constant 1 : index
    %c0_178 = arith.constant 0 : index
    %c0_179 = arith.constant 0 : index
    %371 = vector.load %arg4[%c1_177, %c0_178, %c0_179] : memref<2x22x256xf32, #tpu.memory_space<vmem>>, vector<1x16x128xf32>
    %372 = vector.shape_cast %371 : vector<1x16x128xf32> to vector<16x128xf32>
    %373 = vector.broadcast %49 : f32 to vector<16x128xf32>
    %374 = arith.mulf %373, %372 : vector<16x128xf32>
    %375 = arith.addf %355, %374 : vector<16x128xf32>
    %c1_180 = arith.constant 1 : index
    %c0_181 = arith.constant 0 : index
    %c1_182 = arith.constant 1 : index
    %376 = vector.load %arg4[%c1_180, %c0_181, %c1_182] : memref<2x22x256xf32, #tpu.memory_space<vmem>>, vector<1x16x128xf32>
    %377 = vector.shape_cast %376 : vector<1x16x128xf32> to vector<16x128xf32>
    %378 = vector.broadcast %50 : f32 to vector<16x128xf32>
    %379 = arith.mulf %378, %377 : vector<16x128xf32>
    %380 = arith.addf %360, %379 : vector<16x128xf32>
    %c1_183 = arith.constant 1 : index
    %c0_184 = arith.constant 0 : index
    %c2_185 = arith.constant 2 : index
    %381 = vector.load %arg4[%c1_183, %c0_184, %c2_185] : memref<2x22x256xf32, #tpu.memory_space<vmem>>, vector<1x16x128xf32>
    %382 = vector.shape_cast %381 : vector<1x16x128xf32> to vector<16x128xf32>
    %383 = vector.broadcast %51 : f32 to vector<16x128xf32>
    %384 = arith.mulf %383, %382 : vector<16x128xf32>
    %385 = arith.addf %365, %384 : vector<16x128xf32>
    %c1_186 = arith.constant 1 : index
    %c0_187 = arith.constant 0 : index
    %c3_188 = arith.constant 3 : index
    %386 = vector.load %arg4[%c1_186, %c0_187, %c3_188] : memref<2x22x256xf32, #tpu.memory_space<vmem>>, vector<1x16x128xf32>
    %387 = vector.shape_cast %386 : vector<1x16x128xf32> to vector<16x128xf32>
    %388 = vector.broadcast %52 : f32 to vector<16x128xf32>
    %389 = arith.mulf %388, %387 : vector<16x128xf32>
    %390 = arith.addf %370, %389 : vector<16x128xf32>
    %c1_189 = arith.constant 1 : index
    %c0_190 = arith.constant 0 : index
    %c4_191 = arith.constant 4 : index
    %391 = vector.load %arg4[%c1_189, %c0_190, %c4_191] : memref<2x22x256xf32, #tpu.memory_space<vmem>>, vector<1x16x128xf32>
    %392 = vector.shape_cast %391 : vector<1x16x128xf32> to vector<16x128xf32>
    %393 = vector.broadcast %53 : f32 to vector<16x128xf32>
    %394 = arith.mulf %393, %392 : vector<16x128xf32>
    %395 = arith.addf %375, %394 : vector<16x128xf32>
    %c1_192 = arith.constant 1 : index
    %c0_193 = arith.constant 0 : index
    %c5_194 = arith.constant 5 : index
    %396 = vector.load %arg4[%c1_192, %c0_193, %c5_194] : memref<2x22x256xf32, #tpu.memory_space<vmem>>, vector<1x16x128xf32>
    %397 = vector.shape_cast %396 : vector<1x16x128xf32> to vector<16x128xf32>
    %398 = vector.broadcast %54 : f32 to vector<16x128xf32>
    %399 = arith.mulf %398, %397 : vector<16x128xf32>
    %400 = arith.addf %380, %399 : vector<16x128xf32>
    %c1_195 = arith.constant 1 : index
    %c0_196 = arith.constant 0 : index
    %c6_197 = arith.constant 6 : index
    %401 = vector.load %arg4[%c1_195, %c0_196, %c6_197] : memref<2x22x256xf32, #tpu.memory_space<vmem>>, vector<1x16x128xf32>
    %402 = vector.shape_cast %401 : vector<1x16x128xf32> to vector<16x128xf32>
    %403 = vector.broadcast %55 : f32 to vector<16x128xf32>
    %404 = arith.mulf %403, %402 : vector<16x128xf32>
    %405 = arith.addf %385, %404 : vector<16x128xf32>
    %c1_198 = arith.constant 1 : index
    %c1_199 = arith.constant 1 : index
    %c0_200 = arith.constant 0 : index
    %406 = vector.load %arg4[%c1_198, %c1_199, %c0_200] : memref<2x22x256xf32, #tpu.memory_space<vmem>>, vector<1x16x128xf32>
    %407 = vector.shape_cast %406 : vector<1x16x128xf32> to vector<16x128xf32>
    %408 = vector.broadcast %56 : f32 to vector<16x128xf32>
    %409 = arith.mulf %408, %407 : vector<16x128xf32>
    %410 = arith.addf %390, %409 : vector<16x128xf32>
    %c1_201 = arith.constant 1 : index
    %c1_202 = arith.constant 1 : index
    %c1_203 = arith.constant 1 : index
    %411 = vector.load %arg4[%c1_201, %c1_202, %c1_203] : memref<2x22x256xf32, #tpu.memory_space<vmem>>, vector<1x16x128xf32>
    %412 = vector.shape_cast %411 : vector<1x16x128xf32> to vector<16x128xf32>
    %413 = vector.broadcast %57 : f32 to vector<16x128xf32>
    %414 = arith.mulf %413, %412 : vector<16x128xf32>
    %415 = arith.addf %395, %414 : vector<16x128xf32>
    %c1_204 = arith.constant 1 : index
    %c1_205 = arith.constant 1 : index
    %c2_206 = arith.constant 2 : index
    %416 = vector.load %arg4[%c1_204, %c1_205, %c2_206] : memref<2x22x256xf32, #tpu.memory_space<vmem>>, vector<1x16x128xf32>
    %417 = vector.shape_cast %416 : vector<1x16x128xf32> to vector<16x128xf32>
    %418 = vector.broadcast %58 : f32 to vector<16x128xf32>
    %419 = arith.mulf %418, %417 : vector<16x128xf32>
    %420 = arith.addf %400, %419 : vector<16x128xf32>
    %c1_207 = arith.constant 1 : index
    %c1_208 = arith.constant 1 : index
    %c3_209 = arith.constant 3 : index
    %421 = vector.load %arg4[%c1_207, %c1_208, %c3_209] : memref<2x22x256xf32, #tpu.memory_space<vmem>>, vector<1x16x128xf32>
    %422 = vector.shape_cast %421 : vector<1x16x128xf32> to vector<16x128xf32>
    %423 = vector.broadcast %59 : f32 to vector<16x128xf32>
    %424 = arith.mulf %423, %422 : vector<16x128xf32>
    %425 = arith.addf %405, %424 : vector<16x128xf32>
    %c1_210 = arith.constant 1 : index
    %c1_211 = arith.constant 1 : index
    %c4_212 = arith.constant 4 : index
    %426 = vector.load %arg4[%c1_210, %c1_211, %c4_212] : memref<2x22x256xf32, #tpu.memory_space<vmem>>, vector<1x16x128xf32>
    %427 = vector.shape_cast %426 : vector<1x16x128xf32> to vector<16x128xf32>
    %428 = vector.broadcast %60 : f32 to vector<16x128xf32>
    %429 = arith.mulf %428, %427 : vector<16x128xf32>
    %430 = arith.addf %410, %429 : vector<16x128xf32>
    %c1_213 = arith.constant 1 : index
    %c1_214 = arith.constant 1 : index
    %c5_215 = arith.constant 5 : index
    %431 = vector.load %arg4[%c1_213, %c1_214, %c5_215] : memref<2x22x256xf32, #tpu.memory_space<vmem>>, vector<1x16x128xf32>
    %432 = vector.shape_cast %431 : vector<1x16x128xf32> to vector<16x128xf32>
    %433 = vector.broadcast %61 : f32 to vector<16x128xf32>
    %434 = arith.mulf %433, %432 : vector<16x128xf32>
    %435 = arith.addf %415, %434 : vector<16x128xf32>
    %c1_216 = arith.constant 1 : index
    %c1_217 = arith.constant 1 : index
    %c6_218 = arith.constant 6 : index
    %436 = vector.load %arg4[%c1_216, %c1_217, %c6_218] : memref<2x22x256xf32, #tpu.memory_space<vmem>>, vector<1x16x128xf32>
    %437 = vector.shape_cast %436 : vector<1x16x128xf32> to vector<16x128xf32>
    %438 = vector.broadcast %62 : f32 to vector<16x128xf32>
    %439 = arith.mulf %438, %437 : vector<16x128xf32>
    %440 = arith.addf %420, %439 : vector<16x128xf32>
    %c1_219 = arith.constant 1 : index
    %c2_220 = arith.constant 2 : index
    %c0_221 = arith.constant 0 : index
    %441 = vector.load %arg4[%c1_219, %c2_220, %c0_221] : memref<2x22x256xf32, #tpu.memory_space<vmem>>, vector<1x16x128xf32>
    %442 = vector.shape_cast %441 : vector<1x16x128xf32> to vector<16x128xf32>
    %443 = vector.broadcast %63 : f32 to vector<16x128xf32>
    %444 = arith.mulf %443, %442 : vector<16x128xf32>
    %445 = arith.addf %425, %444 : vector<16x128xf32>
    %c1_222 = arith.constant 1 : index
    %c2_223 = arith.constant 2 : index
    %c1_224 = arith.constant 1 : index
    %446 = vector.load %arg4[%c1_222, %c2_223, %c1_224] : memref<2x22x256xf32, #tpu.memory_space<vmem>>, vector<1x16x128xf32>
    %447 = vector.shape_cast %446 : vector<1x16x128xf32> to vector<16x128xf32>
    %448 = vector.broadcast %64 : f32 to vector<16x128xf32>
    %449 = arith.mulf %448, %447 : vector<16x128xf32>
    %450 = arith.addf %430, %449 : vector<16x128xf32>
    %c1_225 = arith.constant 1 : index
    %c2_226 = arith.constant 2 : index
    %c2_227 = arith.constant 2 : index
    %451 = vector.load %arg4[%c1_225, %c2_226, %c2_227] : memref<2x22x256xf32, #tpu.memory_space<vmem>>, vector<1x16x128xf32>
    %452 = vector.shape_cast %451 : vector<1x16x128xf32> to vector<16x128xf32>
    %453 = vector.broadcast %65 : f32 to vector<16x128xf32>
    %454 = arith.mulf %453, %452 : vector<16x128xf32>
    %455 = arith.addf %435, %454 : vector<16x128xf32>
    %c1_228 = arith.constant 1 : index
    %c2_229 = arith.constant 2 : index
    %c3_230 = arith.constant 3 : index
    %456 = vector.load %arg4[%c1_228, %c2_229, %c3_230] : memref<2x22x256xf32, #tpu.memory_space<vmem>>, vector<1x16x128xf32>
    %457 = vector.shape_cast %456 : vector<1x16x128xf32> to vector<16x128xf32>
    %458 = vector.broadcast %66 : f32 to vector<16x128xf32>
    %459 = arith.mulf %458, %457 : vector<16x128xf32>
    %460 = arith.addf %440, %459 : vector<16x128xf32>
    %c1_231 = arith.constant 1 : index
    %c2_232 = arith.constant 2 : index
    %c4_233 = arith.constant 4 : index
    %461 = vector.load %arg4[%c1_231, %c2_232, %c4_233] : memref<2x22x256xf32, #tpu.memory_space<vmem>>, vector<1x16x128xf32>
    %462 = vector.shape_cast %461 : vector<1x16x128xf32> to vector<16x128xf32>
    %463 = vector.broadcast %67 : f32 to vector<16x128xf32>
    %464 = arith.mulf %463, %462 : vector<16x128xf32>
    %465 = arith.addf %445, %464 : vector<16x128xf32>
    %c1_234 = arith.constant 1 : index
    %c2_235 = arith.constant 2 : index
    %c5_236 = arith.constant 5 : index
    %466 = vector.load %arg4[%c1_234, %c2_235, %c5_236] : memref<2x22x256xf32, #tpu.memory_space<vmem>>, vector<1x16x128xf32>
    %467 = vector.shape_cast %466 : vector<1x16x128xf32> to vector<16x128xf32>
    %468 = vector.broadcast %68 : f32 to vector<16x128xf32>
    %469 = arith.mulf %468, %467 : vector<16x128xf32>
    %470 = arith.addf %450, %469 : vector<16x128xf32>
    %c1_237 = arith.constant 1 : index
    %c2_238 = arith.constant 2 : index
    %c6_239 = arith.constant 6 : index
    %471 = vector.load %arg4[%c1_237, %c2_238, %c6_239] : memref<2x22x256xf32, #tpu.memory_space<vmem>>, vector<1x16x128xf32>
    %472 = vector.shape_cast %471 : vector<1x16x128xf32> to vector<16x128xf32>
    %473 = vector.broadcast %69 : f32 to vector<16x128xf32>
    %474 = arith.mulf %473, %472 : vector<16x128xf32>
    %475 = arith.addf %455, %474 : vector<16x128xf32>
    %c1_240 = arith.constant 1 : index
    %c3_241 = arith.constant 3 : index
    %c0_242 = arith.constant 0 : index
    %476 = vector.load %arg4[%c1_240, %c3_241, %c0_242] : memref<2x22x256xf32, #tpu.memory_space<vmem>>, vector<1x16x128xf32>
    %477 = vector.shape_cast %476 : vector<1x16x128xf32> to vector<16x128xf32>
    %478 = vector.broadcast %70 : f32 to vector<16x128xf32>
    %479 = arith.mulf %478, %477 : vector<16x128xf32>
    %480 = arith.addf %460, %479 : vector<16x128xf32>
    %c1_243 = arith.constant 1 : index
    %c3_244 = arith.constant 3 : index
    %c1_245 = arith.constant 1 : index
    %481 = vector.load %arg4[%c1_243, %c3_244, %c1_245] : memref<2x22x256xf32, #tpu.memory_space<vmem>>, vector<1x16x128xf32>
    %482 = vector.shape_cast %481 : vector<1x16x128xf32> to vector<16x128xf32>
    %483 = vector.broadcast %71 : f32 to vector<16x128xf32>
    %484 = arith.mulf %483, %482 : vector<16x128xf32>
    %485 = arith.addf %465, %484 : vector<16x128xf32>
    %c1_246 = arith.constant 1 : index
    %c3_247 = arith.constant 3 : index
    %c2_248 = arith.constant 2 : index
    %486 = vector.load %arg4[%c1_246, %c3_247, %c2_248] : memref<2x22x256xf32, #tpu.memory_space<vmem>>, vector<1x16x128xf32>
    %487 = vector.shape_cast %486 : vector<1x16x128xf32> to vector<16x128xf32>
    %488 = vector.broadcast %72 : f32 to vector<16x128xf32>
    %489 = arith.mulf %488, %487 : vector<16x128xf32>
    %490 = arith.addf %470, %489 : vector<16x128xf32>
    %c1_249 = arith.constant 1 : index
    %c3_250 = arith.constant 3 : index
    %c3_251 = arith.constant 3 : index
    %491 = vector.load %arg4[%c1_249, %c3_250, %c3_251] : memref<2x22x256xf32, #tpu.memory_space<vmem>>, vector<1x16x128xf32>
    %492 = vector.shape_cast %491 : vector<1x16x128xf32> to vector<16x128xf32>
    %493 = vector.broadcast %73 : f32 to vector<16x128xf32>
    %494 = arith.mulf %493, %492 : vector<16x128xf32>
    %495 = arith.addf %475, %494 : vector<16x128xf32>
    %c1_252 = arith.constant 1 : index
    %c3_253 = arith.constant 3 : index
    %c4_254 = arith.constant 4 : index
    %496 = vector.load %arg4[%c1_252, %c3_253, %c4_254] : memref<2x22x256xf32, #tpu.memory_space<vmem>>, vector<1x16x128xf32>
    %497 = vector.shape_cast %496 : vector<1x16x128xf32> to vector<16x128xf32>
    %498 = vector.broadcast %74 : f32 to vector<16x128xf32>
    %499 = arith.mulf %498, %497 : vector<16x128xf32>
    %500 = arith.addf %480, %499 : vector<16x128xf32>
    %c1_255 = arith.constant 1 : index
    %c3_256 = arith.constant 3 : index
    %c5_257 = arith.constant 5 : index
    %501 = vector.load %arg4[%c1_255, %c3_256, %c5_257] : memref<2x22x256xf32, #tpu.memory_space<vmem>>, vector<1x16x128xf32>
    %502 = vector.shape_cast %501 : vector<1x16x128xf32> to vector<16x128xf32>
    %503 = vector.broadcast %75 : f32 to vector<16x128xf32>
    %504 = arith.mulf %503, %502 : vector<16x128xf32>
    %505 = arith.addf %485, %504 : vector<16x128xf32>
    %c1_258 = arith.constant 1 : index
    %c3_259 = arith.constant 3 : index
    %c6_260 = arith.constant 6 : index
    %506 = vector.load %arg4[%c1_258, %c3_259, %c6_260] : memref<2x22x256xf32, #tpu.memory_space<vmem>>, vector<1x16x128xf32>
    %507 = vector.shape_cast %506 : vector<1x16x128xf32> to vector<16x128xf32>
    %508 = vector.broadcast %76 : f32 to vector<16x128xf32>
    %509 = arith.mulf %508, %507 : vector<16x128xf32>
    %510 = arith.addf %490, %509 : vector<16x128xf32>
    %c1_261 = arith.constant 1 : index
    %c4_262 = arith.constant 4 : index
    %c0_263 = arith.constant 0 : index
    %511 = vector.load %arg4[%c1_261, %c4_262, %c0_263] : memref<2x22x256xf32, #tpu.memory_space<vmem>>, vector<1x16x128xf32>
    %512 = vector.shape_cast %511 : vector<1x16x128xf32> to vector<16x128xf32>
    %513 = vector.broadcast %77 : f32 to vector<16x128xf32>
    %514 = arith.mulf %513, %512 : vector<16x128xf32>
    %515 = arith.addf %495, %514 : vector<16x128xf32>
    %c1_264 = arith.constant 1 : index
    %c4_265 = arith.constant 4 : index
    %c1_266 = arith.constant 1 : index
    %516 = vector.load %arg4[%c1_264, %c4_265, %c1_266] : memref<2x22x256xf32, #tpu.memory_space<vmem>>, vector<1x16x128xf32>
    %517 = vector.shape_cast %516 : vector<1x16x128xf32> to vector<16x128xf32>
    %518 = vector.broadcast %78 : f32 to vector<16x128xf32>
    %519 = arith.mulf %518, %517 : vector<16x128xf32>
    %520 = arith.addf %500, %519 : vector<16x128xf32>
    %c1_267 = arith.constant 1 : index
    %c4_268 = arith.constant 4 : index
    %c2_269 = arith.constant 2 : index
    %521 = vector.load %arg4[%c1_267, %c4_268, %c2_269] : memref<2x22x256xf32, #tpu.memory_space<vmem>>, vector<1x16x128xf32>
    %522 = vector.shape_cast %521 : vector<1x16x128xf32> to vector<16x128xf32>
    %523 = vector.broadcast %79 : f32 to vector<16x128xf32>
    %524 = arith.mulf %523, %522 : vector<16x128xf32>
    %525 = arith.addf %505, %524 : vector<16x128xf32>
    %c1_270 = arith.constant 1 : index
    %c4_271 = arith.constant 4 : index
    %c3_272 = arith.constant 3 : index
    %526 = vector.load %arg4[%c1_270, %c4_271, %c3_272] : memref<2x22x256xf32, #tpu.memory_space<vmem>>, vector<1x16x128xf32>
    %527 = vector.shape_cast %526 : vector<1x16x128xf32> to vector<16x128xf32>
    %528 = vector.broadcast %80 : f32 to vector<16x128xf32>
    %529 = arith.mulf %528, %527 : vector<16x128xf32>
    %530 = arith.addf %510, %529 : vector<16x128xf32>
    %c1_273 = arith.constant 1 : index
    %c4_274 = arith.constant 4 : index
    %c4_275 = arith.constant 4 : index
    %531 = vector.load %arg4[%c1_273, %c4_274, %c4_275] : memref<2x22x256xf32, #tpu.memory_space<vmem>>, vector<1x16x128xf32>
    %532 = vector.shape_cast %531 : vector<1x16x128xf32> to vector<16x128xf32>
    %533 = vector.broadcast %81 : f32 to vector<16x128xf32>
    %534 = arith.mulf %533, %532 : vector<16x128xf32>
    %535 = arith.addf %515, %534 : vector<16x128xf32>
    %c1_276 = arith.constant 1 : index
    %c4_277 = arith.constant 4 : index
    %c5_278 = arith.constant 5 : index
    %536 = vector.load %arg4[%c1_276, %c4_277, %c5_278] : memref<2x22x256xf32, #tpu.memory_space<vmem>>, vector<1x16x128xf32>
    %537 = vector.shape_cast %536 : vector<1x16x128xf32> to vector<16x128xf32>
    %538 = vector.broadcast %82 : f32 to vector<16x128xf32>
    %539 = arith.mulf %538, %537 : vector<16x128xf32>
    %540 = arith.addf %520, %539 : vector<16x128xf32>
    %c1_279 = arith.constant 1 : index
    %c4_280 = arith.constant 4 : index
    %c6_281 = arith.constant 6 : index
    %541 = vector.load %arg4[%c1_279, %c4_280, %c6_281] : memref<2x22x256xf32, #tpu.memory_space<vmem>>, vector<1x16x128xf32>
    %542 = vector.shape_cast %541 : vector<1x16x128xf32> to vector<16x128xf32>
    %543 = vector.broadcast %83 : f32 to vector<16x128xf32>
    %544 = arith.mulf %543, %542 : vector<16x128xf32>
    %545 = arith.addf %525, %544 : vector<16x128xf32>
    %c1_282 = arith.constant 1 : index
    %c5_283 = arith.constant 5 : index
    %c0_284 = arith.constant 0 : index
    %546 = vector.load %arg4[%c1_282, %c5_283, %c0_284] : memref<2x22x256xf32, #tpu.memory_space<vmem>>, vector<1x16x128xf32>
    %547 = vector.shape_cast %546 : vector<1x16x128xf32> to vector<16x128xf32>
    %548 = vector.broadcast %84 : f32 to vector<16x128xf32>
    %549 = arith.mulf %548, %547 : vector<16x128xf32>
    %550 = arith.addf %530, %549 : vector<16x128xf32>
    %c1_285 = arith.constant 1 : index
    %c5_286 = arith.constant 5 : index
    %c1_287 = arith.constant 1 : index
    %551 = vector.load %arg4[%c1_285, %c5_286, %c1_287] : memref<2x22x256xf32, #tpu.memory_space<vmem>>, vector<1x16x128xf32>
    %552 = vector.shape_cast %551 : vector<1x16x128xf32> to vector<16x128xf32>
    %553 = vector.broadcast %85 : f32 to vector<16x128xf32>
    %554 = arith.mulf %553, %552 : vector<16x128xf32>
    %555 = arith.addf %535, %554 : vector<16x128xf32>
    %c1_288 = arith.constant 1 : index
    %c5_289 = arith.constant 5 : index
    %c2_290 = arith.constant 2 : index
    %556 = vector.load %arg4[%c1_288, %c5_289, %c2_290] : memref<2x22x256xf32, #tpu.memory_space<vmem>>, vector<1x16x128xf32>
    %557 = vector.shape_cast %556 : vector<1x16x128xf32> to vector<16x128xf32>
    %558 = vector.broadcast %86 : f32 to vector<16x128xf32>
    %559 = arith.mulf %558, %557 : vector<16x128xf32>
    %560 = arith.addf %540, %559 : vector<16x128xf32>
    %c1_291 = arith.constant 1 : index
    %c5_292 = arith.constant 5 : index
    %c3_293 = arith.constant 3 : index
    %561 = vector.load %arg4[%c1_291, %c5_292, %c3_293] : memref<2x22x256xf32, #tpu.memory_space<vmem>>, vector<1x16x128xf32>
    %562 = vector.shape_cast %561 : vector<1x16x128xf32> to vector<16x128xf32>
    %563 = vector.broadcast %87 : f32 to vector<16x128xf32>
    %564 = arith.mulf %563, %562 : vector<16x128xf32>
    %565 = arith.addf %545, %564 : vector<16x128xf32>
    %c1_294 = arith.constant 1 : index
    %c5_295 = arith.constant 5 : index
    %c4_296 = arith.constant 4 : index
    %566 = vector.load %arg4[%c1_294, %c5_295, %c4_296] : memref<2x22x256xf32, #tpu.memory_space<vmem>>, vector<1x16x128xf32>
    %567 = vector.shape_cast %566 : vector<1x16x128xf32> to vector<16x128xf32>
    %568 = vector.broadcast %88 : f32 to vector<16x128xf32>
    %569 = arith.mulf %568, %567 : vector<16x128xf32>
    %570 = arith.addf %550, %569 : vector<16x128xf32>
    %c1_297 = arith.constant 1 : index
    %c5_298 = arith.constant 5 : index
    %c5_299 = arith.constant 5 : index
    %571 = vector.load %arg4[%c1_297, %c5_298, %c5_299] : memref<2x22x256xf32, #tpu.memory_space<vmem>>, vector<1x16x128xf32>
    %572 = vector.shape_cast %571 : vector<1x16x128xf32> to vector<16x128xf32>
    %573 = vector.broadcast %89 : f32 to vector<16x128xf32>
    %574 = arith.mulf %573, %572 : vector<16x128xf32>
    %575 = arith.addf %555, %574 : vector<16x128xf32>
    %c1_300 = arith.constant 1 : index
    %c5_301 = arith.constant 5 : index
    %c6_302 = arith.constant 6 : index
    %576 = vector.load %arg4[%c1_300, %c5_301, %c6_302] : memref<2x22x256xf32, #tpu.memory_space<vmem>>, vector<1x16x128xf32>
    %577 = vector.shape_cast %576 : vector<1x16x128xf32> to vector<16x128xf32>
    %578 = vector.broadcast %90 : f32 to vector<16x128xf32>
    %579 = arith.mulf %578, %577 : vector<16x128xf32>
    %580 = arith.addf %560, %579 : vector<16x128xf32>
    %c1_303 = arith.constant 1 : index
    %c6_304 = arith.constant 6 : index
    %c0_305 = arith.constant 0 : index
    %581 = vector.load %arg4[%c1_303, %c6_304, %c0_305] : memref<2x22x256xf32, #tpu.memory_space<vmem>>, vector<1x16x128xf32>
    %582 = vector.shape_cast %581 : vector<1x16x128xf32> to vector<16x128xf32>
    %583 = vector.broadcast %91 : f32 to vector<16x128xf32>
    %584 = arith.mulf %583, %582 : vector<16x128xf32>
    %585 = arith.addf %565, %584 : vector<16x128xf32>
    %c1_306 = arith.constant 1 : index
    %c6_307 = arith.constant 6 : index
    %c1_308 = arith.constant 1 : index
    %586 = vector.load %arg4[%c1_306, %c6_307, %c1_308] : memref<2x22x256xf32, #tpu.memory_space<vmem>>, vector<1x16x128xf32>
    %587 = vector.shape_cast %586 : vector<1x16x128xf32> to vector<16x128xf32>
    %588 = vector.broadcast %92 : f32 to vector<16x128xf32>
    %589 = arith.mulf %588, %587 : vector<16x128xf32>
    %590 = arith.addf %570, %589 : vector<16x128xf32>
    %c1_309 = arith.constant 1 : index
    %c6_310 = arith.constant 6 : index
    %c2_311 = arith.constant 2 : index
    %591 = vector.load %arg4[%c1_309, %c6_310, %c2_311] : memref<2x22x256xf32, #tpu.memory_space<vmem>>, vector<1x16x128xf32>
    %592 = vector.shape_cast %591 : vector<1x16x128xf32> to vector<16x128xf32>
    %593 = vector.broadcast %93 : f32 to vector<16x128xf32>
    %594 = arith.mulf %593, %592 : vector<16x128xf32>
    %595 = arith.addf %575, %594 : vector<16x128xf32>
    %c1_312 = arith.constant 1 : index
    %c6_313 = arith.constant 6 : index
    %c3_314 = arith.constant 3 : index
    %596 = vector.load %arg4[%c1_312, %c6_313, %c3_314] : memref<2x22x256xf32, #tpu.memory_space<vmem>>, vector<1x16x128xf32>
    %597 = vector.shape_cast %596 : vector<1x16x128xf32> to vector<16x128xf32>
    %598 = vector.broadcast %94 : f32 to vector<16x128xf32>
    %599 = arith.mulf %598, %597 : vector<16x128xf32>
    %600 = arith.addf %580, %599 : vector<16x128xf32>
    %c1_315 = arith.constant 1 : index
    %c6_316 = arith.constant 6 : index
    %c4_317 = arith.constant 4 : index
    %601 = vector.load %arg4[%c1_315, %c6_316, %c4_317] : memref<2x22x256xf32, #tpu.memory_space<vmem>>, vector<1x16x128xf32>
    %602 = vector.shape_cast %601 : vector<1x16x128xf32> to vector<16x128xf32>
    %603 = vector.broadcast %95 : f32 to vector<16x128xf32>
    %604 = arith.mulf %603, %602 : vector<16x128xf32>
    %605 = arith.addf %585, %604 : vector<16x128xf32>
    %c1_318 = arith.constant 1 : index
    %c6_319 = arith.constant 6 : index
    %c5_320 = arith.constant 5 : index
    %606 = vector.load %arg4[%c1_318, %c6_319, %c5_320] : memref<2x22x256xf32, #tpu.memory_space<vmem>>, vector<1x16x128xf32>
    %607 = vector.shape_cast %606 : vector<1x16x128xf32> to vector<16x128xf32>
    %608 = vector.broadcast %96 : f32 to vector<16x128xf32>
    %609 = arith.mulf %608, %607 : vector<16x128xf32>
    %610 = arith.addf %590, %609 : vector<16x128xf32>
    %c1_321 = arith.constant 1 : index
    %c6_322 = arith.constant 6 : index
    %c6_323 = arith.constant 6 : index
    %611 = vector.load %arg4[%c1_321, %c6_322, %c6_323] : memref<2x22x256xf32, #tpu.memory_space<vmem>>, vector<1x16x128xf32>
    %612 = vector.shape_cast %611 : vector<1x16x128xf32> to vector<16x128xf32>
    %613 = vector.broadcast %97 : f32 to vector<16x128xf32>
    %614 = arith.mulf %613, %612 : vector<16x128xf32>
    %615 = arith.addf %595, %614 : vector<16x128xf32>
    %616 = arith.addf %610, %615 : vector<16x128xf32>
    %617 = arith.addf %600, %605 : vector<16x128xf32>
    %618 = arith.addf %616, %617 : vector<16x128xf32>
    %619 = arith.negf %618 : vector<16x128xf32>
    %620 = math.exp %619 : vector<16x128xf32>
    %cst_324 = arith.constant 1.000000e+00 : f32
    %621 = vector.broadcast %cst_324 : f32 to vector<16x128xf32>
    %622 = arith.addf %621, %620 : vector<16x128xf32>
    %623 = arith.divf %621, %622 : vector<16x128xf32>
    %c0_325 = arith.constant 0 : index
    %c0_326 = arith.constant 0 : index
    %c0_327 = arith.constant 0 : index
    %624 = vector.load %arg3[%c0_325, %c0_326, %c0_327] : memref<1x16x128xf32, #tpu.memory_space<vmem>>, vector<1x16x128xf32>
    %625 = vector.shape_cast %624 : vector<1x16x128xf32> to vector<16x128xf32>
    %626 = vector.shape_cast %623 : vector<16x128xf32> to vector<1x16x128xf32>
    tpu.vector_store %arg3[%c0_325, %c0_326, %c0_327], %626 {strides = array<i32>} : memref<1x16x128xf32, #tpu.memory_space<vmem>>, vector<1x16x128xf32>,
    return
  }
  func.func @transform_0(%arg0: i32) -> i32 {
    %c0_i32 = arith.constant 0 : i32
    %c0_i32_0 = arith.constant 0 : i32
    return %c0_i32 : i32
  }
  func.func @transform_1(%arg0: i32) -> (i32, i32, i32, i32) {
    %c0_i32 = arith.constant 0 : i32
    %c0_i32_0 = arith.constant 0 : i32
    %c0_i32_1 = arith.constant 0 : i32
    %c0_i32_2 = arith.constant 0 : i32
    return %arg0, %c0_i32, %c0_i32_0, %c0_i32_1 : i32, i32, i32, i32
  }
  func.func @transform_2(%arg0: i32) -> (i32, i32, i32) {
    %c0_i32 = arith.constant 0 : i32
    %c0_i32_0 = arith.constant 0 : i32
    %c0_i32_1 = arith.constant 0 : i32
    return %arg0, %c0_i32, %c0_i32_0 : i32, i32, i32
  }
}

</mosaic_0001>

<bundles_post_ra>
// kernel: tpu_custom_call.1
= control target key start
LH: loop header
LB: loop body
LE: loop exit
PB: predicated region body
PF: predicated region fallthrough
CT: control target
= control target key end

     0   :  { %7 = vsyncpa [#allocation6], 0  ;;  %s7912_s0 = inlined_call_operand.hbm [shape: f32[98], index: 0, kind: input, shape index: {}]   ;;  %s7913_s1 = inlined_call_operand.hbm [shape: f32[2,4,16,16], index: 1, kind: input, shape index: {}]   ;;  %s7914_s2 = inlined_call_operand.hbm [shape: f32[2,16,128], index: 2, kind: output, shape index: {}]  }
   0x1   :  { %8 = vsyncpa [#allocation4], 0 }
   0x2   :  { %10 = vsyncpa [#allocation4 + $0x1], 0 }
   0x3   :  { %11 = vsyncpa [#allocation5], 0 }
   0x4   :  { %13 = vsyncpa [#allocation5 + $0x1], 0  ;;  %s4288_s9 = smov 0   ;;  %s4290_s10 = smov 0  }
   0x5   :  { %s4292_s11 = smov 0   ;;  %s4294_s12 = smov 0  }
   0x6 LB: > { %s4309_s13 = sadd.s32 4294967295, %s4254_s12   ;;  %s3902_s14 = sadd.s32 4294967294, %s4254_s12   ;;  %s4254_s12 = sphi %s4294_s12, %s8656_s12   ;;  %s4250_s11 = sphi %s4292_s11, %s8655_s11   ;;  %s4246_s10 = sphi %s4290_s10, %s8654_s10   ;;  %s4242_s9 = sphi %s4288_s9, %s8653_s9  }
   0x7   : > { %s4313_s15 = sadd.s32 1, %s4254_s12   ;;  %s47_s16 = sadd.s32 1, %s4250_s11 }
   0x8   : > { %s44_s17 = ssub.s32 %s4254_s12, %s4313_s15  ;;  %p54_p0 = scmp.ne.s32.totalorder %s4250_s11, %s4246_s10 }
   0x9   : > { %p45_p1 = scmp.eq.s32.totalorder %s44_s17, 0  ;;  %p55_p2 = scmp.eq.s32.totalorder %s4254_s12, 0 }
   0xa   : > { %p60_p3 = scmp.ne.s32.totalorder %s4246_s10, %s4242_s9  ;;  %p7915_p4 = scmp.eq.s32.totalorder %s4309_s13, 0 }
   0xb   : > { %s4325_s18 = scalar_select %p45_p1, %s4250_s11, %s47_s16  }
   0xc   : > { %p4327_p5 = por %p55_p2, %p54_p0  ;;  %p4333_p6 = por %p7915_p4, %p60_p3 }
   0xd   : > { %p84_p7 = scmp.eq.s32.totalorder %s4309_s13, 1  ;;  %p90_p8 = scmp.eq.s32.totalorder %s3902_s14, 1 }
   0xe   : > { %s8068_s20 = scalar_select %p4333_p6, 1, 0 }
   0xf   : > { %p3903_p9 = scmp.ge.s32.totalorder %s4254_s12, 1  ;;  %p97_p10 = scmp.lt.s32.totalorder %s4254_s12, 3 }
  0x10   : > { %p4340_p11 = por %p84_p7, %p54_p0  ;;  %p4344_p12 = por %p90_p8, %p60_p3 }
  0x11   : > { %p4348_p13 = pnand %p3903_p9, %p97_p10  ;;  %p4046_p4 = scmp.lt.s32.totalorder %s4254_s12, 2 }
  0x12   : > { %s8069_s21 = scalar_select %p4340_p11, 1, 0 }
  0x13   : > { %s8070_s22 = scalar_select %p4344_p12, 1, 0 }
  0x14   : > { %p4033_p2 = pneg %p4348_p13  ;;  %s119_s24 = sand.u32 1, %s4250_s11  }
  0x15   : > { %s4023_s25 = sshll.u32 %s4254_s12, 10  ;;  %p8072_p6 = scmp.eq.s32.totalorder %s4309_s13, 0 }
  0x16   : > { %p4362_p7 = pnand %p4046_p4, %p4327_p5  ;;  %s3906_s27 = sshll.u32 %s119_s24, 6 }
  0x17   : > { %p4034_p0 = pnand %p4033_p2, %p8072_p6  ;;  %s4141_s30 = scalar_lea.hbm %s7912_s0, 16 }
  0x18   : > { %p4142_p3 = scmp.ne.s32.totalorder %s7912_s0, %s4141_s30  ;;  %p4148_p6 = scmp.lt.u32.totalorder %s4141_s30, %s7912_s0 }
  0x19   : > { %p4143_p8 = pneg %p4034_p0 }
  0x1b   : > { %p4144_p9 = pnand %p4143_p8, %p4142_p3 }
  0x1d   : > { %p4145_p10 = pneg %p4144_p9 }
  0x1f   : > { %p4150_p4 = pnand %p4148_p6, %p4145_p10 }
  0x21   : > { %4153 = shalt.err (!%p4150_p4)
}
  0x22   : > { %s4256_s7 = smov [#allocation3]   ;;  %s4381_s19 = scalar_lea.hbm %s7913_s1, %s4023_s25 }
  0x23   : > { %4036 = dma.hbm_to_smem (!%p4034_p0), %s7912_s0, 16, %s4256_s7, [#allocation6]  }
  0x24   : > { %s123_s28 = scalar_lea.vmem [#allocation7], %s3906_s27  ;;  %s4385_s30 = scalar_lea.sflag [#allocation4], %s119_s24 }
  0x25   : > { %s130_s29 = sshll.u32 %s123_s28, 4  ;;  %s4154_s3 = scalar_lea.hbm %s4381_s19, 1024  ;;  %s4383_s29 = int_to_ptr.vmem [resolvable:$true] %s130_s29 }
  0x26   : > { %p4155_p5 = scmp.ne.s32.totalorder %s4381_s19, %s4154_s3  ;;  %p4156_p2 = pneg %p4362_p7 }
  0x27   : > { %s4159_s5 = scalar_lea.hbm %s7913_s1, 2048  ;;  %p4160_p8 = scmp.lt.u32.totalorder %s4381_s19, %s7913_s1 }
  0x28   : > { %p4157_p0 = pnand %p4156_p2, %p4155_p5  ;;  %p4161_p9 = scmp.lt.u32.totalorder %s4159_s5, %s4154_s3 }
  0x29   : > { %p4163_p6 = scmp.lt.u32.totalorder %s4154_s3, %s4381_s19 }
  0x2a   : > { %p4158_p3 = pneg %p4157_p0  ;;  %p4162_p10 = por %p4161_p9, %p4160_p8 }
  0x2c   : > { %p4164_p4 = por %p4163_p6, %p4162_p10 }
  0x2e   : > { %p4165_p1 = pnand %p4164_p4, %p4158_p3 }
  0x30   : > { %4168 = shalt.err (!%p4165_p1)
}
  0x31   : > { %s4169_s24 = scalar_lea.vmem %s4383_s29, 1024  ;;  %s4257_s27 = smov [#allocation7]  }
  0x32   : > { %p4170_p5 = scmp.ne.s32.totalorder %s4383_s29, %s4169_s24  ;;  %s4174_s8 = sshll.u32 %s4257_s27, 4  ;;  %s4175_s8 = int_to_ptr.vmem [resolvable:$false] %s4174_s8 }
  0x33   : > { %s4176_s14 = scalar_lea.vmem %s4175_s8, 2048  ;;  %p4177_p11 = scmp.lt.s32.totalorder %s4383_s29, %s4175_s8 }
  0x34   : > { %p4172_p0 = pnand %p4170_p5, %p4156_p2  ;;  %p4178_p8 = scmp.lt.s32.totalorder %s4176_s14, %s4169_s24 }
  0x36   : > { %p4173_p12 = pneg %p4172_p0  ;;  %p4179_p9 = por %p4178_p8, %p4177_p11 }
  0x38   : > { %p4180_p10 = pnand %p4179_p9, %p4173_p12 }
  0x3a   : > { %4183 = shalt.err (!%p4180_p10)
}
  0x3b   : > { %s4258_s16 = smov 128   ;;  %s4259_s17 = smov 8  }
  0x3c   : > { %4040 = dma.hbm_to_vmem [thread:$0]  (!%p4362_p7), %s4381_s19, 1024, %s4383_s29, %s4385_s30, %s4258_s16, %s4258_s16, %s4259_s17  }
  0x3d   : > { %142 = sbr.rel (%p4348_p13) target bundleno = 1072 (0x430), region = 28 }
  0x44   : > { %p8074_p1 = scmp.eq.s32.totalorder %s4309_s13, 0 }
  0x46   : > { %4229 = dma.done.wait (%p8074_p1), [#allocation6], 16   ;;  %p8075_p2 = pmov %p8074_p1 }
  0x47   : > { %s4420_s28 = sand.u32 1, %s4246_s10   ;;  %p8076_p11 = scmp.ne.s32.totalorder %s8068_s20, 0 }
  0x48   : > { %4231 = vsyncadd (%p8075_p2), [#allocation6], 4294967280  ;;  %s3911_s3 = sshll.u32 %s4420_s28, 6  ;;  %s149_s25 = scalar_lea.sflag [#allocation4], %s4420_s28 }
  0x49   : > { %s152_s4 = scalar_lea.vmem [#allocation7], %s3911_s3 }
  0x4a   : > { %4233 = dma.done.wait (%p8076_p11), %s149_s25, 1024  }
  0x4b   : > { %4235 = vsyncadd (%p8076_p11), %s149_s25, 4294966272 }
  0x4c   : > { %157 = sfence }
  0x4d   : > { %v284_v0 = vld [vmem:[%s152_s4] sm:$0xff]  ;;  %v4010_v1 = vld [vmem:[%s152_s4 + $0x10] sm:$0xff]  ;;  %v285_v5 = vld [vmem:[%s152_s4 + $0x8] sm:$0xff]  ;;  %v4260_v7 = vmov 0.0   ;;  %s3916_s20 = sld [smem:[#allocation3 + $0x4]]  ;;  %vm311_vm0 = vcmask 1042432  }
  0x4e   : > { %v4012_v2 = vld [vmem:[%s152_s4 + $0x20] sm:$0xff]  ;;  %v291_v3 = vmax.f32 %v284_v0, %v4010_v1  ;;  %v289_v4 = vadd.f32 %v4010_v1, %v284_v0  ;;  %v4011_v6 = vld [vmem:[%s152_s4 + $0x18] sm:$0xff]  ;;  %273 = vst [vmem:[#allocation2 + $0x8] sm:$0xff] %v4260_v7  ;;  %272 = vst [vmem:[#allocation2] sm:$0xff] %v4260_v7  ;;  %s4261_s23 = smov 3   ;;  %s3917_s26 = sld [smem:[#allocation3 + $0x5]] }
  0x4f   : > { %274 = vst [vmem:[#allocation2 + $0x10] sm:$0xff] %v4260_v7  ;;  %276 = vst [vmem:[#allocation2 + $0x20] sm:$0x3f] %v4260_v7  ;;  %v4014_v8 = vld [vmem:[%s152_s4 + $0x30] sm:$0xff]  ;;  %v292_v9 = vmax.f32 %v285_v5, %v4011_v6  ;;  %v4013_v10 = vld [vmem:[%s152_s4 + $0x28] sm:$0xff]  ;;  %v290_v11 = vadd.f32 %v4011_v6, %v285_v5  ;;  %s4262_s19 = smov 124  }
  0x50   : > { %277 = vst [vmem:[#allocation2 + $0x28] sm:$0x3f] %v4260_v7  ;;  %278 = vst [vmem:[#allocation2 + $0x30] sm:$0xff] %v4260_v7  ;;  %v298_v12 = vmax.f32 %v291_v3, %v4012_v2  ;;  %v296_v13 = vadd.f32 %v4012_v2, %v289_v4  ;;  %v4015_v14 = vld [vmem:[%s152_s4 + $0x38] sm:$0xff]  ;;  %s3918_s29 = sld [smem:[#allocation3 + $0x6]]  ;;  %s3920_s30 = sld [smem:[#allocation3 + $0x8]] }
  0x51   : > { %279 = vst [vmem:[#allocation2 + $0x38] sm:$0xff] %v4260_v7  ;;  %280 = vst [vmem:[#allocation2 + $0x40] sm:$0xff] %v4260_v7  ;;  %v299_v15 = vmax.f32 %v292_v9, %v4013_v10  ;;  %v297_v16 = vadd.f32 %v4013_v10, %v290_v11  ;;  %s3921_s5 = sld [smem:[#allocation3 + $0x9]]  ;;  %vm471_vm1 = vcmask 1046528   ;;  %s3922_s6 = sld [smem:[#allocation3 + $0xa]]  ;;  %vm738_vm2 = vcmask 1045504  }
  0x52   : > { %282 = vst [vmem:[#allocation2 + $0x50] sm:$0x3f] %v4260_v7  ;;  %283 = vst [vmem:[#allocation2 + $0x58] sm:$0x3f] %v4260_v7  ;;  %v305_v17 = vmax.f32 %v298_v12, %v4014_v8  ;;  %v303_v18 = vadd.f32 %v4014_v8, %v296_v13  ;;  %s4263_s7 = smov 127   ;;  %s3923_s24 = sld [smem:[#allocation3 + $0xb]] }
  0x53   : > { %v306_v19 = vmax.f32 %v299_v15, %v4015_v14  ;;  %v304_v20 = vadd.f32 %v4015_v14, %v297_v16  ;;  %v4432_v28 = vstv %s3916_s20  ;;  %s3924_s27 = sld [smem:[#allocation3 + $0xc]]  ;;  %s3925_s8 = sld [smem:[#allocation3 + $0xd]]  ;;  %vm324_vm3 = vcmask 154651  }
  0x54   : > { %v332_v21 = vrot.slane %v305_v17, 5  ;;  %v307_v22 = vmul.f32 0.25, %v303_v18  ;;  %v386_v30 = vmul.f32 0.0, %v4432_v28  ;;  %v4440_v31 = vstv %s3917_s26  ;;  %s3927_s14 = sld [smem:[#allocation3 + $0xf]]  ;;  %s4264_s16 = smov 123  }
  0x55   : > { %v333_v23 = vrot.slane %v306_v19, 5  ;;  %v308_v24 = vmul.f32 0.25, %v304_v20  ;;  %v410_v32 = vmul.f32 0.0, %v4440_v31  ;;  %v4447_v34 = vld [vmem:[#allocation2 + $0x8] sm:$0xfe]  ;;  %s3928_s17 = sld [smem:[#allocation3 + $0x10]] }
  0x56   : > { %335 = vrot.lane.b32.xlu1 %v332_v21, %s4261_s23  ;;  %v312_v26 = vrot.slane %v307_v22, 5  ;;  %v4445_v33 = vstv %s3918_s29  ;;  %v4449_v35 = vstv %s3920_s30  ;;  %s3929_s3 = sld [smem:[#allocation3 + $0x11]]  ;;  %s4265_s25 = smov 2   ;;  %vm326_vm4 = vcmask 154648  }
  0x57   : > { %v334_v25 = vsel %vm311_vm0, %v332_v21, %v333_v23  ;;  %v313_v27 = vrot.slane %v308_v24, 5  ;;  %v437_v36 = vmul.f32 0.0, %v4445_v33  ;;  %v491_v37 = vmul.f32 %v4449_v35, %v4447_v34  ;;  %v4456_v39 = vld [vmem:[#allocation2 + $0x28] sm:$0x1]  ;;  %v4516_v24 = vld [vmem:[#allocation2 + $0x8] sm:$0xfc] }
  0x58   : > { %337 = vrot.lane.b32.xlu0 %v334_v25, %s4261_s23  ;;  %v493_v38 = vmul.f32 0.0, %v4449_v35  ;;  %v495_v42 = vmul.f32 %v4449_v35, %v4456_v39  ;;  %v4461_v43 = vstv %s3921_s5  ;;  %v4472_v52 = vstv %s3922_s6  ;;  %s3930_s4 = sld [smem:[#allocation3 + $0x12]]  ;;  %s4266_s20 = smov 126  }
  0x59   : > { %v314_v29 = vsel %vm311_vm0, %v312_v26, %v313_v27  ;;  %v505_v40 = vrot.slane %v491_v37, 1  ;;  %v529_v46 = vmul.f32 %v4461_v43, %v4447_v34  ;;  %v531_v47 = vmul.f32 0.0, %v4461_v43  ;;  %s3931_s26 = sld [smem:[#allocation3 + $0x13]]  ;;  %s3932_s29 = sld [smem:[#allocation3 + $0x14]] }
  0x5a   : > { %339 = vrot.lane.b32.xlu1 %v333_v23, %s4261_s23  ;;  %v506_v41 = vrot.slane %v493_v38, 1  ;;  %v510_v45 = vrot.slane %v495_v42, 1  ;;  %v533_v51 = vmul.f32 %v4461_v43, %v4456_v39  ;;  %v570_v55 = vmul.f32 %v4472_v52, %v4447_v34  ;;  %s3919_s30 = sld [smem:[#allocation3 + $0x7]]  ;;  %s3926_s5 = sld [smem:[#allocation3 + $0xe]] }
  0x5b   : > { %v543_v49 = vrot.slane %v529_v46, 1  ;;  %v544_v50 = vrot.slane %v531_v47, 1  ;;  %v572_v56 = vmul.f32 0.0, %v4472_v52  ;;  %v574_v60 = vmul.f32 %v4472_v52, %v4456_v39  ;;  %s4267_s6 = smov 122   ;;  %p8650_p13 = scmp.ne.s32.totalorder %s8069_s21, 0 }
  0x5c   : > { %315 = vrot.lane.b32.xlu0 %v312_v26, %s4261_s23  ;;  %v507_v44 = vsel %vm471_vm1, %v505_v40, %v506_v41  ;;  %v511_v48 = vsel %vm471_vm1, %v506_v41, %v510_v45  ;;  %v548_v54 = vrot.slane %v533_v51, 1  ;;  %v584_v58 = vrot.slane %v570_v55, 1 }
  0x5d   : > { %v545_v53 = vsel %vm471_vm1, %v543_v49, %v544_v50  ;;  %v585_v59 = vrot.slane %v572_v56, 1  ;;  %v4483_v61 = vstv %s3923_s24  ;;  %v589_v63 = vrot.slane %v574_v60, 1  ;;  %s3933_s24 = sld [smem:[#allocation3 + $0x15]] }
  0x5e   : > { %319 = vrot.lane.b32.xlu1 %v313_v27, %s4261_s23  ;;  %v549_v57 = vsel %vm471_vm1, %v544_v50, %v548_v54  ;;  %v611_v0 = vmul.f32 %v4483_v61, %v4447_v34  ;;  %v613_v1 = vmul.f32 0.0, %v4483_v61  ;;  %v615_v5 = vmul.f32 %v4483_v61, %v4456_v39 }
  0x5f   : > { %v586_v62 = vsel %vm471_vm1, %v584_v58, %v585_v59  ;;  %v590_v2 = vsel %vm471_vm1, %v585_v59, %v589_v63  ;;  %v4494_v6 = vstv %s3924_s27  ;;  %v4505_v15 = vstv %s3925_s8  ;;  %s3934_s27 = sld [smem:[#allocation3 + $0x16]]  ;;  %s3935_s8 = sld [smem:[#allocation3 + $0x17]] }
  0x60   : > { %317 = vrot.lane.b32.xlu0 %v314_v29, %s4261_s23  ;;  %v625_v3 = vrot.slane %v611_v0, 1  ;;  %v626_v4 = vrot.slane %v613_v1, 1  ;;  %v630_v8 = vrot.slane %v615_v5, 1  ;;  %v652_v9 = vmul.f32 %v4494_v6, %v4447_v34 }
  0x61   : > { %v654_v10 = vmul.f32 0.0, %v4494_v6  ;;  %v656_v14 = vmul.f32 %v4494_v6, %v4456_v39  ;;  %v690_v18 = vmul.f32 %v4505_v15, %v4447_v34  ;;  %v692_v19 = vmul.f32 0.0, %v4505_v15 }
  0x62   : > { %395 = vrot.lane.b32.xlu1 %v386_v30, %s4262_s19  ;;  %v627_v7 = vsel %vm471_vm1, %v625_v3, %v626_v4  ;;  %v631_v11 = vsel %vm471_vm1, %v626_v4, %v630_v8  ;;  %v666_v12 = vrot.slane %v652_v9, 1  ;;  %v694_v23 = vmul.f32 %v4505_v15, %v4456_v39 }
  0x63   : > { %v667_v13 = vrot.slane %v654_v10, 1  ;;  %v671_v17 = vrot.slane %v656_v14, 1  ;;  %v704_v21 = vrot.slane %v690_v18, 1  ;;  %v705_v22 = vrot.slane %v692_v19, 1 }
  0x64   : > { %v4518_v25 = vstv %s3927_s14  ;;  %v709_v27 = vrot.slane %v694_v23, 1  ;;  %v4531_v39 = vstv %s3928_s17  ;;  %v4542_v49 = vstv %s3929_s3  ;;  %s4268_s14 = smov 1   ;;  %s3936_s17 = sld [smem:[#allocation3 + $0x18]] }
  0x65   : > { %v668_v16 = vsel %vm471_vm1, %v666_v12, %v667_v13  ;;  %v672_v20 = vsel %vm471_vm1, %v667_v13, %v671_v17  ;;  %v706_v26 = vsel %vm471_vm1, %v704_v21, %v705_v22  ;;  %v758_v29 = vmul.f32 %v4518_v25, %v4516_v24  ;;  %s3937_s3 = sld [smem:[#allocation3 + $0x19]] }
  0x66   : > { %399 = vrot.lane.b32.xlu1 %v386_v30, %s4262_s19  ;;  %v760_v30 = vmul.f32 0.0, %v4518_v25  ;;  %v710_v34 = vsel %vm471_vm1, %v705_v22, %v709_v27  ;;  %v800_v42 = vmul.f32 %v4531_v39, %v4516_v24  ;;  %v840_v54 = vmul.f32 0.0, %v4542_v49 }
  0x67   : > { %v4553_v59 = vstv %s3930_s4  ;;  %v4564_v5 = vstv %s3931_s26  ;;  %vm328_vm5 = vcmask 149528   ;;  %vm1006_vm6 = vcmask 1044480   ;;  %s3938_s4 = sld [smem:[#allocation3 + $0x1a]]  ;;  %s4269_s26 = smov 125  }
  0x68   : > { %v773_v37 = vrot.slane %v760_v30, 2  ;;  %v814_v46 = vrot.slane %v800_v42, 2  ;;  %v879_v63 = vmul.f32 %v4553_v59, %v4516_v24  ;;  %v881_v0 = vmul.f32 0.0, %v4553_v59 }
  0x69   : > { %v920_v9 = vmul.f32 %v4564_v5, %v4516_v24  ;;  %v922_v10 = vmul.f32 0.0, %v4564_v5  ;;  %vm1277_vm7 = vcmask 1043456   ;;  %vm1774_vm8 = vcmask 1041408  }
  0x6a   : > { %419 = vrot.lane.b32.xlu1 %v410_v32, %s4262_s19  ;;  %v894_v3 = vrot.slane %v881_v0, 2  ;;  %vm401_vm9 = vcmask 1014784   ;;  %vm520_vm10 = vcmask 1039360   ;;  %vm681_vm11 = vcmask 1006592  }
  0x6b   : > { %v934_v12 = vrot.slane %v920_v9, 2  ;;  %v935_v13 = vrot.slane %v922_v10, 2  ;;  %vm829_vm12 = vcmask 1031168   ;;  %vm990_vm13 = vcmask 998400  }
  0x6c   : > { %vm1138_vm14 = vcmask 1022976   ;;  %vm787_vm15 = vcmask 15360  }
  0x6d   : > { %v936_v17 = vsel %vm738_vm2, %v934_v12, %v935_v13 }
  0x6e   : > { %423 = vrot.lane.b32.xlu1 %v410_v32, %s4262_s19  ;;  %v4525_v32 = vld [vmem:[#allocation2 + $0x28] sm:$0x3] }
  0x6f   : > { %v762_v38 = vmul.f32 %v4518_v25, %v4525_v32  ;;  %v842_v58 = vmul.f32 %v4542_v49, %v4525_v32  ;;  %v883_v4 = vmul.f32 %v4553_v59, %v4525_v32  ;;  %v924_v14 = vmul.f32 %v4564_v5, %v4525_v32 }
  0x71   : > { %v777_v41 = vrot.slane %v762_v38, 2  ;;  %v898_v8 = vrot.slane %v883_v4, 2  ;;  %v939_v18 = vrot.slane %v924_v14, 2 }
  0x72   : > { %446 = vrot.lane.b32.xlu1 %v437_v36, %s4262_s19 }
  0x73   : > { %v778_v45 = vsel %vm738_vm2, %v773_v37, %v777_v41  ;;  %v940_v23 = vsel %vm738_vm2, %v935_v13, %v939_v18  ;;  %v4646_v18 = vld [vmem:[#allocation2 + $0x28] sm:$0x7] }
  0x76   : > { %450 = vrot.lane.b32.xlu1 %v437_v36, %s4262_s19  ;;  %v772_v36 = vrot.slane %v758_v29, 2 }
  0x78   : > { %v774_v40 = vsel %vm738_vm2, %v772_v36, %v773_v37 }
  0x7a   : > { %514 = vrot.lane.b32.xlu1 %v507_v44, %s4263_s7  ;;  %v802_v44 = vmul.f32 0.0, %v4531_v39 }
  0x7c   : > { %v815_v47 = vrot.slane %v802_v44, 2 }
  0x7e   : > { %518 = vrot.lane.b32.xlu1 %v511_v48, %s4263_s7  ;;  %v804_v48 = vmul.f32 %v4531_v39, %v4525_v32  ;;  %v816_v50 = vsel %vm738_vm2, %v814_v46, %v815_v47  ;;  %v464_v46 = vstv %s3919_s30  ;;  %s3944_s30 = sld [smem:[#allocation3 + $0x20]] }
  0x80   : > { %v819_v51 = vrot.slane %v804_v48, 2  ;;  %v731_v48 = vstv %s3926_s5  ;;  %s3945_s5 = sld [smem:[#allocation3 + $0x21]] }
  0x82   : > { %552 = vrot.lane.b32.xlu1 %v545_v53, %s4263_s7  ;;  %v838_v53 = vmul.f32 %v4542_v49, %v4516_v24  ;;  %v820_v55 = vsel %vm738_vm2, %v815_v47, %v819_v51 }
  0x84   : > { %v852_v56 = vrot.slane %v838_v53, 2 }
  0x86   : > { %556 = vrot.lane.b32.xlu1 %v549_v57, %s4263_s7  ;;  %v853_v57 = vrot.slane %v840_v54, 2 }
  0x88   : > { %v854_v60 = vsel %vm738_vm2, %v852_v56, %v853_v57 }
  0x8a   : > { %593 = vrot.lane.b32.xlu1 %v586_v62, %s4263_s7  ;;  %v857_v62 = vrot.slane %v842_v58, 2 }
  0x8c   : > { %v858_v1 = vsel %vm738_vm2, %v853_v57, %v857_v62  ;;  %v4620_v62 = vstv %s3933_s24  ;;  %s3947_s24 = sld [smem:[#allocation3 + $0x23]] }
  0x8e   : > { %597 = vrot.lane.b32.xlu1 %v590_v2, %s4263_s7  ;;  %v893_v2 = vrot.slane %v879_v63, 2 }
  0x92   : > { %634 = vrot.lane.b32.xlu1 %v627_v7, %s4263_s7  ;;  %v895_v7 = vsel %vm738_vm2, %v893_v2, %v894_v3  ;;  %v4626_v2 = vld [vmem:[#allocation2 + $0x8] sm:$0xf8] }
  0x96   : > { %638 = vrot.lane.b32.xlu1 %v631_v11, %s4263_s7  ;;  %v899_v11 = vsel %vm738_vm2, %v894_v3, %v898_v8  ;;  %v4628_v3 = vstv %s3934_s27  ;;  %s3946_s27 = sld [smem:[#allocation3 + $0x22]] }
  0x9a   : > { %675 = vrot.lane.b32.xlu1 %v668_v16, %s4264_s16  ;;  %v4575_v16 = vstv %s3932_s29  ;;  %s3939_s29 = sld [smem:[#allocation3 + $0x1b]] }
  0x9b   : > { %v961_v19 = vmul.f32 %v4575_v16, %v4516_v24  ;;  %v965_v29 = vmul.f32 %v4575_v16, %v4525_v32 }
  0x9d   : > { %v980_v36 = vrot.slane %v965_v29, 2 }
  0x9e   : > { %679 = vrot.lane.b32.xlu1 %v672_v20, %s4264_s16  ;;  %v963_v20 = vmul.f32 0.0, %v4575_v16 }
  0xa0   : > { %v976_v27 = vrot.slane %v963_v20, 2 }
  0xa2   : > { %713 = vrot.lane.b32.xlu1 %v706_v26, %s4264_s16  ;;  %v975_v26 = vrot.slane %v961_v19, 2  ;;  %v981_v32 = vsel %vm738_vm2, %v976_v27, %v980_v36 }
  0xa6   : > { %717 = vrot.lane.b32.xlu1 %v710_v34, %s4264_s16  ;;  %v977_v34 = vsel %vm738_vm2, %v975_v26, %v976_v27  ;;  %v1030_v26 = vmul.f32 %v4628_v3, %v4646_v18 }
  0xaa   : > { %781 = vrot.lane.b32.xlu1 %v774_v40, %s4265_s25 }
  0xae   : > { %785 = vrot.lane.b32.xlu1 %v778_v45, %s4265_s25 }
  0xb2   : > { %823 = vrot.lane.b32.xlu1 %v816_v50, %s4266_s20 }
  0xb6   : > { %827 = vrot.lane.b32.xlu1 %v820_v55, %s4266_s20 }
  0xba   : > { %861 = vrot.lane.b32.xlu1 %v854_v60, %s4266_s20 }
  0xbe   : > { %865 = vrot.lane.b32.xlu1 %v858_v1, %s4266_s20 }
  0xc2   : > { %902 = vrot.lane.b32.xlu1 %v895_v7, %s4266_s20 }
  0xc6   : > { %906 = vrot.lane.b32.xlu1 %v899_v11, %s4266_s20  ;;  %v1026_v11 = vmul.f32 %v4628_v3, %v4626_v2 }
  0xc8   : > { %v336_v21 = vpop.permute.xlu1 %335 }
  0xc9   : > { %345 = vst.msk [vmem:[#allocation2 + $0x30] sm:$0xf8] %vm324_vm3, %v336_v21 }
  0xca   : > { %v338_v22 = vpop.permute.xlu0 %337  ;;  %943 = vrot.lane.b32.xlu1 %v936_v17, %s4266_s20  ;;  %v1028_v17 = vmul.f32 0.0, %v4628_v3 }
  0xcb   : > { %346 = vst.msk [vmem:[#allocation2 + $0x40] sm:$0xff] %vm326_vm4, %v338_v22  ;;  %v1040_v22 = vrot.slane %v1026_v11, 3 }
  0xcc   : > { %v340_v24 = vpop.permute.xlu1 %339 }
  0xcd   : > { %347 = vst.msk [vmem:[#allocation2 + $0x50] sm:$0x7] %vm328_vm5, %v340_v24 }
  0xce   : > { %v316_v30 = vpop.permute.xlu0 %315  ;;  %947 = vrot.lane.b32.xlu1 %v940_v23, %s4266_s20  ;;  %v1041_v23 = vrot.slane %v1028_v17, 3 }
  0xcf   : > { %325 = vst.msk [vmem:[#allocation2] sm:$0xf8] %vm324_vm3, %v316_v30 }
  0xd0   : > { %v320_v37 = vpop.permute.xlu1 %319  ;;  %v1042_v36 = vsel %vm1006_vm6, %v1040_v22, %v1041_v23 }
  0xd1   : > { %329 = vst.msk [vmem:[#allocation2 + $0x20] sm:$0x7] %vm328_vm5, %v320_v37  ;;  %v1045_v37 = vrot.slane %v1030_v26, 3 }
  0xd2   : > { %v318_v38 = vpop.permute.xlu0 %317  ;;  %984 = vrot.lane.b32.xlu1 %v977_v34, %s4267_s6  ;;  %v4668_v34 = vstv %s3935_s8  ;;  %s4850_s8 = sld [smem:[#allocation3 + $0x24]] }
  0xd3   : > { %327 = vst.msk [vmem:[#allocation2 + $0x10] sm:$0xff] %vm326_vm4, %v318_v38  ;;  %v1070_v38 = vmul.f32 0.0, %v4668_v34 }
  0xd4   : > { %v4596_v40 = vpop.permute.xlu1 %395 }
  0xd6   : > { %v348_v41 = vld [vmem:[#allocation2] sm:$0xff]  ;;  %988 = vrot.lane.b32.xlu1 %v981_v32, %s4267_s6 }
  0xd7   : > { %v385_v42 = vmul.f32 %v4432_v28, %v348_v41  ;;  %v409_v55 = vmul.f32 %v4440_v31, %v348_v41  ;;  %v436_v7 = vmul.f32 %v4445_v33, %v348_v41  ;;  %v4652_v21 = vld [vmem:[#allocation2] sm:$0xfc] }
  0xd8   : > { %v4600_v44 = vpop.permute.xlu1 %399  ;;  %v4602_v45 = vld [vmem:[#allocation2 + $0x20] sm:$0x1]  ;;  %v4662_v29 = vld [vmem:[#allocation2] sm:$0xfe]  ;;  %v732_v24 = vmul.f32 %v731_v48, %v4652_v21 }
  0xd9   : > { %8077 = vst [vmem:[#allocation12_spill] sm:$0xff] %v4600_v44  ;;  %v4604_v47 = vld [vmem:[#allocation2 + $0x20] sm:$0x3]  ;;  %393 = vrot.lane.b32.xlu0 %v385_v42, %s4262_s19  ;;  %v467_v50 = vmul.f32 %v464_v46, %v4602_v45  ;;  %v465_v32 = vmul.f32 %v464_v46, %v4662_v29  ;;  %v4953_v44 = vld [vmem:[#allocation2 + $0x28] sm:$0x1f] }
  0xda   : > { %v734_v51 = vmul.f32 %v731_v48, %v4604_v47  ;;  %v4609_v53 = vld [vmem:[#allocation2 + $0x10] sm:$0xff]  ;;  %v4611_v54 = vld [vmem:[#allocation2 + $0x20] sm:$0x7]  ;;  %v739_v41 = vrot.slane %v732_v24, 2 }
  0xdb   : > { %v4615_v56 = vmul.f32 %v464_v46, %v4609_v53  ;;  %v475_v57 = vrot.slane %v467_v50, 1  ;;  %v733_v58 = vmul.f32 %v731_v48, %v4609_v53  ;;  %v1002_v1 = vmul.f32 %v4620_v62, %v4611_v54 }
  0xdc   : > { %v4618_v60 = vpop.permute.xlu1 %419  ;;  %v742_v0 = vrot.slane %v734_v51, 2  ;;  %v4634_v9 = vmul.f32 %v4620_v62, %v4609_v53  ;;  %v387_v13 = vmul.f32 %v4432_v28, %v4609_v53  ;;  %v411_v27 = vmul.f32 %v4440_v31, %v4609_v53 }
  0xdd   : > { %8078 = vst [vmem:[#allocation13_spill] sm:$0xff] %v4618_v60  ;;  %417 = vrot.lane.b32.xlu0 %v409_v55, %s4262_s19  ;;  %v473_v63 = vrot.slane %v4615_v56, 1  ;;  %v740_v8 = vrot.slane %v733_v58, 2  ;;  %v1010_v14 = vrot.slane %v1002_v1, 3  ;;  %v1068_v31 = vmul.f32 %v4668_v34, %v4626_v2 }
  0xde   : > { %v1008_v19 = vrot.slane %v4634_v9, 3  ;;  %v438_v42 = vmul.f32 %v4445_v33, %v4609_v53  ;;  %v492_v50 = vmul.f32 %v4449_v35, %v4609_v53  ;;  %v1046_v55 = vsel %vm1006_vm6, %v1041_v23, %v1045_v37  ;;  %v4717_v37 = vld [vmem:[#allocation2] sm:$0xf8] }
  0xdf   : > { %v476_v4 = vsel %vm471_vm1, %v473_v63, %v475_v57  ;;  %v743_v12 = vsel %vm738_vm2, %v740_v8, %v742_v0  ;;  %v4684_v51 = vsel %vm738_vm2, %v739_v41, %v740_v8  ;;  %v1082_v56 = vrot.slane %v1068_v31, 3 }
  0xe0   : > { %479 = vrot.lane.b32.xlu1 %v476_v4, %s4261_s23  ;;  %v4637_v10 = vpop.permute.xlu1 %423  ;;  %v1011_v28 = vsel %vm1006_vm6, %v1008_v19, %v1010_v14  ;;  %v1083_v46 = vrot.slane %v1070_v38, 3  ;;  %v1072_v57 = vmul.f32 %v4668_v34, %v4646_v18  ;;  %v472_v33 = vrot.slane %v465_v32, 1 }
  0xe1   : > { %8079 = vst [vmem:[#allocation14_spill] sm:$0xff] %v4637_v10  ;;  %444 = vrot.lane.b32.xlu0 %v436_v7, %s4262_s19  ;;  %v490_v58 = vmul.f32 %v4449_v35, %v4662_v29  ;;  %v503_v1 = vrot.slane %v492_v50, 1  ;;  %v494_v7 = vmul.f32 %v4449_v35, %v4602_v45  ;;  %v4698_v8 = vstv %s3936_s17  ;;  %s4857_s17 = sld [smem:[#allocation3 + $0x25]] }
  0xe2   : > { %v474_v0 = vsel %vm471_vm1, %v472_v33, %v473_v63  ;;  %v1084_v11 = vsel %vm1006_vm6, %v1082_v56, %v1083_v46  ;;  %v1111_v14 = vmul.f32 0.0, %v4698_v8  ;;  %v530_v22 = vmul.f32 %v4461_v43, %v4609_v53 }
  0xe3   : > { %v502_v63 = vrot.slane %v490_v58, 1  ;;  %v1113_v24 = vmul.f32 %v4698_v8, %v4646_v18  ;;  %v532_v41 = vmul.f32 %v4461_v43, %v4602_v45  ;;  %v1000_v33 = vmul.f32 %v4620_v62, %v4717_v37 }
  0xe4   : > { %746 = vrot.lane.b32.xlu1 %v743_v12, %s4265_s25  ;;  %v4650_v20 = vpop.permute.xlu1 %446  ;;  %v1087_v12 = vrot.slane %v1072_v57, 3  ;;  %v541_v38 = vrot.slane %v530_v22, 1 }
  0xe5   : > { %8080 = vst [vmem:[#allocation15_spill] sm:$0xff] %v4650_v20  ;;  %397 = vrot.lane.b32.xlu0 %v387_v13, %s4262_s19  ;;  %v1109_v13 = vmul.f32 %v4698_v8, %v4626_v2  ;;  %v504_v17 = vsel %vm471_vm1, %v502_v63, %v503_v1  ;;  %v546_v58 = vrot.slane %v532_v41, 1  ;;  %v612_v41 = vmul.f32 %v4483_v61, %v4609_v53 }
  0xe6   : > { %v1088_v23 = vsel %vm1006_vm6, %v1083_v46, %v1087_v12 }
  0xe7   : > { %v1123_v26 = vrot.slane %v1109_v13, 3 }
  0xe8   : > { %1014 = vrot.lane.b32.xlu1 %v1011_v28, %s4268_s14  ;;  %v4666_v30 = vpop.permute.xlu1 %450  ;;  %v508_v28 = vrot.slane %v494_v7, 1  ;;  %v1007_v7 = vrot.slane %v1000_v33, 3 }
  0xe9   : > { %8081 = vst [vmem:[#allocation16_spill] sm:$0xff] %v4666_v30  ;;  %421 = vrot.lane.b32.xlu0 %v411_v27, %s4262_s19  ;;  %v1124_v27 = vrot.slane %v1111_v14, 3  ;;  %v569_v14 = vmul.f32 %v4472_v52, %v4662_v29 }
  0xea   : > { %v509_v31 = vsel %vm471_vm1, %v503_v1, %v508_v28  ;;  %v571_v1 = vmul.f32 %v4472_v52, %v4609_v53  ;;  %v4749_v63 = vsel %vm1006_vm6, %v1007_v7, %v1008_v19  ;;  %v4782_v7 = vstv %s3939_s29  ;;  %s4865_s29 = sld [smem:[#allocation3 + $0x2a]] }
  0xeb   : > { %v1125_v50 = vsel %vm1006_vm6, %v1123_v26, %v1124_v27  ;;  %v4757_v26 = vstv %s3938_s4  ;;  %s4863_s4 = sld [smem:[#allocation3 + $0x29]] }
  0xec   : > { %1049 = vrot.lane.b32.xlu1 %v1042_v36, %s4268_s14  ;;  %v4679_v48 = vpop.permute.xlu1 %514  ;;  %v528_v36 = vmul.f32 %v4461_v43, %v4662_v29  ;;  %v582_v28 = vrot.slane %v571_v1, 1  ;;  %v1188_v19 = vmul.f32 %v4757_v26, %v4626_v2  ;;  %v614_v1 = vmul.f32 %v4483_v61, %v4602_v45 }
  0xed   : > { %8082 = vst [vmem:[#allocation17_spill] sm:$0xff] %v4679_v48  ;;  %448 = vrot.lane.b32.xlu0 %v438_v42, %s4262_s19  ;;  %v4725_v42 = vstv %s3937_s3  ;;  %s4859_s3 = sld [smem:[#allocation3 + $0x28]] }
  0xee   : > { %v1147_v56 = vmul.f32 %v4725_v42, %v4626_v2  ;;  %v1149_v46 = vmul.f32 0.0, %v4725_v42  ;;  %v540_v57 = vrot.slane %v528_v36, 1  ;;  %v1151_v62 = vmul.f32 %v4725_v42, %v4646_v18 }
  0xef   : > { %v581_v36 = vrot.slane %v569_v14, 1 }
  0xf0   : > { %1053 = vrot.lane.b32.xlu1 %v1046_v55, %s4268_s14  ;;  %v4694_v4 = vpop.permute.xlu1 %518  ;;  %v1128_v55 = vrot.slane %v1113_v24, 3  ;;  %v542_v43 = vsel %vm471_vm1, %v540_v57, %v541_v38  ;;  %v1161_v12 = vrot.slane %v1147_v56, 3  ;;  %v1162_v13 = vrot.slane %v1149_v46, 3 }
  0xf1   : > { %8083 = vst [vmem:[#allocation18_spill] sm:$0xff] %v4694_v4  ;;  %477 = vrot.lane.b32.xlu0 %v474_v0, %s4261_s23  ;;  %v1190_v24 = vmul.f32 0.0, %v4757_v26  ;;  %v1192_v46 = vmul.f32 %v4757_v26, %v4646_v18  ;;  %v610_v57 = vmul.f32 %v4483_v61, %v4662_v29 }
  0xf2   : > { %v1163_v9 = vsel %vm1006_vm6, %v1161_v12, %v1162_v13 }
  0xf3   : > { %v1203_v56 = vrot.slane %v1190_v24, 3  ;;  %v1207_v12 = vrot.slane %v1192_v46, 3  ;;  %v622_v14 = vrot.slane %v610_v57, 1  ;;  %v651_v24 = vmul.f32 %v4494_v6, %v4662_v29 }
  0xf4   : > { %1091 = vrot.lane.b32.xlu1 %v1084_v11, %s4268_s14  ;;  %v4707_v35 = vpop.permute.xlu1 %552  ;;  %v1129_v11 = vsel %vm1006_vm6, %v1124_v27, %v1128_v55  ;;  %v1166_v27 = vrot.slane %v1151_v62, 3  ;;  %v1202_v55 = vrot.slane %v1188_v19, 3  ;;  %v1231_v62 = vmul.f32 0.0, %v4782_v7 }
  0xf5   : > { %8084 = vst [vmem:[#allocation19_spill] sm:$0xff] %v4707_v35  ;;  %512 = vrot.lane.b32.xlu0 %v504_v17, %s4263_s7  ;;  %v547_v17 = vsel %vm471_vm1, %v541_v38, %v546_v58 }
  0xf6   : > { %v1244_v19 = vrot.slane %v1231_v62, 3 }
  0xf8   : > { %1095 = vrot.lane.b32.xlu1 %v1088_v23, %s4268_s14  ;;  %v4721_v32 = vpop.permute.xlu1 %556  ;;  %v573_v23 = vmul.f32 %v4472_v52, %v4602_v45 }
  0xf9   : > { %8085 = vst [vmem:[#allocation20_spill] sm:$0xff] %v4721_v32  ;;  %516 = vrot.lane.b32.xlu0 %v509_v31, %s4263_s7  ;;  %v583_v31 = vsel %vm471_vm1, %v581_v36, %v582_v28  ;;  %v4801_v36 = vld [vmem:[#allocation2 + $0x8] sm:$0xf0] }
  0xfa   : > { %v587_v38 = vrot.slane %v573_v23, 1  ;;  %v653_v23 = vmul.f32 %v4494_v6, %v4609_v53 }
  0xfc   : > { %1132 = vrot.lane.b32.xlu1 %v1125_v50, %s4269_s26  ;;  %v4736_v0 = vpop.permute.xlu1 %593  ;;  %v1167_v50 = vsel %vm1006_vm6, %v1162_v13, %v1166_v27  ;;  %v588_v33 = vsel %vm471_vm1, %v582_v28, %v587_v38  ;;  %v1229_v13 = vmul.f32 %v4782_v7, %v4626_v2  ;;  %v628_v28 = vrot.slane %v614_v1, 1 }
  0xfd   : > { %8086 = vst [vmem:[#allocation21_spill] sm:$0xff] %v4736_v0  ;;  %550 = vrot.lane.b32.xlu0 %v542_v43, %s4263_s7  ;;  %v623_v43 = vrot.slane %v612_v41, 1  ;;  %v1233_v2 = vmul.f32 %v4782_v7, %v4646_v18  ;;  %v664_v38 = vrot.slane %v653_v23, 1 }
  0xfe   : > { %v1243_v27 = vrot.slane %v1229_v13, 3 }
 0x100   : > { %1136 = vrot.lane.b32.xlu1 %v1129_v11, %s4269_s26  ;;  %v4753_v22 = vpop.permute.xlu1 %597  ;;  %v1204_v11 = vsel %vm1006_vm6, %v1202_v55, %v1203_v56  ;;  %v4809_v55 = vstv %s3944_s30  ;;  %v1245_v18 = vsel %vm1006_vm6, %v1243_v27, %v1244_v19  ;;  %s4874_s30 = sld [smem:[#allocation3 + $0x2b]] }
 0x101   : > { %8087 = vst [vmem:[#allocation22_spill] sm:$0xff] %v4753_v22  ;;  %554 = vrot.lane.b32.xlu0 %v547_v17, %s4263_s7  ;;  %v624_v17 = vsel %vm471_vm1, %v622_v14, %v623_v43  ;;  %v1384_v46 = vmul.f32 %v4809_v55, %v4801_v36  ;;  %v1386_v57 = vmul.f32 0.0, %v4809_v55 }
 0x103   : > { %v1398_v62 = vrot.slane %v1384_v46, 4  ;;  %v1399_v14 = vrot.slane %v1386_v57, 4 }
 0x104   : > { %1170 = vrot.lane.b32.xlu1 %v1163_v9, %s4269_s26  ;;  %v4766_v52 = vpop.permute.xlu1 %634  ;;  %v1208_v9 = vsel %vm1006_vm6, %v1203_v56, %v1207_v12  ;;  %v1248_v56 = vrot.slane %v1233_v2, 3  ;;  %v691_v12 = vmul.f32 %v4505_v15, %v4609_v53  ;;  %v693_v2 = vmul.f32 %v4505_v15, %v4602_v45 }
 0x105   : > { %8088 = vst [vmem:[#allocation23_spill] sm:$0xff] %v4766_v52  ;;  %591 = vrot.lane.b32.xlu0 %v583_v31, %s4263_s7  ;;  %v629_v31 = vsel %vm471_vm1, %v623_v43, %v628_v28  ;;  %v1288_v43 = vld [vmem:[#allocation2 + $0x28] sm:$0xf]  ;;  %v689_v28 = vmul.f32 %v4505_v15, %v4662_v29 }
 0x106   : > { %v1249_v13 = vsel %vm1006_vm6, %v1244_v19, %v1248_v56  ;;  %v4833_v19 = vstv %s3945_s5  ;;  %v707_v15 = vrot.slane %v693_v2, 1  ;;  %s4883_s5 = sld [smem:[#allocation3 + $0x2c]] }
 0x107   : > { %v1421_v29 = vmul.f32 %v4833_v19, %v4801_v36 }
 0x108   : > { %1174 = vrot.lane.b32.xlu1 %v1167_v50, %s4269_s26  ;;  %v4778_v58 = vpop.permute.xlu1 %638  ;;  %v655_v50 = vmul.f32 %v4494_v6, %v4602_v45 }
 0x109   : > { %8089 = vst [vmem:[#allocation24_spill] sm:$0xff] %v4778_v58  ;;  %595 = vrot.lane.b32.xlu0 %v588_v33, %s4263_s7  ;;  %v663_v33 = vrot.slane %v651_v24, 1  ;;  %v1400_v24 = vsel %vm1277_vm7, %v1398_v62, %v1399_v14 }
 0x10a   : > { %v669_v1 = vrot.slane %v655_v50, 1  ;;  %v1423_v50 = vmul.f32 0.0, %v4833_v19 }
 0x10b   : > { %v665_v6 = vsel %vm471_vm1, %v663_v33, %v664_v38  ;;  %v1435_v33 = vrot.slane %v1421_v29, 4  ;;  %v757_v29 = vmul.f32 %v4518_v25, %v4652_v21 }
 0x10c   : > { %1211 = vrot.lane.b32.xlu1 %v1204_v11, %s4269_s26  ;;  %v4791_v61 = vpop.permute.xlu1 %675  ;;  %v670_v23 = vsel %vm471_vm1, %v664_v38, %v669_v1  ;;  %v4840_v38 = vstv %s3947_s24  ;;  %v1425_v1 = vmul.f32 %v4833_v19, %v1288_v43  ;;  %s4885_s24 = sld [smem:[#allocation3 + $0x2d]] }
 0x10d   : > { %8090 = vst [vmem:[#allocation25_spill] sm:$0xff] %v4791_v61  ;;  %632 = vrot.lane.b32.xlu0 %v624_v17, %s4263_s7  ;;  %v1388_v17 = vmul.f32 %v4809_v55, %v1288_v43  ;;  %v4848_v46 = vmul.f32 %v4840_v38, %v4609_v53 }
 0x110   : > { %1215 = vrot.lane.b32.xlu1 %v1208_v9, %s4269_s26  ;;  %v4805_v41 = vpop.permute.xlu1 %679  ;;  %v702_v9 = vrot.slane %v691_v12, 1  ;;  %v4855_v12 = vld [vmem:[#allocation2] sm:$0xe0] }
 0x111   : > { %8091 = vst [vmem:[#allocation26_spill] sm:$0xff] %v4805_v41  ;;  %636 = vrot.lane.b32.xlu0 %v629_v31, %s4263_s7  ;;  %v1403_v31 = vrot.slane %v1388_v17, 4  ;;  %v759_v17 = vmul.f32 %v4518_v25, %v4609_v53  ;;  %v4938_v41 = vstv %s4874_s30  ;;  %s5440_s30 = sld [smem:[#allocation3 + $0x31]] }
 0x112   : > { %v708_v62 = vsel %vm471_vm1, %v702_v9, %v707_v15 }
 0x113   : > { %v1404_v57 = vsel %vm1277_vm7, %v1399_v14, %v1403_v31 }
 0x114   : > { %1252 = vrot.lane.b32.xlu1 %v1245_v18, %s4269_s26  ;;  %v4818_v11 = vpop.permute.xlu1 %713  ;;  %v701_v18 = vrot.slane %v689_v28, 1  ;;  %v7918_v28 = vrot.slane %v4848_v46, 5 }
 0x115   : > { %8092 = vst [vmem:[#allocation27_spill] sm:$0xff] %v4818_v11  ;;  %673 = vrot.lane.b32.xlu0 %v665_v6, %s4264_s16  ;;  %v1436_v6 = vrot.slane %v1423_v50, 4 }
 0x116   : > { %v703_v56 = vsel %vm471_vm1, %v701_v18, %v702_v9 }
 0x117   : > { %v1437_v2 = vsel %vm1277_vm7, %v1435_v33, %v1436_v6 }
 0x118   : > { %1256 = vrot.lane.b32.xlu1 %v1249_v13, %s4269_s26  ;;  %v4829_v27 = vpop.permute.xlu1 %717  ;;  %v4861_v13 = vstv %s3946_s27  ;;  %s4949_s27 = sld [smem:[#allocation3 + $0x2e]] }
 0x119   : > { %8093 = vst [vmem:[#allocation28_spill] sm:$0xff] %v4829_v27  ;;  %677 = vrot.lane.b32.xlu0 %v670_v23, %s4264_s16  ;;  %v1504_v23 = vmul.f32 %v4840_v38, %v4855_v12  ;;  %v1462_v9 = vmul.f32 %v4861_v13, %v4801_v36  ;;  %v1464_v31 = vmul.f32 0.0, %v4861_v13  ;;  %v1466_v50 = vmul.f32 %v4861_v13, %v1288_v43 }
 0x11a   : > { %v761_v36 = vmul.f32 %v4518_v25, %v4604_v47  ;;  %v4910_v25 = vld [vmem:[#allocation2 + $0x8] sm:$0xe0] }
 0x11b   : > { %v1510_v18 = vrot.slane %v1504_v23, 5  ;;  %v769_v23 = vrot.slane %v757_v29, 2 }
 0x11c   : > { %1407 = vrot.lane.b32.xlu1 %v1400_v24, %s4262_s19  ;;  %v4844_v45 = vpop.permute.xlu1 %781  ;;  %v1440_v24 = vrot.slane %v1425_v1, 4  ;;  %v1476_v1 = vrot.slane %v1462_v9, 4  ;;  %v4927_v9 = vstv %s4865_s29  ;;  %v775_v29 = vrot.slane %v761_v36, 2  ;;  %s3975_s29 = sld [smem:[#allocation3 + $0x3f]] }
 0x11d   : > { %8094 = vst [vmem:[#allocation29_spill] sm:$0xff] %v4844_v45  ;;  %711 = vrot.lane.b32.xlu0 %v703_v56, %s4264_s16  ;;  %v770_v56 = vrot.slane %v759_v17, 2  ;;  %v4901_v33 = vsel %vm311_vm0, %v1510_v18, %v7918_v28  ;;  %v4908_v17 = vmul.f32 %v4531_v39, %v4609_v53  ;;  %v799_v18 = vmul.f32 %v4531_v39, %v4652_v21 }
 0x11e   : > { %v1441_v43 = vsel %vm1277_vm7, %v1436_v6, %v1440_v24  ;;  %v4921_v6 = vstv %s4859_s3  ;;  %v4924_v24 = vstv %s4863_s4  ;;  %v5019_v11 = vstv %s4949_s27  ;;  %s5066_s3 = sld [smem:[#allocation3 + $0x30]]  ;;  %s3951_s4 = sld [smem:[#allocation3 + $0x27]] }
 0x11f   : > { %v812_v4 = vrot.slane %v4908_v17, 2  ;;  %v803_v17 = vmul.f32 %v4531_v39, %v4604_v47  ;;  %v4965_v27 = vmul.f32 %v4921_v6, %v4609_v53  ;;  %s3964_s27 = sld [smem:[#allocation3 + $0x34]] }
 0x120   : > { %1411 = vrot.lane.b32.xlu1 %v1404_v57, %s4262_s19  ;;  %v4869_v14 = vpop.permute.xlu1 %785  ;;  %v4896_v57 = vstv %s4850_s8  ;;  %s4986_s8 = sld [smem:[#allocation3 + $0x26]] }
 0x121   : > { %8095 = vst [vmem:[#allocation30_spill] sm:$0xff] %v4869_v14  ;;  %715 = vrot.lane.b32.xlu0 %v708_v62, %s4264_s16  ;;  %v1477_v62 = vrot.slane %v1464_v31, 4  ;;  %v4915_v28 = vmul.f32 0.0, %v4896_v57  ;;  %v771_v31 = vsel %vm738_vm2, %v769_v23, %v770_v56  ;;  %v4933_v14 = vld [vmem:[#allocation2 + $0x20] sm:$0x1f]  ;;  %v1529_v45 = vmul.f32 %v4896_v57, %v4910_v25 }
 0x122   : > { %v4947_v23 = vstv %s4885_s24  ;;  %v1729_v39 = vmul.f32 %v4924_v24, %v4933_v14  ;;  %v1533_v10 = vmul.f32 %v4896_v57, %v4953_v44  ;;  %s3963_s24 = sld [smem:[#allocation3 + $0x33]] }
 0x123   : > { %v1478_v22 = vsel %vm1277_vm7, %v1476_v1, %v1477_v62  ;;  %v1506_v1 = vmul.f32 %v4840_v38, %v4933_v14  ;;  %v1543_v30 = vrot.slane %v1529_v45, 5  ;;  %v4975_v38 = vmul.f32 %v4924_v24, %v4609_v53 }
 0x124   : > { %1444 = vrot.lane.b32.xlu1 %v1437_v2, %s4262_s19  ;;  %v4891_v15 = vpop.permute.xlu1 %823  ;;  %v1481_v2 = vrot.slane %v1466_v50, 4  ;;  %v1743_v0 = vrot.slane %v1729_v39, 5  ;;  %v839_v39 = vmul.f32 %v4542_v49, %v4609_v53 }
 0x125   : > { %8096 = vst [vmem:[#allocation31_spill] sm:$0xff] %v4891_v15  ;;  %744 = vrot.lane.b32.xlu0 %v4684_v51, %s4265_s25  ;;  %v4918_v51 = vstv %s4857_s17  ;;  %v7932_v52 = vrot.slane %v4975_v38, 5  ;;  %v1513_v20 = vrot.slane %v1506_v1, 5  ;;  %s5021_s17 = sld [smem:[#allocation3 + $0x2f]] }
 0x126   : > { %v1482_v36 = vsel %vm1277_vm7, %v1477_v62, %v1481_v2  ;;  %v1692_v62 = vmul.f32 %v4921_v6, %v4933_v14  ;;  %v1765_v2 = vld [vmem:[#allocation2] sm:$0xc0]  ;;  %v1566_v60 = vmul.f32 %v4918_v51, %v4910_v25 }
 0x127   : > { %v5008_v1 = vsel %vm311_vm0, %v7932_v52, %v1743_v0 }
 0x128   : > { %1448 = vrot.lane.b32.xlu1 %v1441_v43, %s4262_s19  ;;  %v4931_v50 = vpop.permute.xlu1 %827  ;;  %v4944_v43 = vstv %s4883_s5  ;;  %s3962_s5 = sld [smem:[#allocation3 + $0x32]] }
 0x129   : > { %8097 = vst [vmem:[#allocation32_spill] sm:$0xff] %v4931_v50  ;;  %779 = vrot.lane.b32.xlu0 %v771_v31, %s4265_s25  ;;  %v811_v50 = vrot.slane %v799_v18, 2  ;;  %v4957_v31 = vmul.f32 %v4927_v9, %v4609_v53  ;;  %v776_v18 = vsel %vm738_vm2, %v770_v56, %v775_v29  ;;  %v7929_v56 = vrot.slane %v4965_v27, 5 }
 0x12a   : > { %v1706_v29 = vrot.slane %v1692_v62, 5  ;;  %v4998_v62 = vmul.f32 %v4938_v41, %v4609_v53  ;;  %v5031_v35 = vmul.f32 %v4944_v43, %v4609_v53 }
 0x12b   : > { %v813_v32 = vsel %vm738_vm2, %v811_v50, %v812_v4  ;;  %v817_v50 = vrot.slane %v803_v17, 2  ;;  %v8102_v0 = vrot.slane %v4957_v31, 6 }
 0x12c   : > { %1485 = vrot.lane.b32.xlu1 %v1478_v22, %s4262_s19  ;;  %v4971_v58 = vpop.permute.xlu1 %861  ;;  %v4983_v22 = vld [vmem:[#allocation2 + $0x20] sm:$0x3f]  ;;  %8099 = vst [vmem:[#allocation34_spill] sm:$0xff] %v4998_v62  ;;  %8104 = vst [vmem:[#allocation37_spill] sm:$0xff] %v5031_v35 }
 0x12d   : > { %8098 = vst [vmem:[#allocation33_spill] sm:$0xff] %v4971_v58  ;;  %783 = vrot.lane.b32.xlu0 %v776_v18, %s4265_s25  ;;  %v1768_v18 = vmul.f32 %v4927_v9, %v1765_v2  ;;  %v4994_v58 = vsel %vm311_vm0, %v7929_v56, %v1706_v29  ;;  %v1797_v2 = vmul.f32 %v4938_v41, %v4983_v22  ;;  %v8101_v29 = vrot.slane %v4915_v28, 5 }
 0x12e   : > { %v837_v56 = vmul.f32 %v4542_v49, %v4652_v21 }
 0x12f   : > { %v1775_v17 = vrot.slane %v1768_v18, 6 }
 0x130   : > { %1489 = vrot.lane.b32.xlu1 %v1482_v36, %s4262_s19  ;;  %v5001_v45 = vpop.permute.xlu1 %865  ;;  %v1545_v36 = vsel %vm311_vm0, %v1543_v30, %v8101_v29  ;;  %v8105_v30 = vrot.slane %v4848_v46, 5  ;;  %v841_v29 = vmul.f32 %v4542_v49, %v4604_v47  ;;  %v8107_v46 = vrot.slane %v4998_v62, 6 }
 0x131   : > { %8100 = vst [vmem:[#allocation35_spill] sm:$0xff] %v5001_v45  ;;  %821 = vrot.lane.b32.xlu0 %v813_v32, %s4266_s20  ;;  %v1548_v45 = vrot.slane %v1533_v10, 5  ;;  %v5026_v18 = vsel %vm1774_vm8, %v1775_v17, %v8102_v0  ;;  %v1811_v32 = vrot.slane %v1797_v2, 6  ;;  %v1838_v17 = vmul.f32 %v4944_v43, %v4983_v22 }
 0x132   : > { %8103 = vst [vmem:[#allocation36_spill] sm:$0xff] %v5026_v18  ;;  %v1514_v10 = vsel %vm311_vm0, %v8105_v30, %v1513_v20  ;;  %v818_v2 = vsel %vm738_vm2, %v812_v4, %v817_v50  ;;  %v850_v0 = vrot.slane %v839_v39, 2  ;;  %v5053_v49 = vmul.f32 %v4947_v23, %v4609_v53  ;;  %v5056_v30 = vld [vmem:[#allocation2 + $0x8] sm:$0xff] }
 0x133   : > { %v5049_v20 = vsel %vm1774_vm8, %v8107_v46, %v1811_v32  ;;  %v7937_v4 = vrot.slane %v5031_v35, 6  ;;  %v1852_v50 = vrot.slane %v1838_v17, 6  ;;  %v1875_v39 = vmul.f32 %v4947_v23, %v4983_v22 }
 0x134   : > { %1517 = vrot.lane.b32.xlu1 %v1514_v10, %s4261_s23  ;;  %v5044_v52 = vpop.permute.xlu1 %902  ;;  %8108 = vst [vmem:[#allocation39_spill] sm:$0xff] %v5049_v20  ;;  %8109 = vst [vmem:[#allocation40_spill] sm:$0xff] %v5053_v49  ;;  %v1568_v10 = vmul.f32 %v5056_v30, %v4918_v51  ;;  %v5064_v32 = vstv %s4986_s8  ;;  %v5070_v46 = vmul.f32 %v5019_v11, %v4609_v53  ;;  %v855_v18 = vrot.slane %v841_v29, 2  ;;  %s3965_s8 = sld [smem:[#allocation3 + $0x35]] }
 0x135   : > { %8106 = vst [vmem:[#allocation38_spill] sm:$0xff] %v5044_v52  ;;  %825 = vrot.lane.b32.xlu0 %v818_v2, %s4266_s20  ;;  %v849_v52 = vrot.slane %v837_v56, 2  ;;  %v8110_v2 = vrot.slane %v4915_v28, 5  ;;  %v5078_v17 = vsel %vm1774_vm8, %v7937_v4, %v1852_v50  ;;  %v7939_v56 = vrot.slane %v5053_v49, 6 }
 0x136   : > { %8111 = vst [vmem:[#allocation41_spill] sm:$0xff] %v5078_v17  ;;  %v1889_v62 = vrot.slane %v1875_v39, 6  ;;  %v880_v28 = vmul.f32 %v4553_v59, %v4609_v53  ;;  %v1580_v50 = vrot.slane %v1566_v60, 5  ;;  %v1570_v39 = vmul.f32 %v4918_v51, %v4953_v44 }
 0x137   : > { %v1549_v20 = vsel %vm311_vm0, %v8110_v2, %v1548_v45  ;;  %v851_v15 = vsel %vm738_vm2, %v849_v52, %v850_v0  ;;  %v1916_v45 = vmul.f32 %v5019_v11, %v4983_v22  ;;  %v1581_v2 = vrot.slane %v1568_v10, 5 }
 0x138   : > { %1552 = vrot.lane.b32.xlu1 %v1545_v36, %s4263_s7  ;;  %v5083_v61 = vpop.permute.xlu1 %906  ;;  %v5095_v52 = vsel %vm1774_vm8, %v7939_v56, %v1889_v62  ;;  %v878_v36 = vmul.f32 %v4553_v59, %v4652_v21  ;;  %v5100_v29 = vstv %s5021_s17  ;;  %v882_v60 = vmul.f32 %v4553_v59, %v4604_v47  ;;  %s3966_s17 = sld [smem:[#allocation3 + $0x36]] }
 0x139   : > { %8112 = vst [vmem:[#allocation42_spill] sm:$0xff] %v5083_v61  ;;  %859 = vrot.lane.b32.xlu0 %v851_v15, %s4266_s20  ;;  %8113 = vst [vmem:[#allocation43_spill] sm:$0xff] %v5095_v52  ;;  %v1930_v61 = vrot.slane %v1916_v45, 6  ;;  %v1607_v15 = vmul.f32 %v5064_v32, %v4910_v25  ;;  %v1609_v10 = vmul.f32 %v5056_v30, %v5064_v32  ;;  %v891_v45 = vrot.slane %v880_v28, 2 }
 0x13a   : > { %v5111_v62 = vmul.f32 %v5100_v29, %v4609_v53  ;;  %v856_v56 = vsel %vm738_vm2, %v850_v0, %v855_v18  ;;  %v8116_v59 = vrot.slane %v5070_v46, 6  ;;  %v1957_v49 = vmul.f32 %v5100_v29, %v4983_v22 }
 0x13b   : > { %v1582_v17 = vsel %vm311_vm0, %v1580_v50, %v1581_v2  ;;  %v1585_v35 = vrot.slane %v1570_v39, 5  ;;  %v890_v48 = vrot.slane %v878_v36, 2  ;;  %v1621_v28 = vrot.slane %v1607_v15, 5 }
 0x13c   : > { %8114 = vst [vmem:[#allocation44_spill] sm:$0xff] %v5111_v62  ;;  %1556 = vrot.lane.b32.xlu1 %v1549_v20, %s4263_s7  ;;  %v5115_v4 = vpop.permute.xlu1 %943  ;;  %v5120_v52 = vsel %vm1774_vm8, %v8116_v59, %v1930_v61  ;;  %v5127_v20 = vstv %s5066_s3  ;;  %v7944_v18 = vrot.slane %v5111_v62, 6  ;;  %v1971_v0 = vrot.slane %v1957_v49, 6  ;;  %v2439_v62 = vld [vmem:[#allocation2 + $0x30] sm:$0xfc]  ;;  %s3967_s3 = sld [smem:[#allocation3 + $0x37]] }
 0x13d   : > { %8115 = vst [vmem:[#allocation45_spill] sm:$0xff] %v5115_v4  ;;  %8117 = vst [vmem:[#allocation46_spill] sm:$0xff] %v5120_v52  ;;  %863 = vrot.lane.b32.xlu0 %v856_v56, %s4266_s20  ;;  %v1622_v4 = vrot.slane %v1609_v10, 5  ;;  %v5132_v61 = vmul.f32 %v5127_v20, %v4609_v53  ;;  %v892_v56 = vsel %vm738_vm2, %v890_v48, %v891_v45  ;;  %v896_v59 = vrot.slane %v882_v60, 2 }
 0x13e   : > { %v921_v39 = vmul.f32 %v4564_v5, %v4609_v53  ;;  %v5143_v49 = vsel %vm1774_vm8, %v7944_v18, %v1971_v0  ;;  %v1586_v36 = vsel %vm311_vm0, %v1581_v2, %v1585_v35  ;;  %v1998_v48 = vmul.f32 %v5127_v20, %v4983_v22 }
 0x13f   : > { %8118 = vst [vmem:[#allocation47_spill] sm:$0xff] %v5132_v61  ;;  %8120 = vst [vmem:[#allocation49_spill] sm:$0xff] %v5143_v49  ;;  %v919_v60 = vmul.f32 %v4564_v5, %v4652_v21  ;;  %v5153_v15 = vstv %s3951_s4  ;;  %v897_v0 = vsel %vm738_vm2, %v891_v45, %v896_v59  ;;  %v1623_v35 = vsel %vm311_vm0, %v1621_v28, %v1622_v4  ;;  %v5173_v59 = vld [vmem:[#allocation2 + $0x40] sm:$0xff]  ;;  %s3972_s4 = sld [smem:[#allocation3 + $0x3c]] }
 0x140   : > { %1589 = vrot.lane.b32.xlu1 %v1582_v17, %s4263_s7  ;;  %v5136_v50 = vpop.permute.xlu1 %947  ;;  %v1611_v17 = vmul.f32 %v5064_v32, %v4953_v44  ;;  %v932_v2 = vrot.slane %v921_v39, 2  ;;  %v1648_v49 = vmul.f32 %v5153_v15, %v4910_v25  ;;  %v1650_v10 = vmul.f32 %v5056_v30, %v5153_v15 }
 0x141   : > { %8119 = vst [vmem:[#allocation48_spill] sm:$0xff] %v5136_v50  ;;  %900 = vrot.lane.b32.xlu0 %v892_v56, %s4266_s20  ;;  %v2012_v50 = vrot.slane %v1998_v48, 6  ;;  %v923_v56 = vmul.f32 %v4564_v5, %v4604_v47  ;;  %v8121_v48 = vrot.slane %v5132_v61, 6  ;;  %v931_v45 = vrot.slane %v919_v60, 2 }
 0x142   : > { %v1626_v18 = vrot.slane %v1611_v17, 5  ;;  %v5175_v5 = vstv %s3975_s29  ;;  %v1662_v60 = vrot.slane %v1648_v49, 5  ;;  %v960_v61 = vmul.f32 %v4575_v16, %v4652_v21  ;;  %s3973_s29 = sld [smem:[#allocation3 + $0x3d]] }
 0x143   : > { %v933_v39 = vsel %vm738_vm2, %v931_v45, %v932_v2  ;;  %v937_v17 = vrot.slane %v923_v56, 2  ;;  %v2442_v45 = vmul.f32 %v5175_v5, %v2439_v62  ;;  %v1689_v52 = vmul.f32 %v4921_v6, %v4910_v25 }
 0x144   : > { %1593 = vrot.lane.b32.xlu1 %v1586_v36, %s4263_s7  ;;  %v5169_v36 = vsel %vm1774_vm8, %v8121_v48, %v2012_v50  ;;  %v5171_v28 = vpop.permute.xlu1 %984  ;;  %v1627_v50 = vsel %vm311_vm0, %v1622_v4, %v1626_v18  ;;  %v1663_v48 = vrot.slane %v1650_v10, 5  ;;  %v964_v10 = vmul.f32 %v4575_v16, %v4604_v47 }
 0x145   : > { %904 = vrot.lane.b32.xlu0 %v897_v0, %s4266_s20  ;;  %8122 = vst [vmem:[#allocation50_spill] sm:$0xff] %v5169_v36  ;;  %v962_v0 = vmul.f32 %v4575_v16, %v4609_v53  ;;  %v1652_v36 = vmul.f32 %v5153_v15, %v4953_v44  ;;  %v938_v4 = vsel %vm738_vm2, %v932_v2, %v937_v17 }
 0x146   : > { %v1664_v21 = vsel %vm311_vm0, %v1662_v60, %v1663_v48  ;;  %v1691_v62 = vmul.f32 %v5056_v30, %v4921_v6  ;;  %v978_v47 = vrot.slane %v964_v10, 2  ;;  %v1703_v60 = vrot.slane %v1689_v52, 5 }
 0x147   : > { %v973_v49 = vrot.slane %v962_v0, 2  ;;  %v2448_v0 = vrot.slane %v2442_v45, 2  ;;  %v1027_v52 = vmul.f32 %v4628_v3, %v4609_v53 }
 0x148   : > { %1630 = vrot.lane.b32.xlu1 %v1623_v35, %s4263_s7  ;;  %v5189_v35 = vmul.f32 %v5175_v5, %v5173_v59  ;;  %v5196_v18 = vpop.permute.xlu1 %988 }
 0x149   : > { %941 = vrot.lane.b32.xlu0 %v933_v39, %s4266_s20  ;;  %8123 = vst [vmem:[#allocation51_spill] sm:$0xff] %v5196_v18  ;;  %v1667_v39 = vrot.slane %v1652_v36, 5  ;;  %v1693_v18 = vmul.f32 %v4921_v6, %v4953_v44  ;;  %v979_v10 = vsel %vm738_vm2, %v973_v49, %v978_v47  ;;  %v1038_v47 = vrot.slane %v1027_v52, 3 }
 0x14a   : > { %v7947_v2 = vrot.slane %v5189_v35, 2 }
 0x14b   : > { %v5191_v56 = vpop.permute.xlu0 %393  ;;  %v1668_v36 = vsel %vm311_vm0, %v1663_v48, %v1667_v39  ;;  %v1708_v39 = vrot.slane %v1693_v18, 5 }
 0x14c   : > { %1634 = vrot.lane.b32.xlu1 %v1627_v50, %s4263_s7  ;;  %v972_v50 = vrot.slane %v960_v61, 2  ;;  %v5220_v45 = vsel %vm738_vm2, %v2448_v0, %v7947_v2 }
 0x14d   : > { %945 = vrot.lane.b32.xlu0 %v938_v4, %s4266_s20  ;;  %v1704_v4 = vrot.slane %v1691_v62, 5  ;;  %8125 = vst [vmem:[#allocation53_spill] sm:$0xff] %v5220_v45  ;;  %v1726_v62 = vmul.f32 %v4924_v24, %v4910_v25 }
 0x14e   : > { %v974_v16 = vsel %vm738_vm2, %v972_v50, %v973_v49  ;;  %v1728_v50 = vmul.f32 %v5056_v30, %v4924_v24 }
 0x14f   : > { %v5207_v17 = vpop.permute.xlu0 %417  ;;  %v1705_v48 = vsel %vm311_vm0, %v1703_v60, %v1704_v4  ;;  %v1709_v25 = vsel %vm311_vm0, %v1704_v4, %v1708_v39  ;;  %v1740_v18 = vrot.slane %v1726_v62, 5  ;;  %v5262_v62 = vld [vmem:[#allocation2 + $0x8] sm:$0xc0] }
 0x150   : > { %1671 = vrot.lane.b32.xlu1 %v1664_v21, %s4263_s7  ;;  %v1741_v60 = vrot.slane %v1728_v50, 5 }
 0x151   : > { %982 = vrot.lane.b32.xlu0 %v974_v16, %s4267_s6  ;;  %v1025_v16 = vmul.f32 %v4628_v3, %v4717_v37 }
 0x152   : > { %v5215_v61 = vpop.permute.xlu1 %479  ;;  %v1742_v4 = vsel %vm311_vm0, %v1740_v18, %v1741_v60 }
 0x153   : > { %8124 = vst [vmem:[#allocation52_spill] sm:$0xff] %v5215_v61  ;;  %v5222_v21 = vpop.permute.xlu0 %444 }
 0x154   : > { %1675 = vrot.lane.b32.xlu1 %v1668_v36, %s4263_s7  ;;  %v1029_v36 = vmul.f32 %v4628_v3, %v4611_v54 }
 0x155   : > { %986 = vrot.lane.b32.xlu0 %v979_v10, %s4267_s6  ;;  %v1730_v10 = vmul.f32 %v4924_v24, %v4953_v44  ;;  %v1067_v44 = vmul.f32 %v4668_v34, %v4717_v37 }
 0x156   : > { %v5234_v0 = vpop.permute.xlu1 %746  ;;  %v1043_v3 = vrot.slane %v1029_v36, 3 }
 0x157   : > { %8126 = vst [vmem:[#allocation54_spill] sm:$0xff] %v5234_v0  ;;  %v5238_v49 = vpop.permute.xlu0 %397  ;;  %v1037_v0 = vrot.slane %v1025_v16, 3 }
 0x158   : > { %8127 = vst [vmem:[#allocation55_spill] sm:$0xff] %v5238_v49  ;;  %1712 = vrot.lane.b32.xlu1 %v1705_v48, %s4264_s16  ;;  %v1745_v48 = vrot.slane %v1730_v10, 5  ;;  %v1044_v16 = vsel %vm1006_vm6, %v1038_v47, %v1043_v3  ;;  %v1794_v10 = vmul.f32 %v4938_v41, %v5262_v62 }
 0x159   : > { %1012 = vrot.lane.b32.xlu0 %v4749_v63, %s4268_s14  ;;  %v1039_v52 = vsel %vm1006_vm6, %v1037_v0, %v1038_v47  ;;  %v1069_v63 = vmul.f32 %v4668_v34, %v4609_v53  ;;  %v1770_v0 = vmul.f32 %v4927_v9, %v4983_v22  ;;  %v1079_v9 = vrot.slane %v1067_v44, 3  ;;  %v5280_v22 = vld [vmem:[#allocation2 + $0x28] sm:$0x3f] }
 0x15a   : > { %v5248_v2 = vpop.permute.xlu1 %1014  ;;  %v1746_v18 = vsel %vm311_vm0, %v1741_v60, %v1745_v48  ;;  %v1110_v60 = vmul.f32 %v4698_v8, %v4609_v53  ;;  %v1798_v44 = vmul.f32 %v4938_v41, %v5280_v22 }
 0x15b   : > { %8128 = vst [vmem:[#allocation56_spill] sm:$0xff] %v5248_v2  ;;  %v5250_v49 = vpop.permute.xlu0 %421  ;;  %v1080_v36 = vrot.slane %v1069_v63, 3  ;;  %v1778_v3 = vrot.slane %v1770_v0, 6  ;;  %v1108_v0 = vmul.f32 %v4698_v8, %v4717_v37 }
 0x15c   : > { %8129 = vst [vmem:[#allocation57_spill] sm:$0xff] %v5250_v49  ;;  %1716 = vrot.lane.b32.xlu1 %v1709_v25, %s4264_s16  ;;  %v1071_v25 = vmul.f32 %v4668_v34, %v4611_v54 }
 0x15d   : > { %1047 = vrot.lane.b32.xlu0 %v1039_v52, %s4268_s14  ;;  %v1796_v52 = vmul.f32 %v5056_v30, %v4938_v41  ;;  %v1081_v34 = vsel %vm1006_vm6, %v1079_v9, %v1080_v36 }
 0x15e   : > { %v5258_v39 = vpop.permute.xlu1 %1049  ;;  %v1085_v63 = vrot.slane %v1071_v25, 3 }
 0x15f   : > { %8130 = vst [vmem:[#allocation58_spill] sm:$0xff] %v5258_v39  ;;  %v5264_v50 = vpop.permute.xlu0 %448  ;;  %v1809_v48 = vrot.slane %v1796_v52, 6  ;;  %v1112_v52 = vmul.f32 %v4698_v8, %v4611_v54 }
 0x160   : > { %8131 = vst [vmem:[#allocation59_spill] sm:$0xff] %v5264_v50  ;;  %1749 = vrot.lane.b32.xlu1 %v1742_v4, %s4264_s16  ;;  %v1808_v4 = vrot.slane %v1794_v10, 6  ;;  %v1086_v53 = vsel %vm1006_vm6, %v1080_v36, %v1085_v63  ;;  %v1121_v10 = vrot.slane %v1110_v60, 3  ;;  %v5316_v36 = vld [vmem:[#allocation2 + $0x10] sm:$0xff] }
 0x161   : > { %1051 = vrot.lane.b32.xlu0 %v1044_v16, %s4268_s14  ;;  %v1126_v8 = vrot.slane %v1112_v52, 3  ;;  %v1148_v63 = vmul.f32 %v5316_v36, %v4725_v42 }
 0x162   : > { %v5278_v39 = vpop.permute.xlu1 %1053  ;;  %v1810_v9 = vsel %vm1774_vm8, %v1808_v4, %v1809_v48 }
 0x163   : > { %8132 = vst [vmem:[#allocation60_spill] sm:$0xff] %v5278_v39  ;;  %v5282_v47 = vpop.permute.xlu0 %477 }
 0x164   : > { %1753 = vrot.lane.b32.xlu1 %v1746_v18, %s4264_s16  ;;  %v8134_v18 = vrot.slane %v4957_v31, 6  ;;  %v1837_v31 = vmul.f32 %v5056_v30, %v4944_v43 }
 0x165   : > { %1089 = vrot.lane.b32.xlu0 %v1081_v34, %s4268_s14  ;;  %v1813_v34 = vrot.slane %v1798_v44, 6 }
 0x166   : > { %v5291_v16 = vpop.permute.xlu1 %1091  ;;  %v1779_v25 = vsel %vm1774_vm8, %v8134_v18, %v1778_v3  ;;  %v1120_v18 = vrot.slane %v1108_v0, 3  ;;  %v1850_v44 = vrot.slane %v1837_v31, 6  ;;  %v1839_v0 = vmul.f32 %v4944_v43, %v5280_v22 }
 0x167   : > { %8133 = vst [vmem:[#allocation61_spill] sm:$0xff] %v5291_v16  ;;  %v5295_v39 = vpop.permute.xlu0 %512  ;;  %v1835_v16 = vmul.f32 %v4944_v43, %v5262_v62  ;;  %v1814_v60 = vsel %vm1774_vm8, %v1809_v48, %v1813_v34  ;;  %v1872_v31 = vmul.f32 %v4947_v23, %v5262_v62 }
 0x168   : > { %1782 = vrot.lane.b32.xlu1 %v1779_v25, %s4265_s25  ;;  %v1122_v54 = vsel %vm1006_vm6, %v1120_v18, %v1121_v10  ;;  %v1127_v18 = vsel %vm1006_vm6, %v1121_v10, %v1126_v8  ;;  %v1854_v34 = vrot.slane %v1839_v0, 6  ;;  %v1189_v8 = vmul.f32 %v5316_v36, %v4757_v26 }
 0x169   : > { %1093 = vrot.lane.b32.xlu0 %v1086_v53, %s4268_s14  ;;  %v1849_v4 = vrot.slane %v1835_v16, 6 }
 0x16a   : > { %v5310_v3 = vpop.permute.xlu1 %1095 }
 0x16b   : > { %8135 = vst [vmem:[#allocation62_spill] sm:$0xff] %v5310_v3  ;;  %v5312_v25 = vpop.permute.xlu0 %516  ;;  %v1159_v3 = vrot.slane %v1148_v63, 3  ;;  %v1851_v16 = vsel %vm1774_vm8, %v1849_v4, %v1850_v44  ;;  %v1855_v63 = vsel %vm1774_vm8, %v1850_v44, %v1854_v34  ;;  %v1886_v4 = vrot.slane %v1872_v31, 6 }
 0x16c   : > { %8136 = vst [vmem:[#allocation63_spill] sm:$0xff] %v5312_v25  ;;  %1817 = vrot.lane.b32.xlu1 %v1810_v9, %s4265_s25  ;;  %v1146_v9 = vmul.f32 %v4725_v42, %v4717_v37  ;;  %v1874_v25 = vmul.f32 %v5056_v30, %v4947_v23  ;;  %v1913_v34 = vmul.f32 %v5019_v11, %v5262_v62 }
 0x16d   : > { %1130 = vrot.lane.b32.xlu0 %v1122_v54, %s4269_s26  ;;  %v4106_v54 = vld [vmem:[#allocation2 + $0x20] sm:$0x7]  ;;  %v1915_v31 = vmul.f32 %v5056_v30, %v5019_v11 }
 0x16e   : > { %v5324_v53 = vpop.permute.xlu1 %1132  ;;  %v1150_v48 = vmul.f32 %v4106_v54, %v4725_v42  ;;  %v1887_v0 = vrot.slane %v1874_v25, 6 }
 0x16f   : > { %v5328_v52 = vpop.permute.xlu0 %550 }
 0x170   : > { %1821 = vrot.lane.b32.xlu1 %v1814_v60, %s4265_s25  ;;  %v1158_v60 = vrot.slane %v1146_v9, 3  ;;  %v1164_v10 = vrot.slane %v1150_v48, 3  ;;  %v1888_v25 = vsel %vm1774_vm8, %v1886_v4, %v1887_v0  ;;  %v1927_v4 = vrot.slane %v1913_v34, 6 }
 0x171   : > { %1134 = vrot.lane.b32.xlu0 %v1127_v18, %s4269_s26  ;;  %v1876_v18 = vmul.f32 %v4947_v23, %v5280_v22  ;;  %v1954_v34 = vmul.f32 %v5100_v29, %v5262_v62 }
 0x172   : > { %v5339_v2 = vpop.permute.xlu1 %1136  ;;  %v1160_v42 = vsel %vm1006_vm6, %v1158_v60, %v1159_v3  ;;  %v1165_v48 = vsel %vm1006_vm6, %v1159_v3, %v1164_v10  ;;  %v1200_v60 = vrot.slane %v1189_v8, 3  ;;  %v1230_v10 = vmul.f32 %v5316_v36, %v4782_v7 }
 0x173   : > { %8137 = vst [vmem:[#allocation64_spill] sm:$0xff] %v5339_v2  ;;  %v5341_v50 = vpop.permute.xlu0 %554  ;;  %v1891_v44 = vrot.slane %v1876_v18, 6  ;;  %v1928_v18 = vrot.slane %v1915_v31, 6 }
 0x174   : > { %8138 = vst [vmem:[#allocation65_spill] sm:$0xff] %v5341_v50  ;;  %1858 = vrot.lane.b32.xlu1 %v1851_v16, %s4266_s20  ;;  %v1187_v16 = vmul.f32 %v4757_v26, %v4717_v37 }
 0x175   : > { %1168 = vrot.lane.b32.xlu0 %v1160_v42, %s4269_s26  ;;  %v1191_v42 = vmul.f32 %v4106_v54, %v4757_v26  ;;  %v1892_v8 = vsel %vm1774_vm8, %v1887_v0, %v1891_v44  ;;  %v1929_v0 = vsel %vm1774_vm8, %v1927_v4, %v1928_v18  ;;  %v1968_v4 = vrot.slane %v1954_v34, 6 }
 0x176   : > { %v5351_v9 = vpop.permute.xlu1 %1170  ;;  %v1199_v49 = vrot.slane %v1187_v16, 3 }
 0x177   : > { %8139 = vst [vmem:[#allocation66_spill] sm:$0xff] %v5351_v9  ;;  %v5355_v2 = vpop.permute.xlu0 %591  ;;  %v1205_v3 = vrot.slane %v1191_v42, 3  ;;  %v1241_v42 = vrot.slane %v1230_v10, 3 }
 0x178   : > { %1862 = vrot.lane.b32.xlu1 %v1855_v63, %s4266_s20  ;;  %v1201_v26 = vsel %vm1006_vm6, %v1199_v49, %v1200_v60 }
 0x179   : > { %1172 = vrot.lane.b32.xlu0 %v1165_v48, %s4269_s26  ;;  %v1917_v48 = vmul.f32 %v5019_v11, %v5280_v22  ;;  %v1206_v49 = vsel %vm1006_vm6, %v1200_v60, %v1205_v3  ;;  %v5397_v60 = vld [vmem:[#allocation2] sm:$0xf0]  ;;  %v1385_v3 = vmul.f32 %v5316_v36, %v4809_v55 }
 0x17a   : > { %v5366_v50 = vpop.permute.xlu1 %1174 }
 0x17b   : > { %8140 = vst [vmem:[#allocation67_spill] sm:$0xff] %v5366_v50  ;;  %v5368_v63 = vpop.permute.xlu0 %595  ;;  %v1932_v44 = vrot.slane %v1917_v48, 6 }
 0x17c   : > { %8141 = vst [vmem:[#allocation68_spill] sm:$0xff] %v5368_v63  ;;  %1895 = vrot.lane.b32.xlu1 %v1888_v25, %s4266_s20  ;;  %v1228_v25 = vmul.f32 %v4782_v7, %v4717_v37  ;;  %v1956_v37 = vmul.f32 %v5056_v30, %v5100_v29 }
 0x17d   : > { %1209 = vrot.lane.b32.xlu0 %v1201_v26, %s4269_s26  ;;  %v1232_v26 = vmul.f32 %v4106_v54, %v4782_v7  ;;  %v1933_v10 = vsel %vm1774_vm8, %v1928_v18, %v1932_v44 }
 0x17e   : > { %v5378_v16 = vpop.permute.xlu1 %1211  ;;  %v1240_v63 = vrot.slane %v1228_v25, 3  ;;  %v1969_v48 = vrot.slane %v1956_v37, 6  ;;  %v1958_v25 = vmul.f32 %v5100_v29, %v5280_v22  ;;  %v1995_v37 = vmul.f32 %v5127_v20, %v5262_v62 }
 0x17f   : > { %8142 = vst [vmem:[#allocation69_spill] sm:$0xff] %v5378_v16  ;;  %v5382_v50 = vpop.permute.xlu0 %632  ;;  %v1246_v54 = vrot.slane %v1232_v26, 3 }
 0x180   : > { %1899 = vrot.lane.b32.xlu1 %v1892_v8, %s4266_s20  ;;  %v1242_v7 = vsel %vm1006_vm6, %v1240_v63, %v1241_v42  ;;  %v1970_v44 = vsel %vm1774_vm8, %v1968_v4, %v1969_v48  ;;  %v1973_v34 = vrot.slane %v1958_v25, 6  ;;  %v1999_v25 = vmul.f32 %v5127_v20, %v5280_v22 }
 0x181   : > { %1213 = vrot.lane.b32.xlu0 %v1206_v49, %s4269_s26  ;;  %v1269_v49 = vld [vmem:[#allocation2 + $0x20] sm:$0xf]  ;;  %v1247_v26 = vsel %vm1006_vm6, %v1241_v42, %v1246_v54  ;;  %v1422_v54 = vmul.f32 %v5316_v36, %v4833_v19 }
 0x182   : > { %v5393_v31 = vpop.permute.xlu1 %1215  ;;  %v1387_v18 = vmul.f32 %v4809_v55, %v1269_v49  ;;  %v1974_v62 = vsel %vm1774_vm8, %v1969_v48, %v1973_v34  ;;  %v1424_v48 = vmul.f32 %v4833_v19, %v1269_v49 }
 0x183   : > { %8143 = vst [vmem:[#allocation70_spill] sm:$0xff] %v5393_v31  ;;  %v5395_v8 = vpop.permute.xlu0 %636 }
 0x184   : > { %8144 = vst [vmem:[#allocation71_spill] sm:$0xff] %v5395_v8  ;;  %1936 = vrot.lane.b32.xlu1 %v1929_v0, %s4266_s20  ;;  %v1383_v0 = vmul.f32 %v4809_v55, %v5397_v60  ;;  %v1997_v8 = vmul.f32 %v5056_v30, %v5127_v20  ;;  %v1401_v42 = vrot.slane %v1387_v18, 4  ;;  %v1433_v18 = vrot.slane %v1422_v54, 4 }
 0x185   : > { %1250 = vrot.lane.b32.xlu0 %v1242_v7, %s4269_s26  ;;  %v1396_v7 = vrot.slane %v1385_v3, 4  ;;  %v2009_v3 = vrot.slane %v1995_v37, 6 }
 0x186   : > { %v5407_v31 = vpop.permute.xlu1 %1252  ;;  %v1395_v45 = vrot.slane %v1383_v0, 4  ;;  %v2010_v4 = vrot.slane %v1997_v8, 6  ;;  %v2014_v8 = vrot.slane %v1999_v25, 6 }
 0x187   : > { %8145 = vst [vmem:[#allocation72_spill] sm:$0xff] %v5407_v31  ;;  %v5411_v63 = vpop.permute.xlu0 %673 }
 0x188   : > { %1940 = vrot.lane.b32.xlu1 %v1933_v10, %s4266_s20  ;;  %v1397_v55 = vsel %vm1277_vm7, %v1395_v45, %v1396_v7  ;;  %v1402_v45 = vsel %vm1277_vm7, %v1396_v7, %v1401_v42  ;;  %v2011_v22 = vsel %vm1774_vm8, %v2009_v3, %v2010_v4  ;;  %v1438_v42 = vrot.slane %v1424_v48, 4 }
 0x189   : > { %1254 = vrot.lane.b32.xlu0 %v1247_v26, %s4269_s26  ;;  %v1420_v26 = vmul.f32 %v4833_v19, %v5397_v60  ;;  %v1463_v19 = vmul.f32 %v5316_v36, %v4861_v13  ;;  %v2015_v54 = vsel %vm1774_vm8, %v2010_v4, %v2014_v8  ;;  %v1461_v3 = vmul.f32 %v4861_v13, %v5397_v60 }
 0x18a   : > { %v5422_v61 = vpop.permute.xlu1 %1256 }
 0x18b   : > { %8146 = vst [vmem:[#allocation73_spill] sm:$0xff] %v5422_v61  ;;  %v5424_v10 = vpop.permute.xlu0 %677  ;;  %v1432_v37 = vrot.slane %v1420_v26, 4  ;;  %v7954_v26 = vstv %s5440_s30  ;;  %v1474_v48 = vrot.slane %v1463_v19, 4  ;;  %v1473_v8 = vrot.slane %v1461_v3, 4 }
 0x18c   : > { %8147 = vst [vmem:[#allocation74_spill] sm:$0xff] %v5424_v10  ;;  %1977 = vrot.lane.b32.xlu1 %v1970_v44, %s4266_s20  ;;  %v2034_v4 = vmul.f32 %v7954_v26, %v5173_v59 }
 0x18d   : > { %1405 = vrot.lane.b32.xlu0 %v1397_v55, %s4262_s19  ;;  %v1434_v7 = vsel %vm1277_vm7, %v1432_v37, %v1433_v18 }
 0x18e   : > { %v5434_v0 = vpop.permute.xlu1 %1407 }
 0x18f   : > { %8148 = vst [vmem:[#allocation75_spill] sm:$0xff] %v5434_v0  ;;  %v5438_v44 = vpop.permute.xlu0 %711 }
 0x190   : > { %1981 = vrot.lane.b32.xlu1 %v1974_v62, %s4266_s20 }
 0x191   : > { %1409 = vrot.lane.b32.xlu0 %v1402_v45, %s4262_s19  ;;  %v1439_v45 = vsel %vm1277_vm7, %v1433_v18, %v1438_v42  ;;  %v1475_v18 = vsel %vm1277_vm7, %v1473_v8, %v1474_v48 }
 0x192   : > { %v5447_v34 = vpop.permute.xlu1 %1411 }
 0x193   : > { %8149 = vst [vmem:[#allocation76_spill] sm:$0xff] %v5447_v34  ;;  %v5449_v55 = vpop.permute.xlu0 %715  ;;  %v1567_v34 = vmul.f32 %v5316_v36, %v4918_v51 }
 0x194   : > { %8150 = vst [vmem:[#allocation77_spill] sm:$0xff] %v5449_v55  ;;  %2018 = vrot.lane.b32.xlu1 %v2011_v22, %s4267_s6  ;;  %v1465_v22 = vmul.f32 %v4861_v13, %v1269_v49 }
 0x195   : > { %1442 = vrot.lane.b32.xlu0 %v1434_v7, %s4262_s19  ;;  %v1578_v0 = vrot.slane %v1567_v34, 5 }
 0x196   : > { %v5457_v62 = vpop.permute.xlu1 %1444  ;;  %v1479_v49 = vrot.slane %v1465_v22, 4 }
 0x197   : > { %8151 = vst [vmem:[#allocation78_spill] sm:$0xff] %v5457_v62  ;;  %v5461_v25 = vpop.permute.xlu0 %744  ;;  %v5475_v62 = vstv %s3962_s5  ;;  %s5607_s5 = sld [smem:[#allocation3]] }
 0x198   : > { %8152 = vst [vmem:[#allocation79_spill] sm:$0xff] %v5461_v25  ;;  %2022 = vrot.lane.b32.xlu1 %v2015_v54, %s4267_s6  ;;  %v2051_v13 = vmul.f32 %v5056_v30, %v5475_v62  ;;  %v1480_v59 = vsel %vm1277_vm7, %v1474_v48, %v1479_v49  ;;  %v1530_v54 = vmul.f32 %v5316_v36, %v4896_v57 }
 0x199   : > { %1446 = vrot.lane.b32.xlu0 %v1439_v45, %s4262_s19  ;;  %v1528_v45 = vmul.f32 %v4896_v57, %v4855_v12 }
 0x19a   : > { %v5468_v37 = vpop.permute.xlu1 %1448  ;;  %v1541_v8 = vrot.slane %v1530_v54, 5 }
 0x19b   : > { %8153 = vst [vmem:[#allocation80_spill] sm:$0xff] %v5468_v37  ;;  %v5473_v7 = vpop.permute.xlu0 %779 }
 0x19c   : > { %8154 = vst [vmem:[#allocation81_spill] sm:$0xff] %v5473_v7  ;;  %2039 = vrot.lane.b32.xlu1 %v2034_v4, %s4268_s14  ;;  %v5497_v4 = vstv %s3963_s24  ;;  %s3974_s24 = sld [smem:[#allocation3 + $0x3e]] }
 0x19d   : > { %1483 = vrot.lane.b32.xlu0 %v1475_v18, %s4262_s19  ;;  %v2078_v48 = vmul.f32 %v5056_v30, %v5497_v4  ;;  %v1532_v18 = vmul.f32 %v4896_v57, %v4933_v14  ;;  %v1565_v57 = vmul.f32 %v4918_v51, %v4855_v12 }
 0x19e   : > { %v5482_v42 = vpop.permute.xlu1 %1485 }
 0x19f   : > { %8155 = vst [vmem:[#allocation82_spill] sm:$0xff] %v5482_v42  ;;  %v5484_v19 = vpop.permute.xlu0 %783 }
 0x1a0   : > { %8156 = vst [vmem:[#allocation83_spill] sm:$0xff] %v5484_v19  ;;  %2060 = vrot.lane.b32.xlu1 %v2051_v13, %s4268_s14 }
 0x1a1   : > { %1487 = vrot.lane.b32.xlu0 %v1480_v59, %s4262_s19  ;;  %v1540_v59 = vrot.slane %v1528_v45, 5  ;;  %v5521_v45 = vstv %s3964_s27  ;;  %s5632_s27 = sld [smem:[#allocation3 + $0x1]] }
 0x1a2   : > { %v5491_v3 = vpop.permute.xlu1 %1489 }
 0x1a3   : > { %8157 = vst [vmem:[#allocation84_spill] sm:$0xff] %v5491_v3  ;;  %v5495_v22 = vpop.permute.xlu0 %821  ;;  %v1542_v42 = vsel %vm311_vm0, %v1540_v59, %v1541_v8 }
 0x1a4   : > { %2064 = vrot.lane.b32.xlu1 %v2051_v13, %s4268_s14  ;;  %v1546_v13 = vrot.slane %v1532_v18, 5  ;;  %v2105_v18 = vmul.f32 %v5056_v30, %v5521_v45 }
 0x1a5   : > { %1515 = vrot.lane.b32.xlu0 %v4901_v33, %s4261_s23 }
 0x1a6   : > { %v5506_v49 = vpop.permute.xlu1 %1517  ;;  %v1547_v59 = vsel %vm311_vm0, %v1541_v8, %v1546_v13  ;;  %v1608_v8 = vmul.f32 %v5316_v36, %v5064_v32 }
 0x1a7   : > { %8158 = vst [vmem:[#allocation85_spill] sm:$0xff] %v5506_v49  ;;  %v5508_v26 = vpop.permute.xlu0 %825  ;;  %v1577_v49 = vrot.slane %v1565_v57, 5  ;;  %v5545_v57 = vstv %s3965_s8  ;;  %s5641_s8 = sld [smem:[#allocation3 + $0x1c]] }
 0x1a8   : > { %8159 = vst [vmem:[#allocation86_spill] sm:$0xff] %v5508_v26  ;;  %2087 = vrot.lane.b32.xlu1 %v2078_v48, %s4268_s14 }
 0x1a9   : > { %1550 = vrot.lane.b32.xlu0 %v1542_v42, %s4263_s7  ;;  %v1569_v42 = vmul.f32 %v4918_v51, %v4933_v14  ;;  %v1606_v51 = vmul.f32 %v5064_v32, %v4855_v12 }
 0x1aa   : > { %v5515_v54 = vpop.permute.xlu1 %1552 }
 0x1ab   : > { %8160 = vst [vmem:[#allocation87_spill] sm:$0xff] %v5515_v54  ;;  %v5519_v33 = vpop.permute.xlu0 %859  ;;  %v1583_v26 = vrot.slane %v1569_v42, 5  ;;  %v1619_v42 = vrot.slane %v1608_v8, 5  ;;  %v1618_v12 = vrot.slane %v1606_v51, 5  ;;  %v5568_v51 = vstv %s3966_s17  ;;  %s5649_s17 = sld [smem:[#allocation3 + $0x2]] }
 0x1ac   : > { %2091 = vrot.lane.b32.xlu1 %v2078_v48, %s4268_s14  ;;  %v1579_v48 = vsel %vm311_vm0, %v1577_v49, %v1578_v0 }
 0x1ad   : > { %1554 = vrot.lane.b32.xlu0 %v1547_v59, %s4263_s7  ;;  %v1584_v49 = vsel %vm311_vm0, %v1578_v0, %v1583_v26  ;;  %v2128_v59 = vmul.f32 %v5056_v30, %v5545_v57  ;;  %v1649_v0 = vmul.f32 %v5316_v36, %v5153_v15 }
 0x1ae   : > { %v5530_v54 = vpop.permute.xlu1 %1556 }
 0x1af   : > { %8161 = vst [vmem:[#allocation88_spill] sm:$0xff] %v5530_v54  ;;  %v5532_v61 = vpop.permute.xlu0 %863 }
 0x1b0   : > { %8162 = vst [vmem:[#allocation89_spill] sm:$0xff] %v5532_v61  ;;  %2114 = vrot.lane.b32.xlu1 %v2105_v18, %s4269_s26 }
 0x1b1   : > { %1587 = vrot.lane.b32.xlu0 %v1579_v48, %s4263_s7  ;;  %v1610_v48 = vmul.f32 %v5064_v32, %v4933_v14  ;;  %v4107_v32 = vld [vmem:[#allocation2] sm:$0xe0] }
 0x1b2   : > { %v5539_v34 = vpop.permute.xlu1 %1589  ;;  %v1647_v8 = vmul.f32 %v4107_v32, %v5153_v15 }
 0x1b3   : > { %8163 = vst [vmem:[#allocation90_spill] sm:$0xff] %v5539_v34  ;;  %v5543_v13 = vpop.permute.xlu0 %900  ;;  %v1624_v61 = vrot.slane %v1610_v48, 5  ;;  %v2155_v48 = vmul.f32 %v5056_v30, %v5568_v51 }
 0x1b4   : > { %2118 = vrot.lane.b32.xlu1 %v2105_v18, %s4269_s26  ;;  %v1620_v18 = vsel %vm311_vm0, %v1618_v12, %v1619_v42  ;;  %v1659_v37 = vrot.slane %v1647_v8, 5 }
 0x1b5   : > { %1591 = vrot.lane.b32.xlu0 %v1584_v49, %s4263_s7  ;;  %v1625_v12 = vsel %vm311_vm0, %v1619_v42, %v1624_v61 }
 0x1b6   : > { %v5554_v34 = vpop.permute.xlu1 %1593 }
 0x1b7   : > { %8164 = vst [vmem:[#allocation91_spill] sm:$0xff] %v5554_v34  ;;  %v5556_v54 = vpop.permute.xlu0 %904  ;;  %v1660_v34 = vrot.slane %v1649_v0, 5  ;;  %v1688_v0 = vmul.f32 %v4107_v32, %v4921_v6 }
 0x1b8   : > { %8165 = vst [vmem:[#allocation92_spill] sm:$0xff] %v5556_v54  ;;  %2137 = vrot.lane.b32.xlu1 %v2128_v59, %s4269_s26  ;;  %v8187_v54 = vld [vmem:[#allocation31_spill] sm:$0xff] }
 0x1b9   : > { %1628 = vrot.lane.b32.xlu0 %v1620_v18, %s4263_s7  ;;  %v1651_v18 = vmul.f32 %v5153_v15, %v4933_v14  ;;  %v2225_v14 = vld [vmem:[#allocation2 + $0x38] sm:$0xfe] }
 0x1ba   : > { %v5563_v26 = vpop.permute.xlu1 %1630 }
 0x1bb   : > { %8166 = vst [vmem:[#allocation93_spill] sm:$0xff] %v5563_v26  ;;  %v5566_v49 = vpop.permute.xlu0 %941  ;;  %v1665_v61 = vrot.slane %v1651_v18, 5 }
 0x1bc   : > { %2141 = vrot.lane.b32.xlu1 %v2128_v59, %s4269_s26  ;;  %v1661_v59 = vsel %vm311_vm0, %v1659_v37, %v1660_v34  ;;  %v5595_v37 = vstv %s3972_s4  ;;  %s5688_s4 = sld [smem:[#allocation3 + $0x40]] }
 0x1bd   : > { %1632 = vrot.lane.b32.xlu0 %v1625_v12, %s4263_s7  ;;  %v5589_v12 = vstv %s3967_s3  ;;  %v1666_v8 = vsel %vm311_vm0, %v1660_v34, %v1665_v61  ;;  %v2322_v18 = vmul.f32 %v5595_v37, %v2225_v14  ;;  %v2324_v6 = vmul.f32 %v5056_v30, %v5595_v37  ;;  %s5675_s3 = sld [smem:[#allocation3 + $0x1d]] }
 0x1be   : > { %v5577_v26 = vpop.permute.xlu1 %1634  ;;  %v8172_v34 = vrot.slane %v4965_v27, 5  ;;  %v5622_v27 = vstv %s3973_s29  ;;  %s5735_s29 = sld [smem:[#allocation3 + $0x3]] }
 0x1bf   : > { %8167 = vst [vmem:[#allocation94_spill] sm:$0xff] %v5577_v26  ;;  %v5579_v3 = vpop.permute.xlu0 %945  ;;  %v5603_v26 = vld [vmem:[#allocation2 + $0x58] sm:$0x1]  ;;  %v2337_v19 = vrot.slane %v2324_v6, 1  ;;  %v2359_v6 = vmul.f32 %v5622_v27, %v2225_v14 }
 0x1c0   : > { %8168 = vst [vmem:[#allocation95_spill] sm:$0xff] %v5579_v3  ;;  %2164 = vrot.lane.b32.xlu1 %v2155_v48, %s4269_s26  ;;  %v2182_v3 = vmul.f32 %v5056_v30, %v5589_v12 }
 0x1c1   : > { %1669 = vrot.lane.b32.xlu0 %v1661_v59, %s4263_s7 }
 0x1c2   : > { %v5584_v42 = vpop.permute.xlu1 %1671 }
 0x1c3   : > { %8169 = vst [vmem:[#allocation96_spill] sm:$0xff] %v5584_v42  ;;  %v5587_v15 = vpop.permute.xlu0 %982  ;;  %v1700_v42 = vrot.slane %v1688_v0, 5 }
 0x1c4   : > { %2168 = vrot.lane.b32.xlu1 %v2155_v48, %s4269_s26 }
 0x1c5   : > { %1673 = vrot.lane.b32.xlu0 %v1666_v8, %s4263_s7  ;;  %v1702_v61 = vsel %vm311_vm0, %v1700_v42, %v8172_v34  ;;  %v2336_v8 = vrot.slane %v2322_v18, 1  ;;  %v2361_v34 = vmul.f32 %v5056_v30, %v5622_v27 }
 0x1c6   : > { %v5601_v59 = vpop.permute.xlu1 %1675 }
 0x1c7   : > { %8170 = vst [vmem:[#allocation97_spill] sm:$0xff] %v5601_v59  ;;  %v5605_v48 = vpop.permute.xlu0 %986  ;;  %v2326_v59 = vmul.f32 %v5595_v37, %v5603_v26  ;;  %v2338_v42 = vsel %vm471_vm1, %v2336_v8, %v2337_v19 }
 0x1c8   : > { %8171 = vst [vmem:[#allocation98_spill] sm:$0xff] %v5605_v48  ;;  %2191 = vrot.lane.b32.xlu1 %v2182_v3, %s4269_s26  ;;  %v1725_v48 = vmul.f32 %v4107_v32, %v4924_v24 }
 0x1c9   : > { %1710 = vrot.lane.b32.xlu0 %v1702_v61, %s4264_s16  ;;  %v2341_v18 = vrot.slane %v2326_v59, 1 }
 0x1ca   : > { %v5616_v0 = vpop.permute.xlu1 %1712  ;;  %v1737_v24 = vrot.slane %v1725_v48, 5  ;;  %v2373_v48 = vrot.slane %v2359_v6, 1 }
 0x1cb   : > { %8173 = vst [vmem:[#allocation99_spill] sm:$0xff] %v5616_v0  ;;  %v5619_v55 = vpop.permute.xlu0 %1012  ;;  %v2342_v8 = vsel %vm471_vm1, %v2337_v19, %v2341_v18  ;;  %v2363_v0 = vmul.f32 %v5622_v27, %v5603_v26  ;;  %v402_v18 = vsel %vm401_vm9, %v5191_v56, %v4596_v40 }
 0x1cc   : > { %8174 = vst [vmem:[#allocation100_spill] sm:$0xff] %v5619_v55  ;;  %2195 = vrot.lane.b32.xlu1 %v2182_v3, %s4269_s26  ;;  %v7967_v3 = vstv %s5607_s5 }
 0x1cd   : > { %1714 = vrot.lane.b32.xlu0 %v4994_v58, %s4264_s16  ;;  %v8177_v58 = vrot.slane %v4975_v38, 5  ;;  %v5653_v38 = vstv %s3974_s24  ;;  %s5747_s24 = sld [smem:[#allocation3 + $0x1e]] }
 0x1ce   : > { %v5630_v61 = vpop.permute.xlu1 %1716  ;;  %v2400_v6 = vmul.f32 %v5653_v38, %v2225_v14  ;;  %v5679_v14 = vld [vmem:[#allocation2] sm:$0xc0] }
 0x1cf   : > { %8175 = vst [vmem:[#allocation101_spill] sm:$0xff] %v5630_v61  ;;  %v5634_v32 = vpop.permute.xlu0 %1047  ;;  %v1739_v59 = vsel %vm311_vm0, %v1737_v24, %v8177_v58  ;;  %v2374_v61 = vrot.slane %v2361_v34, 1  ;;  %v5655_v24 = vld [vmem:[#allocation2] sm:$0xff]  ;;  %v2378_v58 = vrot.slane %v2363_v0, 1 }
 0x1d0   : > { %8176 = vst [vmem:[#allocation102_spill] sm:$0xff] %v5634_v32  ;;  %2345 = vrot.lane.b32.xlu1 %v2338_v42, %s4262_s19  ;;  %v351_v19 = vmul.f32 %v5655_v24, %v7967_v3  ;;  %v8180_v3 = vld [vmem:[#allocation17_spill] sm:$0xff] }
 0x1d1   : > { %1747 = vrot.lane.b32.xlu0 %v1739_v59, %s4264_s16  ;;  %v2375_v34 = vsel %vm471_vm1, %v2373_v48, %v2374_v61  ;;  %v5670_v59 = vmul.f32 %v5056_v30, %v5653_v38  ;;  %v521_v40 = vsel %vm520_vm10, %v5295_v39, %v8180_v3  ;;  %v8184_v30 = vld [vmem:[#allocation25_spill] sm:$0xff]  ;;  %v2414_v3 = vrot.slane %v2400_v6, 1 }
 0x1d2   : > { %v5647_v10 = vpop.permute.xlu1 %1749  ;;  %v406_v0 = vadd.f32 %v402_v18, %v351_v19  ;;  %v682_v39 = vsel %vm681_vm11, %v5411_v63, %v8184_v30  ;;  %v2379_v19 = vsel %vm471_vm1, %v2374_v61, %v2378_v58  ;;  %v830_v63 = vsel %vm829_vm12, %v5495_v22, %v8187_v54  ;;  %v8190_v54 = vld [vmem:[#allocation13_spill] sm:$0xff] }
 0x1d3   : > { %8178 = vst [vmem:[#allocation103_spill] sm:$0xff] %v5647_v10  ;;  %v5651_v42 = vpop.permute.xlu0 %1051  ;;  %v8186_v10 = vld [vmem:[#allocation36_spill] sm:$0xff]  ;;  %v2415_v18 = vrot.slane %v5670_v59, 1  ;;  %v425_v59 = vsel %vm401_vm9, %v5207_v17, %v8190_v54 }
 0x1d4   : > { %8179 = vst [vmem:[#allocation104_spill] sm:$0xff] %v5651_v42  ;;  %2349 = vrot.lane.b32.xlu1 %v2342_v8, %s4262_s19  ;;  %v5684_v8 = vstv %s5632_s27  ;;  %v2404_v42 = vmul.f32 %v5653_v38, %v5603_v26  ;;  %v5719_v26 = vld [vmem:[#allocation2 + $0x50] sm:$0x3]  ;;  %s5757_s27 = sld [smem:[#allocation3 + $0x41]] }
 0x1d5   : > { %1751 = vrot.lane.b32.xlu0 %v5008_v1, %s4264_s16  ;;  %v1793_v1 = vmul.f32 %v5679_v14, %v4938_v41  ;;  %8182 = vst [vmem:[#allocation105_spill] sm:$0xff] %v5684_v8  ;;  %v525_v41 = vadd.f32 %v521_v40, %v406_v0  ;;  %v5713_v40 = vstv %s5649_s17  ;;  %v8191_v0 = vld [vmem:[#allocation34_spill] sm:$0xff]  ;;  %v2416_v17 = vsel %vm471_vm1, %v2414_v3, %v2415_v18  ;;  %s5829_s17 = sld [smem:[#allocation3 + $0x42]] }
 0x1d6   : > { %v5677_v56 = vpop.permute.xlu1 %1753 }
 0x1d7   : > { %8181 = vst [vmem:[#allocation17_spill] sm:$0xff] %v5677_v56  ;;  %v5686_v48 = vpop.permute.xlu0 %1089  ;;  %v5695_v56 = vstv %s5641_s8  ;;  %v1805_v6 = vrot.slane %v1793_v1, 6  ;;  %v686_v61 = vadd.f32 %v682_v39, %v525_v41  ;;  %v991_v1 = vsel %vm990_vm13, %v5587_v15, %v5171_v28  ;;  %v5739_v28 = vld [vmem:[#allocation2 + $0x38] sm:$0xfc]  ;;  %s5821_s8 = sld [smem:[#allocation3 + $0x1f]] }
 0x1d8   : > { %8183 = vst [vmem:[#allocation106_spill] sm:$0xff] %v5686_v48  ;;  %2382 = vrot.lane.b32.xlu1 %v2375_v34, %s4262_s19  ;;  %8185 = vst [vmem:[#allocation25_spill] sm:$0xff] %v5695_v56  ;;  %v5710_v34 = vmul.f32 %v5316_v36, %v5695_v56  ;;  %v1271_v22 = vmul.f32 %v5695_v56, %v5397_v60  ;;  %v8192_v39 = vrot.slane %v8191_v0, 6  ;;  %v2419_v56 = vrot.slane %v2404_v42, 1  ;;  %v8193_v15 = vld [vmem:[#allocation19_spill] sm:$0xff] }
 0x1d9   : > { %1780 = vrot.lane.b32.xlu0 %v8186_v10, %s4265_s25  ;;  %v358_v10 = vmul.f32 %v5655_v24, %v5684_v8 }
 0x1da   : > { %v5706_v30 = vpop.permute.xlu1 %1782  ;;  %v1807_v41 = vsel %vm1774_vm8, %v1805_v6, %v8192_v39  ;;  %v5745_v6 = vstv %s5675_s3  ;;  %v5755_v39 = vstv %s5688_s4  ;;  %v8199_v8 = vrot.slane %v5710_v34, 4  ;;  %s5893_s3 = sld [smem:[#allocation3 + $0x43]]  ;;  %s3983_s4 = sld [smem:[#allocation3 + $0x47]] }
 0x1db   : > { %8188 = vst [vmem:[#allocation36_spill] sm:$0xff] %v5706_v30  ;;  %v5717_v58 = vpop.permute.xlu0 %1093  ;;  %v1834_v30 = vmul.f32 %v5679_v14, %v4944_v43  ;;  %v431_v0 = vadd.f32 %v425_v59, %v358_v10  ;;  %v5767_v10 = vld [vmem:[#allocation2 + $0x8] sm:$0xff] }
 0x1dc   : > { %8189 = vst [vmem:[#allocation31_spill] sm:$0xff] %v5717_v58  ;;  %2386 = vrot.lane.b32.xlu1 %v2379_v19, %s4262_s19  ;;  %v834_v58 = vadd.f32 %v830_v63, %v686_v61  ;;  %v558_v19 = vsel %vm520_vm10, %v5328_v52, %v8193_v15  ;;  %v2444_v63 = vmul.f32 %v5175_v5, %v5719_v26  ;;  %v8195_v52 = vld [vmem:[#allocation27_spill] sm:$0xff] }
 0x1dd   : > { %1815 = vrot.lane.b32.xlu0 %v1807_v41, %s4265_s25  ;;  %v1278_v41 = vrot.slane %v1271_v22, 4  ;;  %v719_v15 = vsel %vm681_vm11, %v5438_v44, %v8195_v52  ;;  %v2467_v5 = vmul.f32 %v5755_v39, %v5739_v28  ;;  %v564_v59 = vadd.f32 %v558_v19, %v431_v0  ;;  %v8196_v22 = vld [vmem:[#allocation39_spill] sm:$0xff] }
 0x1de   : > { %v5749_v43 = vpop.permute.xlu1 %1817  ;;  %v995_v3 = vadd.f32 %v991_v1, %v834_v58  ;;  %v2469_v58 = vmul.f32 %v5767_v10, %v5755_v39  ;;  %v2420_v44 = vsel %vm471_vm1, %v2415_v18, %v2419_v56  ;;  %v1846_v61 = vrot.slane %v1834_v30, 6  ;;  %v5774_v52 = vld [vmem:[#allocation2 + $0x58] sm:$0x3]  ;;  %v8201_v30 = vld [vmem:[#allocation37_spill] sm:$0xff] }
 0x1df   : > { %8194 = vst [vmem:[#allocation34_spill] sm:$0xff] %v5749_v43  ;;  %v1131_v42 = vpop.permute.xlu0 %1130  ;;  %v2451_v54 = vrot.slane %v2444_v63, 2  ;;  %v1280_v19 = vsel %vm1277_vm7, %v1278_v41, %v8199_v8  ;;  %v725_v56 = vadd.f32 %v719_v15, %v564_v59  ;;  %v8202_v0 = vrot.slane %v8201_v30, 6 }
 0x1e0   : > { %v1139_v43 = vsel %vm1138_vm14, %v1131_v42, %v5324_v53  ;;  %2423 = vrot.lane.b32.xlu1 %v2416_v17, %s4262_s19  ;;  %v8197_v53 = vld [vmem:[#allocation33_spill] sm:$0xff]  ;;  %v1290_v63 = vmul.f32 %v5745_v6, %v5397_v60  ;;  %v2481_v41 = vrot.slane %v2467_v5, 2  ;;  %v2471_v15 = vmul.f32 %v5755_v39, %v5774_v52 }
 0x1e1   : > { %v1143_v1 = vadd.f32 %v1139_v43, %v995_v3  ;;  %1819 = vrot.lane.b32.xlu0 %v8196_v22, %s4265_s25  ;;  %v867_v17 = vsel %vm829_vm12, %v5519_v33, %v8197_v53  ;;  %v5786_v43 = vmul.f32 %v5316_v36, %v5745_v6  ;;  %v1848_v3 = vsel %vm1774_vm8, %v1846_v61, %v8202_v0  ;;  %v8204_v22 = vld [vmem:[#allocation15_spill] sm:$0xff] }
 0x1e2   : > { %v5779_v42 = vpop.permute.xlu1 %1821  ;;  %v452_v8 = vsel %vm401_vm9, %v5222_v21, %v8204_v22  ;;  %v5804_v59 = vstv %s5735_s29  ;;  %v367_v61 = vmul.f32 %v5655_v24, %v5713_v40  ;;  %v5813_v30 = vstv %s5747_s24  ;;  %s3987_s29 = sld [smem:[#allocation3 + $0x4b]]  ;;  %s3991_s24 = sld [smem:[#allocation3 + $0x4f]] }
 0x1e3   : > { %8198 = vst [vmem:[#allocation39_spill] sm:$0xff] %v5779_v42  ;;  %v5788_v18 = vpop.permute.xlu0 %1134  ;;  %v5793_v33 = vadd.f32 %v1280_v19, %v1143_v1  ;;  %v2482_v42 = vrot.slane %v2469_v58, 2  ;;  %v873_v1 = vadd.f32 %v867_v17, %v725_v56  ;;  %v8205_v19 = vld [vmem:[#allocation21_spill] sm:$0xff]  ;;  %8206 = vst [vmem:[#allocation15_spill] sm:$0xff] %v5813_v30  ;;  %v1871_v58 = vmul.f32 %v5679_v14, %v4947_v23 }
 0x1e4   : > { %8200 = vst [vmem:[#allocation33_spill] sm:$0xff] %v5788_v18  ;;  %2427 = vrot.lane.b32.xlu1 %v2420_v44, %s4262_s19  ;;  %v599_v21 = vsel %vm520_vm10, %v5355_v2, %v8205_v19  ;;  %v458_v0 = vadd.f32 %v452_v8, %v367_v61  ;;  %v8208_v56 = vrot.slane %v5189_v35, 2  ;;  %v5827_v2 = vstv %s5757_s27  ;;  %s4003_s27 = sld [smem:[#allocation3 + $0x5b]] }
 0x1e5   : > { %8203 = vst [vmem:[#allocation37_spill] sm:$0xff] %v5793_v33  ;;  %1856 = vrot.lane.b32.xlu0 %v1848_v3, %s4266_s20  ;;  %v1018_v33 = vadd.f32 %v5619_v55, %v873_v1  ;;  %v2483_v23 = vsel %vm738_vm2, %v2481_v41, %v2482_v42  ;;  %v2486_v8 = vrot.slane %v2471_v15, 2  ;;  %v1302_v61 = vrot.slane %v1290_v63, 4 }
 0x1e6   : > { %v5815_v5 = vpop.permute.xlu1 %1858  ;;  %v2452_v3 = vsel %vm738_vm2, %v8208_v56, %v2451_v54  ;;  %v605_v1 = vadd.f32 %v599_v21, %v458_v0  ;;  %v2504_v35 = vmul.f32 %v5827_v2, %v5739_v28  ;;  %v2506_v54 = vmul.f32 %v5767_v10, %v5827_v2  ;;  %v8210_v56 = vld [vmem:[#allocation38_spill] sm:$0xff] }
 0x1e7   : > { %8207 = vst [vmem:[#allocation107_spill] sm:$0xff] %v5815_v5  ;;  %v1169_v17 = vpop.permute.xlu0 %1168  ;;  %v8209_v5 = vld [vmem:[#allocation41_spill] sm:$0xff]  ;;  %v1883_v41 = vrot.slane %v1871_v58, 6  ;;  %v8212_v63 = vrot.slane %v5786_v43, 4  ;;  %v5851_v15 = vmul.f32 %v5316_v36, %v5813_v30  ;;  %v8215_v58 = vld [vmem:[#allocation40_spill] sm:$0xff] }
 0x1e8   : > { %v1176_v19 = vsel %vm1138_vm14, %v1169_v17, %v5351_v9  ;;  %2455 = vrot.lane.b32.xlu1 %v2452_v3, %s4261_s23  ;;  %v908_v17 = vsel %vm829_vm12, %v5543_v13, %v8210_v56  ;;  %v376_v13 = vmul.f32 %v5655_v24, %v5804_v59  ;;  %v8216_v0 = vrot.slane %v8215_v58, 6 }
 0x1e9   : > { %v1182_v44 = vadd.f32 %v1176_v19, %v1018_v33  ;;  %1860 = vrot.lane.b32.xlu0 %v8209_v5, %s4266_s20  ;;  %v1304_v33 = vsel %vm1277_vm7, %v1302_v61, %v8212_v63  ;;  %v750_v19 = vadd.f32 %v5461_v25, %v605_v1  ;;  %v2487_v63 = vsel %vm738_vm2, %v2482_v42, %v2486_v8  ;;  %v8217_v25 = vld [vmem:[#allocation23_spill] sm:$0xff] }
 0x1ea   : > { %v5844_v3 = vpop.permute.xlu1 %1862  ;;  %v1885_v61 = vsel %vm1774_vm8, %v1883_v41, %v8216_v0  ;;  %v1321_v1 = vmul.f32 %v5813_v30, %v5397_v60  ;;  %v2508_v24 = vmul.f32 %v5827_v2, %v5774_v52  ;;  %v1912_v42 = vmul.f32 %v5679_v14, %v5019_v11  ;;  %v8219_v8 = vld [vmem:[#allocation43_spill] sm:$0xff] }
 0x1eb   : > { %8211 = vst [vmem:[#allocation41_spill] sm:$0xff] %v5844_v3  ;;  %v5854_v21 = vpop.permute.xlu0 %1172  ;;  %v5856_v5 = vadd.f32 %v1304_v33, %v1182_v44  ;;  %v914_v56 = vadd.f32 %v908_v17, %v750_v19  ;;  %v2518_v44 = vrot.slane %v2504_v35, 2  ;;  %v2519_v33 = vrot.slane %v2506_v54, 2 }
 0x1ec   : > { %8213 = vst [vmem:[#allocation108_spill] sm:$0xff] %v5854_v21  ;;  %2490 = vrot.lane.b32.xlu1 %v2483_v23, %s4263_s7  ;;  %v640_v23 = vsel %vm520_vm10, %v5382_v50, %v8217_v25  ;;  %v483_v17 = vadd.f32 %v5282_v47, %v376_v13  ;;  %v5881_v35 = vstv %s5821_s8  ;;  %v5884_v19 = vstv %s5829_s17  ;;  %s4007_s8 = sld [smem:[#allocation3 + $0x5f]]  ;;  %s3980_s17 = sld [smem:[#allocation3 + $0x44]] }
 0x1ed   : > { %8214 = vst [vmem:[#allocation109_spill] sm:$0xff] %v5856_v5  ;;  %1893 = vrot.lane.b32.xlu0 %v1885_v61, %s4266_s20  ;;  %v1062_v41 = vadd.f32 %v5634_v32, %v914_v56  ;;  %v2545_v50 = vmul.f32 %v5884_v19, %v5739_v28  ;;  %v2547_v11 = vmul.f32 %v5767_v10, %v5884_v19  ;;  %v1333_v13 = vrot.slane %v1321_v1, 4 }
 0x1ee   : > { %v5873_v58 = vpop.permute.xlu1 %1895  ;;  %v646_v56 = vadd.f32 %v640_v23, %v483_v17  ;;  %v2520_v32 = vsel %vm738_vm2, %v2518_v44, %v2519_v33  ;;  %v1924_v3 = vrot.slane %v1912_v42, 6  ;;  %v5905_v5 = vmul.f32 %v5316_v36, %v5881_v35 }
 0x1ef   : > { %8218 = vst [vmem:[#allocation40_spill] sm:$0xff] %v5873_v58  ;;  %v1210_v54 = vpop.permute.xlu0 %1209  ;;  %v2523_v58 = vrot.slane %v2508_v24, 2  ;;  %v8222_v1 = vrot.slane %v5851_v15, 4  ;;  %v1352_v36 = vmul.f32 %v5881_v35, %v5397_v60  ;;  %v2559_v42 = vrot.slane %v2545_v50, 2 }
 0x1f0   : > { %v1217_v0 = vsel %vm1138_vm14, %v1210_v54, %v5378_v16  ;;  %2494 = vrot.lane.b32.xlu1 %v2487_v63, %s4263_s7  ;;  %v8220_v54 = vld [vmem:[#allocation45_spill] sm:$0xff] }
 0x1f1   : > { %v1223_v61 = vadd.f32 %v1217_v0, %v1062_v41  ;;  %1897 = vrot.lane.b32.xlu0 %v8219_v8, %s4266_s20  ;;  %v949_v63 = vsel %vm829_vm12, %v5566_v49, %v8220_v54  ;;  %v1335_v23 = vsel %vm1277_vm7, %v1333_v13, %v8222_v1  ;;  %v794_v8 = vadd.f32 %v5473_v7, %v646_v56  ;;  %v8227_v1 = vld [vmem:[#allocation46_spill] sm:$0xff] }
 0x1f2   : > { %v5901_v16 = vpop.permute.xlu1 %1899  ;;  %v8225_v49 = vrot.slane %v5070_v46, 6  ;;  %v2560_v41 = vrot.slane %v2547_v11, 2  ;;  %v2524_v13 = vsel %vm738_vm2, %v2519_v33, %v2523_v58  ;;  %v2549_v56 = vmul.f32 %v5884_v19, %v5774_v52  ;;  %v6230_v54 = vld [vmem:[#allocation2 + $0x50] sm:$0x7] }
 0x1f3   : > { %8221 = vst [vmem:[#allocation23_spill] sm:$0xff] %v5901_v16  ;;  %v5911_v17 = vpop.permute.xlu0 %1213  ;;  %v5913_v44 = vadd.f32 %v1335_v23, %v1223_v61  ;;  %v955_v0 = vadd.f32 %v949_v63, %v794_v8  ;;  %v7980_v46 = vrot.slane %v5905_v5, 4  ;;  %v1364_v50 = vrot.slane %v1352_v36, 4 }
 0x1f4   : > { %8223 = vst [vmem:[#allocation43_spill] sm:$0xff] %v5911_v17  ;;  %2527 = vrot.lane.b32.xlu1 %v2520_v32, %s4263_s7  ;;  %v1926_v24 = vsel %vm1774_vm8, %v1924_v3, %v8225_v49  ;;  %v1953_v32 = vmul.f32 %v5679_v14, %v5100_v29  ;;  %v2561_v33 = vsel %vm738_vm2, %v2559_v42, %v2560_v41  ;;  %v5936_v58 = vstv %s5893_s3  ;;  %s3981_s3 = sld [smem:[#allocation3 + $0x45]] }
 0x1f5   : > { %8224 = vst [vmem:[#allocation110_spill] sm:$0xff] %v5913_v44  ;;  %1934 = vrot.lane.b32.xlu0 %v1926_v24, %s4266_s20  ;;  %v1103_v60 = vadd.f32 %v5686_v48, %v955_v0  ;;  %v2564_v23 = vrot.slane %v2549_v56, 2  ;;  %v2586_v29 = vmul.f32 %v5936_v58, %v5739_v28  ;;  %v2588_v8 = vmul.f32 %v5767_v10, %v5936_v58 }
 0x1f6   : > { %v5925_v61 = vpop.permute.xlu1 %1936  ;;  %v1366_v49 = vsel %vm1277_vm7, %v1364_v50, %v7980_v46  ;;  %v1965_v36 = vrot.slane %v1953_v32, 6  ;;  %v2590_v50 = vmul.f32 %v5936_v58, %v5774_v52 }
 0x1f7   : > { %8226 = vst [vmem:[#allocation111_spill] sm:$0xff] %v5925_v61  ;;  %v1251_v3 = vpop.permute.xlu0 %1250 }
 0x1f8   : > { %v1258_v11 = vsel %vm1138_vm14, %v1251_v3, %v5407_v31  ;;  %2531 = vrot.lane.b32.xlu1 %v2524_v13, %s4263_s7  ;;  %v8231_v13 = vld [vmem:[#allocation44_spill] sm:$0xff]  ;;  %v2565_v3 = vsel %vm738_vm2, %v2560_v41, %v2564_v23  ;;  %v8235_v41 = vld [vmem:[#allocation49_spill] sm:$0xff] }
 0x1f9   : > { %v1264_v63 = vadd.f32 %v1258_v11, %v1103_v60  ;;  %1938 = vrot.lane.b32.xlu0 %v8227_v1, %s4266_s20  ;;  %v8232_v56 = vrot.slane %v8231_v13, 6  ;;  %v2600_v11 = vrot.slane %v2586_v29, 2  ;;  %v2601_v1 = vrot.slane %v2588_v8, 2 }
 0x1fa   : > { %v5947_v24 = vpop.permute.xlu1 %1940  ;;  %v2605_v29 = vrot.slane %v2590_v50, 2  ;;  %v6164_v31 = vstv %s3981_s3  ;;  %s4001_s3 = sld [smem:[#allocation3 + $0x59]] }
 0x1fb   : > { %8228 = vst [vmem:[#allocation46_spill] sm:$0xff] %v5947_v24  ;;  %v5949_v42 = vadd.f32 %v1366_v49, %v1264_v63  ;;  %v5951_v0 = vpop.permute.xlu0 %1254  ;;  %v1967_v60 = vsel %vm1774_vm8, %v1965_v36, %v8232_v56  ;;  %v1994_v63 = vmul.f32 %v5679_v14, %v5127_v20  ;;  %v5965_v49 = vld [vmem:[#allocation2 + $0x38] sm:$0xf8]  ;;  %v5970_v36 = vstv %s3983_s4  ;;  %v5981_v56 = vld [vmem:[#allocation2 + $0x58] sm:$0x7]  ;;  %s3985_s4 = sld [smem:[#allocation3 + $0x49]] }
 0x1fc   : > { %8230 = vst [vmem:[#allocation113_spill] sm:$0xff] %v5951_v0  ;;  %2568 = vrot.lane.b32.xlu1 %v2561_v33, %s4263_s7  ;;  %v2602_v23 = vsel %vm738_vm2, %v2600_v11, %v2601_v1  ;;  %v2731_v8 = vmul.f32 %v5970_v36, %v5965_v49  ;;  %v2733_v20 = vmul.f32 %v5767_v10, %v5970_v36 }
 0x1fd   : > { %8229 = vst [vmem:[#allocation112_spill] sm:$0xff] %v5949_v42  ;;  %1975 = vrot.lane.b32.xlu0 %v1967_v60, %s4266_s20  ;;  %v2006_v13 = vrot.slane %v1994_v63, 6  ;;  %v2606_v50 = vsel %vm738_vm2, %v2601_v1, %v2605_v29  ;;  %v2735_v63 = vmul.f32 %v5970_v36, %v5981_v56 }
 0x1fe   : > { %v5961_v32 = vpop.permute.xlu1 %1977  ;;  %v2745_v46 = vrot.slane %v2731_v8, 3  ;;  %v2746_v61 = vrot.slane %v2733_v20, 3 }
 0x1ff   : > { %8233 = vst [vmem:[#allocation44_spill] sm:$0xff] %v5961_v32  ;;  %v5967_v33 = vpop.permute.xlu0 %1405  ;;  %v2750_v29 = vrot.slane %v2735_v63, 3 }
 0x200   : > { %8234 = vst [vmem:[#allocation114_spill] sm:$0xff] %v5967_v33  ;;  %2572 = vrot.lane.b32.xlu1 %v2565_v3, %s4263_s7  ;;  %v8238_v3 = vld [vmem:[#allocation47_spill] sm:$0xff]  ;;  %v2747_v1 = vsel %vm1006_vm6, %v2745_v46, %v2746_v61 }
 0x201   : > { %1979 = vrot.lane.b32.xlu0 %v8235_v41, %s4266_s20  ;;  %v8239_v41 = vrot.slane %v8238_v3, 6  ;;  %v6000_v3 = vstv %s3987_s29  ;;  %v2751_v46 = vsel %vm1006_vm6, %v2746_v61, %v2750_v29  ;;  %s3982_s29 = sld [smem:[#allocation3 + $0x46]] }
 0x202   : > { %v5979_v14 = vpop.permute.xlu1 %1981  ;;  %v2891_v8 = vmul.f32 %v6000_v3, %v5965_v49  ;;  %v2893_v20 = vmul.f32 %v5767_v10, %v6000_v3  ;;  %v2895_v9 = vmul.f32 %v6000_v3, %v5981_v56 }
 0x203   : > { %8236 = vst [vmem:[#allocation49_spill] sm:$0xff] %v5979_v14  ;;  %v5983_v60 = vpop.permute.xlu0 %1409  ;;  %v2008_v11 = vsel %vm1774_vm8, %v2006_v13, %v8239_v41  ;;  %v8242_v13 = vld [vmem:[#allocation50_spill] sm:$0xff] }
 0x204   : > { %8237 = vst [vmem:[#allocation115_spill] sm:$0xff] %v5983_v60  ;;  %2609 = vrot.lane.b32.xlu1 %v2602_v23, %s4263_s7  ;;  %v5998_v23 = vld [vmem:[#allocation2 + $0x30] sm:$0xff]  ;;  %v2905_v63 = vrot.slane %v2891_v8, 3  ;;  %v6023_v60 = vld [vmem:[#allocation2 + $0x38] sm:$0xf0]  ;;  %v2910_v61 = vrot.slane %v2895_v9, 3 }
 0x205   : > { %2016 = vrot.lane.b32.xlu0 %v2008_v11, %s4267_s6  ;;  %v2077_v21 = vmul.f32 %v5497_v4, %v5998_v23 }
 0x206   : > { %v5993_v44 = vpop.permute.xlu1 %2018 }
 0x207   : > { %8240 = vst [vmem:[#allocation47_spill] sm:$0xff] %v5993_v44  ;;  %v5995_v16 = vpop.permute.xlu0 %1442 }
 0x208   : > { %8241 = vst [vmem:[#allocation116_spill] sm:$0xff] %v5995_v16  ;;  %2613 = vrot.lane.b32.xlu1 %v2606_v50, %s4263_s7  ;;  %v8245_v50 = vstv %s5440_s30  ;;  %s3995_s30 = sld [smem:[#allocation3 + $0x53]] }
 0x209   : > { %2020 = vrot.lane.b32.xlu0 %v8242_v13, %s4267_s6  ;;  %v2033_v44 = vmul.f32 %v8245_v50, %v5998_v23  ;;  %v2906_v13 = vrot.slane %v2893_v20, 3  ;;  %v2050_v50 = vmul.f32 %v5475_v62, %v5998_v23 }
 0x20a   : > { %v6009_v41 = vpop.permute.xlu1 %2022 }
 0x20b   : > { %8243 = vst [vmem:[#allocation50_spill] sm:$0xff] %v6009_v41  ;;  %v6011_v11 = vpop.permute.xlu0 %1446  ;;  %v2911_v9 = vsel %vm1006_vm6, %v2906_v13, %v2910_v61 }
 0x20c   : > { %8244 = vst [vmem:[#allocation117_spill] sm:$0xff] %v6011_v11  ;;  %2754 = vrot.lane.b32.xlu1 %v2747_v1, %s4265_s25  ;;  %v6030_v1 = vstv %s3991_s24  ;;  %s3986_s24 = sld [smem:[#allocation3 + $0x4a]] }
 0x20d   : > { %2037 = vrot.lane.b32.xlu0 %v2033_v44, %s4268_s14  ;;  %v2907_v44 = vsel %vm1006_vm6, %v2905_v63, %v2906_v13  ;;  %v3036_v29 = vmul.f32 %v6030_v1, %v6023_v60  ;;  %v3038_v8 = vmul.f32 %v5767_v10, %v6030_v1 }
 0x20e   : > { %v6021_v16 = vpop.permute.xlu1 %2039 }
 0x20f   : > { %8246 = vst [vmem:[#allocation118_spill] sm:$0xff] %v6021_v16  ;;  %v6025_v41 = vpop.permute.xlu0 %1483  ;;  %v6040_v16 = vld [vmem:[#allocation2 + $0x58] sm:$0xf]  ;;  %v3050_v63 = vrot.slane %v3036_v29, 4  ;;  %v3051_v11 = vrot.slane %v3038_v8, 4 }
 0x210   : > { %8247 = vst [vmem:[#allocation119_spill] sm:$0xff] %v6025_v41  ;;  %2758 = vrot.lane.b32.xlu1 %v2751_v46, %s4265_s25  ;;  %v6044_v46 = vld [vmem:[#allocation2 + $0x40] sm:$0xff] }
 0x211   : > { %2058 = vrot.lane.b32.xlu0 %v2050_v50, %s4268_s14  ;;  %v2052_v50 = vmul.f32 %v6044_v46, %v5475_v62  ;;  %v6060_v62 = vstv %s3995_s30  ;;  %v3052_v13 = vsel %vm1277_vm7, %v3050_v63, %v3051_v11  ;;  %s3989_s30 = sld [smem:[#allocation3 + $0x4d]] }
 0x212   : > { %v6038_v20 = vpop.permute.xlu1 %2060  ;;  %v3196_v61 = vmul.f32 %v6060_v62, %v6023_v60  ;;  %v3198_v29 = vmul.f32 %v5767_v10, %v6060_v62 }
 0x213   : > { %8248 = vst [vmem:[#allocation120_spill] sm:$0xff] %v6038_v20  ;;  %v6042_v41 = vpop.permute.xlu0 %1487  ;;  %v3040_v20 = vmul.f32 %v6030_v1, %v6040_v16 }
 0x214   : > { %8249 = vst [vmem:[#allocation121_spill] sm:$0xff] %v6042_v41  ;;  %2914 = vrot.lane.b32.xlu1 %v2907_v44, %s4266_s20  ;;  %v3211_v63 = vrot.slane %v3198_v29, 4  ;;  %v6094_v29 = vld [vmem:[#allocation2 + $0x38] sm:$0xc0] }
 0x215   : > { %2062 = vrot.lane.b32.xlu0 %v2052_v50, %s4268_s14  ;;  %v3055_v44 = vrot.slane %v3040_v20, 4  ;;  %v3210_v20 = vrot.slane %v3196_v61, 4  ;;  %v6092_v61 = vstv %s4003_s27  ;;  %s3990_s27 = sld [smem:[#allocation3 + $0x4e]] }
 0x216   : > { %v6053_v33 = vpop.permute.xlu1 %2064 }
 0x217   : > { %8250 = vst [vmem:[#allocation122_spill] sm:$0xff] %v6053_v33  ;;  %v6055_v55 = vpop.permute.xlu0 %1515  ;;  %v3200_v33 = vmul.f32 %v6060_v62, %v6040_v16 }
 0x218   : > { %8251 = vst [vmem:[#allocation123_spill] sm:$0xff] %v6055_v55  ;;  %2918 = vrot.lane.b32.xlu1 %v2911_v9, %s4266_s20  ;;  %v2079_v9 = vmul.f32 %v6044_v46, %v5497_v4  ;;  %v6086_v4 = vld [vmem:[#allocation2 + $0x50] sm:$0x3f] }
 0x219   : > { %2085 = vrot.lane.b32.xlu0 %v2077_v21, %s4268_s14  ;;  %v3056_v21 = vsel %vm1277_vm7, %v3051_v11, %v3055_v44  ;;  %v3212_v11 = vsel %vm1277_vm7, %v3210_v20, %v3211_v63  ;;  %v6109_v20 = vmul.f32 %v6044_v46, %v6092_v61 }
 0x21a   : > { %v6068_v8 = vpop.permute.xlu1 %2087 }
 0x21b   : > { %8252 = vst [vmem:[#allocation124_spill] sm:$0xff] %v6068_v8  ;;  %v6070_v50 = vpop.permute.xlu0 %1550 }
 0x21c   : > { %8253 = vst [vmem:[#allocation125_spill] sm:$0xff] %v6070_v50  ;;  %3059 = vrot.lane.b32.xlu1 %v3052_v13, %s4268_s14  ;;  %v2104_v50 = vmul.f32 %v5521_v45, %v5998_v23  ;;  %v3215_v13 = vrot.slane %v3200_v33, 4 }
 0x21d   : > { %2089 = vrot.lane.b32.xlu0 %v2079_v9, %s4268_s14 }
 0x21e   : > { %v6079_v18 = vpop.permute.xlu1 %2091  ;;  %v3216_v33 = vsel %vm1277_vm7, %v3211_v63, %v3215_v13  ;;  %v7988_v13 = vrot.slane %v6109_v20, 6 }
 0x21f   : > { %8254 = vst [vmem:[#allocation126_spill] sm:$0xff] %v6079_v18  ;;  %v6081_v42 = vpop.permute.xlu0 %1554 }
 0x220   : > { %8255 = vst [vmem:[#allocation127_spill] sm:$0xff] %v6081_v42  ;;  %3063 = vrot.lane.b32.xlu1 %v3056_v21, %s4268_s14  ;;  %v2106_v42 = vmul.f32 %v6044_v46, %v5521_v45  ;;  %v3472_v21 = vmul.f32 %v6092_v61, %v6086_v4 }
 0x221   : > { %2112 = vrot.lane.b32.xlu0 %v2104_v50, %s4269_s26  ;;  %v6103_v50 = vstv %s4007_s8  ;;  %s3993_s8 = sld [smem:[#allocation3 + $0x51]] }
 0x222   : > { %v6090_v44 = vpop.permute.xlu1 %2114  ;;  %v3616_v45 = vmul.f32 %v5767_v10, %v6103_v50  ;;  %v3479_v63 = vrot.slane %v3472_v21, 6  ;;  %v2129_v21 = vmul.f32 %v6044_v46, %v5545_v57 }
 0x223   : > { %8256 = vst [vmem:[#allocation128_spill] sm:$0xff] %v6090_v44  ;;  %v6096_v9 = vpop.permute.xlu0 %1587  ;;  %v3614_v44 = vmul.f32 %v6103_v50, %v6094_v29 }
 0x224   : > { %8257 = vst [vmem:[#allocation129_spill] sm:$0xff] %v6096_v9  ;;  %3219 = vrot.lane.b32.xlu1 %v3212_v11, %s4269_s26  ;;  %v6117_v11 = vld [vmem:[#allocation2 + $0x58] sm:$0x3f]  ;;  %v3629_v14 = vrot.slane %v3616_v45, 6 }
 0x225   : > { %2116 = vrot.lane.b32.xlu0 %v2106_v42, %s4269_s26  ;;  %v2127_v42 = vmul.f32 %v5545_v57, %v5998_v23  ;;  %v3628_v8 = vrot.slane %v3614_v44, 6  ;;  %v3618_v18 = vmul.f32 %v6103_v50, %v6117_v11  ;;  %v2154_v57 = vmul.f32 %v5568_v51, %v5998_v23 }
 0x226   : > { %v6115_v9 = vpop.permute.xlu1 %2118 }
 0x227   : > { %8258 = vst [vmem:[#allocation130_spill] sm:$0xff] %v6115_v9  ;;  %v6119_v32 = vpop.permute.xlu0 %1591  ;;  %v3630_v44 = vsel %vm1774_vm8, %v3628_v8, %v3629_v14  ;;  %v3633_v45 = vrot.slane %v3618_v18, 6 }
 0x228   : > { %8259 = vst [vmem:[#allocation131_spill] sm:$0xff] %v6119_v32  ;;  %3223 = vrot.lane.b32.xlu1 %v3216_v33, %s4269_s26  ;;  %v3480_v32 = vsel %vm1774_vm8, %v7988_v13, %v3479_v63  ;;  %v6138_v33 = vstv %s3980_s17  ;;  %s3994_s17 = sld [smem:[#allocation3 + $0x52]] }
 0x229   : > { %2135 = vrot.lane.b32.xlu0 %v2127_v42, %s4269_s26  ;;  %v2627_v42 = vmul.f32 %v6138_v33, %v5739_v28 }
 0x22a   : > { %v6128_v9 = vpop.permute.xlu1 %2137 }
 0x22b   : > { %8260 = vst [vmem:[#allocation132_spill] sm:$0xff] %v6128_v9  ;;  %v6130_v0 = vpop.permute.xlu0 %1628  ;;  %v2641_v18 = vrot.slane %v2627_v42, 2  ;;  %v6172_v42 = vld [vmem:[#allocation2 + $0x30] sm:$0xfe] }
 0x22c   : > { %8261 = vst [vmem:[#allocation133_spill] sm:$0xff] %v6130_v0  ;;  %3483 = vrot.lane.b32.xlu1 %v3480_v32, %s4261_s23  ;;  %v2629_v0 = vmul.f32 %v5767_v10, %v6138_v33  ;;  %v3634_v32 = vsel %vm1774_vm8, %v3629_v14, %v3633_v45  ;;  %v2666_v45 = vmul.f32 %v5767_v10, %v6164_v31 }
 0x22d   : > { %2139 = vrot.lane.b32.xlu0 %v2129_v21, %s4269_s26  ;;  %v2631_v21 = vmul.f32 %v6138_v33, %v5774_v52 }
 0x22e   : > { %v6146_v63 = vpop.permute.xlu1 %2141  ;;  %v2642_v8 = vrot.slane %v2629_v0, 2 }
 0x22f   : > { %8262 = vst [vmem:[#allocation134_spill] sm:$0xff] %v6146_v63  ;;  %v6148_v13 = vpop.permute.xlu0 %1632  ;;  %v2156_v63 = vmul.f32 %v6044_v46, %v5568_v51  ;;  %v2646_v0 = vrot.slane %v2631_v21, 2 }
 0x230   : > { %8263 = vst [vmem:[#allocation135_spill] sm:$0xff] %v6148_v13  ;;  %3637 = vrot.lane.b32.xlu1 %v3630_v44, %s4263_s7  ;;  %v2643_v14 = vsel %vm738_vm2, %v2641_v18, %v2642_v8  ;;  %v2664_v44 = vmul.f32 %v6164_v31, %v5739_v28  ;;  %v2323_v28 = vmul.f32 %v6044_v46, %v5595_v37 }
 0x231   : > { %2162 = vrot.lane.b32.xlu0 %v2154_v57, %s4269_s26  ;;  %v2647_v18 = vsel %vm738_vm2, %v2642_v8, %v2646_v0  ;;  %v6200_v0 = vstv %s3985_s4  ;;  %s4002_s4 = sld [smem:[#allocation3 + $0x5a]] }
 0x232   : > { %v6157_v9 = vpop.permute.xlu1 %2164  ;;  %v2678_v21 = vrot.slane %v2664_v44, 2 }
 0x233   : > { %8264 = vst [vmem:[#allocation136_spill] sm:$0xff] %v6157_v9  ;;  %v6159_v55 = vpop.permute.xlu0 %1669  ;;  %v2679_v9 = vrot.slane %v2666_v45, 2  ;;  %v2809_v45 = vmul.f32 %v6200_v0, %v5965_v49 }
 0x234   : > { %8265 = vst [vmem:[#allocation137_spill] sm:$0xff] %v6159_v55  ;;  %3641 = vrot.lane.b32.xlu1 %v3634_v32, %s4263_s7  ;;  %v2181_v32 = vmul.f32 %v5589_v12, %v5998_v23  ;;  %v6189_v55 = vld [vmem:[#allocation2 + $0x50] sm:$0x1] }
 0x235   : > { %2166 = vrot.lane.b32.xlu0 %v2156_v63, %s4269_s26  ;;  %v2321_v63 = vmul.f32 %v5595_v37, %v6172_v42  ;;  %v2325_v8 = vmul.f32 %v5595_v37, %v6189_v55 }
 0x236   : > { %v6174_v57 = vpop.permute.xlu1 %2168 }
 0x237   : > { %8266 = vst [vmem:[#allocation138_spill] sm:$0xff] %v6174_v57  ;;  %v6176_v51 = vpop.permute.xlu0 %1673  ;;  %v2183_v57 = vmul.f32 %v6044_v46, %v5589_v12  ;;  %v2333_v48 = vrot.slane %v2321_v63, 1  ;;  %v2811_v12 = vmul.f32 %v5767_v10, %v6200_v0 }
 0x238   : > { %8267 = vst [vmem:[#allocation139_spill] sm:$0xff] %v6176_v51  ;;  %2650 = vrot.lane.b32.xlu1 %v2643_v14, %s4264_s16  ;;  %v2668_v51 = vmul.f32 %v6164_v31, %v5774_v52  ;;  %v2680_v52 = vsel %vm738_vm2, %v2678_v21, %v2679_v9  ;;  %v2823_v21 = vrot.slane %v2809_v45, 3 }
 0x239   : > { %2189 = vrot.lane.b32.xlu0 %v2181_v32, %s4269_s26  ;;  %v2334_v32 = vrot.slane %v2323_v28, 1  ;;  %v2360_v28 = vmul.f32 %v6044_v46, %v5622_v27 }
 0x23a   : > { %v6191_v23 = vpop.permute.xlu1 %2191  ;;  %v2683_v44 = vrot.slane %v2668_v51, 2  ;;  %v2358_v51 = vmul.f32 %v5622_v27, %v6172_v42 }
 0x23b   : > { %8268 = vst [vmem:[#allocation140_spill] sm:$0xff] %v6191_v23  ;;  %v6193_v14 = vpop.permute.xlu0 %1710  ;;  %v2335_v37 = vsel %vm471_vm1, %v2333_v48, %v2334_v32  ;;  %v2824_v23 = vrot.slane %v2811_v12, 3  ;;  %v2371_v24 = vrot.slane %v2360_v28, 1  ;;  %v6236_v12 = vstv %s3982_s29  ;;  %s4005_s29 = sld [smem:[#allocation3 + $0x5d]] }
 0x23c   : > { %8269 = vst [vmem:[#allocation141_spill] sm:$0xff] %v6193_v14  ;;  %2654 = vrot.lane.b32.xlu1 %v2647_v18, %s4264_s16  ;;  %v2684_v18 = vsel %vm738_vm2, %v2679_v9, %v2683_v44  ;;  %v2399_v28 = vmul.f32 %v5653_v38, %v6172_v42 }
 0x23d   : > { %2193 = vrot.lane.b32.xlu0 %v2183_v57, %s4269_s26  ;;  %v2339_v57 = vrot.slane %v2325_v8, 1  ;;  %v2370_v8 = vrot.slane %v2358_v51, 1  ;;  %v2825_v9 = vsel %vm1006_vm6, %v2823_v21, %v2824_v23  ;;  %v6254_v21 = vmul.f32 %v6044_v46, %v6236_v12 }
 0x23e   : > { %v6208_v14 = vpop.permute.xlu1 %2195 }
 0x23f   : > { %8270 = vst [vmem:[#allocation142_spill] sm:$0xff] %v6208_v14  ;;  %v6210_v63 = vpop.permute.xlu0 %1714  ;;  %v2340_v48 = vsel %vm471_vm1, %v2334_v32, %v2339_v57  ;;  %v2708_v32 = vmul.f32 %v6236_v12, %v6230_v54  ;;  %v6242_v57 = vstv %s3986_s24  ;;  %s4006_s24 = sld [smem:[#allocation3 + $0x5e]] }
 0x240   : > { %8271 = vst [vmem:[#allocation143_spill] sm:$0xff] %v6210_v63  ;;  %2687 = vrot.lane.b32.xlu1 %v2680_v52, %s4264_s16  ;;  %v2813_v63 = vmul.f32 %v6200_v0, %v5981_v56 }
 0x241   : > { %2343 = vrot.lane.b32.xlu0 %v2335_v37, %s4262_s19  ;;  %v2362_v37 = vmul.f32 %v5622_v27, %v6189_v55  ;;  %v2372_v27 = vsel %vm471_vm1, %v2370_v8, %v2371_v24  ;;  %v2852_v8 = vmul.f32 %v5767_v10, %v6242_v57 }
 0x242   : > { %v6222_v14 = vpop.permute.xlu1 %2345  ;;  %v2828_v44 = vrot.slane %v2813_v63, 3  ;;  %v2401_v63 = vmul.f32 %v6044_v46, %v5653_v38 }
 0x243   : > { %8272 = vst [vmem:[#allocation144_spill] sm:$0xff] %v6222_v14  ;;  %v6224_v52 = vpop.permute.xlu0 %1747  ;;  %v2376_v51 = vrot.slane %v2362_v37, 1 }
 0x244   : > { %8273 = vst [vmem:[#allocation145_spill] sm:$0xff] %v6224_v52  ;;  %2691 = vrot.lane.b32.xlu1 %v2684_v18, %s4264_s16  ;;  %v2829_v18 = vsel %vm1006_vm6, %v2824_v23, %v2828_v44  ;;  %v2411_v44 = vrot.slane %v2399_v28, 1  ;;  %v6281_v28 = vld [vmem:[#allocation2 + $0x50] sm:$0xf] }
 0x245   : > { %2347 = vrot.lane.b32.xlu0 %v2340_v48, %s4262_s19  ;;  %v2850_v48 = vmul.f32 %v6242_v57, %v5965_v49  ;;  %v2377_v23 = vsel %vm471_vm1, %v2371_v24, %v2376_v51  ;;  %v8001_v49 = vrot.slane %v6254_v21, 3 }
 0x246   : > { %v6234_v45 = vpop.permute.xlu1 %2349 }
 0x247   : > { %8274 = vst [vmem:[#allocation146_spill] sm:$0xff] %v6234_v45  ;;  %v6238_v14 = vpop.permute.xlu0 %1751  ;;  %v2715_v45 = vrot.slane %v2708_v32, 3  ;;  %v2864_v52 = vrot.slane %v2850_v48, 3 }
 0x248   : > { %8275 = vst [vmem:[#allocation147_spill] sm:$0xff] %v6238_v14  ;;  %2832 = vrot.lane.b32.xlu1 %v2825_v9, %s4266_s20  ;;  %v2403_v14 = vmul.f32 %v5653_v38, %v6189_v55 }
 0x249   : > { %2380 = vrot.lane.b32.xlu0 %v2372_v27, %s4262_s19  ;;  %v2412_v27 = vrot.slane %v2401_v63, 1  ;;  %v2716_v24 = vsel %vm1006_vm6, %v8001_v49, %v2715_v45 }
 0x24a   : > { %v6260_v37 = vpop.permute.xlu1 %2382  ;;  %v2417_v51 = vrot.slane %v2403_v14, 1 }
 0x24b   : > { %8276 = vst [vmem:[#allocation148_spill] sm:$0xff] %v6260_v37  ;;  %v6262_v9 = vpop.permute.xlu0 %1780  ;;  %v2865_v37 = vrot.slane %v2852_v8, 3  ;;  %v2413_v38 = vsel %vm471_vm1, %v2411_v44, %v2412_v27  ;;  %v6287_v8 = vstv %s3989_s30  ;;  %v6295_v44 = vld [vmem:[#allocation2 + $0x30] sm:$0xfc]  ;;  %s4009_s30 = sld [smem:[#allocation3 + $0x61]] }
 0x24c   : > { %8277 = vst [vmem:[#allocation149_spill] sm:$0xff] %v6262_v9  ;;  %2836 = vrot.lane.b32.xlu1 %v2829_v18, %s4266_s20  ;;  %v2854_v9 = vmul.f32 %v6242_v57, %v5981_v56  ;;  %v2972_v45 = vmul.f32 %v6287_v8, %v6281_v28  ;;  %v2418_v14 = vsel %vm471_vm1, %v2412_v27, %v2417_v51 }
 0x24d   : > { %2384 = vrot.lane.b32.xlu0 %v2377_v23, %s4262_s19  ;;  %v2866_v63 = vsel %vm1006_vm6, %v2864_v52, %v2865_v37  ;;  %v2468_v52 = vmul.f32 %v6044_v46, %v5755_v39 }
 0x24e   : > { %v6272_v32 = vpop.permute.xlu1 %2386  ;;  %v2869_v56 = vrot.slane %v2854_v9, 3  ;;  %v6301_v9 = vstv %s3990_s27  ;;  %s3969_s27 = sld [smem:[#allocation3 + $0x39]] }
 0x24f   : > { %8278 = vst [vmem:[#allocation150_spill] sm:$0xff] %v6272_v32  ;;  %v6274_v18 = vpop.permute.xlu0 %1815  ;;  %v2995_v27 = vmul.f32 %v6301_v9, %v6023_v60  ;;  %v2997_v51 = vmul.f32 %v5767_v10, %v6301_v9  ;;  %v2979_v32 = vrot.slane %v2972_v45, 4 }
 0x250   : > { %8279 = vst [vmem:[#allocation151_spill] sm:$0xff] %v6274_v18  ;;  %2719 = vrot.lane.b32.xlu1 %v2716_v24, %s4265_s25  ;;  %v2466_v24 = vmul.f32 %v6295_v44, %v5755_v39  ;;  %v2479_v18 = vrot.slane %v2468_v52, 2 }
 0x251   : > { %2421 = vrot.lane.b32.xlu0 %v2413_v38, %s4262_s19  ;;  %v2870_v38 = vsel %vm1006_vm6, %v2865_v37, %v2869_v56  ;;  %v2470_v37 = vmul.f32 %v5755_v39, %v5719_v26  ;;  %v8285_v56 = vld [vmem:[#allocation53_spill] sm:$0xff]  ;;  %v3009_v13 = vrot.slane %v2995_v27, 4  ;;  %v3010_v41 = vrot.slane %v2997_v51, 4 }
 0x252   : > { %v6285_v48 = vpop.permute.xlu1 %2423  ;;  %v2503_v39 = vmul.f32 %v6295_v44, %v5827_v2  ;;  %v2505_v27 = vmul.f32 %v6044_v46, %v5827_v2  ;;  %v6338_v51 = vstv %s3993_s8  ;;  %s6753_s8 = sld [smem:[#allocation3 + $0x3a]] }
 0x253   : > { %8280 = vst [vmem:[#allocation152_spill] sm:$0xff] %v6285_v48  ;;  %v6289_v23 = vpop.permute.xlu0 %1819 }
 0x254   : > { %8281 = vst [vmem:[#allocation153_spill] sm:$0xff] %v6289_v23  ;;  %2873 = vrot.lane.b32.xlu1 %v2866_v63, %s4266_s20  ;;  %v6307_v63 = vmul.f32 %v6044_v46, %v6287_v8 }
 0x255   : > { %2425 = vrot.lane.b32.xlu0 %v2418_v14, %s4262_s19  ;;  %v2478_v14 = vrot.slane %v2466_v24, 2 }
 0x256   : > { %8282 = vst [vmem:[#allocation154_spill] sm:$0xff] %v6307_v63  ;;  %v6313_v49 = vpop.permute.xlu1 %2427  ;;  %v8008_v23 = vrot.slane %v6307_v63, 4 }
 0x257   : > { %8283 = vst [vmem:[#allocation155_spill] sm:$0xff] %v6313_v49  ;;  %v6315_v48 = vpop.permute.xlu0 %1856  ;;  %v2999_v49 = vmul.f32 %v6301_v9, %v6040_v16  ;;  %v2480_v52 = vsel %vm738_vm2, %v2478_v14, %v2479_v18 }
 0x258   : > { %8284 = vst [vmem:[#allocation156_spill] sm:$0xff] %v6315_v48  ;;  %2877 = vrot.lane.b32.xlu1 %v2870_v38, %s4266_s20  ;;  %v2980_v24 = vsel %vm1277_vm7, %v8008_v23, %v2979_v32  ;;  %v2484_v38 = vrot.slane %v2470_v37, 2  ;;  %v3114_v32 = vmul.f32 %v6338_v51, %v6023_v60  ;;  %v2515_v48 = vrot.slane %v2503_v39, 2 }
 0x259   : > { %2453 = vrot.lane.b32.xlu0 %v8285_v56, %s4261_s23  ;;  %v3011_v56 = vsel %vm1277_vm7, %v3009_v13, %v3010_v41  ;;  %v2507_v13 = vmul.f32 %v5827_v2, %v5719_v26  ;;  %v2546_v39 = vmul.f32 %v6044_v46, %v5884_v19 }
 0x25a   : > { %v6325_v7 = vpop.permute.xlu1 %2455  ;;  %v2485_v37 = vsel %vm738_vm2, %v2479_v18, %v2484_v38  ;;  %v2544_v18 = vmul.f32 %v6295_v44, %v5884_v19 }
 0x25b   : > { %8286 = vst [vmem:[#allocation53_spill] sm:$0xff] %v6325_v7  ;;  %v6327_v45 = vpop.permute.xlu0 %1860  ;;  %v2516_v7 = vrot.slane %v2505_v27, 2 }
 0x25c   : > { %8287 = vst [vmem:[#allocation157_spill] sm:$0xff] %v6327_v45  ;;  %2983 = vrot.lane.b32.xlu1 %v2980_v24, %s4268_s14  ;;  %v3014_v45 = vrot.slane %v2999_v49, 4  ;;  %v3116_v24 = vmul.f32 %v5767_v10, %v6338_v51 }
 0x25d   : > { %2488 = vrot.lane.b32.xlu0 %v2480_v52, %s4263_s7  ;;  %v3128_v52 = vrot.slane %v3114_v32, 4  ;;  %v2517_v2 = vsel %vm738_vm2, %v2515_v48, %v2516_v7  ;;  %v2556_v48 = vrot.slane %v2544_v18, 2  ;;  %v3253_v18 = vld [vmem:[#allocation2 + $0x38] sm:$0xe0] }
 0x25e   : > { %v6346_v23 = vpop.permute.xlu1 %2490  ;;  %v3015_v49 = vsel %vm1277_vm7, %v3010_v41, %v3014_v45  ;;  %v3129_v63 = vrot.slane %v3116_v24, 4  ;;  %v2521_v41 = vrot.slane %v2507_v13, 2  ;;  %v6368_v45 = vstv %s3994_s17  ;;  %s7064_s17 = sld [smem:[#allocation3 + $0x4c]] }
 0x25f   : > { %8288 = vst [vmem:[#allocation158_spill] sm:$0xff] %v6346_v23  ;;  %v6348_v14 = vpop.permute.xlu0 %1893  ;;  %v3118_v23 = vmul.f32 %v6338_v51, %v6040_v16  ;;  %v3157_v32 = vmul.f32 %v5767_v10, %v6368_v45  ;;  %v2557_v13 = vrot.slane %v2546_v39, 2 }
 0x260   : > { %8289 = vst [vmem:[#allocation159_spill] sm:$0xff] %v6348_v14  ;;  %3018 = vrot.lane.b32.xlu1 %v3011_v56, %s4268_s14  ;;  %v3130_v38 = vsel %vm1277_vm7, %v3128_v52, %v3129_v63  ;;  %v3155_v56 = vmul.f32 %v6368_v45, %v6023_v60  ;;  %v2548_v52 = vmul.f32 %v5884_v19, %v5719_v26 }
 0x261   : > { %2492 = vrot.lane.b32.xlu0 %v2485_v37, %s4263_s7  ;;  %v3133_v27 = vrot.slane %v3118_v23, 4  ;;  %v2585_v19 = vmul.f32 %v6295_v44, %v5936_v58 }
 0x262   : > { %v6358_v17 = vpop.permute.xlu1 %2494  ;;  %v3169_v23 = vrot.slane %v3155_v56, 4 }
 0x263   : > { %8290 = vst [vmem:[#allocation160_spill] sm:$0xff] %v6358_v17  ;;  %v6360_v14 = vpop.permute.xlu0 %1897  ;;  %v3134_v60 = vsel %vm1277_vm7, %v3129_v63, %v3133_v27  ;;  %v2587_v63 = vmul.f32 %v6044_v46, %v5936_v58 }
 0x264   : > { %8291 = vst [vmem:[#allocation161_spill] sm:$0xff] %v6360_v14  ;;  %3022 = vrot.lane.b32.xlu1 %v3015_v49, %s4268_s14  ;;  %v2522_v49 = vsel %vm738_vm2, %v2516_v7, %v2521_v41  ;;  %v2562_v7 = vrot.slane %v2548_v52, 2  ;;  %v6398_v41 = vstv %s4001_s3  ;;  %s7098_s3 = sld [smem:[#allocation3 + $0x50]] }
 0x265   : > { %2525 = vrot.lane.b32.xlu0 %v2517_v2, %s4263_s7  ;;  %v3170_v2 = vrot.slane %v3157_v32, 4  ;;  %v3387_v56 = vmul.f32 %v6398_v41, %v3253_v18  ;;  %v3389_v32 = vmul.f32 %v5767_v10, %v6398_v41 }
 0x266   : > { %v6376_v24 = vpop.permute.xlu1 %2527 }
 0x267   : > { %8292 = vst [vmem:[#allocation162_spill] sm:$0xff] %v6376_v24  ;;  %v6378_v37 = vpop.permute.xlu0 %1934  ;;  %v3159_v24 = vmul.f32 %v6368_v45, %v6040_v16  ;;  %v3171_v16 = vsel %vm1277_vm7, %v3169_v23, %v3170_v2  ;;  %v2589_v23 = vmul.f32 %v5936_v58, %v5719_v26  ;;  %v3401_v14 = vrot.slane %v3387_v56, 5 }
 0x268   : > { %8293 = vst [vmem:[#allocation163_spill] sm:$0xff] %v6378_v37  ;;  %3137 = vrot.lane.b32.xlu1 %v3130_v38, %s4269_s26  ;;  %v2558_v38 = vsel %vm738_vm2, %v2556_v48, %v2557_v13  ;;  %v2598_v37 = vrot.slane %v2587_v63, 2 }
 0x269   : > { %2529 = vrot.lane.b32.xlu0 %v2522_v49, %s4263_s7  ;;  %v3174_v27 = vrot.slane %v3159_v24, 4  ;;  %v3254_v49 = vld [vmem:[#allocation2 + $0x58] sm:$0x1f]  ;;  %v6413_v24 = vld [vmem:[#allocation2 + $0x30] sm:$0xf8]  ;;  %v2603_v58 = vrot.slane %v2589_v23, 2 }
 0x26a   : > { %v6388_v17 = vpop.permute.xlu1 %2531 }
 0x26b   : > { %8294 = vst [vmem:[#allocation164_spill] sm:$0xff] %v6388_v17  ;;  %v6390_v39 = vpop.permute.xlu0 %1938  ;;  %v2597_v17 = vrot.slane %v2585_v19, 2 }
 0x26c   : > { %8295 = vst [vmem:[#allocation165_spill] sm:$0xff] %v6390_v39  ;;  %3141 = vrot.lane.b32.xlu1 %v3134_v60, %s4269_s26  ;;  %v2563_v60 = vsel %vm738_vm2, %v2557_v13, %v2562_v7  ;;  %v3391_v39 = vmul.f32 %v6398_v41, %v3254_v49  ;;  %v2730_v13 = vmul.f32 %v5970_v36, %v6413_v24 }
 0x26d   : > { %2566 = vrot.lane.b32.xlu0 %v2558_v38, %s4263_s7  ;;  %v3175_v38 = vsel %vm1277_vm7, %v3170_v2, %v3174_v27  ;;  %v2599_v26 = vsel %vm738_vm2, %v2597_v17, %v2598_v37  ;;  %v2732_v7 = vmul.f32 %v6044_v46, %v5970_v36  ;;  %v6428_v2 = vstv %s4002_s4  ;;  %s7120_s4 = sld [smem:[#allocation3 + $0x58]] }
 0x26e   : > { %v6405_v48 = vpop.permute.xlu1 %2568  ;;  %v3406_v63 = vrot.slane %v3391_v39, 5  ;;  %v3428_v27 = vmul.f32 %v6428_v2, %v3253_v18  ;;  %v3430_v56 = vmul.f32 %v5767_v10, %v6428_v2  ;;  %v2742_v23 = vrot.slane %v2730_v13, 3 }
 0x26f   : > { %8296 = vst [vmem:[#allocation166_spill] sm:$0xff] %v6405_v48  ;;  %v6407_v52 = vpop.permute.xlu0 %1975  ;;  %v3402_v48 = vrot.slane %v3389_v32, 5  ;;  %v3432_v10 = vmul.f32 %v6428_v2, %v3254_v49 }
 0x270   : > { %8297 = vst [vmem:[#allocation167_spill] sm:$0xff] %v6407_v52  ;;  %3178 = vrot.lane.b32.xlu1 %v3171_v16, %s4269_s26  ;;  %v3442_v18 = vrot.slane %v3428_v27, 5  ;;  %v3443_v39 = vrot.slane %v3430_v56, 5 }
 0x271   : > { %2570 = vrot.lane.b32.xlu0 %v2563_v60, %s4263_s7  ;;  %v3403_v19 = vsel %vm311_vm0, %v3401_v14, %v3402_v48  ;;  %v2604_v60 = vsel %vm738_vm2, %v2598_v37, %v2603_v58  ;;  %v3407_v14 = vsel %vm311_vm0, %v3402_v48, %v3406_v63  ;;  %v2890_v37 = vmul.f32 %v6000_v3, %v6413_v24  ;;  %v6462_v63 = vld [vmem:[#allocation2 + $0x8] sm:$0xff] }
 0x272   : > { %v6418_v52 = vpop.permute.xlu1 %2572  ;;  %v2892_v58 = vmul.f32 %v6044_v46, %v6000_v3  ;;  %v6456_v48 = vstv %s4005_s29  ;;  %v3444_v49 = vsel %vm311_vm0, %v3442_v18, %v3443_v39  ;;  %v2894_v18 = vmul.f32 %v6000_v3, %v6230_v54  ;;  %s7509_s29 = sld [smem:[#allocation3 + $0x5c]] }
 0x273   : > { %8298 = vst [vmem:[#allocation168_spill] sm:$0xff] %v6418_v52  ;;  %v6420_v16 = vpop.permute.xlu0 %1979  ;;  %8304 = vst [vmem:[#allocation174_spill] sm:$0xff] %v6456_v48  ;;  %v3534_v27 = vmul.f32 %v6462_v63, %v6456_v48  ;;  %v3037_v3 = vmul.f32 %v6044_v46, %v6030_v1 }
 0x274   : > { %8299 = vst [vmem:[#allocation169_spill] sm:$0xff] %v6420_v16  ;;  %3182 = vrot.lane.b32.xlu1 %v3175_v38, %s4269_s26  ;;  %v2743_v38 = vrot.slane %v2732_v7, 3  ;;  %v3447_v7 = vrot.slane %v3432_v10, 5  ;;  %v6474_v10 = vld [vmem:[#allocation2 + $0x30] sm:$0xf0] }
 0x275   : > { %2607 = vrot.lane.b32.xlu0 %v2599_v26, %s4263_s7  ;;  %v2734_v26 = vmul.f32 %v5970_v36, %v6230_v54 }
 0x276   : > { %v6435_v32 = vpop.permute.xlu1 %2609  ;;  %v2744_v13 = vsel %vm1006_vm6, %v2742_v23, %v2743_v38 }
 0x277   : > { %8300 = vst [vmem:[#allocation170_spill] sm:$0xff] %v6435_v32  ;;  %v6437_v17 = vpop.permute.xlu0 %2016  ;;  %v2748_v36 = vrot.slane %v2734_v26, 3  ;;  %v2902_v26 = vrot.slane %v2890_v37, 3 }
 0x278   : > { %8301 = vst [vmem:[#allocation171_spill] sm:$0xff] %v6437_v17  ;;  %3410 = vrot.lane.b32.xlu1 %v3403_v19, %s4262_s19  ;;  %v3532_v19 = vmul.f32 %v6456_v48, %v6094_v29 }
 0x279   : > { %2611 = vrot.lane.b32.xlu0 %v2604_v60, %s4263_s7  ;;  %v2749_v23 = vsel %vm1006_vm6, %v2743_v38, %v2748_v36  ;;  %v3035_v38 = vmul.f32 %v6030_v1, %v6474_v10  ;;  %v6490_v36 = vstv %s4006_s24  ;;  %s7578_s24 = sld [smem:[#allocation3 + $0x60]] }
 0x27a   : > { %v6446_v32 = vpop.permute.xlu1 %2613  ;;  %8309 = vst [vmem:[#allocation179_spill] sm:$0xff] %v6490_v36 }
 0x27b   : > { %8302 = vst [vmem:[#allocation172_spill] sm:$0xff] %v6446_v32  ;;  %v6448_v17 = vpop.permute.xlu0 %2020  ;;  %v3547_v32 = vrot.slane %v3534_v27, 6  ;;  %v3575_v27 = vmul.f32 %v6462_v63, %v6490_v36 }
 0x27c   : > { %8303 = vst [vmem:[#allocation173_spill] sm:$0xff] %v6448_v17  ;;  %3414 = vrot.lane.b32.xlu1 %v3407_v14, %s4262_s19  ;;  %v2903_v14 = vrot.slane %v2892_v58, 3  ;;  %v3546_v17 = vrot.slane %v3532_v19, 6  ;;  %v3573_v19 = vmul.f32 %v6490_v36, %v6094_v29 }
 0x27d   : > { %2752 = vrot.lane.b32.xlu0 %v2744_v13, %s4265_s25  ;;  %v3448_v13 = vsel %vm311_vm0, %v3443_v39, %v3447_v7  ;;  %v2908_v39 = vrot.slane %v2894_v18, 3  ;;  %v3048_v18 = vrot.slane %v3037_v3, 4 }
 0x27e   : > { %v6466_v56 = vpop.permute.xlu1 %2754  ;;  %v2904_v37 = vsel %vm1006_vm6, %v2902_v26, %v2903_v14  ;;  %v3548_v58 = vsel %vm1774_vm8, %v3546_v17, %v3547_v32  ;;  %v3047_v26 = vrot.slane %v3035_v38, 4  ;;  %v3039_v17 = vmul.f32 %v6030_v1, %v6281_v28 }
 0x27f   : > { %8305 = vst [vmem:[#allocation175_spill] sm:$0xff] %v6466_v56  ;;  %v6468_v60 = vpop.permute.xlu0 %2037  ;;  %v3195_v1 = vmul.f32 %v6060_v62, %v6474_v10 }
 0x280   : > { %8306 = vst [vmem:[#allocation176_spill] sm:$0xff] %v6468_v60  ;;  %3451 = vrot.lane.b32.xlu1 %v3444_v49, %s4262_s19  ;;  %v3536_v60 = vmul.f32 %v6456_v48, %v6117_v11  ;;  %v3049_v3 = vsel %vm1277_vm7, %v3047_v26, %v3048_v18  ;;  %v8346_v48 = vld [vmem:[#allocation35_spill] sm:$0xff] }
 0x281   : > { %2756 = vrot.lane.b32.xlu0 %v2749_v23, %s4265_s25 }
 0x282   : > { %v6480_v56 = vpop.permute.xlu1 %2758  ;;  %v3551_v7 = vrot.slane %v3536_v60, 6 }
 0x283   : > { %8307 = vst [vmem:[#allocation177_spill] sm:$0xff] %v6480_v56  ;;  %v6482_v49 = vpop.permute.xlu0 %2058  ;;  %v3588_v56 = vrot.slane %v3575_v27, 6 }
 0x284   : > { %8308 = vst [vmem:[#allocation178_spill] sm:$0xff] %v6482_v49  ;;  %3455 = vrot.lane.b32.xlu1 %v3448_v13, %s4262_s19  ;;  %v2909_v49 = vsel %vm1006_vm6, %v2903_v14, %v2908_v39  ;;  %v3552_v60 = vsel %vm1774_vm8, %v3547_v32, %v3551_v7  ;;  %v3053_v14 = vrot.slane %v3039_v17, 4  ;;  %v3197_v32 = vmul.f32 %v6044_v46, %v6060_v62 }
 0x285   : > { %2912 = vrot.lane.b32.xlu0 %v2904_v37, %s4266_s20  ;;  %v3587_v37 = vrot.slane %v3573_v19, 6 }
 0x286   : > { %v6498_v23 = vpop.permute.xlu1 %2914  ;;  %v3054_v17 = vsel %vm1277_vm7, %v3048_v18, %v3053_v14 }
 0x287   : > { %8310 = vst [vmem:[#allocation180_spill] sm:$0xff] %v6498_v23  ;;  %v6500_v13 = vpop.permute.xlu0 %2062  ;;  %v3577_v23 = vmul.f32 %v6490_v36, %v6117_v11  ;;  %v3589_v39 = vsel %vm1774_vm8, %v3587_v37, %v3588_v56  ;;  %v3199_v37 = vmul.f32 %v6060_v62, %v6281_v28 }
 0x288   : > { %8311 = vst [vmem:[#allocation181_spill] sm:$0xff] %v6500_v13  ;;  %3555 = vrot.lane.b32.xlu1 %v3548_v58, %s4263_s7 }
 0x289   : > { %2916 = vrot.lane.b32.xlu0 %v2909_v49, %s4266_s20  ;;  %v6520_v49 = vstv %s4009_s30  ;;  %v3592_v58 = vrot.slane %v3577_v23, 6  ;;  %v3213_v62 = vrot.slane %v3199_v37, 4 }
 0x28a   : > { %v6510_v16 = vpop.permute.xlu1 %2918  ;;  %8314 = vst [vmem:[#allocation184_spill] sm:$0xff] %v6520_v49  ;;  %v3692_v7 = vmul.f32 %v6520_v49, %v6094_v29  ;;  %v3694_v19 = vmul.f32 %v6462_v63, %v6520_v49 }
 0x28b   : > { %8312 = vst [vmem:[#allocation182_spill] sm:$0xff] %v6510_v16  ;;  %v6512_v38 = vpop.permute.xlu0 %2085  ;;  %v3208_v16 = vrot.slane %v3197_v32, 4  ;;  %v3593_v29 = vsel %vm1774_vm8, %v3588_v56, %v3592_v58 }
 0x28c   : > { %8313 = vst [vmem:[#allocation183_spill] sm:$0xff] %v6512_v38  ;;  %3559 = vrot.lane.b32.xlu1 %v3552_v60, %s4263_s7  ;;  %v3207_v60 = vrot.slane %v3195_v1, 4  ;;  %v3706_v23 = vrot.slane %v3692_v7, 6  ;;  %v6540_v38 = vld [vmem:[#allocation2 + $0x30] sm:$0xc0] }
 0x28d   : > { %3057 = vrot.lane.b32.xlu0 %v3049_v3, %s4268_s14  ;;  %v3707_v3 = vrot.slane %v3694_v19, 6  ;;  %8317 = vst [vmem:[#allocation187_spill] sm:$0xff] %v6540_v38  ;;  %v3470_v14 = vmul.f32 %v6092_v61, %v6540_v38  ;;  %v3214_v58 = vsel %vm1277_vm7, %v3208_v16, %v3213_v62  ;;  %v3613_v19 = vmul.f32 %v6103_v50, %v6540_v38 }
 0x28e   : > { %v6528_v27 = vpop.permute.xlu1 %3059  ;;  %v3209_v18 = vsel %vm1277_vm7, %v3207_v60, %v3208_v16  ;;  %v3615_v61 = vmul.f32 %v6044_v46, %v6103_v50  ;;  %v8323_v60 = vrot.slane %v6109_v20, 6  ;;  %v2628_v20 = vmul.f32 %v6044_v46, %v6138_v33 }
 0x28f   : > { %8315 = vst [vmem:[#allocation185_spill] sm:$0xff] %v6528_v27  ;;  %v6530_v26 = vpop.permute.xlu0 %2089  ;;  %v3696_v27 = vmul.f32 %v6520_v49, %v6117_v11  ;;  %v3708_v56 = vsel %vm1774_vm8, %v3706_v23, %v3707_v3  ;;  %v3476_v7 = vrot.slane %v3470_v14, 6  ;;  %v3625_v16 = vrot.slane %v3613_v19, 6 }
 0x290   : > { %8316 = vst [vmem:[#allocation186_spill] sm:$0xff] %v6530_v26  ;;  %3596 = vrot.lane.b32.xlu1 %v3589_v39, %s4263_s7  ;;  %v3617_v23 = vmul.f32 %v6103_v50, %v6086_v4 }
 0x291   : > { %3061 = vrot.lane.b32.xlu0 %v3054_v17, %s4268_s14  ;;  %v3711_v1 = vrot.slane %v3696_v27, 6  ;;  %v3478_v37 = vsel %vm1774_vm8, %v3476_v7, %v8323_v60 }
 0x292   : > { %v6542_v26 = vpop.permute.xlu1 %3063  ;;  %v3631_v14 = vrot.slane %v3617_v23, 6  ;;  %v8330_v23 = vld [vmem:[#allocation14_spill] sm:$0xff] }
 0x293   : > { %8318 = vst [vmem:[#allocation188_spill] sm:$0xff] %v6542_v26  ;;  %v6544_v39 = vpop.permute.xlu0 %2112  ;;  %v3712_v17 = vsel %vm1774_vm8, %v3707_v3, %v3711_v1  ;;  %v8326_v1 = vld [vmem:[#allocation105_spill] sm:$0xff] }
 0x294   : > { %8319 = vst [vmem:[#allocation189_spill] sm:$0xff] %v6544_v39  ;;  %3600 = vrot.lane.b32.xlu1 %v3593_v29, %s4263_s7  ;;  %v3626_v29 = vrot.slane %v3615_v61, 6  ;;  %v359_v4 = vmul.f32 %v6462_v63, %v8326_v1  ;;  %v2639_v61 = vrot.slane %v2628_v20, 2  ;;  %v4115_v20 = vld [vmem:[#allocation2 + $0x28] sm:$0xf] }
 0x295   : > { %3217 = vrot.lane.b32.xlu0 %v3209_v18, %s4269_s26 }
 0x296   : > { %v6552_v11 = vpop.permute.xlu1 %3219  ;;  %v3627_v3 = vsel %vm1774_vm8, %v3625_v16, %v3626_v29  ;;  %v3632_v7 = vsel %vm1774_vm8, %v3626_v29, %v3631_v14  ;;  %v2665_v29 = vmul.f32 %v6044_v46, %v6164_v31 }
 0x297   : > { %8320 = vst [vmem:[#allocation190_spill] sm:$0xff] %v6552_v11  ;;  %v6554_v32 = vpop.permute.xlu0 %2116 }
 0x298   : > { %8321 = vst [vmem:[#allocation191_spill] sm:$0xff] %v6554_v32  ;;  %3715 = vrot.lane.b32.xlu1 %v3708_v56, %s4264_s16  ;;  %v2626_v56 = vmul.f32 %v6295_v44, %v6138_v33  ;;  %v2676_v26 = vrot.slane %v2665_v29, 2 }
 0x299   : > { %3221 = vrot.lane.b32.xlu0 %v3214_v58, %s4269_s26 }
 0x29a   : > { %v6572_v18 = vpop.permute.xlu1 %3223  ;;  %v2638_v19 = vrot.slane %v2626_v56, 2  ;;  %v6608_v56 = vmul.f32 %v6462_v63, %v5745_v6 }
 0x29b   : > { %v6564_v27 = vpop.permute.xlu0 %2135  ;;  %8324 = vst [vmem:[#allocation193_spill] sm:$0xff] %v6572_v18 }
 0x29c   : > { %8322 = vst [vmem:[#allocation192_spill] sm:$0xff] %v6564_v27  ;;  %3719 = vrot.lane.b32.xlu1 %v3712_v17, %s4264_s16  ;;  %v4114_v17 = vld [vmem:[#allocation2 + $0x50] sm:$0x3]  ;;  %v2640_v27 = vsel %vm738_vm2, %v2638_v19, %v2639_v61 }
 0x29d   : > { %3481 = vrot.lane.b32.xlu0 %v3478_v37, %s4261_s23  ;;  %v2630_v60 = vmul.f32 %v4114_v17, %v6138_v33  ;;  %v8329_v37 = vld [vmem:[#allocation13_spill] sm:$0xff]  ;;  %v368_v33 = vmul.f32 %v6462_v63, %v5713_v40  ;;  %v2667_v52 = vmul.f32 %v4114_v17, %v6164_v31  ;;  %v8342_v17 = vld [vmem:[#allocation28_spill] sm:$0xff]  ;;  %s6642_s23 = sld [smem:[#allocation3 + $0x3b]] }
 0x29e   : > { %v6585_v50 = vpop.permute.xlu1 %3483  ;;  %v432_v16 = vadd.f32 %v8329_v37, %v359_v4 }
 0x29f   : > { %v6575_v62 = vpop.permute.xlu0 %2139  ;;  %8327 = vst [vmem:[#allocation105_spill] sm:$0xff] %v6585_v50  ;;  %v2644_v32 = vrot.slane %v2630_v60, 2  ;;  %v8335_v60 = vld [vmem:[#allocation20_spill] sm:$0xff]  ;;  %v6617_v50 = vmul.f32 %v6462_v63, %v5804_v59  ;;  %v6625_v49 = vadd.f32 %v8204_v22, %v368_v33 }
 0x2a0   : > { %8325 = vst [vmem:[#allocation194_spill] sm:$0xff] %v6575_v62 }
 0x2a1   : > { %3635 = vrot.lane.b32.xlu0 %v3627_v3, %s4263_s7  ;;  %v434_v3 = vadd.f32 %v8330_v23, %v359_v4  ;;  %v1295_v4 = vmul.f32 %v4115_v20, %v5745_v6  ;;  %v2645_v11 = vsel %vm738_vm2, %v2639_v61, %v2644_v32  ;;  %8337 = vst [vmem:[#allocation20_spill] sm:$0xff] %v6625_v49  ;;  %v6634_v32 = vld [vmem:[#allocation2 + $0x8] sm:$0xf0]  ;;  %v2681_v49 = vrot.slane %v2667_v52, 2 }
 0x2a2   : > { %v6603_v14 = vpop.permute.xlu1 %3637 }
 0x2a3   : > { %v6587_v58 = vpop.permute.xlu0 %2162  ;;  %8332 = vst [vmem:[#allocation14_spill] sm:$0xff] %v6603_v14  ;;  %v567_v37 = vadd.f32 %v8335_v60, %v434_v3  ;;  %v4116_v14 = vld [vmem:[#allocation2 + $0x20] sm:$0xf] }
 0x2a4   : > { %8328 = vst [vmem:[#allocation195_spill] sm:$0xff] %v6587_v58  ;;  %v2663_v58 = vmul.f32 %v6295_v44, %v6164_v31  ;;  %v8334_v44 = vld [vmem:[#allocation19_spill] sm:$0xff]  ;;  %v1294_v13 = vmul.f32 %v4116_v14, %v5745_v6  ;;  %v1291_v31 = vmul.f32 %v6634_v32, %v5745_v6  ;;  %v1325_v22 = vmul.f32 %v4116_v14, %v5813_v30 }
 0x2a5   : > { %3639 = vrot.lane.b32.xlu0 %v3632_v7, %s4263_s7  ;;  %v6611_v7 = vstv %s3969_s27  ;;  %v565_v19 = vadd.f32 %v8334_v44, %v432_v16  ;;  %v8338_v16 = vld [vmem:[#allocation16_spill] sm:$0xff]  ;;  %v8340_v44 = vld [vmem:[#allocation25_spill] sm:$0xff]  ;;  %v728_v29 = vadd.f32 %v8342_v17, %v567_v37  ;;  %v2808_v6 = vmul.f32 %v6200_v0, %v6413_v24 }
 0x2a6   : > { %8333 = vst [vmem:[#allocation196_spill] sm:$0xff] %v6611_v7  ;;  %v2675_v18 = vrot.slane %v2663_v58, 2  ;;  %v6628_v3 = vadd.f32 %v8338_v16, %v368_v33  ;;  %v1273_v36 = vmul.f32 %v4116_v14, %v8340_v44  ;;  %v8341_v58 = vld [vmem:[#allocation27_spill] sm:$0xff]  ;;  %v4118_v33 = vld [vmem:[#allocation2 + $0x10] sm:$0xff]  ;;  %v1305_v52 = vrot.slane %v1291_v31, 4 }
 0x2a7   : > { %v6594_v62 = vpop.permute.xlu0 %2166  ;;  %v726_v61 = vadd.f32 %v8341_v58, %v565_v19  ;;  %v378_v44 = vmul.f32 %v4118_v33, %v5804_v59  ;;  %v8345_v19 = vstv %s5607_s5  ;;  %v360_v59 = vmul.f32 %v4118_v33, %v8326_v1  ;;  %s6672_s5 = sld [smem:[#allocation3 + $0x38]] }
 0x2a8   : > { %8331 = vst [vmem:[#allocation13_spill] sm:$0xff] %v6594_v62  ;;  %8339 = vst [vmem:[#allocation16_spill] sm:$0xff] %v6628_v3  ;;  %v1310_v62 = vrot.slane %v1295_v4, 4  ;;  %v2677_v4 = vsel %vm738_vm2, %v2675_v18, %v2676_v26  ;;  %v352_v37 = vmul.f32 %v4118_v33, %v8345_v19  ;;  %v1308_v58 = vrot.slane %v1294_v13, 4  ;;  %v8347_v19 = vld [vmem:[#allocation52_spill] sm:$0xff] }
 0x2a9   : > { %2648 = vrot.lane.b32.xlu0 %v2640_v27, %s4264_s16  ;;  %v1356_v27 = vmul.f32 %v4116_v14, %v5881_v35  ;;  %v2810_v14 = vmul.f32 %v6044_v46, %v6200_v0  ;;  %v369_v30 = vmul.f32 %v4118_v33, %v5713_v40  ;;  %v1339_v18 = vrot.slane %v1325_v22, 4  ;;  %v8350_v22 = vld [vmem:[#allocation12_spill] sm:$0xff] }
 0x2aa   : > { %v876_v46 = vadd.f32 %v8346_v48, %v728_v29  ;;  %v486_v38 = vadd.f32 %v8347_v19, %v6617_v50  ;;  %v2820_v1 = vrot.slane %v2808_v6, 3  ;;  %v2812_v31 = vmul.f32 %v6200_v0, %v6230_v54  ;;  %v8356_v6 = vld [vmem:[#allocation57_spill] sm:$0xff] }
 0x2ab   : > { %v6620_v39 = vpop.permute.xlu0 %2189  ;;  %v1370_v3 = vrot.slane %v1356_v27, 4  ;;  %v1281_v27 = vrot.slane %v1273_v36, 4  ;;  %v8348_v36 = vrot.slane %v5905_v5, 4  ;;  %v1357_v5 = vmul.f32 %v4115_v20, %v5881_v35 }
 0x2ac   : > { %8336 = vst [vmem:[#allocation19_spill] sm:$0xff] %v6620_v39  ;;  %v1306_v39 = vrot.slane %v6608_v56, 4  ;;  %v6697_v0 = vadd.f32 %v8347_v19, %v378_v44  ;;  %v426_v20 = vsel %vm401_vm9, %v8356_v6, %v8330_v23  ;;  %v6718_v19 = vmul.f32 %v6462_v63, %v5881_v35  ;;  %v8363_v6 = vld [vmem:[#allocation18_spill] sm:$0xff] }
 0x2ad   : > { %2652 = vrot.lane.b32.xlu0 %v2645_v11, %s4264_s16  ;;  %v6644_v11 = vpop.permute.xlu1 %3641  ;;  %v6670_v13 = vsel %vm1277_vm7, %v8348_v36, %v1370_v3  ;;  %v8352_v3 = vrot.slane %v5710_v34, 4  ;;  %v8360_v36 = vld [vmem:[#allocation59_spill] sm:$0xff]  ;;  %v6721_v23 = vstv %s6642_s23 }
 0x2ae   : > { %8343 = vst [vmem:[#allocation25_spill] sm:$0xff] %v6644_v11  ;;  %v6659_v11 = vsel %vm1277_vm7, %v1306_v39, %v1310_v62  ;;  %v2682_v62 = vsel %vm738_vm2, %v2676_v26, %v2681_v49  ;;  %v6703_v34 = vsel %vm1277_vm7, %v1305_v52, %v1306_v39  ;;  %v453_v44 = vsel %vm401_vm9, %v8360_v36, %v8338_v16 }
 0x2af   : > { %v6646_v56 = vpop.permute.xlu0 %2193  ;;  %v6686_v33 = vsel %vm1277_vm7, %v8352_v3, %v1281_v27  ;;  %8357 = vst [vmem:[#allocation12_spill] sm:$0xff] %v6703_v34  ;;  %v8359_v27 = vld [vmem:[#allocation24_spill] sm:$0xff]  ;;  %v484_v16 = vadd.f32 %v5282_v47, %v6617_v50  ;;  %v1372_v3 = vrot.slane %v1357_v5, 4  ;;  %v8366_v50 = vld [vmem:[#allocation22_spill] sm:$0xff]  ;;  %vm1055_vm2 = vcmask 7168  }
 0x2b0   : > { %8344 = vst [vmem:[#allocation27_spill] sm:$0xff] %v6646_v56  ;;  %v6662_v56 = vadd.f32 %v8197_v53, %v726_v61  ;;  %v2821_v53 = vrot.slane %v2810_v14, 3  ;;  %v8351_v61 = vld [vmem:[#allocation55_spill] sm:$0xff]  ;;  %v8358_v14 = vrot.slane %v5851_v15, 4 }
 0x2b1   : > { %2685 = vrot.lane.b32.xlu0 %v2677_v4, %s4264_s16  ;;  %v403_v29 = vsel %vm401_vm9, %v8351_v61, %v8350_v22  ;;  %v8353_v4 = vrot.slane %v5786_v43, 4  ;;  %v6693_v26 = vpop.permute.xlu1 %2650  ;;  %v433_v61 = vadd.f32 %v426_v20, %v360_v59  ;;  %v8365_v59 = vld [vmem:[#allocation65_spill] sm:$0xff]  ;;  %v2209_v20 = vstv %s6672_s5 }
 0x2b2   : > { %8355 = vst [vmem:[#allocation52_spill] sm:$0xff] %v6693_v26  ;;  %v6708_v43 = vsel %vm1277_vm7, %v8358_v14, %v1339_v18  ;;  %v407_v52 = vadd.f32 %v403_v29, %v352_v37  ;;  %v2822_v15 = vsel %vm1006_vm6, %v2820_v1, %v2821_v53  ;;  %v2826_v18 = vrot.slane %v2812_v31, 3  ;;  %v8364_v14 = vld [vmem:[#allocation63_spill] sm:$0xff]  ;;  %v6737_v31 = vld [vmem:[#allocation2 + $0x40] sm:$0xff] }
 0x2b3   : > { %v6674_v40 = vpop.permute.xlu0 %2343  ;;  %v6691_v49 = vsel %vm1277_vm7, %v8353_v4, %v1308_v58  ;;  %v6711_v58 = vadd.f32 %v8359_v27, %v486_v38  ;;  %v2706_v38 = vmul.f32 %v6236_v12, %v6413_v24  ;;  %v460_v4 = vadd.f32 %v453_v44, %v369_v30 }
 0x2b4   : > { %8349 = vst [vmem:[#allocation28_spill] sm:$0xff] %v6674_v40  ;;  %8354 = vst [vmem:[#allocation35_spill] sm:$0xff] %v6691_v49  ;;  %v522_v37 = vsel %vm520_vm10, %v8364_v14, %v8363_v6  ;;  %v2290_v1 = vmul.f32 %v6721_v23, %v6172_v42  ;;  %v2292_v12 = vmul.f32 %v6737_v31, %v6721_v23  ;;  %v8039_v29 = vrot.slane %v6718_v19, 4 }
 0x2b5   : > { %2689 = vrot.lane.b32.xlu0 %v2682_v62, %s4264_s16  ;;  %v8362_v62 = vld [vmem:[#allocation56_spill] sm:$0xff]  ;;  %v559_v47 = vsel %vm520_vm10, %v8365_v59, %v8335_v60  ;;  %v6748_v5 = vpop.permute.xlu1 %2654  ;;  %v2827_v44 = vsel %vm1006_vm6, %v2821_v53, %v2826_v18  ;;  %v2849_v6 = vmul.f32 %v6242_v57, %v6413_v24  ;;  %v2851_v60 = vmul.f32 %v6737_v31, %v6242_v57  ;;  %v8370_v53 = vld [vmem:[#allocation67_spill] sm:$0xff] }
 0x2b6   : > { %v1021_v22 = vadd.f32 %v8362_v62, %v876_v46  ;;  %v8367_v46 = vld [vmem:[#allocation68_spill] sm:$0xff]  ;;  %8368 = vst [vmem:[#allocation57_spill] sm:$0xff] %v6748_v5  ;;  %v6761_v14 = vadd.f32 %v8217_v25, %v484_v16  ;;  %v526_v59 = vadd.f32 %v522_v37, %v407_v52  ;;  %v2302_v5 = vrot.slane %v2290_v1, 1  ;;  %v8371_v25 = vld [vmem:[#allocation71_spill] sm:$0xff] }
 0x2b7   : > { %v6723_v39 = vpop.permute.xlu0 %2347  ;;  %v600_v30 = vsel %vm520_vm10, %v8367_v46, %v8366_v50  ;;  %v6766_v46 = vsel %vm1277_vm7, %v8039_v29, %v1372_v3  ;;  %v2294_v50 = vmul.f32 %v6721_v23, %v6189_v55  ;;  %v566_v26 = vadd.f32 %v559_v47, %v433_v61 }
 0x2b8   : > { %8361 = vst [vmem:[#allocation55_spill] sm:$0xff] %v6723_v39  ;;  %v1185_v18 = vadd.f32 %v8370_v53, %v1021_v22  ;;  %v641_v52 = vsel %vm520_vm10, %v8371_v25, %v8359_v27  ;;  %v2210_v16 = vmul.f32 %v2209_v20, %v6172_v42  ;;  %v2211_v3 = vmul.f32 %v6737_v31, %v2209_v20  ;;  %v8432_v39 = vld [vmem:[#allocation179_spill] sm:$0xff] }
 0x2b9   : > { %2830 = vrot.lane.b32.xlu0 %v2822_v15, %s4266_s20  ;;  %v2712_v15 = vrot.slane %v2706_v38, 3  ;;  %v607_v38 = vadd.f32 %v600_v30, %v460_v4  ;;  %v8373_v29 = vrot.slane %v6254_v21, 3  ;;  %v2861_v22 = vrot.slane %v2849_v6, 3 }
 0x2ba   : > { %v2862_v4 = vrot.slane %v2851_v60, 3  ;;  %v2853_v61 = vmul.f32 %v6242_v57, %v6230_v54  ;;  %v2308_v1 = vrot.slane %v2294_v50, 1  ;;  %v2212_v27 = vmul.f32 %v2209_v20, %v6189_v55 }
 0x2bb   : > { %v6751_v36 = vpop.permute.xlu0 %2380  ;;  %v2228_v47 = vmul.f32 %v6611_v7, %v6172_v42  ;;  %v2230_v30 = vmul.f32 %v6737_v31, %v6611_v7  ;;  %v6793_v21 = vadd.f32 %v6659_v11, %v1185_v18  ;;  %v2232_v57 = vmul.f32 %v6611_v7, %v6189_v55  ;;  %v8380_v11 = vld [vmem:[#allocation92_spill] sm:$0xff] }
 0x2bc   : > { %8369 = vst [vmem:[#allocation24_spill] sm:$0xff] %v6751_v36  ;;  %v2303_v36 = vrot.slane %v2292_v12, 1  ;;  %v6784_v12 = vpop.permute.xlu1 %2687  ;;  %v6802_v50 = vadd.f32 %v641_v52, %v6697_v0  ;;  %v2216_v20 = vrot.slane %v2210_v16, 1  ;;  %v2217_v6 = vrot.slane %v2211_v3, 1  ;;  %v8382_v3 = vld [vmem:[#allocation26_spill] sm:$0xff] }
 0x2bd   : > { %2834 = vrot.lane.b32.xlu0 %v2827_v44, %s4266_s20  ;;  %v2714_v44 = vsel %vm1006_vm6, %v2712_v15, %v8373_v29  ;;  %8374 = vst [vmem:[#allocation56_spill] sm:$0xff] %v6784_v12  ;;  %v8375_v29 = vld [vmem:[#allocation54_spill] sm:$0xff]  ;;  %v6805_v60 = vstv %s6753_s8  ;;  %v2219_v0 = vrot.slane %v2212_v27, 1  ;;  %v2240_v52 = vrot.slane %v2228_v47, 1  ;;  %s3804_s8 = scalar_lea.sflag [#allocation5], %s4420_s28 }
 0x2be   : > { %v752_v15 = vadd.f32 %v8375_v29, %v607_v38  ;;  %v6797_v54 = vsel %vm471_vm1, %v2302_v5, %v2303_v36  ;;  %8377 = vst [vmem:[#allocation63_spill] sm:$0xff] %v6805_v60  ;;  %v2863_v38 = vsel %vm1006_vm6, %v2861_v22, %v2862_v4  ;;  %v2867_v5 = vrot.slane %v2853_v61, 3 }
 0x2bf   : > { %v6777_v37 = vpop.permute.xlu0 %2384  ;;  %8376 = vst [vmem:[#allocation18_spill] sm:$0xff] %v6797_v54  ;;  %v2970_v29 = vmul.f32 %v6287_v8, %v6474_v10  ;;  %v6816_v7 = vsel %vm471_vm1, %v2303_v36, %v2308_v1  ;;  %v2241_v16 = vrot.slane %v2230_v30, 1  ;;  %v2259_v22 = vmul.f32 %v6805_v60, %v6172_v42  ;;  %v8384_v8 = vld [vmem:[#allocation77_spill] sm:$0xff]  ;;  %v8387_v42 = vld [vmem:[#allocation70_spill] sm:$0xff] }
 0x2c0   : > { %8372 = vst [vmem:[#allocation59_spill] sm:$0xff] %v6777_v37  ;;  %8381 = vst [vmem:[#allocation68_spill] sm:$0xff] %v6816_v7  ;;  %v2246_v37 = vrot.slane %v2232_v57, 1  ;;  %v6826_v61 = vmul.f32 %v6737_v31, %v6805_v60  ;;  %v720_v36 = vsel %vm681_vm11, %v8384_v8, %v8342_v17  ;;  %v6832_v27 = vsel %vm471_vm1, %v2216_v20, %v2217_v6  ;;  %v6834_v47 = vpop.permute.xlu1 %2691  ;;  %v8389_v20 = vld [vmem:[#allocation104_spill] sm:$0xff] }
 0x2c1   : > { %2717 = vrot.lane.b32.xlu0 %v2714_v44, %s4265_s25  ;;  %v8379_v44 = vld [vmem:[#allocation42_spill] sm:$0xff]  ;;  %8385 = vst [vmem:[#allocation67_spill] sm:$0xff] %v6832_v27  ;;  %8386 = vst [vmem:[#allocation71_spill] sm:$0xff] %v6834_v47  ;;  %v2994_v57 = vmul.f32 %v6301_v9, %v6474_v10  ;;  %v2996_v17 = vmul.f32 %v6737_v31, %v6301_v9  ;;  %v6850_v8 = vsel %vm471_vm1, %v2217_v6, %v2219_v0  ;;  %v8394_v6 = vld [vmem:[#allocation81_spill] sm:$0xff]  ;;  %s6979_s25 = sld [smem:[#allocation3 + $0x57]] }
 0x2c2   : > { %v909_v18 = vsel %vm829_vm12, %v8380_v11, %v8379_v44  ;;  %8390 = vst [vmem:[#allocation92_spill] sm:$0xff] %v6850_v8  ;;  %v6853_v44 = vsel %vm471_vm1, %v2240_v52, %v2241_v16 }
 0x2c3   : > { %v6807_v25 = vpop.permute.xlu0 %2421  ;;  %v916_v1 = vadd.f32 %v909_v18, %v752_v15  ;;  %8391 = vst [vmem:[#allocation26_spill] sm:$0xff] %v6853_v44 }
 0x2c4   : > { %8378 = vst [vmem:[#allocation65_spill] sm:$0xff] %v6807_v25  ;;  %v8383_v25 = vld [vmem:[#allocation74_spill] sm:$0xff] }
 0x2c5   : > { %2871 = vrot.lane.b32.xlu0 %v2863_v38, %s4266_s20  ;;  %v683_v12 = vsel %vm681_vm11, %v8383_v25, %v8382_v3  ;;  %v8388_v25 = vld [vmem:[#allocation43_spill] sm:$0xff]  ;;  %v2868_v38 = vsel %vm1006_vm6, %v2862_v4, %v2867_v5  ;;  %v2976_v3 = vrot.slane %v2970_v29, 4  ;;  %v1064_v18 = vadd.f32 %v8389_v20, %v916_v1  ;;  %v8393_v1 = vld [vmem:[#allocation29_spill] sm:$0xff] }
 0x2c6   : > { %v1218_v11 = vsel %vm1138_vm14, %v8388_v25, %v8387_v42  ;;  %v6846_v15 = vadd.f32 %v683_v12, %v526_v59  ;;  %v1353_v4 = vmul.f32 %v6634_v32, %v5881_v35  ;;  %v6859_v29 = vsel %vm471_vm1, %v2241_v16, %v2246_v37  ;;  %v8395_v42 = vld [vmem:[#allocation154_spill] sm:$0xff] }
 0x2c7   : > { %v6836_v30 = vpop.permute.xlu0 %2425  ;;  %8392 = vst [vmem:[#allocation74_spill] sm:$0xff] %v6859_v29  ;;  %v2271_v5 = vrot.slane %v2259_v22, 1  ;;  %v2272_v59 = vrot.slane %v6826_v61, 1  ;;  %v6862_v12 = vadd.f32 %v720_v36, %v566_v26  ;;  %v788_v0 = vsel %vm787_vm15, %v8394_v6, %v8393_v1  ;;  %v8397_v22 = vld [vmem:[#allocation30_spill] sm:$0xff]  ;;  %v8398_v61 = vld [vmem:[#allocation83_spill] sm:$0xff]  ;;  %v6879_v1 = vpop.permute.xlu1 %2832 }
 0x2c8   : > { %v1225_v52 = vadd.f32 %v1218_v11, %v1064_v18  ;;  %v2263_v25 = vmul.f32 %v6805_v60, %v6189_v55  ;;  %v8396_v35 = vrot.slane %v8395_v42, 4  ;;  %v3006_v37 = vrot.slane %v2994_v57, 4  ;;  %8399 = vst [vmem:[#allocation77_spill] sm:$0xff] %v6879_v1  ;;  %v8400_v11 = vld [vmem:[#allocation84_spill] sm:$0xff]  ;;  %v6909_v29 = vld [vmem:[#allocation2 + $0x30] sm:$0xe0] }
 0x2c9   : > { %2875 = vrot.lane.b32.xlu0 %v2868_v38, %s4266_s20  ;;  %v3007_v16 = vrot.slane %v2996_v17, 4  ;;  %v2998_v26 = vmul.f32 %v6301_v9, %v6281_v28  ;;  %v789_v36 = vsel %vm787_vm15, %v8398_v61, %v8397_v22  ;;  %v3113_v55 = vmul.f32 %v6338_v51, %v6474_v10 }
 0x2ca   : > { %v2978_v32 = vsel %vm1277_vm7, %v2976_v3, %v8396_v35  ;;  %v3115_v42 = vmul.f32 %v6737_v31, %v6338_v51  ;;  %v3117_v57 = vmul.f32 %v6338_v51, %v6281_v28  ;;  %v8401_v3 = vld [vmem:[#allocation121_spill] sm:$0xff]  ;;  %v1367_v17 = vrot.slane %v1353_v4, 4  ;;  %v8404_v4 = vld [vmem:[#allocation94_spill] sm:$0xff] }
 0x2cb   : > { %v6869_v38 = vpop.permute.xlu0 %2453  ;;  %v1492_v9 = vsel %vm401_vm9, %v8401_v3, %v8400_v11  ;;  %v3154_v18 = vmul.f32 %v6368_v45, %v6474_v10  ;;  %v6895_v6 = vmul.f32 %v6737_v31, %v6368_v45  ;;  %v795_v35 = vadd.f32 %v788_v0, %v6761_v14  ;;  %v8405_v11 = vld [vmem:[#allocation135_spill] sm:$0xff] }
 0x2cc   : > { %v6900_v22 = vsel %vm471_vm1, %v2271_v5, %v2272_v59  ;;  %v2277_v51 = vrot.slane %v2263_v25, 1  ;;  %v797_v3 = vadd.f32 %v789_v36, %v6711_v58  ;;  %v1637_v20 = vsel %vm520_vm10, %v8405_v11, %v8404_v4  ;;  %v8409_v4 = vld [vmem:[#allocation31_spill] sm:$0xff] }
 0x2cd   : > { %2981 = vrot.lane.b32.xlu0 %v2978_v32, %s4268_s14  ;;  %v1349_v32 = vadd.f32 %v6708_v43, %v1225_v52  ;;  %8402 = vst [vmem:[#allocation43_spill] sm:$0xff] %v6900_v22  ;;  %v3008_v1 = vsel %vm1277_vm7, %v3006_v37, %v3007_v16  ;;  %v3012_v47 = vrot.slane %v2998_v26, 4  ;;  %v3125_v43 = vrot.slane %v3113_v55, 4  ;;  %v8406_v52 = vld [vmem:[#allocation80_spill] sm:$0xff]  ;;  %v8408_v26 = vld [vmem:[#allocation62_spill] sm:$0xff]  ;;  %v6925_v55 = vpop.permute.xlu1 %2836 }
 0x2ce   : > { %v3126_v5 = vrot.slane %v3115_v42, 4  ;;  %v3131_v0 = vrot.slane %v3117_v57, 4  ;;  %v6914_v25 = vadd.f32 %v8406_v52, %v6793_v21  ;;  %v8407_v58 = vrot.slane %v6718_v19, 4  ;;  %8410 = vst [vmem:[#allocation81_spill] sm:$0xff] %v6925_v55  ;;  %v8412_v57 = vld [vmem:[#allocation45_spill] sm:$0xff]  ;;  %v8427_v22 = vld [vmem:[#allocation138_spill] sm:$0xff] }
 0x2cf   : > { %v6902_v60 = vpop.permute.xlu0 %2488  ;;  %v1499_v14 = vadd.f32 %v1492_v9, %v1349_v32  ;;  %v3166_v11 = vrot.slane %v3154_v18, 4  ;;  %v3167_v37 = vrot.slane %v6895_v6, 4  ;;  %v1098_v9 = vsel %vm1055_vm2, %v8409_v4, %v8408_v26  ;;  %v8413_v18 = vld [vmem:[#allocation48_spill] sm:$0xff]  ;;  %v8415_v26 = vld [vmem:[#allocation86_spill] sm:$0xff] }
 0x2d0   : > { %8403 = vst [vmem:[#allocation29_spill] sm:$0xff] %v6902_v60  ;;  %v6919_v36 = vsel %vm1277_vm7, %v1367_v17, %v8407_v58  ;;  %v3158_v21 = vmul.f32 %v6368_v45, %v6281_v28  ;;  %v3386_v19 = vmul.f32 %v6398_v41, %v6909_v29  ;;  %v956_v17 = vadd.f32 %v8412_v57, %v795_v35  ;;  %v6947_v35 = vld [vmem:[#allocation2 + $0x50] sm:$0x1f] }
 0x2d1   : > { %3016 = vrot.lane.b32.xlu0 %v3008_v1, %s4268_s14  ;;  %v1644_v1 = vadd.f32 %v1637_v20, %v1499_v14  ;;  %v958_v32 = vadd.f32 %v8413_v18, %v797_v3  ;;  %v2278_v6 = vsel %vm471_vm1, %v2272_v59, %v2277_v51  ;;  %v3013_v58 = vsel %vm1277_vm7, %v3007_v16, %v3012_v47  ;;  %v8414_v14 = vld [vmem:[#allocation32_spill] sm:$0xff]  ;;  %v8417_v59 = vld [vmem:[#allocation46_spill] sm:$0xff]  ;;  %v8418_v51 = vld [vmem:[#allocation165_spill] sm:$0xff] }
 0x2d2   : > { %v6939_v20 = vadd.f32 %v8398_v61, %v6802_v50  ;;  %v831_v55 = vsel %vm829_vm12, %v8415_v26, %v8414_v14  ;;  %v3127_v28 = vsel %vm1277_vm7, %v3125_v43, %v3126_v5  ;;  %v3132_v45 = vsel %vm1277_vm7, %v3126_v5, %v3131_v0  ;;  %8416 = vst [vmem:[#allocation30_spill] sm:$0xff] %v6947_v35  ;;  %v8419_v61 = vld [vmem:[#allocation61_spill] sm:$0xff]  ;;  %v8420_v57 = vld [vmem:[#allocation106_spill] sm:$0xff]  ;;  %v8421_v14 = vld [vmem:[#allocation36_spill] sm:$0xff] }
 0x2d3   : > { %v6927_v42 = vpop.permute.xlu0 %2492  ;;  %v1106_v3 = vadd.f32 %v1098_v9, %v958_v32  ;;  %v1943_v47 = vsel %vm829_vm12, %v8418_v51, %v8417_v59  ;;  %v3168_v50 = vsel %vm1277_vm7, %v3166_v11, %v3167_v37  ;;  %v3388_v16 = vmul.f32 %v6737_v31, %v6398_v41 }
 0x2d4   : > { %8411 = vst [vmem:[#allocation154_spill] sm:$0xff] %v6927_v42  ;;  %v1788_v43 = vadd.f32 %v8421_v14, %v1644_v1  ;;  %v3172_v5 = vrot.slane %v3158_v21, 4  ;;  %v3398_v0 = vrot.slane %v3386_v19, 5  ;;  %v6962_v9 = vadd.f32 %v831_v55, %v6846_v15  ;;  %v8424_v21 = vld [vmem:[#allocation187_spill] sm:$0xff]  ;;  %v8425_v15 = vld [vmem:[#allocation174_spill] sm:$0xff] }
 0x2d5   : > { %3020 = vrot.lane.b32.xlu0 %v3013_v58, %s4268_s14  ;;  %v1097_v58 = vsel %vm1055_vm2, %v8420_v57, %v8419_v61  ;;  %v3390_v32 = vmul.f32 %v6398_v41, %v6947_v35  ;;  %v3427_v11 = vmul.f32 %v6428_v2, %v6909_v29  ;;  %v3429_v51 = vmul.f32 %v6737_v31, %v6428_v2  ;;  %v6970_v61 = vpop.permute.xlu1 %2719  ;;  %v8426_v57 = vld [vmem:[#allocation73_spill] sm:$0xff]  ;;  %s7023_s14 = sld [smem:[#allocation3 + $0x48]] }
 0x2d6   : > { %v1950_v59 = vadd.f32 %v1943_v47, %v1788_v43  ;;  %8423 = vst [vmem:[#allocation121_spill] sm:$0xff] %v6970_v61  ;;  %v3431_v1 = vmul.f32 %v6428_v2, %v6947_v35  ;;  %v3531_v55 = vmul.f32 %v8425_v15, %v8424_v21  ;;  %v3533_v41 = vmul.f32 %v6737_v31, %v8425_v15  ;;  %v8428_v47 = vld [vmem:[#allocation13_spill] sm:$0xff] }
 0x2d7   : > { %v6959_v26 = vpop.permute.xlu0 %2525  ;;  %v1104_v19 = vadd.f32 %v1097_v58, %v956_v17  ;;  %v1267_v14 = vadd.f32 %v8426_v57, %v1106_v3  ;;  %v2171_v43 = vsel %vm1138_vm14, %v8428_v47, %v8427_v22  ;;  %v3399_v8 = vrot.slane %v3388_v16, 5  ;;  %v8433_v3 = vld [vmem:[#allocation89_spill] sm:$0xff] }
 0x2d8   : > { %8422 = vst [vmem:[#allocation83_spill] sm:$0xff] %v6959_v26  ;;  %v6985_v26 = vld [vmem:[#allocation2 + $0x50] sm:$0x3f]  ;;  %v3572_v60 = vmul.f32 %v8432_v39, %v8424_v21  ;;  %v6996_v17 = vmul.f32 %v6737_v31, %v8432_v39  ;;  %v868_v58 = vsel %vm829_vm12, %v8433_v3, %v8346_v48  ;;  %v3404_v47 = vrot.slane %v3390_v32, 5 }
 0x2d9   : > { %3135 = vrot.lane.b32.xlu0 %v3127_v28, %s4269_s26  ;;  %8429 = vst [vmem:[#allocation135_spill] sm:$0xff] %v6985_v26  ;;  %v3535_v2 = vmul.f32 %v6985_v26, %v8425_v15  ;;  %v8430_v28 = vld [vmem:[#allocation181_spill] sm:$0xff]  ;;  %v3439_v22 = vrot.slane %v3427_v11, 5  ;;  %v3440_v27 = vrot.slane %v3429_v51, 5  ;;  %v3445_v16 = vrot.slane %v3431_v1, 5  ;;  %v7006_v48 = vpop.permute.xlu1 %2873 }
 0x2da   : > { %v2074_v44 = vadd.f32 %v8430_v28, %v1950_v59  ;;  %v3173_v59 = vsel %vm1277_vm7, %v3167_v37, %v3172_v5  ;;  %v3543_v28 = vrot.slane %v3531_v55, 6  ;;  %v1381_v34 = vadd.f32 %v6766_v46, %v1267_v14  ;;  %8435 = vst [vmem:[#allocation62_spill] sm:$0xff] %v7006_v48  ;;  %v8437_v5 = vld [vmem:[#allocation155_spill] sm:$0xff] }
 0x2db   : > { %v6990_v42 = vpop.permute.xlu0 %2529  ;;  %v3544_v7 = vrot.slane %v3533_v41, 6  ;;  %v3549_v54 = vrot.slane %v3535_v2, 6  ;;  %v875_v49 = vadd.f32 %v868_v58, %v6862_v12  ;;  %v3585_v37 = vrot.slane %v6996_v17, 6  ;;  %v8446_v58 = vld [vmem:[#allocation97_spill] sm:$0xff] }
 0x2dc   : > { %8431 = vst [vmem:[#allocation80_spill] sm:$0xff] %v6990_v42  ;;  %v2178_v15 = vadd.f32 %v2171_v43, %v2074_v44  ;;  %v8434_v42 = vld [vmem:[#allocation72_spill] sm:$0xff]  ;;  %v3400_v44 = vsel %vm311_vm0, %v3398_v0, %v3399_v8  ;;  %v7016_v46 = vsel %vm311_vm0, %v3399_v8, %v3404_v47  ;;  %v7019_v14 = vsel %vm311_vm0, %v3439_v22, %v3440_v27  ;;  %v8439_v22 = vld [vmem:[#allocation85_spill] sm:$0xff] }
 0x2dd   : > { %3139 = vrot.lane.b32.xlu0 %v3132_v45, %s4269_s26  ;;  %v1265_v40 = vadd.f32 %v8434_v42, %v1104_v19  ;;  %v3584_v45 = vrot.slane %v3572_v60, 6  ;;  %v2430_v42 = vsel %vm401_vm9, %v6836_v30, %v8437_v5  ;;  %v3576_v12 = vmul.f32 %v6985_v26, %v8432_v39  ;;  %v8438_v30 = vld [vmem:[#allocation184_spill] sm:$0xff] }
 0x2de   : > { %v2287_v11 = vadd.f32 %v2278_v6, %v2178_v15  ;;  %v7027_v60 = vsel %vm311_vm0, %v3440_v27, %v3445_v16  ;;  %v7030_v0 = vstv %s6979_s25  ;;  %v3691_v8 = vmul.f32 %v8438_v30, %v8424_v21  ;;  %v8442_v43 = vld [vmem:[#allocation168_spill] sm:$0xff] }
 0x2df   : > { %v7008_v32 = vpop.permute.xlu0 %2566  ;;  %v1379_v51 = vadd.f32 %v6919_v36, %v1265_v40  ;;  %v1524_v1 = vadd.f32 %v8439_v22, %v1381_v34  ;;  %v7037_v55 = vsel %vm1774_vm8, %v3543_v28, %v3544_v7  ;;  %v7040_v39 = vsel %vm1774_vm8, %v3544_v7, %v3549_v54  ;;  %v8440_v40 = vld [vmem:[#allocation95_spill] sm:$0xff]  ;;  %v7059_v28 = vpop.permute.xlu1 %2877 }
 0x2e0   : > { %8436 = vst [vmem:[#allocation31_spill] sm:$0xff] %v7008_v32  ;;  %v7043_v6 = vadd.f32 %v8362_v62, %v875_v49  ;;  %v2437_v27 = vadd.f32 %v2430_v42, %v2287_v11  ;;  %v7046_v41 = vsel %vm1774_vm8, %v3584_v45, %v3585_v37  ;;  %v3693_v21 = vmul.f32 %v6737_v31, %v8438_v30  ;;  %v8441_v36 = vld [vmem:[#allocation123_spill] sm:$0xff]  ;;  %v8444_v62 = vld [vmem:[#allocation153_spill] sm:$0xff]  ;;  %v8447_v42 = vld [vmem:[#allocation34_spill] sm:$0xff] }
 0x2e1   : > { %3176 = vrot.lane.b32.xlu0 %v3168_v50, %s4269_s26  ;;  %v950_v34 = vsel %vm829_vm12, %v8440_v40, %v8413_v18  ;;  %v1522_v19 = vadd.f32 %v8441_v36, %v1379_v51  ;;  %v3590_v54 = vrot.slane %v3576_v12, 6  ;;  %v8443_v49 = vld [vmem:[#allocation39_spill] sm:$0xff]  ;;  %8445 = vst [vmem:[#allocation45_spill] sm:$0xff] %v7059_v28  ;;  %v3703_v3 = vrot.slane %v3691_v8, 6 }
 0x2e2   : > { %v1824_v2 = vsel %vm787_vm15, %v8444_v62, %v8443_v49  ;;  %v3320_v18 = vmul.f32 %v6737_v31, %v7030_v0  ;;  %v1686_v47 = vadd.f32 %v8446_v58, %v1524_v1  ;;  %v3322_v15 = vmul.f32 %v7030_v0, %v6947_v35  ;;  %v8448_v12 = vld [vmem:[#allocation151_spill] sm:$0xff] }
 0x2e3   : > { %v2571_v50 = vpop.permute.xlu0 %2570  ;;  %v3695_v16 = vmul.f32 %v6985_v26, %v8438_v30  ;;  %v3318_v45 = vmul.f32 %v7030_v0, %v6909_v29  ;;  %v1823_v11 = vsel %vm787_vm15, %v8448_v12, %v8447_v42  ;;  %v3704_v51 = vrot.slane %v3693_v21, 6  ;;  %v8451_v30 = vld [vmem:[#allocation96_spill] sm:$0xff] }
 0x2e4   : > { %v2575_v7 = vsel %vm520_vm10, %v2571_v50, %v8442_v43  ;;  %v1684_v40 = vadd.f32 %v8451_v30, %v1522_v19  ;;  %v7087_v49 = vstv %s7023_s14  ;;  %v7096_v21 = vsel %vm1774_vm8, %v3585_v37, %v3590_v54  ;;  %v7107_v37 = vpop.permute.xlu1 %2983 }
 0x2e5   : > { %v2582_v17 = vadd.f32 %v2575_v7, %v2437_v27  ;;  %3180 = vrot.lane.b32.xlu0 %v3173_v59, %s4269_s26  ;;  %v957_v59 = vadd.f32 %v950_v34, %v6939_v20  ;;  %v8450_v27 = vld [vmem:[#allocation113_spill] sm:$0xff]  ;;  %v1832_v7 = vadd.f32 %v1824_v2, %v1686_v47  ;;  %v8452_v20 = vld [vmem:[#allocation91_spill] sm:$0xff]  ;;  %v3336_v43 = vrot.slane %v3322_v15, 5  ;;  %v8455_v47 = vld [vmem:[#allocation126_spill] sm:$0xff]  ;;  %8457 = vst [vmem:[#allocation165_spill] sm:$0xff] %v7107_v37 }
 0x2e6   : > { %v1259_v50 = vsel %vm1138_vm14, %v8450_v27, %v8426_v57  ;;  %v7091_v34 = vadd.f32 %v8452_v20, %v6914_v25  ;;  %v3709_v57 = vrot.slane %v3695_v16, 6  ;;  %v3330_v27 = vrot.slane %v3318_v45, 5  ;;  %v7100_v2 = vld [vmem:[#allocation2 + $0x58] sm:$0x1]  ;;  %v8458_v15 = vld [vmem:[#allocation49_spill] sm:$0xff] }
 0x2e7   : > { %v7077_v8 = vpop.permute.xlu0 %2607  ;;  %v7080_v1 = vadd.f32 %v6970_v61, %v2582_v17  ;;  %v1105_v42 = vadd.f32 %v8409_v4, %v957_v59  ;;  %v3331_v17 = vrot.slane %v3320_v18, 5  ;;  %v1830_v61 = vadd.f32 %v1823_v11, %v1684_v40  ;;  %8454 = vst [vmem:[#allocation86_spill] sm:$0xff] %v7100_v2  ;;  %v8456_v4 = vld [vmem:[#allocation186_spill] sm:$0xff]  ;;  %v8459_v40 = vld [vmem:[#allocation124_spill] sm:$0xff]  ;;  %v7127_v37 = vld [vmem:[#allocation2 + $0x38] sm:$0xfe] }
 0x2e8   : > { %8453 = vst [vmem:[#allocation32_spill] sm:$0xff] %v7091_v34  ;;  %v2295_v25 = vmul.f32 %v7100_v2, %v6721_v23  ;;  %v2771_v18 = vmul.f32 %v7087_v49, %v6413_v24  ;;  %v1992_v16 = vadd.f32 %v8458_v15, %v1832_v7  ;;  %v7115_v45 = vsel %vm1774_vm8, %v3703_v3, %v3704_v51  ;;  %v4122_v11 = vld [vmem:[#allocation2 + $0x50] sm:$0x7] }
 0x2e9   : > { %8449 = vst [vmem:[#allocation48_spill] sm:$0xff] %v7080_v1  ;;  %3408 = vrot.lane.b32.xlu0 %v3400_v44, %s4262_s19  ;;  %v1266_v19 = vadd.f32 %v1259_v50, %v1105_v42  ;;  %v2094_v44 = vsel %vm1055_vm2, %v8456_v4, %v8455_v47  ;;  %v2773_v59 = vmul.f32 %v6737_v31, %v7087_v49  ;;  %v8460_v42 = vld [vmem:[#allocation183_spill] sm:$0xff]  ;;  %8461 = vst [vmem:[#allocation61_spill] sm:$0xff] %v7127_v37  ;;  %v8462_v1 = vld [vmem:[#allocation44_spill] sm:$0xff] }
 0x2ea   : > { %v2775_v50 = vmul.f32 %v4122_v11, %v7087_v49  ;;  %v2093_v47 = vsel %vm1055_vm2, %v8460_v42, %v8459_v40  ;;  %v2293_v5 = vmul.f32 %v6462_v63, %v6721_v23  ;;  %v2291_v3 = vmul.f32 %v7127_v37, %v6721_v23 }
 0x2eb   : > { %v7109_v54 = vpop.permute.xlu0 %2611  ;;  %v7134_v7 = vstv %s7064_s17  ;;  %v1990_v28 = vadd.f32 %v8462_v1, %v1830_v61  ;;  %v2102_v48 = vadd.f32 %v2094_v44, %v1992_v16  ;;  %v7138_v26 = vsel %vm311_vm0, %v3331_v17, %v3336_v43  ;;  %v8468_v16 = vld [vmem:[#allocation98_spill] sm:$0xff] }
 0x2ec   : > { %v7141_v40 = vsel %vm1774_vm8, %v3704_v51, %v3709_v57  ;;  %v1380_v63 = vadd.f32 %v6670_v13, %v1266_v19  ;;  %v2310_v32 = vrot.slane %v2295_v25, 1  ;;  %v7147_v23 = vsel %vm311_vm0, %v3330_v27, %v3331_v17  ;;  %v7153_v57 = vpop.permute.xlu1 %3018  ;;  %v8464_v17 = vld [vmem:[#allocation137_spill] sm:$0xff]  ;;  %v8466_v19 = vld [vmem:[#allocation142_spill] sm:$0xff] }
 0x2ed   : > { %3412 = vrot.lane.b32.xlu0 %v7016_v46, %s4262_s19  ;;  %v2783_v46 = vrot.slane %v2771_v18, 3  ;;  %v2100_v2 = vadd.f32 %v2093_v47, %v1990_v28  ;;  %v2784_v35 = vrot.slane %v2773_v59, 3  ;;  %v2789_v61 = vrot.slane %v2775_v50, 3  ;;  %8463 = vst [vmem:[#allocation106_spill] sm:$0xff] %v7153_v57  ;;  %v8469_v50 = vld [vmem:[#allocation112_spill] sm:$0xff] }
 0x2ee   : > { %v7151_v43 = vmul.f32 %v7134_v7, %v6413_v24  ;;  %v2306_v44 = vrot.slane %v2293_v5, 1  ;;  %v2305_v51 = vrot.slane %v2291_v3, 1  ;;  %v7159_v13 = vmul.f32 %v6737_v31, %v7134_v7  ;;  %v8465_v5 = vld [vmem:[#allocation139_spill] sm:$0xff] }
 0x2ef   : > { %v7144_v34 = vpop.permute.xlu0 %2752  ;;  %v7162_v28 = vmul.f32 %v4122_v11, %v7134_v7  ;;  %v1677_v24 = vsel %vm520_vm10, %v8464_v17, %v8451_v30  ;;  %v1678_v27 = vsel %vm520_vm10, %v8465_v5, %v8446_v58  ;;  %v2206_v25 = vadd.f32 %v8466_v19, %v2102_v48  ;;  %v8470_v17 = vld [vmem:[#allocation140_spill] sm:$0xff] }
 0x2f0   : > { %v7172_v18 = vstv %s7098_s3  ;;  %v1521_v11 = vadd.f32 %v8441_v36, %v8469_v50  ;;  %v1523_v47 = vadd.f32 %v8439_v22, %v1380_v63  ;;  %v2311_v3 = vsel %vm471_vm1, %v2306_v44, %v2310_v32  ;;  %v8473_v63 = vld [vmem:[#allocation167_spill] sm:$0xff] }
 0x2f1   : > { %3449 = vrot.lane.b32.xlu0 %v7019_v14, %s4262_s19  ;;  %v8467_v14 = vld [vmem:[#allocation51_spill] sm:$0xff]  ;;  %v2204_v57 = vadd.f32 %v8470_v17, %v2100_v2  ;;  %v7185_v58 = vsel %vm1006_vm6, %v2783_v46, %v2784_v35  ;;  %v7188_v48 = vsel %vm1006_vm6, %v2784_v35, %v2789_v61  ;;  %v7191_v5 = vstv %s7120_s4  ;;  %v8474_v46 = vld [vmem:[#allocation169_spill] sm:$0xff] }
 0x2f2   : > { %v992_v59 = vsel %vm990_vm13, %v8468_v16, %v8467_v14  ;;  %v8471_v14 = vld [vmem:[#allocation64_spill] sm:$0xff]  ;;  %v8472_v16 = vld [vmem:[#allocation33_spill] sm:$0xff]  ;;  %v1683_v50 = vadd.f32 %v1677_v24, %v1521_v11  ;;  %v1685_v22 = vadd.f32 %v1678_v27, %v1523_v47  ;;  %v2307_v32 = vsel %vm471_vm1, %v2305_v51, %v2306_v44  ;;  %v7208_v27 = vpop.permute.xlu1 %3022 }
 0x2f3   : > { %v7181_v30 = vpop.permute.xlu0 %2756  ;;  %v1140_v36 = vsel %vm1138_vm14, %v8472_v16, %v8471_v14  ;;  %v996_v2 = vadd.f32 %v992_v59, %v6962_v9  ;;  %v1983_v35 = vsel %vm829_vm12, %v8473_v63, %v8462_v1  ;;  %v1984_v61 = vsel %vm829_vm12, %v8474_v46, %v8458_v15  ;;  %8475 = vst [vmem:[#allocation187_spill] sm:$0xff] %v7208_v27  ;;  %v8476_v1 = vld [vmem:[#allocation108_spill] sm:$0xff]  ;;  %v8499_v27 = vld [vmem:[#allocation18_spill] sm:$0xff] }
 0x2f4   : > { %v2319_v37 = vadd.f32 %v2311_v3, %v2206_v25  ;;  %v1829_v14 = vadd.f32 %v8448_v12, %v1683_v50  ;;  %v1831_v24 = vadd.f32 %v8444_v62, %v1685_v22  ;;  %v1177_v59 = vsel %vm1138_vm14, %v8476_v1, %v8370_v53  ;;  %v8477_v3 = vld [vmem:[#allocation19_spill] sm:$0xff]  ;;  %v8479_v50 = vld [vmem:[#allocation53_spill] sm:$0xff]  ;;  %v8480_v22 = vld [vmem:[#allocation100_spill] sm:$0xff] }
 0x2f5   : > { %3453 = vrot.lane.b32.xlu0 %v7027_v60, %s4262_s19  ;;  %v1144_v51 = vadd.f32 %v1140_v36, %v996_v2  ;;  %v2317_v11 = vadd.f32 %v2307_v32, %v2204_v57  ;;  %v7222_v62 = vmul.f32 %v7172_v18, %v6474_v10  ;;  %v7226_v47 = vmul.f32 %v6737_v31, %v7172_v18  ;;  %v8478_v57 = vld [vmem:[#allocation27_spill] sm:$0xff] }
 0x2f6   : > { %v1989_v25 = vadd.f32 %v1983_v35, %v1829_v14  ;;  %v1991_v12 = vadd.f32 %v1984_v61, %v1831_v24  ;;  %v2197_v53 = vsel %vm1138_vm14, %v8477_v3, %v8470_v17  ;;  %v2198_v16 = vsel %vm1138_vm14, %v8478_v57, %v8466_v19  ;;  %v8481_v17 = vld [vmem:[#allocation75_spill] sm:$0xff]  ;;  %v8482_v35 = vld [vmem:[#allocation114_spill] sm:$0xff]  ;;  %v8483_v61 = vld [vmem:[#allocation76_spill] sm:$0xff] }
 0x2f7   : > { %v7210_v44 = vpop.permute.xlu0 %2912  ;;  %v2460_v36 = vadd.f32 %v6869_v38, %v2317_v11  ;;  %v1019_v10 = vadd.f32 %v8480_v22, %v6662_v56  ;;  %v1184_v32 = vadd.f32 %v1177_v59, %v7043_v6  ;;  %v1413_v46 = vsel %vm401_vm9, %v8482_v35, %v8481_v17  ;;  %v8484_v14 = vld [vmem:[#allocation115_spill] sm:$0xff]  ;;  %v8485_v24 = vld [vmem:[#allocation78_spill] sm:$0xff]  ;;  %v8486_v56 = vld [vmem:[#allocation116_spill] sm:$0xff]  ;;  %v7253_v59 = vpop.permute.xlu1 %3137 }
 0x2f8   : > { %v2099_v31 = vadd.f32 %v8460_v42, %v1989_v25  ;;  %v2101_v2 = vadd.f32 %v8456_v4, %v1991_v12  ;;  %v1286_v19 = vadd.f32 %v6686_v33, %v1144_v51  ;;  %v1450_v6 = vsel %vm401_vm9, %v8486_v56, %v8485_v24  ;;  %8487 = vst [vmem:[#allocation174_spill] sm:$0xff] %v7253_v59  ;;  %v8488_v4 = vld [vmem:[#allocation175_spill] sm:$0xff]  ;;  %v8489_v25 = vld [vmem:[#allocation177_spill] sm:$0xff]  ;;  %v8495_v17 = vld [vmem:[#allocation66_spill] sm:$0xff] }
 0x2f9   : > { %3553 = vrot.lane.b32.xlu0 %v7037_v55, %s4263_s7  ;;  %v2462_v55 = vadd.f32 %v8479_v50, %v2319_v37  ;;  %v1414_v37 = vsel %vm401_vm9, %v8484_v14, %v8483_v61  ;;  %v2760_v11 = vsel %vm787_vm15, %v7144_v34, %v8488_v4  ;;  %v2761_v33 = vsel %vm787_vm15, %v7181_v30, %v8489_v25  ;;  %v8490_v51 = vld [vmem:[#allocation117_spill] sm:$0xff]  ;;  %v8491_v3 = vld [vmem:[#allocation87_spill] sm:$0xff]  ;;  %v8500_v59 = vld [vmem:[#allocation68_spill] sm:$0xff] }
 0x2fa   : > { %v2203_v1 = vadd.f32 %v2197_v53, %v2099_v31  ;;  %v2205_v42 = vadd.f32 %v2198_v16, %v2101_v2  ;;  %v1451_v12 = vsel %vm401_vm9, %v8490_v51, %v8406_v52  ;;  %v8492_v53 = vld [vmem:[#allocation125_spill] sm:$0xff]  ;;  %v8493_v16 = vld [vmem:[#allocation170_spill] sm:$0xff]  ;;  %v8494_v31 = vld [vmem:[#allocation172_spill] sm:$0xff]  ;;  %v1183_v35 = vadd.f32 %v8495_v17, %v1019_v10 }
 0x2fb   : > { %v7241_v63 = vpop.permute.xlu0 %2916  ;;  %v1558_v57 = vsel %vm520_vm10, %v8492_v53, %v8491_v3  ;;  %v2622_v22 = vadd.f32 %v8493_v16, %v2460_v36  ;;  %v2624_v2 = vadd.f32 %v8494_v31, %v2462_v55  ;;  %v8496_v61 = vld [vmem:[#allocation37_spill] sm:$0xff]  ;;  %v8497_v56 = vld [vmem:[#allocation35_spill] sm:$0xff]  ;;  %v1418_v52 = vadd.f32 %v1414_v37, %v1286_v19 }
 0x2fc   : > { %v1417_v14 = vadd.f32 %v1413_v46, %v8496_v61  ;;  %v1318_v4 = vadd.f32 %v8497_v56, %v1184_v32  ;;  %v8498_v51 = vld [vmem:[#allocation109_spill] sm:$0xff]  ;;  %v2316_v55 = vadd.f32 %v8499_v27, %v2203_v1  ;;  %v2318_v10 = vadd.f32 %v8500_v59, %v2205_v42  ;;  %v8501_v32 = vld [vmem:[#allocation88_spill] sm:$0xff]  ;;  %v8502_v46 = vld [vmem:[#allocation127_spill] sm:$0xff] }
 0x2fd   : > { %3557 = vrot.lane.b32.xlu0 %v7040_v39, %s4263_s7  ;;  %v4124_v39 = vld [vmem:[#allocation2 + $0x50] sm:$0xf]  ;;  %v1456_v60 = vadd.f32 %v1450_v6, %v8498_v51  ;;  %v2767_v9 = vadd.f32 %v2760_v11, %v2622_v22  ;;  %v2769_v3 = vadd.f32 %v2761_v33, %v2624_v2  ;;  %v1559_v17 = vsel %vm520_vm10, %v8502_v46, %v8501_v32  ;;  %v8504_v56 = vld [vmem:[#allocation129_spill] sm:$0xff]  ;;  %v7300_v11 = vld [vmem:[#allocation2 + $0x58] sm:$0x1f] }
 0x2fe   : > { %v7275_v15 = vmul.f32 %v4124_v39, %v7172_v18  ;;  %v1458_v53 = vadd.f32 %v1451_v12, %v1318_v4  ;;  %v1562_v36 = vadd.f32 %v1558_v57, %v1417_v14  ;;  %v8503_v61 = vld [vmem:[#allocation90_spill] sm:$0xff]  ;;  %v2615_v37 = vsel %vm520_vm10, %v7077_v8, %v8493_v16  ;;  %v7291_v6 = vld [vmem:[#allocation2 + $0x8] sm:$0xff]  ;;  %8507 = vst [vmem:[#allocation13_spill] sm:$0xff] %v7300_v11  ;;  %v7304_v57 = vld [vmem:[#allocation2 + $0x38] sm:$0xe0] }
 0x2ff   : > { %v3058_v25 = vpop.permute.xlu0 %3057  ;;  %v1595_v19 = vsel %vm520_vm10, %v8504_v56, %v8503_v61  ;;  %v3321_v27 = vmul.f32 %v7291_v6, %v7030_v0  ;;  %v2459_v1 = vadd.f32 %v6869_v38, %v2316_v55  ;;  %v8506_v42 = vld [vmem:[#allocation185_spill] sm:$0xff]  ;;  %v3323_v33 = vmul.f32 %v7300_v11, %v7030_v0  ;;  %v8508_v16 = vld [vmem:[#allocation180_spill] sm:$0xff]  ;;  %v8509_v2 = vld [vmem:[#allocation182_spill] sm:$0xff] }
 0x300   : > { %v3065_v59 = vsel %vm1055_vm2, %v3058_v25, %v8506_v42  ;;  %v3319_v8 = vmul.f32 %v7304_v57, %v7030_v0  ;;  %v2616_v38 = vsel %vm520_vm10, %v7109_v54, %v8494_v31  ;;  %v2927_v22 = vadd.f32 %v8508_v16, %v2767_v9  ;;  %v8510_v4 = vld [vmem:[#allocation188_spill] sm:$0xff]  ;;  %v8511_v51 = vld [vmem:[#allocation131_spill] sm:$0xff]  ;;  %v8513_v46 = vld [vmem:[#allocation141_spill] sm:$0xff] }
 0x301   : > { %3594 = vrot.lane.b32.xlu0 %v7046_v41, %s4263_s7  ;;  %v7296_v41 = vpop.permute.xlu1 %3141  ;;  %v2929_v14 = vadd.f32 %v8509_v2, %v2769_v3  ;;  %v1596_v55 = vsel %vm520_vm10, %v8511_v51, %v8452_v20  ;;  %v8512_v32 = vld [vmem:[#allocation99_spill] sm:$0xff]  ;;  %v2621_v0 = vadd.f32 %v2615_v37, %v2459_v1  ;;  %v2461_v42 = vadd.f32 %v8479_v50, %v2318_v10 }
 0x302   : > { %8505 = vst [vmem:[#allocation73_spill] sm:$0xff] %v7296_v41  ;;  %v1718_v56 = vsel %vm681_vm11, %v8513_v46, %v8512_v32  ;;  %v2920_v54 = vsel %vm829_vm12, %v7210_v44, %v8508_v16  ;;  %v3072_v9 = vadd.f32 %v3065_v59, %v2927_v22  ;;  %v3334_v31 = vrot.slane %v3321_v27, 5  ;;  %v8514_v32 = vld [vmem:[#allocation12_spill] sm:$0xff]  ;;  %v8519_v16 = vld [vmem:[#allocation103_spill] sm:$0xff] }
 0x303   : > { %v3062_v12 = vpop.permute.xlu0 %3061  ;;  %v2766_v20 = vadd.f32 %v7144_v34, %v2621_v0  ;;  %v3338_v51 = vrot.slane %v3323_v33, 5  ;;  %v3333_v11 = vrot.slane %v3319_v8, 5  ;;  %v1317_v37 = vadd.f32 %v8514_v32, %v1183_v35  ;;  %v8515_v34 = vld [vmem:[#allocation101_spill] sm:$0xff]  ;;  %v8516_v33 = vld [vmem:[#allocation143_spill] sm:$0xff] }
 0x304   : > { %v3066_v39 = vsel %vm1055_vm2, %v3062_v12, %v8510_v4  ;;  %v2623_v4 = vadd.f32 %v2616_v38, %v2461_v42  ;;  %v1563_v1 = vadd.f32 %v1559_v17, %v1418_v52  ;;  %v1601_v50 = vadd.f32 %v1595_v19, %v1456_v60  ;;  %v8517_v52 = vld [vmem:[#allocation193_spill] sm:$0xff]  ;;  %v8518_v17 = vld [vmem:[#allocation190_spill] sm:$0xff]  ;;  %v8530_v32 = vld [vmem:[#allocation171_spill] sm:$0xff] }
 0x305   : > { %3598 = vrot.lane.b32.xlu0 %v7096_v21, %s4263_s7  ;;  %v3074_v3 = vadd.f32 %v3066_v39, %v2929_v14  ;;  %v2921_v21 = vsel %vm829_vm12, %v7241_v63, %v8509_v2  ;;  %v1603_v10 = vadd.f32 %v1596_v55, %v1458_v53  ;;  %v1722_v46 = vadd.f32 %v1718_v56, %v1562_v36  ;;  %v7332_v44 = vpop.permute.xlu1 %3178  ;;  %v8521_v2 = vld [vmem:[#allocation17_spill] sm:$0xff]  ;;  %v8522_v14 = vld [vmem:[#allocation147_spill] sm:$0xff]  ;;  %v8524_v56 = vld [vmem:[#allocation156_spill] sm:$0xff] }
 0x306   : > { %v2768_v27 = vadd.f32 %v7181_v30, %v2623_v4  ;;  %v2926_v59 = vadd.f32 %v2920_v54, %v2766_v20  ;;  %v1719_v35 = vsel %vm681_vm11, %v8516_v33, %v8515_v34  ;;  %v3232_v63 = vadd.f32 %v8518_v17, %v3072_v9  ;;  %v8523_v55 = vld [vmem:[#allocation107_spill] sm:$0xff]  ;;  %v8525_v42 = vld [vmem:[#allocation41_spill] sm:$0xff] }
 0x307   : > { %v3218_v41 = vpop.permute.xlu0 %3217  ;;  %v3234_v60 = vadd.f32 %v8517_v52, %v3074_v3  ;;  %v3339_v8 = vsel %vm311_vm0, %v3334_v31, %v3338_v51  ;;  %v3335_v38 = vsel %vm311_vm0, %v3333_v11, %v3334_v31  ;;  %v1756_v39 = vsel %vm681_vm11, %v8522_v14, %v8521_v2  ;;  %v8526_v54 = vld [vmem:[#allocation157_spill] sm:$0xff]  ;;  %v8527_v3 = vld [vmem:[#allocation40_spill] sm:$0xff]  ;;  %v8528_v4 = vld [vmem:[#allocation159_spill] sm:$0xff] }
 0x308   : > { %v3225_v19 = vsel %vm1138_vm14, %v3218_v41, %v8518_v17  ;;  %v2928_v53 = vadd.f32 %v2921_v21, %v2768_v27  ;;  %v3071_v36 = vadd.f32 %v3058_v25, %v2926_v59  ;;  %v1864_v41 = vsel %vm829_vm12, %v8524_v56, %v8523_v55  ;;  %v8529_v51 = vld [vmem:[#allocation47_spill] sm:$0xff]  ;;  %v8531_v17 = vld [vmem:[#allocation128_spill] sm:$0xff]  ;;  %v8536_v14 = vld [vmem:[#allocation173_spill] sm:$0xff] }
 0x309   : > { %3713 = vrot.lane.b32.xlu0 %v7115_v45, %s4264_s16  ;;  %v8520_v45 = vld [vmem:[#allocation145_spill] sm:$0xff]  ;;  %v1723_v0 = vadd.f32 %v1719_v35, %v1563_v1  ;;  %v1865_v11 = vsel %vm829_vm12, %v8526_v54, %v8525_v42  ;;  %v1901_v20 = vsel %vm829_vm12, %v8528_v4, %v8527_v3  ;;  %v2024_v21 = vsel %vm990_vm13, %v8530_v32, %v8529_v51  ;;  %v7368_v35 = vpop.permute.xlu1 %3182  ;;  %v8537_v55 = vld [vmem:[#allocation14_spill] sm:$0xff]  ;;  %v4129_v32 = vld [vmem:[#allocation2 + $0x58] sm:$0x7] }
 0x30a   : > { %v1755_v22 = vsel %vm681_vm11, %v8520_v45, %v8519_v16  ;;  %v3073_v9 = vadd.f32 %v3062_v12, %v2928_v53  ;;  %v3231_v31 = vadd.f32 %v3225_v19, %v3071_v36  ;;  %v3347_v27 = vadd.f32 %v3339_v8, %v3234_v60  ;;  %v8532_v19 = vld [vmem:[#allocation189_spill] sm:$0xff]  ;;  %v4128_v36 = vld [vmem:[#allocation2 + $0x38] sm:$0xf8]  ;;  %v8539_v54 = vld [vmem:[#allocation130_spill] sm:$0xff] }
 0x30b   : > { %v3222_v30 = vpop.permute.xlu0 %3221  ;;  %v3345_v59 = vadd.f32 %v3335_v38, %v3232_v63  ;;  %v1761_v1 = vadd.f32 %v1755_v22, %v1601_v50  ;;  %v1763_v34 = vadd.f32 %v1756_v39, %v1603_v10  ;;  %v1868_v33 = vadd.f32 %v1864_v41, %v1722_v46  ;;  %v8533_v46 = vld [vmem:[#allocation23_spill] sm:$0xff]  ;;  %v8534_v8 = vld [vmem:[#allocation161_spill] sm:$0xff]  ;;  %v8535_v22 = vld [vmem:[#allocation50_spill] sm:$0xff] }
 0x30c   : > { %v3226_v25 = vsel %vm1138_vm14, %v3222_v30, %v8517_v52  ;;  %v2772_v30 = vmul.f32 %v4128_v36, %v7087_v49  ;;  %v2774_v45 = vmul.f32 %v7291_v6, %v7087_v49  ;;  %v1869_v60 = vadd.f32 %v1865_v11, %v1723_v0  ;;  %v8538_v41 = vld [vmem:[#allocation105_spill] sm:$0xff] }
 0x30d   : > { %3717 = vrot.lane.b32.xlu0 %v7141_v40, %s4264_s16  ;;  %v3233_v12 = vadd.f32 %v3226_v25, %v3073_v9  ;;  %v2120_v40 = vsel %vm1138_vm14, %v8532_v19, %v8531_v17  ;;  %v1907_v63 = vadd.f32 %v1901_v20, %v1761_v1  ;;  %v2028_v50 = vadd.f32 %v2024_v21, %v1868_v33  ;;  %v8540_v9 = vld [vmem:[#allocation191_spill] sm:$0xff]  ;;  %v8543_v19 = vld [vmem:[#allocation176_spill] sm:$0xff] }
 0x30e   : > { %v3344_v10 = vadd.f32 %v7147_v23, %v3231_v31  ;;  %v1902_v38 = vsel %vm829_vm12, %v8534_v8, %v8533_v46  ;;  %v2025_v39 = vsel %vm990_vm13, %v8536_v14, %v8535_v22  ;;  %v3490_v25 = vadd.f32 %v8538_v41, %v3347_v27  ;;  %v8542_v1 = vld [vmem:[#allocation119_spill] sm:$0xff]  ;;  %v8547_v8 = vld [vmem:[#allocation132_spill] sm:$0xff] }
 0x30f   : > { %v3482_v52 = vpop.permute.xlu0 %3481  ;;  %v2124_v42 = vadd.f32 %v2120_v40, %v2028_v50  ;;  %v2121_v0 = vsel %vm1138_vm14, %v8540_v9, %v8539_v54  ;;  %v3346_v11 = vadd.f32 %v7138_v26, %v3233_v12  ;;  %v2786_v20 = vrot.slane %v2772_v30, 3  ;;  %v7397_v26 = vpop.permute.xlu1 %3410  ;;  %v8545_v50 = vld [vmem:[#allocation28_spill] sm:$0xff]  ;;  %v8549_v22 = vld [vmem:[#allocation67_spill] sm:$0xff] }
 0x310   : > { %v3488_v53 = vadd.f32 %v3482_v52, %v3345_v59  ;;  %v3487_v23 = vadd.f32 %v3482_v52, %v3344_v10  ;;  %v2787_v51 = vrot.slane %v2774_v45, 3  ;;  %v2776_v21 = vmul.f32 %v4129_v32, %v7087_v49  ;;  %v8541_v59 = vld [vmem:[#allocation82_spill] sm:$0xff]  ;;  %v8546_v45 = vld [vmem:[#allocation25_spill] sm:$0xff] }
 0x311   : > { %v1457_v27 = vadd.f32 %v8485_v24, %v1317_v37  ;;  %v1491_v33 = vsel %vm401_vm9, %v8542_v1, %v8541_v59  ;;  %v2029_v17 = vadd.f32 %v2025_v39, %v1869_v60  ;;  %v1909_v52 = vadd.f32 %v1902_v38, %v1763_v34  ;;  %v8548_v24 = vld [vmem:[#allocation192_spill] sm:$0xff]  ;;  %v8550_v34 = vld [vmem:[#allocation158_spill] sm:$0xff] }
 0x312   : > { %v3650_v56 = vadd.f32 %v8537_v55, %v3488_v53  ;;  %v2043_v40 = vadd.f32 %v8543_v19, %v1907_v63  ;;  %v8544_v53 = vld [vmem:[#allocation144_spill] sm:$0xff]  ;;  %v3652_v10 = vadd.f32 %v8546_v45, %v3490_v25  ;;  %v2143_v37 = vsel %vm1138_vm14, %v8548_v24, %v8547_v8  ;;  %v8551_v63 = vld [vmem:[#allocation29_spill] sm:$0xff]  ;;  %v8555_v1 = vld [vmem:[#allocation118_spill] sm:$0xff] }
 0x313   : > { %v3636_v31 = vpop.permute.xlu0 %3635  ;;  %v2351_v30 = vsel %vm401_vm9, %v8545_v50, %v8544_v53  ;;  %v2125_v49 = vadd.f32 %v2121_v0, %v2029_v17  ;;  %v2223_v14 = vadd.f32 %v8549_v22, %v2124_v42  ;;  %v3489_v39 = vadd.f32 %v8538_v41, %v3346_v11  ;;  %v8552_v0 = vld [vmem:[#allocation110_spill] sm:$0xff]  ;;  %v8557_v53 = vld [vmem:[#allocation55_spill] sm:$0xff]  ;;  %v7432_v22 = vpop.permute.xlu1 %3414 }
 0x314   : > { %v3643_v4 = vsel %vm520_vm10, %v3636_v31, %v8537_v55  ;;  %3755 = vrot.lane.b32.xlu1 %v3650_v56, %s4263_s7  ;;  %v2496_v38 = vsel %vm520_vm10, %v8551_v63, %v8550_v34  ;;  %v2788_v56 = vsel %vm1006_vm6, %v2786_v20, %v2787_v51  ;;  %v2791_v25 = vrot.slane %v2776_v21, 3  ;;  %v8554_v31 = vld [vmem:[#allocation133_spill] sm:$0xff]  ;;  %v8558_v50 = vld [vmem:[#allocation134_spill] sm:$0xff] }
 0x315   : > { %v3649_v12 = vadd.f32 %v3643_v4, %v3487_v23  ;;  %v2355_v54 = vadd.f32 %v2351_v30, %v2223_v14  ;;  %v2932_v42 = vmul.f32 %v4128_v36, %v7134_v7  ;;  %v2934_v41 = vmul.f32 %v7291_v6, %v7134_v7  ;;  %v8553_v23 = vld [vmem:[#allocation93_spill] sm:$0xff]  ;;  %v8559_v30 = vld [vmem:[#allocation194_spill] sm:$0xff]  ;;  %v8561_v14 = vld [vmem:[#allocation160_spill] sm:$0xff] }
 0x316   : > { %v1497_v11 = vadd.f32 %v1491_v33, %v8552_v0  ;;  %v1636_v4 = vsel %vm520_vm10, %v8554_v31, %v8553_v23  ;;  %v2045_v17 = vadd.f32 %v8555_v1, %v1909_v52  ;;  %v2149_v21 = vadd.f32 %v2143_v37, %v2043_v40  ;;  %v8566_v0 = vld [vmem:[#allocation24_spill] sm:$0xff] }
 0x317   : > { %v3640_v60 = vpop.permute.xlu0 %3639  ;;  %3753 = vrot.lane.b32.xlu0 %v3649_v12, %s4263_s7  ;;  %v8556_v12 = vld [vmem:[#allocation146_spill] sm:$0xff]  ;;  %v2144_v36 = vsel %vm1138_vm14, %v8559_v30, %v8558_v50  ;;  %v2500_v24 = vadd.f32 %v2496_v38, %v2355_v54  ;;  %v2792_v40 = vsel %vm1006_vm6, %v2787_v51, %v2791_v25  ;;  %v2936_v37 = vmul.f32 %v4129_v32, %v7134_v7 }
 0x318   : > { %v3644_v55 = vsel %vm520_vm10, %v3640_v60, %v8546_v45  ;;  %3759 = vrot.lane.b32.xlu1 %v3652_v10, %s4263_s7  ;;  %v2352_v20 = vsel %vm401_vm9, %v8557_v53, %v8556_v12  ;;  %v8560_v45 = vld [vmem:[#allocation92_spill] sm:$0xff]  ;;  %v8562_v60 = vld [vmem:[#allocation154_spill] sm:$0xff]  ;;  %v2946_v38 = vrot.slane %v2932_v42, 3  ;;  %v1602_v54 = vadd.f32 %v8503_v61, %v1457_v27 }
 0x319   : > { %v3651_v9 = vadd.f32 %v3644_v55, %v3489_v39  ;;  %v2224_v10 = vadd.f32 %v8560_v45, %v2125_v49  ;;  %v2497_v52 = vsel %vm520_vm10, %v8562_v60, %v8561_v14  ;;  %v8563_v39 = vld [vmem:[#allocation52_spill] sm:$0xff]  ;;  %v2947_v55 = vrot.slane %v2934_v41, 3  ;;  %v8569_v25 = vld [vmem:[#allocation26_spill] sm:$0xff]  ;;  %v8576_v14 = vld [vmem:[#allocation59_spill] sm:$0xff] }
 0x31a   : > { %v8567_v12 = vrot.slane %v7159_v13, 3  ;;  %v8568_v53 = vrot.slane %v7151_v43, 3  ;;  %v7456_v7 = vmul.f32 %v7191_v5, %v6909_v29  ;;  %v1642_v51 = vadd.f32 %v1636_v4, %v1497_v11  ;;  %v8570_v27 = vld [vmem:[#allocation162_spill] sm:$0xff]  ;;  %v8572_v43 = vld [vmem:[#allocation57_spill] sm:$0xff] }
 0x31b   : > { %v2649_v33 = vpop.permute.xlu0 %2648  ;;  %3757 = vrot.lane.b32.xlu0 %v3651_v9, %s4263_s7  ;;  %v2356_v49 = vadd.f32 %v2352_v20, %v2224_v10  ;;  %v8565_v9 = vld [vmem:[#allocation148_spill] sm:$0xff]  ;;  %v2151_v32 = vadd.f32 %v2144_v36, %v2045_v17  ;;  %v2254_v42 = vadd.f32 %v8569_v25, %v2149_v21  ;;  %v8571_v20 = vld [vmem:[#allocation83_spill] sm:$0xff]  ;;  %v2951_v29 = vrot.slane %v2936_v37, 3  ;;  %v7468_v17 = vpop.permute.xlu1 %3451  ;;  %v8579_v37 = vld [vmem:[#allocation149_spill] sm:$0xff] }
 0x31c   : > { %v2656_v34 = vsel %vm681_vm11, %v2649_v33, %v8563_v39  ;;  %2795 = vrot.lane.b32.xlu1 %v2788_v56, %s4266_s20  ;;  %v2388_v31 = vsel %vm401_vm9, %v8566_v0, %v8565_v9  ;;  %v2945_v56 = vsel %vm1006_vm6, %v8568_v53, %v8567_v12  ;;  %v2533_v30 = vsel %vm520_vm10, %v8571_v20, %v8570_v27  ;;  %v4130_v10 = vld [vmem:[#allocation2 + $0x38] sm:$0xf0]  ;;  %v8575_v33 = vld [vmem:[#allocation150_spill] sm:$0xff]  ;;  %v8584_v25 = vld [vmem:[#allocation80_spill] sm:$0xff] }
 0x31d   : > { %v7443_v63 = vadd.f32 %v2656_v34, %v2500_v24  ;;  %v2501_v41 = vadd.f32 %v2497_v52, %v2356_v49  ;;  %v3077_v11 = vmul.f32 %v4130_v10, %v7172_v18  ;;  %v2394_v4 = vadd.f32 %v2388_v31, %v2254_v42  ;;  %8573 = vst [vmem:[#allocation89_spill] sm:$0xff] %v7468_v17  ;;  %v8581_v0 = vld [vmem:[#allocation163_spill] sm:$0xff]  ;;  %v8585_v42 = vld [vmem:[#allocation56_spill] sm:$0xff] }
 0x31e   : > { %v7475_v36 = vmul.f32 %v7291_v6, %v7172_v18  ;;  %v1762_v24 = vadd.f32 %v8519_v16, %v1602_v54  ;;  %v2389_v60 = vsel %vm401_vm9, %v8576_v14, %v8575_v33  ;;  %v8577_v52 = vrot.slane %v7162_v28, 3  ;;  %v8583_v28 = vld [vmem:[#allocation164_spill] sm:$0xff] }
 0x31f   : > { %8564 = vst [vmem:[#allocation179_spill] sm:$0xff] %v7443_v63  ;;  %v2653_v61 = vpop.permute.xlu0 %2652  ;;  %2793 = vrot.lane.b32.xlu0 %v7185_v58, %s4266_s20  ;;  %v2948_v58 = vsel %vm1006_vm6, %v2946_v38, %v2947_v55  ;;  %v8578_v39 = vmov %v8567_v12  ;;  %v1786_v49 = vadd.f32 %v8579_v37, %v1642_v51  ;;  %v8580_v38 = vld [vmem:[#allocation111_spill] sm:$0xff]  ;;  %v8582_v12 = vld [vmem:[#allocation74_spill] sm:$0xff]  ;;  %v2539_v54 = vadd.f32 %v2533_v30, %v2394_v4 }
 0x320   : > { %v2657_v45 = vsel %vm681_vm11, %v2653_v61, %v8572_v43  ;;  %2799 = vrot.lane.b32.xlu1 %v2792_v40, %s4266_s20  ;;  %v2950_v34 = vsel %vm1006_vm6, %v8578_v39, %v8577_v52  ;;  %v3088_v40 = vrot.slane %v7222_v62, 4  ;;  %v1942_v31 = vsel %vm829_vm12, %v8581_v0, %v8580_v38  ;;  %v4131_v30 = vld [vmem:[#allocation2 + $0x58] sm:$0xf]  ;;  %v7517_v52 = vpop.permute.xlu1 %3455 }
 0x321   : > { %v7470_v21 = vadd.f32 %v2657_v45, %v2501_v41  ;;  %v2256_v16 = vadd.f32 %v8582_v12, %v2151_v32  ;;  %v2534_v13 = vsel %vm520_vm10, %v8584_v25, %v8583_v28  ;;  %v2952_v51 = vsel %vm1006_vm6, %v2947_v55, %v2951_v29  ;;  %v8587_v29 = vld [vmem:[#allocation61_spill] sm:$0xff]  ;;  %8590 = vst [vmem:[#allocation184_spill] sm:$0xff] %v7517_v52  ;;  %v7531_v25 = vld [vmem:[#allocation2 + $0x40] sm:$0xff] }
 0x322   : > { %v3091_v41 = vrot.slane %v3077_v11, 4  ;;  %v3092_v32 = vrot.slane %v7475_v36, 4  ;;  %v3081_v43 = vmul.f32 %v4131_v30, %v7172_v18  ;;  %v1948_v10 = vadd.f32 %v1942_v31, %v1786_v49  ;;  %v8589_v36 = vld [vmem:[#allocation195_spill] sm:$0xff]  ;;  %v8591_v49 = vld [vmem:[#allocation178_spill] sm:$0xff] }
 0x323   : > { %8574 = vst [vmem:[#allocation72_spill] sm:$0xff] %v7470_v21  ;;  %v2686_v53 = vpop.permute.xlu0 %2685  ;;  %2797 = vrot.lane.b32.xlu0 %v7188_v48, %s4266_s20  ;;  %v2396_v61 = vadd.f32 %v2389_v60, %v2256_v16  ;;  %v8586_v48 = vld [vmem:[#allocation196_spill] sm:$0xff]  ;;  %v8062_v4 = vrot.slane %v7226_v47, 4  ;;  %v1908_v55 = vadd.f32 %v8527_v3, %v1762_v24  ;;  %v8592_v31 = vld [vmem:[#allocation71_spill] sm:$0xff]  ;;  %v3350_v3 = vmul.f32 %v7304_v57, %v7191_v5 }
 0x324   : > { %v2693_v62 = vsel %vm681_vm11, %v2686_v53, %v8585_v42  ;;  %2955 = vrot.lane.b32.xlu1 %v2948_v58, %s4267_s6  ;;  %v7505_v45 = vmul.f32 %v7291_v6, %v8586_v48  ;;  %v2229_v11 = vmul.f32 %v8587_v29, %v8586_v48  ;;  %v8588_v58 = vld [vmem:[#allocation136_spill] sm:$0xff]  ;;  %v2072_v0 = vadd.f32 %v8591_v49, %v1948_v10  ;;  %v8594_v10 = vld [vmem:[#allocation86_spill] sm:$0xff]  ;;  %v8602_v21 = vld [vmem:[#allocation31_spill] sm:$0xff] }
 0x325   : > { %v2699_v20 = vadd.f32 %v2693_v62, %v2539_v54  ;;  %v2170_v18 = vsel %vm1138_vm14, %v8589_v36, %v8588_v58  ;;  %v2541_v60 = vadd.f32 %v2534_v13, %v2396_v61  ;;  %v7528_v24 = vmul.f32 %v7291_v6, %v7191_v5  ;;  %v8593_v61 = vld [vmem:[#allocation30_spill] sm:$0xff] }
 0x326   : > { %v3093_v54 = vsel %vm1277_vm7, %v3091_v41, %v3092_v32  ;;  %v3096_v53 = vrot.slane %v3081_v43, 4  ;;  %v2044_v13 = vadd.f32 %v8543_v19, %v1908_v55  ;;  %v2176_v62 = vadd.f32 %v2170_v18, %v2072_v0  ;;  %v8595_v55 = vld [vmem:[#allocation32_spill] sm:$0xff]  ;;  %v8596_v18 = vld [vmem:[#allocation77_spill] sm:$0xff] }
 0x327   : > { %v2690_v39 = vpop.permute.xlu0 %2689  ;;  %2953 = vrot.lane.b32.xlu0 %v2945_v56, %s4267_s6  ;;  %v7535_v56 = vmul.f32 %v7531_v25, %v7191_v5  ;;  %v7541_v30 = vmul.f32 %v7191_v5, %v8593_v61  ;;  %v2233_v36 = vmul.f32 %v8594_v10, %v8586_v48  ;;  %v2244_v41 = vrot.slane %v7505_v45, 1  ;;  %v8598_v0 = vld [vmem:[#allocation65_spill] sm:$0xff] }
 0x328   : > { %v2694_v12 = vsel %vm681_vm11, %v2690_v39, %v8592_v31  ;;  %2959 = vrot.lane.b32.xlu1 %v2952_v51, %s4267_s6  ;;  %v3361_v51 = vrot.slane %v7456_v7, 5  ;;  %v2243_v43 = vrot.slane %v2229_v11, 1  ;;  %v3090_v19 = vsel %vm1277_vm7, %v3088_v40, %v8062_v4  ;;  %v8597_v11 = vld [vmem:[#allocation152_spill] sm:$0xff] }
 0x329   : > { %v2701_v16 = vadd.f32 %v2694_v12, %v2541_v60  ;;  %v1764_v7 = vadd.f32 %v8521_v2, %v8595_v55  ;;  %v3364_v48 = vrot.slane %v3350_v3, 5  ;;  %v3365_v45 = vrot.slane %v7528_v24, 5  ;;  %v8599_v2 = vld [vmem:[#allocation13_spill] sm:$0xff]  ;;  %v8600_v3 = vld [vmem:[#allocation43_spill] sm:$0xff] }
 0x32a   : > { %v2429_v12 = vsel %vm401_vm9, %v8598_v0, %v8597_v11  ;;  %v3097_v40 = vsel %vm1277_vm7, %v3092_v32, %v3096_v53  ;;  %v3354_v10 = vmul.f32 %v8599_v2, %v7191_v5  ;;  %v2285_v55 = vadd.f32 %v8600_v3, %v2176_v62  ;;  %v8601_v0 = vld [vmem:[#allocation166_spill] sm:$0xff]  ;;  %v8603_v53 = vld [vmem:[#allocation81_spill] sm:$0xff] }
 0x32b   : > { %v2831_v60 = vpop.permute.xlu0 %2830  ;;  %2957 = vrot.lane.b32.xlu0 %v2950_v34, %s4267_s6  ;;  %v7559_v34 = vpop.permute.xlu1 %3555  ;;  %v3493_v24 = vstv %s7509_s29  ;;  %v2248_v4 = vrot.slane %v2233_v36, 1  ;;  %v2245_v14 = vsel %vm471_vm1, %v2243_v43, %v2244_v41  ;;  %s7574_s6 = sld [smem:[#allocation3 + $0x55]]  ;;  %v3362_v5 = vrot.slane %v7535_v56, 5  ;;  %v4133_v43 = vld [vmem:[#allocation2 + $0x38] sm:$0xc0] }
 0x32c   : > { %v2838_v39 = vsel %vm829_vm12, %v2831_v60, %v8596_v18  ;;  %3100 = vrot.lane.b32.xlu1 %v3093_v54, %s4269_s26  ;;  %v1910_v60 = vadd.f32 %v8533_v46, %v1764_v7  ;;  %v2150_v54 = vadd.f32 %v8547_v8, %v2044_v13  ;;  %v2435_v8 = vadd.f32 %v2429_v12, %v2285_v55  ;;  %v8607_v55 = vld [vmem:[#allocation21_spill] sm:$0xff] }
 0x32d   : > { %v7561_v61 = vadd.f32 %v2838_v39, %v2699_v20  ;;  %v2574_v20 = vsel %vm520_vm10, %v8602_v21, %v8601_v0  ;;  %v3366_v62 = vsel %vm311_vm0, %v3364_v48, %v3365_v45  ;;  %v3369_v36 = vrot.slane %v3354_v10, 5 }
 0x32e   : > { %v2046_v46 = vadd.f32 %v8555_v1, %v1910_v60  ;;  %v3495_v7 = vmul.f32 %v4133_v43, %v3493_v24  ;;  %v2255_v39 = vadd.f32 %v2245_v14, %v2150_v54  ;;  %v2580_v3 = vadd.f32 %v2574_v20, %v2435_v8  ;;  %v8610_v14 = vld [vmem:[#allocation15_spill] sm:$0xff] }
 0x32f   : > { %v2835_v32 = vpop.permute.xlu0 %2834  ;;  %3098 = vrot.lane.b32.xlu0 %v3090_v19, %s4269_s26  ;;  %v3497_v19 = vmul.f32 %v7291_v6, %v3493_v24  ;;  %v8604_v1 = vrot.slane %v7275_v15, 4  ;;  %v8605_v12 = vrot.slane %v7226_v47, 4  ;;  %v7601_v63 = vpop.permute.xlu1 %3559  ;;  %v3367_v15 = vrot.slane %v7541_v30, 5  ;;  %v4134_v47 = vld [vmem:[#allocation2 + $0x8] sm:$0xf0] }
 0x330   : > { %v2839_v13 = vsel %vm829_vm12, %v2835_v32, %v8603_v53  ;;  %3104 = vrot.lane.b32.xlu1 %v3097_v40, %s4269_s26  ;;  %v2152_v56 = vadd.f32 %v8558_v50, %v2046_v46  ;;  %v8606_v40 = vld [vmem:[#allocation20_spill] sm:$0xff]  ;;  %v8609_v32 = vld [vmem:[#allocation22_spill] sm:$0xff]  ;;  %v7608_v54 = vmul.f32 %v4134_v47, %v8610_v14  ;;  %v3363_v46 = vsel %vm311_vm0, %v3361_v51, %v3362_v5  ;;  %v8612_v47 = vld [vmem:[#allocation79_spill] sm:$0xff] }
 0x331   : > { %v7585_v21 = vadd.f32 %v2839_v13, %v2701_v16  ;;  %v3095_v60 = vsel %vm1277_vm7, %v8605_v12, %v8604_v1  ;;  %v606_v48 = vadd.f32 %v8607_v55, %v8606_v40  ;;  %v8608_v16 = vld [vmem:[#allocation16_spill] sm:$0xff]  ;;  %v2249_v13 = vsel %vm471_vm1, %v2244_v41, %v2248_v4  ;;  %v4135_v4 = vld [vmem:[#allocation2 + $0x58] sm:$0x3f] }
 0x332   : > { %v7598_v10 = vadd.f32 %v8609_v32, %v8608_v16  ;;  %v3499_v41 = vmul.f32 %v4135_v4, %v3493_v24  ;;  %v3370_v8 = vsel %vm311_vm0, %v3365_v45, %v3369_v36  ;;  %v3509_v1 = vrot.slane %v3495_v7, 6  ;;  %v8611_v32 = vld [vmem:[#allocation135_spill] sm:$0xff] }
 0x333   : > { %v7603_v50 = vpop.permute.xlu0 %2717  ;;  %3102 = vrot.lane.b32.xlu0 %v3095_v60, %s4269_s26  ;;  %v3510_v12 = vrot.slane %v3497_v19, 6  ;;  %v4136_v60 = vld [vmem:[#allocation2 + $0x30] sm:$0xc0]  ;;  %v2257_v40 = vadd.f32 %v2249_v13, %v2152_v56  ;;  %v2395_v55 = vadd.f32 %v8565_v9, %v2255_v39  ;;  %v3496_v16 = vmul.f32 %v7531_v25, %v3493_v24  ;;  %v7630_v39 = vpop.permute.xlu1 %3596 }
 0x334   : > { %v2723_v20 = vadd.f32 %v7603_v50, %v2580_v3  ;;  %3373 = vrot.lane.b32.xlu1 %v3366_v62, %s4262_s19  ;;  %v3494_v30 = vmul.f32 %v4136_v60, %v3493_v24  ;;  %v3498_v3 = vmul.f32 %v8611_v32, %v3493_v24  ;;  %v751_v62 = vadd.f32 %v8612_v47, %v606_v48  ;;  %v8613_v19 = vld [vmem:[#allocation62_spill] sm:$0xff] }
 0x335   : > { %v7619_v52 = vstv %s7574_s6  ;;  %v3368_v45 = vsel %vm311_vm0, %v3362_v5, %v3367_v15  ;;  %v3653_v36 = vstv %s7578_s24  ;;  %v2397_v7 = vadd.f32 %v8575_v33, %v2257_v40  ;;  %8614 = vst [vmem:[#allocation85_spill] sm:$0xff] %v7630_v39 }
 0x336   : > { %v3257_v9 = vmul.f32 %v7304_v57, %v7619_v52  ;;  %v3514_v24 = vrot.slane %v3499_v41, 6  ;;  %v3511_v13 = vsel %vm1774_vm8, %v3509_v1, %v3510_v12  ;;  %v3657_v5 = vmul.f32 %v7291_v6, %v3653_v36 }
 0x337   : > { %v2872_v51 = vpop.permute.xlu0 %2871  ;;  %3371 = vrot.lane.b32.xlu0 %v3363_v46, %s4262_s19  ;;  %v3655_v46 = vmul.f32 %v4133_v43, %v3653_v36  ;;  %v2540_v33 = vadd.f32 %v8570_v27, %v2395_v55  ;;  %v3506_v15 = vrot.slane %v3494_v30, 6  ;;  %v3507_v40 = vrot.slane %v3496_v16, 6  ;;  %v8616_v55 = vld [vmem:[#allocation48_spill] sm:$0xff] }
 0x338   : > { %v2879_v56 = vsel %vm829_vm12, %v2872_v51, %v8613_v19  ;;  %3377 = vrot.lane.b32.xlu1 %v3370_v8, %s4262_s19  ;;  %v3512_v47 = vrot.slane %v3498_v3, 6  ;;  %v2542_v8 = vadd.f32 %v8583_v28, %v2397_v7  ;;  %v3259_v51 = vmul.f32 %v7291_v6, %v7619_v52 }
 0x339   : > { %v7632_v48 = vadd.f32 %v2879_v56, %v2723_v20  ;;  %v3261_v41 = vmul.f32 %v8599_v2, %v7619_v52  ;;  %v3654_v1 = vmul.f32 %v4136_v60, %v3653_v36  ;;  %v2700_v43 = vadd.f32 %v8585_v42, %v2540_v33  ;;  %v8615_v56 = vld [vmem:[#allocation45_spill] sm:$0xff]  ;;  %v8617_v33 = vld [vmem:[#allocation38_spill] sm:$0xff] }
 0x33a   : > { %v3271_v30 = vrot.slane %v3257_v9, 5  ;;  %v3515_v28 = vsel %vm1774_vm8, %v3510_v12, %v3514_v24  ;;  %v3669_v3 = vrot.slane %v3655_v46, 6  ;;  %v3670_v7 = vrot.slane %v3657_v5, 6  ;;  %v7660_v24 = vpop.permute.xlu1 %3600 }
 0x33b   : > { %v2876_v20 = vpop.permute.xlu0 %2875  ;;  %3375 = vrot.lane.b32.xlu0 %v3368_v45, %s4262_s19  ;;  %v3659_v39 = vmul.f32 %v4135_v4, %v3653_v36  ;;  %v2702_v17 = vadd.f32 %v8592_v31, %v2542_v8  ;;  %v2845_v60 = vadd.f32 %v8596_v18, %v2700_v43  ;;  %v3508_v42 = vsel %vm1774_vm8, %v3506_v15, %v3507_v40  ;;  %v8619_v4 = vld [vmem:[#allocation58_spill] sm:$0xff]  ;;  %s7676_s19 = sld [smem:[#allocation3 + $0x56]] }
 0x33c   : > { %v2880_v27 = vsel %vm829_vm12, %v2876_v20, %v8615_v56  ;;  %3518 = vrot.lane.b32.xlu1 %v3511_v13, %s4263_s7  ;;  %v3656_v45 = vmul.f32 %v7531_v25, %v3653_v36  ;;  %v915_v20 = vadd.f32 %v8617_v33, %v751_v62  ;;  %v7658_v9 = vmul.f32 %v7291_v6, %v8610_v14  ;;  %v8620_v18 = vld [vmem:[#allocation102_spill] sm:$0xff] }
 0x33d   : > { %v7649_v16 = vadd.f32 %v2880_v27, %v8616_v55  ;;  %v3272_v12 = vrot.slane %v3259_v51, 5  ;;  %8618 = vst [vmem:[#allocation95_spill] sm:$0xff] %v7660_v24  ;;  %v3513_v31 = vsel %vm1774_vm8, %v3507_v40, %v3512_v47  ;;  %v1056_v46 = vsel %vm1055_vm2, %v8620_v18, %v8619_v4  ;;  %v8621_v55 = vld [vmem:[#allocation165_spill] sm:$0xff]  ;;  %v8622_v33 = vld [vmem:[#allocation174_spill] sm:$0xff] }
 0x33e   : > { %v2847_v5 = vadd.f32 %v8603_v53, %v2702_v17  ;;  %v3666_v62 = vrot.slane %v3654_v1, 6  ;;  %v3276_v8 = vrot.slane %v3261_v41, 5  ;;  %v3671_v43 = vsel %vm1774_vm8, %v3669_v3, %v3670_v7  ;;  %v8623_v41 = vld [vmem:[#allocation54_spill] sm:$0xff] }
 0x33f   : > { %v2982_v13 = vpop.permute.xlu0 %2981  ;;  %3516 = vrot.lane.b32.xlu0 %v3508_v42, %s4263_s7  ;;  %v3273_v51 = vsel %vm311_vm0, %v3271_v30, %v3272_v12  ;;  %v3674_v27 = vrot.slane %v3659_v39, 6  ;;  %v3667_v47 = vrot.slane %v3656_v45, 6  ;;  %v3658_v24 = vmul.f32 %v8611_v32, %v3653_v36  ;;  %v8624_v30 = vld [vmem:[#allocation73_spill] sm:$0xff] }
 0x340   : > { %v2988_v15 = vadd.f32 %v2982_v13, %v2845_v60  ;;  %3522 = vrot.lane.b32.xlu1 %v3515_v28, %s4263_s7  ;;  %v2990_v42 = vadd.f32 %v8621_v55, %v2847_v5  ;;  %v1336_v4 = vrot.slane %v7608_v54, 4  ;;  %v1337_v17 = vrot.slane %v7658_v9, 4  ;;  %v7686_v54 = vpop.permute.xlu1 %3715  ;;  %v7689_v60 = vld [vmem:[#allocation2 + $0x30] sm:$0xe0]  ;;  %v8625_v5 = vld [vmem:[#allocation60_spill] sm:$0xff] }
 0x341   : > { %v753_v39 = vadd.f32 %v8623_v41, %v7598_v10  ;;  %v1063_v1 = vadd.f32 %v1056_v46, %v915_v20  ;;  %v3277_v32 = vsel %vm311_vm0, %v3272_v12, %v3276_v8  ;;  %v3675_v36 = vsel %vm1774_vm8, %v3670_v7, %v3674_v27  ;;  %v4138_v7 = vld [vmem:[#allocation2 + $0x28] sm:$0xf] }
 0x342   : > { %v3150_v40 = vadd.f32 %v8622_v33, %v2988_v15  ;;  %v3152_v28 = vadd.f32 %v8624_v30, %v2990_v42  ;;  %v3256_v45 = vmul.f32 %v7689_v60, %v7619_v52  ;;  %v3258_v10 = vmul.f32 %v7531_v25, %v7619_v52  ;;  %v8626_v15 = vld [vmem:[#allocation104_spill] sm:$0xff]  ;;  %v8628_v27 = vld [vmem:[#allocation69_spill] sm:$0xff] }
 0x343   : > { %v7678_v53 = vpop.permute.xlu0 %3016  ;;  %3520 = vrot.lane.b32.xlu0 %v3513_v31, %s4263_s7  ;;  %v3668_v9 = vsel %vm1774_vm8, %v3666_v62, %v3667_v47  ;;  %v3672_v31 = vrot.slane %v3658_v24, 6  ;;  %v1338_v18 = vsel %vm1277_vm7, %v1336_v4, %v1337_v17  ;;  %v1326_v46 = vmul.f32 %v4138_v7, %v8610_v14  ;;  %v8627_v24 = vld [vmem:[#allocation42_spill] sm:$0xff] }
 0x344   : > { %v3283_v3 = vadd.f32 %v3273_v51, %v3150_v40  ;;  %3678 = vrot.lane.b32.xlu1 %v3671_v43, %s4264_s16  ;;  %v1057_v8 = vsel %vm1055_vm2, %v8626_v15, %v8625_v5  ;;  %v3285_v51 = vadd.f32 %v3277_v32, %v3152_v28  ;;  %v917_v43 = vadd.f32 %v8627_v24, %v753_v39  ;;  %v8629_v15 = vld [vmem:[#allocation70_spill] sm:$0xff] }
 0x345   : > { %v1224_v42 = vadd.f32 %v8628_v27, %v1063_v1  ;;  %v3268_v40 = vrot.slane %v3256_v45, 5  ;;  %v3269_v4 = vrot.slane %v3258_v10, 5  ;;  %v3673_v14 = vsel %vm1774_vm8, %v3667_v47, %v3672_v31 }
 0x346   : > { %v3423_v20 = vadd.f32 %v7397_v26, %v3283_v3  ;;  %v3425_v41 = vadd.f32 %v7432_v22, %v3285_v51  ;;  %v1065_v32 = vadd.f32 %v1057_v8, %v917_v43  ;;  %v2987_v39 = vadd.f32 %v2982_v13, %v7561_v61 }
 0x347   : > { %v7698_v12 = vpop.permute.xlu0 %3020  ;;  %3676 = vrot.lane.b32.xlu0 %v3668_v9, %s4264_s16  ;;  %v7712_v9 = vld [vmem:[#allocation2 + $0x50] sm:$0x1f]  ;;  %v1341_v45 = vrot.slane %v1326_v46, 4  ;;  %v1348_v31 = vadd.f32 %v1338_v18, %v1224_v42  ;;  %v3270_v7 = vsel %vm311_vm0, %v3268_v40, %v3269_v4 }
 0x348   : > { %3682 = vrot.lane.b32.xlu1 %v3675_v36, %s4264_s16  ;;  %v3568_v62 = vadd.f32 %v7559_v34, %v3423_v20  ;;  %v3260_v28 = vmul.f32 %v7712_v9, %v7619_v52  ;;  %v7716_v36 = vpop.permute.xlu1 %3719  ;;  %v7720_v20 = vstv %s7676_s19  ;;  %v3570_v47 = vadd.f32 %v7601_v63, %v3425_v41 }
 0x349   : > { %v3287_v13 = vmul.f32 %v7689_v60, %v7720_v20  ;;  %v3289_v46 = vmul.f32 %v7531_v25, %v7720_v20  ;;  %v1226_v8 = vadd.f32 %v8629_v15, %v1065_v32  ;;  %v1342_v18 = vsel %vm1277_vm7, %v1337_v17, %v1341_v45 }
 0x34a   : > { %v3728_v3 = vadd.f32 %v7686_v54, %v3568_v62  ;;  %v3730_v5 = vadd.f32 %v7716_v36, %v3570_v47  ;;  %v3274_v61 = vrot.slane %v3260_v28, 5  ;;  %v1498_v43 = vadd.f32 %v8541_v59, %v1348_v31 }
 0x34b   : > { %v3136_v1 = vpop.permute.xlu0 %3135  ;;  %3680 = vrot.lane.b32.xlu0 %v3673_v14, %s4264_s16  ;;  %v3299_v40 = vrot.slane %v3287_v13, 5  ;;  %v3300_v41 = vrot.slane %v3289_v46, 5  ;;  %v3291_v14 = vmul.f32 %v7712_v9, %v7720_v20  ;;  %v3032_v47 = vadd.f32 %v7698_v12, %v7649_v16  ;;  %v8633_v16 = vld [vmem:[#allocation94_spill] sm:$0xff]  ;;  %s3912_s16 = sshll.u32 %s4420_s28, 4 }
 0x34c   : > { %v3143_v10 = vsel %vm1138_vm14, %v3136_v1, %v8622_v33  ;;  %3737 = vrot.lane.b32.xlu1 %v3728_v3, %s4263_s7  ;;  %v2989_v33 = vadd.f32 %v8621_v55, %v7585_v21  ;;  %v3275_v42 = vsel %vm311_vm0, %v3269_v4, %v3274_v61  ;;  %v1350_v3 = vadd.f32 %v1342_v18, %v1226_v8  ;;  %s173_s26 = scalar_lea.vmem [#allocation8], %s3912_s16 }
 0x34d   : > { %v3149_v52 = vadd.f32 %v3143_v10, %v2987_v39  ;;  %v3030_v21 = vadd.f32 %v7678_v53, %v7632_v48  ;;  %v1643_v28 = vadd.f32 %v8553_v23, %v1498_v43  ;;  %v3301_v32 = vsel %vm311_vm0, %v3299_v40, %v3300_v41  ;;  %v8630_v39 = vld [vmem:[#allocation84_spill] sm:$0xff]  ;;  %v8636_v40 = vld [vmem:[#allocation181_spill] sm:$0xff]  ;;  %s3817_s30 = sshll.u32 %s173_s26, 4  ;;  %s7868_s30 = int_to_ptr.vmem [resolvable:$true] %s3817_s30 }
 0x34e   : > { %v3305_v4 = vrot.slane %v3291_v14, 5  ;;  %v1500_v1 = vadd.f32 %v8630_v39, %v1350_v3  ;;  %v8634_v43 = vld [vmem:[#allocation36_spill] sm:$0xff]  ;;  %v8637_v3 = vld [vmem:[#allocation46_spill] sm:$0xff]  ;;  %s4184_s25 = scalar_lea.vmem %s7868_s30, 256 }
 0x34f   : > { %v3140_v51 = vpop.permute.xlu0 %3139  ;;  %v3282_v62 = vadd.f32 %v3270_v7, %v3149_v52  ;;  %v1787_v45 = vadd.f32 %v8579_v37, %v1643_v28  ;;  %v8631_v7 = vld [vmem:[#allocation120_spill] sm:$0xff]  ;;  %p4185_p12 = scmp.ne.s32.totalorder %s7868_s30, %s4184_s25 }
 0x350   : > { %v3144_v24 = vsel %vm1138_vm14, %v3140_v51, %v8624_v30  ;;  %3741 = vrot.lane.b32.xlu1 %v3730_v5, %s4263_s7  ;;  %v2066_v23 = vsel %vm1055_vm2, %v8591_v49, %v8631_v7  ;;  %v8632_v5 = vld [vmem:[#allocation63_spill] sm:$0xff]  ;;  %v3306_v13 = vsel %vm311_vm0, %v3300_v41, %v3305_v4  ;;  %v1645_v46 = vadd.f32 %v8633_v16, %v1500_v1  ;;  %v8638_v4 = vld [vmem:[#allocation138_spill] sm:$0xff] }
 0x351   : > { %v3151_v27 = vadd.f32 %v3144_v24, %v2989_v33  ;;  %v2262_v61 = vmul.f32 %v7291_v6, %v8632_v5  ;;  %v2260_v37 = vmul.f32 %v8587_v29, %v8632_v5  ;;  %v1949_v15 = vadd.f32 %v8580_v38, %v1787_v45  ;;  %v4140_v29 = vld [vmem:[#allocation2 + $0x58] sm:$0x1]  ;;  %p4186_p7 = pnand %p4185_p12, %p8650_p13 }
 0x352   : > { %v1789_v49 = vadd.f32 %v8634_v43, %v1645_v46  ;;  %v2264_v41 = vmul.f32 %v4140_v29, %v8632_v5 }
 0x353   : > { %v3177_v55 = vpop.permute.xlu0 %3176  ;;  %v3284_v17 = vadd.f32 %v3275_v42, %v3151_v27  ;;  %v2073_v33 = vadd.f32 %v2066_v23, %v1949_v15  ;;  %v2275_v18 = vrot.slane %v2262_v61, 1  ;;  %v2274_v24 = vrot.slane %v2260_v37, 1  ;;  %v8635_v42 = vld [vmem:[#allocation122_spill] sm:$0xff]  ;;  %v8639_v37 = vld [vmem:[#allocation155_spill] sm:$0xff]  ;;  %p4187_p3 = pneg %p4186_p7 }
 0x354   : > { %v3184_v30 = vsel %vm1138_vm14, %v3177_v55, %v7332_v44  ;;  %v2067_v14 = vsel %vm1055_vm2, %v8636_v40, %v8635_v42  ;;  %v3288_v15 = vmul.f32 %v7304_v57, %v7720_v20  ;;  %v3292_v57 = vmul.f32 %v8599_v2, %v7720_v20 }
 0x355   : > { %v3190_v59 = vadd.f32 %v3184_v30, %v3030_v21  ;;  %v1951_v21 = vadd.f32 %v8637_v3, %v1789_v49  ;;  %v2177_v38 = vadd.f32 %v8588_v58, %v2073_v33  ;;  %v2276_v55 = vsel %vm471_vm1, %v2274_v24, %v2275_v18 }
 0x356   : > { %v3307_v29 = vrot.slane %v3292_v57, 5 }
 0x357   : > { %v3181_v10 = vpop.permute.xlu0 %3180  ;;  %v7754_v48 = vadd.f32 %v3301_v32, %v3190_v59  ;;  %v2075_v30 = vadd.f32 %v2067_v14, %v1951_v21  ;;  %v2279_v59 = vrot.slane %v2264_v41, 1  ;;  %v2286_v32 = vadd.f32 %v2276_v55, %v2177_v38 }
 0x358   : > { %v3185_v31 = vsel %vm1138_vm14, %v3181_v10, %v7368_v35 }
 0x359   : > { %v3192_v52 = vadd.f32 %v3185_v31, %v3032_v47  ;;  %v2179_v39 = vadd.f32 %v8638_v4, %v2075_v30  ;;  %v2280_v45 = vsel %vm471_vm1, %v2275_v18, %v2279_v59  ;;  %v2436_v10 = vadd.f32 %v8597_v11, %v2286_v32  ;;  %v8642_v18 = vld [vmem:[#allocation121_spill] sm:$0xff]  ;;  %v8646_v4 = vld [vmem:[#allocation184_spill] sm:$0xff] }
 0x35a   : > { %v8644_v30 = vld [vmem:[#allocation89_spill] sm:$0xff] }
 0x35b   : > { %v3409_v8 = vpop.permute.xlu0 %3408  ;;  %v7768_v51 = vadd.f32 %v3306_v13, %v3192_v52  ;;  %v2288_v31 = vadd.f32 %v2280_v45, %v2179_v39  ;;  %v2581_v5 = vadd.f32 %v8601_v0, %v2436_v10  ;;  %v8645_v32 = vld [vmem:[#allocation85_spill] sm:$0xff] }
 0x35c   : > { %v3416_v47 = vsel %vm401_vm9, %v3409_v8, %v7397_v26  ;;  %v8641_v8 = vld [vmem:[#allocation168_spill] sm:$0xff] }
 0x35d   : > { %v3422_v52 = vadd.f32 %v3416_v47, %v3282_v62  ;;  %v2438_v13 = vadd.f32 %v8639_v37, %v2288_v31  ;;  %v2724_v16 = vadd.f32 %v7603_v50, %v2581_v5 }
 0x35f   : > { %v3413_v27 = vpop.permute.xlu0 %3412  ;;  %v2583_v33 = vadd.f32 %v8641_v8, %v2438_v13  ;;  %v2886_v50 = vadd.f32 %v8613_v19, %v2724_v16 }
 0x360   : > { %v3417_v58 = vsel %vm401_vm9, %v3413_v27, %v7432_v22  ;;  %v3290_v22 = vmul.f32 %v7291_v6, %v7720_v20  ;;  %v8643_v27 = vld [vmem:[#allocation187_spill] sm:$0xff] }
 0x361   : > { %v3424_v46 = vadd.f32 %v3417_v58, %v3284_v17  ;;  %v2726_v24 = vadd.f32 %v8642_v18, %v2583_v33  ;;  %v3025_v6 = vsel %vm1055_vm2, %v7698_v12, %v8643_v27  ;;  %v8647_v58 = vld [vmem:[#allocation95_spill] sm:$0xff] }
 0x362   : > { %v3303_v49 = vrot.slane %v3290_v22, 5 }
 0x363   : > { %v3450_v28 = vpop.permute.xlu0 %3449  ;;  %v2888_v42 = vadd.f32 %v8615_v56, %v2726_v24 }
 0x364   : > { %v3308_v38 = vsel %vm311_vm0, %v3303_v49, %v3307_v29 }
 0x365   : > { %v3033_v14 = vadd.f32 %v3025_v6, %v2888_v42 }
 0x367   : > { %v3454_v1 = vpop.permute.xlu0 %3453  ;;  %v3193_v2 = vadd.f32 %v7368_v35, %v3033_v14 }
 0x368   : > { %v3458_v31 = vsel %vm401_vm9, %v3454_v1, %v8646_v4 }
 0x369   : > { %v3316_v56 = vadd.f32 %v3308_v38, %v3193_v2  ;;  %v3465_v37 = vadd.f32 %v3458_v31, %v7768_v51 }
 0x36b   : > { %v3554_v7 = vpop.permute.xlu0 %3553  ;;  %v3466_v39 = vadd.f32 %v8646_v4, %v3316_v56 }
 0x36c   : > { %v3561_v23 = vsel %vm520_vm10, %v3554_v7, %v7559_v34  ;;  %v8640_v34 = vld [vmem:[#allocation106_spill] sm:$0xff] }
 0x36d   : > { %v3567_v61 = vadd.f32 %v3561_v23, %v3422_v52  ;;  %v3024_v0 = vsel %vm1055_vm2, %v7678_v53, %v8640_v34 }
 0x36e   : > { %v3031_v43 = vadd.f32 %v3024_v0, %v2886_v50 }
 0x36f   : > { %v3558_v26 = vpop.permute.xlu0 %3557 }
 0x370   : > { %v3562_v11 = vsel %vm520_vm10, %v3558_v26, %v7601_v63  ;;  %v3302_v63 = vrot.slane %v3288_v15, 5  ;;  %v3191_v40 = vadd.f32 %v7332_v44, %v3031_v43  ;;  %v8648_v43 = vld [vmem:[#allocation179_spill] sm:$0xff] }
 0x371   : > { %v3569_v62 = vadd.f32 %v3562_v11, %v3424_v46 }
 0x372   : > { %v3304_v19 = vsel %vm311_vm0, %v3302_v63, %v3303_v49 }
 0x373   : > { %v3595_v17 = vpop.permute.xlu0 %3594  ;;  %v3314_v21 = vadd.f32 %v3304_v19, %v3191_v40  ;;  %v8649_v19 = vld [vmem:[#allocation72_spill] sm:$0xff] }
 0x374   : > { %v3602_v45 = vsel %vm520_vm10, %v3595_v17, %v8645_v32 }
 0x375   : > { %v3464_v59 = vadd.f32 %v8644_v30, %v3314_v21 }
 0x377   : > { %v3599_v53 = vpop.permute.xlu0 %3598  ;;  %v3609_v35 = vadd.f32 %v8645_v32, %v3464_v59 }
 0x378   : > { %v3603_v23 = vsel %vm520_vm10, %v3599_v53, %v8647_v58 }
 0x379   : > { %v3610_v16 = vadd.f32 %v3603_v23, %v3465_v37 }
 0x37b   : > { %v3714_v41 = vpop.permute.xlu0 %3713 }
 0x37c   : > { %v3721_v3 = vsel %vm681_vm11, %v3714_v41, %v7686_v54  ;;  %v3457_v54 = vsel %vm401_vm9, %v3450_v28, %v8644_v30  ;;  %v3611_v28 = vadd.f32 %v8647_v58, %v3466_v39 }
 0x37d   : > { %v3727_v20 = vadd.f32 %v3721_v3, %v3567_v61  ;;  %v3463_v10 = vadd.f32 %v3457_v54, %v7754_v48 }
 0x37f   : > { %v3718_v12 = vpop.permute.xlu0 %3717  ;;  %3735 = vrot.lane.b32.xlu0 %v3727_v20, %s4263_s7  ;;  %v3608_v52 = vadd.f32 %v3602_v45, %v3463_v10 }
 0x380   : > { %v3722_v44 = vsel %vm681_vm11, %v3718_v12, %v7716_v36 }
 0x381   : > { %v3729_v55 = vadd.f32 %v3722_v44, %v3569_v62 }
 0x383   : > { %3739 = vrot.lane.b32.xlu0 %v3729_v55, %s4263_s7  ;;  %s3996_s7 = sld [smem:[#allocation3 + $0x54]] }
 0x386   : > { %v3756_v47 = vpop.permute.xlu1 %3755 }
 0x387   : > { %v3768_v36 = vadd.f32 %v3756_v47, %v3609_v35 }
 0x389   : > { %v3754_v7 = vpop.permute.xlu0 %3753  ;;  %3777 = vrot.lane.b32.xlu1 %v3768_v36, %s4266_s20  ;;  %v3237_v0 = vstv %s3996_s7 }
 0x38a   : > { %v3761_v5 = vsel %vm520_vm10, %v3754_v7, %v3756_v47  ;;  %v3760_v61 = vpop.permute.xlu1 %3759  ;;  %v3238_v50 = vmul.f32 %v7689_v60, %v3237_v0  ;;  %v3239_v17 = vmul.f32 %v7531_v25, %v3237_v0  ;;  %v3240_v42 = vmul.f32 %v7712_v9, %v3237_v0 }
 0x38b   : > { %v3767_v13 = vadd.f32 %v3761_v5, %v3608_v52  ;;  %v3770_v48 = vadd.f32 %v3760_v61, %v3611_v28 }
 0x38c   : > { %v3244_v27 = vrot.slane %v3238_v50, 5  ;;  %v3245_v6 = vrot.slane %v3239_v17, 5  ;;  %v3247_v3 = vrot.slane %v3240_v42, 5 }
 0x38d   : > { %v3758_v46 = vpop.permute.xlu0 %3757  ;;  %3781 = vrot.lane.b32.xlu1 %v3770_v48, %s4266_s20  ;;  %3775 = vrot.lane.b32.xlu0 %v3767_v13, %s4266_s20 }
 0x38e   : > { %v3762_v1 = vsel %vm520_vm10, %v3758_v46, %v3760_v61  ;;  %v2796_v26 = vpop.permute.xlu1 %2795  ;;  %v3246_v41 = vsel %vm311_vm0, %v3244_v27, %v3245_v6  ;;  %v3248_v9 = vsel %vm311_vm0, %v3245_v6, %v3247_v3 }
 0x38f   : > { %v3769_v11 = vadd.f32 %v3762_v1, %v3610_v16 }
 0x391   : > { %v2794_v62 = vpop.permute.xlu0 %2793  ;;  %3779 = vrot.lane.b32.xlu0 %v3769_v11, %s4266_s20  ;;  %s4024_s20 = sshll.u32 %s4309_s13, 8  ;;  %s4270_s13 = smov [#allocation8]  }
 0x392   : > { %v2800_v15 = vpop.permute.xlu1 %2799  ;;  %v2801_v33 = vsel %vm829_vm12, %v2794_v62, %v2796_v26  ;;  %s7866_s5 = scalar_lea.hbm %s7914_s2, %s4024_s20  ;;  %s4188_s14 = sshll.u32 %s4270_s13, 4  ;;  %s4189_s14 = int_to_ptr.vmem [resolvable:$false] %s4188_s14 }
 0x393   : > { %v2805_v63 = vadd.f32 %v2801_v33, %v8648_v43  ;;  %s4190_s17 = scalar_lea.vmem %s4189_s14, 512  ;;  %p4191_p6 = scmp.lt.s32.totalorder %s7868_s30, %s4189_s14 }
 0x394   : > { %p4192_p4 = scmp.lt.s32.totalorder %s4190_s17, %s4184_s25 }
 0x395   : > { %v2798_v22 = vpop.permute.xlu0 %2797 }
 0x396   : > { %v2956_v34 = vpop.permute.xlu1 %2955  ;;  %v2802_v57 = vsel %vm829_vm12, %v2798_v22, %v2800_v15  ;;  %p4193_p5 = por %p4192_p4, %p4191_p6 }
 0x397   : > { %v2806_v25 = vadd.f32 %v2802_v57, %v8649_v19 }
 0x398   : > { %p4194_p0 = pnand %p4193_p5, %p4187_p3 }
 0x399   : > { %v2954_v51 = vpop.permute.xlu0 %2953 }
 0x39a   : > { %v2960_v8 = vpop.permute.xlu1 %2959  ;;  %v2961_v24 = vsel %vm990_vm13, %v2954_v51, %v2956_v34 }
 0x39b   : > { %v2965_v53 = vadd.f32 %v2961_v24, %v2805_v63 }
 0x39d   : > { %v2958_v18 = vpop.permute.xlu0 %2957 }
 0x39e   : > { %v3101_v49 = vpop.permute.xlu1 %3100  ;;  %v2962_v14 = vsel %vm990_vm13, %v2958_v18, %v2960_v8 }
 0x39f   : > { %v2966_v21 = vadd.f32 %v2962_v14, %v2806_v25 }
 0x3a1   : > { %v3099_v40 = vpop.permute.xlu0 %3098 }
 0x3a2   : > { %v3106_v60 = vsel %vm1138_vm14, %v3099_v40, %v3101_v49  ;;  %v3105_v2 = vpop.permute.xlu1 %3104 }
 0x3a3   : > { %v3110_v29 = vadd.f32 %v3106_v60, %v2965_v53 }
 0x3a5   : > { %v3103_v20 = vpop.permute.xlu0 %3102  ;;  %v3251_v38 = vadd.f32 %v3246_v41, %v3110_v29 }
 0x3a6   : > { %v3107_v12 = vsel %vm1138_vm14, %v3103_v20, %v3105_v2  ;;  %v3374_v55 = vpop.permute.xlu1 %3373 }
 0x3a7   : > { %v3111_v44 = vadd.f32 %v3107_v12, %v2966_v21 }
 0x3a9   : > { %v3252_v56 = vadd.f32 %v3248_v9, %v3111_v44  ;;  %v3372_v30 = vpop.permute.xlu0 %3371 }
 0x3aa   : > { %v3378_v59 = vpop.permute.xlu1 %3377  ;;  %v3379_v7 = vsel %vm401_vm9, %v3372_v30, %v3374_v55 }
 0x3ab   : > { %v3383_v28 = vadd.f32 %v3379_v7, %v3251_v38 }
 0x3ad   : > { %v3376_v54 = vpop.permute.xlu0 %3375 }
 0x3ae   : > { %v3519_v32 = vpop.permute.xlu1 %3518  ;;  %v3380_v5 = vsel %vm401_vm9, %v3376_v54, %v3378_v59 }
 0x3af   : > { %v3384_v46 = vadd.f32 %v3380_v5, %v3252_v56 }
 0x3b1   : > { %v3517_v35 = vpop.permute.xlu0 %3516 }
 0x3b2   : > { %v3523_v4 = vpop.permute.xlu1 %3522  ;;  %v3524_v58 = vsel %vm520_vm10, %v3517_v35, %v3519_v32 }
 0x3b3   : > { %v3528_v37 = vadd.f32 %v3524_v58, %v3383_v28 }
 0x3b5   : > { %v3521_v39 = vpop.permute.xlu0 %3520 }
 0x3b6   : > { %v3679_v45 = vpop.permute.xlu1 %3678  ;;  %v3525_v48 = vsel %vm520_vm10, %v3521_v39, %v3523_v4 }
 0x3b7   : > { %v3529_v62 = vadd.f32 %v3525_v48, %v3384_v46 }
 0x3b9   : > { %v3677_v47 = vpop.permute.xlu0 %3676 }
 0x3ba   : > { %v3683_v10 = vpop.permute.xlu1 %3682  ;;  %v3684_v61 = vsel %vm681_vm11, %v3677_v47, %v3679_v45 }
 0x3bb   : > { %v3688_v1 = vadd.f32 %v3684_v61, %v3528_v37 }
 0x3bd   : > { %v3681_v36 = vpop.permute.xlu0 %3680 }
 0x3be   : > { %v3738_v31 = vpop.permute.xlu1 %3737  ;;  %v3685_v11 = vsel %vm681_vm11, %v3681_v36, %v3683_v10 }
 0x3bf   : > { %v3689_v0 = vadd.f32 %v3685_v11, %v3529_v62 }
 0x3c2   : > { %v3742_v23 = vpop.permute.xlu1 %3741 }
 0x3f1   : > { %v3736_v52 = vpop.permute.xlu0 %3735 }
 0x3f2   : > { %v3743_v16 = vsel %vm520_vm10, %v3736_v52, %v3738_v31 }
 0x3f3   : > { %v3747_v15 = vadd.f32 %v3743_v16, %v3688_v1 }
 0x3f5   : > { %v3740_v13 = vpop.permute.xlu0 %3739 }
 0x3f6   : > { %v3744_v34 = vsel %vm520_vm10, %v3740_v13, %v3742_v23 }
 0x3f7   : > { %v3748_v33 = vadd.f32 %v3744_v34, %v3689_v0 }
 0x3fb   : > { %v3778_v26 = vpop.permute.xlu1 %3777 }
 0x3ff   : > { %v3776_v22 = vpop.permute.xlu0 %3775  ;;  %v3782_v50 = vpop.permute.xlu1 %3781 }
 0x400   : > { %v3783_v51 = vsel %vm829_vm12, %v3776_v22, %v3778_v26 }
 0x401   : > { %v3787_v8 = vadd.f32 %v3783_v51, %v3747_v15 }
 0x403   : > { %v4016_v17 = vmul.f32 -1.442695, %v3787_v8  ;;  %v3780_v18 = vpop.permute.xlu0 %3779 }
 0x404   : > { %v3784_v24 = vsel %vm829_vm12, %v3780_v18, %v3782_v50 }
 0x405   : > { %4096 = vpow2.f32 %v4016_v17  ;;  %v3788_v43 = vadd.f32 %v3784_v24, %v3748_v33 }
 0x407   : > { %v4017_v63 = vmul.f32 -1.442695, %v3788_v43 }
 0x409   : > { %4098 = vpow2.f32 %v4017_v63 }
 0x40f   : > { %v4097_v49 = vpop.eup %4096 }
 0x410   : > { %v3795_v57 = vadd.f32 1.0, %v4097_v49 }
 0x412   : > { %4100 = vrcp.f32 %v3795_v57 }
 0x413   : > { %v4099_v27 = vpop.eup %4098 }
 0x414   : > { %v3796_v6 = vadd.f32 1.0, %v4099_v27 }
 0x416   : > { %4102 = vrcp.f32 %v3796_v6 }
 0x41c   : > { %v4101_v42 = vpop.eup %4100 }
 0x41d   : > { %3801 = vst [vmem:[%s173_s26] sm:$0xff] %v4101_v42 }
 0x420   : > { %v4103_v53 = vpop.eup %4102 }
 0x421   : > { %3802 = vst [vmem:[%s173_s26 + $0x8] sm:$0xff] %v4103_v53 }
 0x422   : > { %4197 = shalt.err (!%p4194_p0)
}
 0x423   : > { %s4198_s3 = scalar_lea.hbm %s7866_s5, 256  ;;  %s4202_s6 = scalar_lea.hbm %s7914_s2, 512 }
 0x424   : > { %p4199_p8 = scmp.ne.s32.totalorder %s7866_s5, %s4198_s3  ;;  %p4203_p1 = scmp.lt.u32.totalorder %s7866_s5, %s7914_s2 }
 0x425   : > { %p4204_p2 = scmp.lt.u32.totalorder %s4202_s6, %s4198_s3  ;;  %p4206_p12 = scmp.lt.u32.totalorder %s4198_s3, %s7866_s5 }
 0x426   : > { %p4200_p9 = pnand %p4199_p8, %p8650_p13 }
 0x427   : > { %p4205_p11 = por %p4204_p2, %p4203_p1 }
 0x428   : > { %p4201_p10 = pneg %p4200_p9 }
 0x429   : > { %p4207_p7 = por %p4206_p12, %p4205_p11 }
 0x42b   : > { %p4208_p3 = pnand %p4207_p7, %p4201_p10 }
 0x42d   : > { %4211 = shalt.err (!%p4208_p3)
}
 0x42e   : > { %s4271_s7 = smov 128   ;;  %s4272_s16 = smov 8  }
 0x42f   : > { %4031 = dma.vmem_to_hbm [thread:$0]  (%p8650_p13), %s7868_s30, 256, %s7866_s5, %s3804_s8, %s4271_s7, %s4271_s7, %s4272_s16  }
 0x430 PF: > { %s3832_s20 = sand.u32 1, %s4242_s9   ;;  %p8651_p6 = scmp.ne.s32.totalorder %s8070_s22, 0 }
 0x431   : > { %p8652_p4 = scmp.ge.s32.totalorder %s4254_s12, 2  ;;  %s3833_s26 = scalar_lea.sflag [#allocation5], %s3832_s20 }
 0x433   : > { %p4042_p5 = pnand %p8652_p4, %p8651_p6 }
 0x435   : > { %4237 = dma.done.wait (!%p4042_p5), %s3833_s26, 256  }
 0x436   : > { %4239 = vsyncadd (!%p4042_p5), %s3833_s26, 4294967040  ;;  %p16_p0 = scmp.ge.s32.totalorder %s4313_s15, 4   ;;  %s8653_s9 = smov %s4246_s10 }
 0x437   : > { %s8654_s10 = smov %s4250_s11  ;;  %s8655_s11 = smov %s4325_s18 }
 0x438   : > { %s8656_s12 = smov %s4313_s15  ;;  %18 = sbr.rel (!%p16_p0) target bundleno = 6 (0x6), region = 82 }
 0x43f   :  { %3838 = vsyncpa [#allocation4], 1 }
 0x440   :  { %3840 = vsyncpa [#allocation4 + $0x1], 1 }
 0x441   :  { %3841 = vsyncpa [#allocation5], 1 }
 0x442   :  { %3843 = vsyncpa [#allocation5 + $0x1], 1 }
 0x443   :  { %3844 = vsyncpa [#allocation6], 1 }
 0x444   :  { %3846 = vsyncpa [#allocation6 + $0x1], 1 }

</bundles_post_ra>
